<compile_context>
chip_gen: v7x
topology: tpu7x:2x2x1
jax: 0.10.0
libtpu: 0.0.40
codegen_flags: <defaults>
</compile_context>

<pallas_src>
import functools
import math

import jax
import jax.numpy as jnp
from jax.experimental import pallas as pl
from jax.experimental.pallas import tpu as pltpu

CODE_SIZE = 512

# (cin, cout, kernel, stride, padding, elu) — last (head) layer appended at
# init time with cout = discrete_size.
CONV_CFGS = [
    (CODE_SIZE, CODE_SIZE, 5, 2, 2, True),
    (CODE_SIZE, CODE_SIZE // 2, 3, 2, 1, True),
    (CODE_SIZE // 2, CODE_SIZE // 4, 3, 2, 1, True),
    (CODE_SIZE // 4, CODE_SIZE // 4, 3, 2, 1, True),
    (CODE_SIZE // 4, CODE_SIZE // 8, 3, 2, 1, True),
]


# ----------------------------------------------------------------------------
# In-kernel helpers
# ----------------------------------------------------------------------------
def _conv_transpose_layer(x, w_ref, b_ref, g_ref, shift_buf, cfg):
    """One ConvTranspose1d (+ optional ELU) on a single-batch (L, Cin) tile.

    y[o, :] = bias + sum_{l, k : o == l*stride + k - padding} x[l, :] @ W[k]

    stride > 1 : per-tap z_k = x @ W[k] (fused into one wide matmul when
                 Cout % 128 == 0), then y += G_k @ z_k with host-precomputed
                 exact 0/1 scatter matrices G_k, all in bf16 on the MXU.
    stride == 1: each tap is a pure row shift by (k - padding); accumulate the
                 taps into a zero-guarded VMEM scratch at static sublane
                 offsets instead of an (Lout x Lout) scatter matmul.
    """
    K, stride, padding = cfg["K"], cfg["stride"], cfg["padding"]
    L, Lout, cout = cfg["L"], cfg["Lout"], cfg["cout"]
    x_bf = x.astype(jnp.bfloat16)

    if stride > 1:
        acc = jnp.zeros((Lout, cout), jnp.float32)
        if cfg["fused"]:
            # One wide MXU matmul for all K taps; tap k at lane offset k*Cout
            # (128-aligned because Cout % 128 == 0 for fused layers).
            z_all = jnp.dot(x_bf, w_ref[...],
                            preferred_element_type=jnp.float32)   # (L, K*Cout)
            for k in range(K):
                z_k = z_all[:, k * cout:(k + 1) * cout].astype(jnp.bfloat16)
                acc = acc + jnp.dot(g_ref[k], z_k,
                                    preferred_element_type=jnp.float32)
        else:
            for k in range(K):
                z_k = jnp.dot(x_bf, w_ref[k],
                              preferred_element_type=jnp.float32)  # (L, Cout)
                acc = acc + jnp.dot(g_ref[k], z_k.astype(jnp.bfloat16),
                                    preferred_element_type=jnp.float32)
        y = acc + b_ref[...]
    else:
        # stride == 1: tap k contributes z_k[l] to output row l + (k - padding).
        # Scratch row r corresponds to output row (r - padding); the guard rows
        # at both ends absorb the out-of-range contributions.
        shift_buf[...] = jnp.zeros_like(shift_buf)
        for k in range(K):
            z_k = jnp.dot(x_bf, w_ref[k],
                          preferred_element_type=jnp.float32)      # (L, Cout)
            shift_buf[pl.ds(k, L), :] += z_k
        y = shift_buf[pl.ds(padding, Lout), :] + b_ref[...]

    if cfg["elu"]:
        # ELU(alpha=1): exp(y)-1 under the select is forward-exact.
        y = jnp.where(y > 0.0, y, jnp.exp(y) - 1.0)
    return y


def _fused_forward_kernel(*refs, conv_cfgs, code_size, num_segments, t,
                          has_shift_buf):
    it = iter(refs)
    latent_ref = next(it)
    lin_w_ref = next(it)
    lin_b_ref = next(it)
    layer_refs = []
    for cfg in conv_cfgs:
        w_ref = next(it)
        b_ref = next(it)
        g_ref = next(it) if cfg["stride"] > 1 else None
        layer_refs.append((w_ref, b_ref, g_ref))
    space_ref = next(it)
    out_ref = next(it)
    shift_buf = next(it) if has_shift_buf else None

    # ---- unpack_idea: Linear + tanh (one batch element per grid step) ------
    # lin_w columns are pre-permuted so column (l*code + c) corresponds to
    # torch output feature (c*8 + l); see prepare_params().
    idea = jnp.dot(latent_ref[0].astype(jnp.bfloat16), lin_w_ref[...],
                   preferred_element_type=jnp.float32)
    idea = jnp.tanh(idea + lin_b_ref[...])                    # (1, 8*code)

    # torch's .view(-1, code, 8) in NCW == rows l of an (8, code) NLC tile.
    row8 = jax.lax.broadcasted_iota(jnp.int32, (8, 1), 0)
    h = jnp.zeros((8, code_size), jnp.float32)
    for l in range(8):
        piece = idea[:, l * code_size:(l + 1) * code_size]    # (1, code)
        h = jnp.where(row8 == l, piece, h)

    # ---- make_level: ConvTranspose1d stack (+ELU, except last layer) -------
    for cfg, (w_ref, b_ref, g_ref) in zip(conv_cfgs, layer_refs):
        h = _conv_transpose_layer(h, w_ref, b_ref, g_ref, shift_buf, cfg)

    # ---- head: softmax(h * t) . space  (deterministic t > 0 branch) --------
    hh = h[:num_segments, :] * t                              # (S, D) f32
    m = jnp.max(hh, axis=-1, keepdims=True)
    e = jnp.exp(hh - m)
    denom = jnp.sum(e, axis=-1, keepdims=True)
    p = e * pl.reciprocal(denom, approx=True)
    v = jnp.sum(p * space_ref[...], axis=-1, keepdims=True)   # (S, 1)
    out_ref[0] = v


# ----------------------------------------------------------------------------
# Parameters
# ----------------------------------------------------------------------------
def init_params(key, latent_size, discrete_size):
    """Synthetic parameters in native PyTorch layouts."""
    cfgs = CONV_CFGS + [(CODE_SIZE // 8, discrete_size, 3, 1, 1, False)]
    keys = jax.random.split(key, 2 + 2 * len(cfgs))
    params = {
        # nn.Linear: weight (out, in), bias (out,)
        "lin_w": jax.random.normal(keys[0], (8 * CODE_SIZE, latent_size),
                                   jnp.float32) / math.sqrt(latent_size),
        "lin_b": jax.random.normal(keys[1], (8 * CODE_SIZE,),
                                   jnp.float32) * 0.01,
        "convs": [],
    }
    for i, (cin, cout, k, s, p, elu) in enumerate(cfgs):
        # nn.ConvTranspose1d: weight (Cin, Cout, K), bias (Cout,)
        w = jax.random.normal(keys[2 + 2 * i], (cin, cout, k),
                              jnp.float32) / math.sqrt(cin * k)
        b = jax.random.normal(keys[3 + 2 * i], (cout,), jnp.float32) * 0.01
        params["convs"].append({"w": w, "b": b, "stride": s, "padding": p,
                                "elu": elu})
    return params


def prepare_params(params, latent_size):
    """One-time conversion from PyTorch layouts to kernel layouts (bf16)."""
    code = CODE_SIZE
    # Kernel wants column (l*code + c) <- torch output feature (c*8 + l).
    lin_w = jnp.reshape(
        jnp.transpose(jnp.reshape(params["lin_w"].T, (latent_size, code, 8)),
                      (0, 2, 1)),
        (latent_size, 8 * code)).astype(jnp.bfloat16)
    lin_b = jnp.reshape(jnp.reshape(params["lin_b"], (code, 8)).T,
                        (1, 8 * code)).astype(jnp.float32)

    convs, cfgs = [], []
    L = 8
    for c in params["convs"]:
        cin, cout, K = (int(d) for d in c["w"].shape)
        stride, padding, elu = int(c["stride"]), int(c["padding"]), bool(c["elu"])
        Lout = (L - 1) * stride + K - 2 * padding
        fused = (cout % 128 == 0) and stride > 1

        entry = {"b": jnp.reshape(c["b"], (1, cout)).astype(jnp.float32)}
        if fused:
            # (Cin, Cout, K) -> (Cin, K*Cout): one wide MXU matmul per layer.
            entry["w"] = jnp.transpose(c["w"], (0, 2, 1)).reshape(
                cin, K * cout).astype(jnp.bfloat16)
        else:
            # (Cin, Cout, K) -> (K, Cin, Cout): per-tap matmuls.
            entry["w"] = jnp.transpose(c["w"], (2, 0, 1)).astype(jnp.bfloat16)
        if stride > 1:
            # Exact 0/1 scatter matrices G[k, o, l] = (o == l*stride + k - pad),
            # precomputed host-side in bf16 (exactly representable).
            o = jnp.arange(Lout)[None, :, None]
            l = jnp.arange(L)[None, None, :]
            k = jnp.arange(K)[:, None, None]
            entry["g"] = (o == l * stride + k - padding).astype(jnp.bfloat16)

        convs.append(entry)
        cfgs.append(dict(K=K, stride=stride, padding=padding, elu=elu,
                         fused=fused, cin=cin, cout=cout, L=L, Lout=Lout))
        L = Lout
    return {"lin_w": lin_w, "lin_b": lin_b, "convs": convs,
            "conv_cfgs": tuple(cfgs)}


# ----------------------------------------------------------------------------
# Forward pass (single fused pallas_call, grid over batch)
# ----------------------------------------------------------------------------
def _const_spec(arr):
    """Whole-array block, constant index_map -> stays VMEM-resident over grid."""
    zeros = (0,) * arr.ndim
    return pl.BlockSpec(arr.shape, lambda b, _z=zeros: _z)


def generator_forward(kparams, latent, num_segments, discrete_size, t=1.0):
    assert t > 0.0, "only the deterministic softmax branch (t > 0) is supported"
    B, latent_size = latent.shape
    cfgs = kparams["conv_cfgs"]
    assert cfgs[-1]["cout"] == discrete_size
    assert 0 < num_segments <= cfgs[-1]["Lout"]

    space = jnp.linspace(-1.0, 1.0, discrete_size,
                         dtype=jnp.float32).reshape(1, discrete_size)
    latent3 = latent.astype(jnp.float32).reshape(B, 1, latent_size)

    inputs = [latent3, kparams["lin_w"], kparams["lin_b"]]
    in_specs = [pl.BlockSpec((1, 1, latent_size), lambda b: (b, 0, 0)),
                _const_spec(kparams["lin_w"]),
                _const_spec(kparams["lin_b"])]
    for entry, cfg in zip(kparams["convs"], cfgs):
        inputs.append(entry["w"]); in_specs.append(_const_spec(entry["w"]))
        inputs.append(entry["b"]); in_specs.append(_const_spec(entry["b"]))
        if cfg["stride"] > 1:
            inputs.append(entry["g"]); in_specs.append(_const_spec(entry["g"]))
    inputs.append(space); in_specs.append(_const_spec(space))

    # Scratch for stride==1 layers: (L + K - 1) rows = Lout + 2*padding rows
    # (guard rows at both ends absorb clipped contributions).
    s1 = [cfg for cfg in cfgs if cfg["stride"] == 1]
    scratch_shapes = []
    if s1:
        rows = max(cfg["L"] + cfg["K"] - 1 for cfg in s1)
        cols = s1[0]["cout"]
        assert all(cfg["cout"] == cols for cfg in s1)
        scratch_shapes.append(pltpu.VMEM((rows, cols), jnp.float32))

    kernel = functools.partial(
        _fused_forward_kernel, conv_cfgs=cfgs, code_size=CODE_SIZE,
        num_segments=int(num_segments), t=float(t), has_shift_buf=bool(s1))

    out_vals = pl.pallas_call(
        kernel,
        out_shape=jax.ShapeDtypeStruct((B, num_segments, 1), jnp.float32),
        grid_spec=pltpu.PrefetchScalarGridSpec(
            num_scalar_prefetch=0,
            grid=(B,),
            in_specs=in_specs,
            out_specs=pl.BlockSpec((1, num_segments, 1), lambda b: (b, 0, 0)),
            scratch_shapes=scratch_shapes),
        compiler_params=pltpu.CompilerParams(
            dimension_semantics=("parallel",),
            vmem_limit_bytes=32 * 1024 * 1024),
    )(*inputs)

    # Pairwise aux reduction in the wrapper (needs all batch elements; tiny).
    # Matches torch exactly: 0.5 * mean_s |v_i - v_j|, summed, / (B(B-1)/8).
    v = out_vals[..., 0]                                        # (B, S)
    aux = 0.5 * jnp.mean(jnp.abs(v[None, :, :] - v[:, None, :]), axis=-1)
    aux_loss = jnp.sum(aux) / (B * (B - 1) / 8.0)

    out = jnp.concatenate([out_vals, jnp.zeros_like(out_vals)], axis=-1)
    return out, -aux_loss


# ----------------------------------------------------------------------------
if __name__ == "__main__":
    latent_size = 32
    discrete_size = 32
    num_segments = 64
    batch = 2

    key = jax.random.PRNGKey(0)
    pkey, xkey = jax.random.split(key)
    params = init_params(pkey, latent_size, discrete_size)
    kparams = prepare_params(params, latent_size)
    latent = jax.random.normal(xkey, (batch, latent_size), jnp.float32)

    out, neg_aux = generator_forward(kparams, latent, num_segments,
                                     discrete_size, t=1.0)
    jax.block_until_ready((out, neg_aux))

    assert out.shape == (batch, num_segments, 2)
    assert out.dtype == jnp.float32
    assert neg_aux.shape == ()
    assert bool(jnp.all(jnp.isfinite(out)))
    assert bool(jnp.isfinite(neg_aux))
    print("KERNEL_OK")
</pallas_src>

<mosaic_0001>
module attributes {stable_mosaic.version = 11 : i64} {
  func.func @_fused_forward_kernel(%arg0: i32, %arg1: memref<1x1x32xf32, #tpu.memory_space<vmem>>, %arg2: memref<32x4096xbf16, #tpu.memory_space<vmem>>, %arg3: memref<1x4096xf32, #tpu.memory_space<vmem>>, %arg4: memref<512x2560xbf16, #tpu.memory_space<vmem>>, %arg5: memref<1x512xf32, #tpu.memory_space<vmem>>, %arg6: memref<5x15x8xbf16, #tpu.memory_space<vmem>>, %arg7: memref<512x768xbf16, #tpu.memory_space<vmem>>, %arg8: memref<1x256xf32, #tpu.memory_space<vmem>>, %arg9: memref<3x29x15xbf16, #tpu.memory_space<vmem>>, %arg10: memref<256x384xbf16, #tpu.memory_space<vmem>>, %arg11: memref<1x128xf32, #tpu.memory_space<vmem>>, %arg12: memref<3x57x29xbf16, #tpu.memory_space<vmem>>, %arg13: memref<128x384xbf16, #tpu.memory_space<vmem>>, %arg14: memref<1x128xf32, #tpu.memory_space<vmem>>, %arg15: memref<3x113x57xbf16, #tpu.memory_space<vmem>>, %arg16: memref<3x128x64xbf16, #tpu.memory_space<vmem>>, %arg17: memref<1x64xf32, #tpu.memory_space<vmem>>, %arg18: memref<3x225x113xbf16, #tpu.memory_space<vmem>>, %arg19: memref<3x64x32xbf16, #tpu.memory_space<vmem>>, %arg20: memref<1x32xf32, #tpu.memory_space<vmem>>, %arg21: memref<1x32xf32, #tpu.memory_space<vmem>>, %arg22: memref<1x64x1xf32, #tpu.memory_space<vmem>>, %arg23: memref<227x32xf32, #tpu.memory_space<vmem>>) attributes {dimension_semantics = [#tpu.dimension_semantics<parallel>], iteration_bounds = array<i64: 2>, scalar_prefetch = 0 : i64, scratch_operands = 1 : i64, tpu.core_type = #tpu.core_type<tc>, window_params = [{transform_indices = @transform_0, window_bounds = array<i64: 1, 1, 32>}, {pipeline_mode = #tpu.pipeline_mode<synchronous>, transform_indices = @transform_1, window_bounds = array<i64: 32, 4096>}, {pipeline_mode = #tpu.pipeline_mode<synchronous>, transform_indices = @transform_2, window_bounds = array<i64: 1, 4096>}, {pipeline_mode = #tpu.pipeline_mode<synchronous>, transform_indices = @transform_3, window_bounds = array<i64: 512, 2560>}, {pipeline_mode = #tpu.pipeline_mode<synchronous>, transform_indices = @transform_4, window_bounds = array<i64: 1, 512>}, {pipeline_mode = #tpu.pipeline_mode<synchronous>, transform_indices = @transform_5, window_bounds = array<i64: 5, 15, 8>}, {pipeline_mode = #tpu.pipeline_mode<synchronous>, transform_indices = @transform_6, window_bounds = array<i64: 512, 768>}, {pipeline_mode = #tpu.pipeline_mode<synchronous>, transform_indices = @transform_7, window_bounds = array<i64: 1, 256>}, {pipeline_mode = #tpu.pipeline_mode<synchronous>, transform_indices = @transform_8, window_bounds = array<i64: 3, 29, 15>}, {pipeline_mode = #tpu.pipeline_mode<synchronous>, transform_indices = @transform_9, window_bounds = array<i64: 256, 384>}, {pipeline_mode = #tpu.pipeline_mode<synchronous>, transform_indices = @transform_10, window_bounds = array<i64: 1, 128>}, {pipeline_mode = #tpu.pipeline_mode<synchronous>, transform_indices = @transform_11, window_bounds = array<i64: 3, 57, 29>}, {pipeline_mode = #tpu.pipeline_mode<synchronous>, transform_indices = @transform_12, window_bounds = array<i64: 128, 384>}, {pipeline_mode = #tpu.pipeline_mode<synchronous>, transform_indices = @transform_13, window_bounds = array<i64: 1, 128>}, {pipeline_mode = #tpu.pipeline_mode<synchronous>, transform_indices = @transform_14, window_bounds = array<i64: 3, 113, 57>}, {pipeline_mode = #tpu.pipeline_mode<synchronous>, transform_indices = @transform_15, window_bounds = array<i64: 3, 128, 64>}, {pipeline_mode = #tpu.pipeline_mode<synchronous>, transform_indices = @transform_16, window_bounds = array<i64: 1, 64>}, {pipeline_mode = #tpu.pipeline_mode<synchronous>, transform_indices = @transform_17, window_bounds = array<i64: 3, 225, 113>}, {pipeline_mode = #tpu.pipeline_mode<synchronous>, transform_indices = @transform_18, window_bounds = array<i64: 3, 64, 32>}, {pipeline_mode = #tpu.pipeline_mode<synchronous>, transform_indices = @transform_19, window_bounds = array<i64: 1, 32>}, {pipeline_mode = #tpu.pipeline_mode<synchronous>, transform_indices = @transform_20, window_bounds = array<i64: 1, 32>}, {transform_indices = @transform_21, window_bounds = array<i64: 1, 64, 1>}]} {
    %c0 = arith.constant 0 : index
    %c0_0 = arith.constant 0 : index
    %c0_1 = arith.constant 0 : index
    %0 = vector.load %arg1[%c0, %c0_0, %c0_1] : memref<1x1x32xf32, #tpu.memory_space<vmem>>, vector<1x1x32xf32>
    %1 = vector.shape_cast %0 : vector<1x1x32xf32> to vector<1x32xf32>
    %2 = arith.truncf %1 : vector<1x32xf32> to vector<1x32xbf16>
    %c0_2 = arith.constant 0 : index
    %c0_3 = arith.constant 0 : index
    %3 = vector.load %arg2[%c0_2, %c0_3] : memref<32x4096xbf16, #tpu.memory_space<vmem>>, vector<32x4096xbf16>
    %cst = arith.constant dense<0.000000e+00> : vector<1x4096xf32>
    %4 = tpu.matmul %2, %3, %cst {dimension_numbers = #tpu.dot_dimension_numbers<[1], [0], [0], [1], [0, 0, 1, 1], [], []>} : vector<1x32xbf16>, vector<32x4096xbf16>, vector<1x4096xf32> -> vector<1x4096xf32>
    %c0_4 = arith.constant 0 : index
    %c0_5 = arith.constant 0 : index
    %5 = vector.load %arg3[%c0_4, %c0_5] : memref<1x4096xf32, #tpu.memory_space<vmem>>, vector<1x4096xf32>
    %6 = arith.addf %4, %5 : vector<1x4096xf32>
    %7 = math.tanh %6 : vector<1x4096xf32>
    %8 = tpu.iota {dimensions = array<i32: 0>} : vector<8x1xi32>
    %cst_6 = arith.constant 0.000000e+00 : f32
    %9 = vector.broadcast %cst_6 : f32 to vector<8x512xf32>
    %10 = vector.extract_strided_slice %7 {offsets = [0, 0], sizes = [1, 512], strides = [1, 1]} : vector<1x4096xf32> to vector<1x512xf32>
    %c0_i32 = arith.constant 0 : i32
    %11 = vector.broadcast %c0_i32 : i32 to vector<8x1xi32>
    %12 = arith.cmpi eq, %8, %11 : vector<8x1xi32>
    %13 = vector.shape_cast %12 : vector<8x1xi1> to vector<8x1xi1>
    %14 = vector.broadcast %13 : vector<8x1xi1> to vector<8x512xi1>
    %15 = vector.shape_cast %10 : vector<1x512xf32> to vector<1x512xf32>
    %16 = vector.broadcast %15 : vector<1x512xf32> to vector<8x512xf32>
    %17 = arith.select %14, %16, %9 : vector<8x512xi1>, vector<8x512xf32>
    %18 = vector.extract_strided_slice %7 {offsets = [0, 512], sizes = [1, 512], strides = [1, 1]} : vector<1x4096xf32> to vector<1x512xf32>
    %c1_i32 = arith.constant 1 : i32
    %19 = vector.broadcast %c1_i32 : i32 to vector<8x1xi32>
    %20 = arith.cmpi eq, %8, %19 : vector<8x1xi32>
    %21 = vector.shape_cast %20 : vector<8x1xi1> to vector<8x1xi1>
    %22 = vector.broadcast %21 : vector<8x1xi1> to vector<8x512xi1>
    %23 = vector.shape_cast %18 : vector<1x512xf32> to vector<1x512xf32>
    %24 = vector.broadcast %23 : vector<1x512xf32> to vector<8x512xf32>
    %25 = arith.select %22, %24, %17 : vector<8x512xi1>, vector<8x512xf32>
    %26 = vector.extract_strided_slice %7 {offsets = [0, 1024], sizes = [1, 512], strides = [1, 1]} : vector<1x4096xf32> to vector<1x512xf32>
    %c2_i32 = arith.constant 2 : i32
    %27 = vector.broadcast %c2_i32 : i32 to vector<8x1xi32>
    %28 = arith.cmpi eq, %8, %27 : vector<8x1xi32>
    %29 = vector.shape_cast %28 : vector<8x1xi1> to vector<8x1xi1>
    %30 = vector.broadcast %29 : vector<8x1xi1> to vector<8x512xi1>
    %31 = vector.shape_cast %26 : vector<1x512xf32> to vector<1x512xf32>
    %32 = vector.broadcast %31 : vector<1x512xf32> to vector<8x512xf32>
    %33 = arith.select %30, %32, %25 : vector<8x512xi1>, vector<8x512xf32>
    %34 = vector.extract_strided_slice %7 {offsets = [0, 1536], sizes = [1, 512], strides = [1, 1]} : vector<1x4096xf32> to vector<1x512xf32>
    %c3_i32 = arith.constant 3 : i32
    %35 = vector.broadcast %c3_i32 : i32 to vector<8x1xi32>
    %36 = arith.cmpi eq, %8, %35 : vector<8x1xi32>
    %37 = vector.shape_cast %36 : vector<8x1xi1> to vector<8x1xi1>
    %38 = vector.broadcast %37 : vector<8x1xi1> to vector<8x512xi1>
    %39 = vector.shape_cast %34 : vector<1x512xf32> to vector<1x512xf32>
    %40 = vector.broadcast %39 : vector<1x512xf32> to vector<8x512xf32>
    %41 = arith.select %38, %40, %33 : vector<8x512xi1>, vector<8x512xf32>
    %42 = vector.extract_strided_slice %7 {offsets = [0, 2048], sizes = [1, 512], strides = [1, 1]} : vector<1x4096xf32> to vector<1x512xf32>
    %c4_i32 = arith.constant 4 : i32
    %43 = vector.broadcast %c4_i32 : i32 to vector<8x1xi32>
    %44 = arith.cmpi eq, %8, %43 : vector<8x1xi32>
    %45 = vector.shape_cast %44 : vector<8x1xi1> to vector<8x1xi1>
    %46 = vector.broadcast %45 : vector<8x1xi1> to vector<8x512xi1>
    %47 = vector.shape_cast %42 : vector<1x512xf32> to vector<1x512xf32>
    %48 = vector.broadcast %47 : vector<1x512xf32> to vector<8x512xf32>
    %49 = arith.select %46, %48, %41 : vector<8x512xi1>, vector<8x512xf32>
    %50 = vector.extract_strided_slice %7 {offsets = [0, 2560], sizes = [1, 512], strides = [1, 1]} : vector<1x4096xf32> to vector<1x512xf32>
    %c5_i32 = arith.constant 5 : i32
    %51 = vector.broadcast %c5_i32 : i32 to vector<8x1xi32>
    %52 = arith.cmpi eq, %8, %51 : vector<8x1xi32>
    %53 = vector.shape_cast %52 : vector<8x1xi1> to vector<8x1xi1>
    %54 = vector.broadcast %53 : vector<8x1xi1> to vector<8x512xi1>
    %55 = vector.shape_cast %50 : vector<1x512xf32> to vector<1x512xf32>
    %56 = vector.broadcast %55 : vector<1x512xf32> to vector<8x512xf32>
    %57 = arith.select %54, %56, %49 : vector<8x512xi1>, vector<8x512xf32>
    %58 = vector.extract_strided_slice %7 {offsets = [0, 3072], sizes = [1, 512], strides = [1, 1]} : vector<1x4096xf32> to vector<1x512xf32>
    %c6_i32 = arith.constant 6 : i32
    %59 = vector.broadcast %c6_i32 : i32 to vector<8x1xi32>
    %60 = arith.cmpi eq, %8, %59 : vector<8x1xi32>
    %61 = vector.shape_cast %60 : vector<8x1xi1> to vector<8x1xi1>
    %62 = vector.broadcast %61 : vector<8x1xi1> to vector<8x512xi1>
    %63 = vector.shape_cast %58 : vector<1x512xf32> to vector<1x512xf32>
    %64 = vector.broadcast %63 : vector<1x512xf32> to vector<8x512xf32>
    %65 = arith.select %62, %64, %57 : vector<8x512xi1>, vector<8x512xf32>
    %66 = vector.extract_strided_slice %7 {offsets = [0, 3584], sizes = [1, 512], strides = [1, 1]} : vector<1x4096xf32> to vector<1x512xf32>
    %c7_i32 = arith.constant 7 : i32
    %67 = vector.broadcast %c7_i32 : i32 to vector<8x1xi32>
    %68 = arith.cmpi eq, %8, %67 : vector<8x1xi32>
    %69 = vector.shape_cast %68 : vector<8x1xi1> to vector<8x1xi1>
    %70 = vector.broadcast %69 : vector<8x1xi1> to vector<8x512xi1>
    %71 = vector.shape_cast %66 : vector<1x512xf32> to vector<1x512xf32>
    %72 = vector.broadcast %71 : vector<1x512xf32> to vector<8x512xf32>
    %73 = arith.select %70, %72, %65 : vector<8x512xi1>, vector<8x512xf32>
    %74 = arith.truncf %73 : vector<8x512xf32> to vector<8x512xbf16>
    %cst_7 = arith.constant 0.000000e+00 : f32
    %75 = vector.broadcast %cst_7 : f32 to vector<15x512xf32>
    %c0_8 = arith.constant 0 : index
    %c0_9 = arith.constant 0 : index
    %76 = vector.load %arg4[%c0_8, %c0_9] : memref<512x2560xbf16, #tpu.memory_space<vmem>>, vector<512x2560xbf16>
    %cst_10 = arith.constant dense<0.000000e+00> : vector<8x2560xf32>
    %77 = tpu.matmul %74, %76, %cst_10 {dimension_numbers = #tpu.dot_dimension_numbers<[1], [0], [0], [1], [0, 0, 1, 1], [], []>} : vector<8x512xbf16>, vector<512x2560xbf16>, vector<8x2560xf32> -> vector<8x2560xf32>
    %78 = vector.extract_strided_slice %77 {offsets = [0, 0], sizes = [8, 512], strides = [1, 1]} : vector<8x2560xf32> to vector<8x512xf32>
    %79 = arith.truncf %78 : vector<8x512xf32> to vector<8x512xbf16>
    %c0_11 = arith.constant 0 : index
    %c0_12 = arith.constant 0 : index
    %c0_13 = arith.constant 0 : index
    %80 = vector.load %arg6[%c0_11, %c0_12, %c0_13] : memref<5x15x8xbf16, #tpu.memory_space<vmem>>, vector<1x15x8xbf16>
    %81 = vector.shape_cast %80 : vector<1x15x8xbf16> to vector<15x8xbf16>
    %cst_14 = arith.constant dense<0.000000e+00> : vector<15x512xf32>
    %82 = tpu.matmul %81, %79, %cst_14 {dimension_numbers = #tpu.dot_dimension_numbers<[1], [0], [0], [1], [0, 0, 1, 1], [], []>} : vector<15x8xbf16>, vector<8x512xbf16>, vector<15x512xf32> -> vector<15x512xf32>
    %83 = arith.addf %75, %82 : vector<15x512xf32>
    %84 = vector.extract_strided_slice %77 {offsets = [0, 512], sizes = [8, 512], strides = [1, 1]} : vector<8x2560xf32> to vector<8x512xf32>
    %85 = arith.truncf %84 : vector<8x512xf32> to vector<8x512xbf16>
    %c1 = arith.constant 1 : index
    %c0_15 = arith.constant 0 : index
    %c0_16 = arith.constant 0 : index
    %86 = vector.load %arg6[%c1, %c0_15, %c0_16] : memref<5x15x8xbf16, #tpu.memory_space<vmem>>, vector<1x15x8xbf16>
    %87 = vector.shape_cast %86 : vector<1x15x8xbf16> to vector<15x8xbf16>
    %cst_17 = arith.constant dense<0.000000e+00> : vector<15x512xf32>
    %88 = tpu.matmul %87, %85, %cst_17 {dimension_numbers = #tpu.dot_dimension_numbers<[1], [0], [0], [1], [0, 0, 1, 1], [], []>} : vector<15x8xbf16>, vector<8x512xbf16>, vector<15x512xf32> -> vector<15x512xf32>
    %89 = arith.addf %83, %88 : vector<15x512xf32>
    %90 = vector.extract_strided_slice %77 {offsets = [0, 1024], sizes = [8, 512], strides = [1, 1]} : vector<8x2560xf32> to vector<8x512xf32>
    %91 = arith.truncf %90 : vector<8x512xf32> to vector<8x512xbf16>
    %c2 = arith.constant 2 : index
    %c0_18 = arith.constant 0 : index
    %c0_19 = arith.constant 0 : index
    %92 = vector.load %arg6[%c2, %c0_18, %c0_19] : memref<5x15x8xbf16, #tpu.memory_space<vmem>>, vector<1x15x8xbf16>
    %93 = vector.shape_cast %92 : vector<1x15x8xbf16> to vector<15x8xbf16>
    %cst_20 = arith.constant dense<0.000000e+00> : vector<15x512xf32>
    %94 = tpu.matmul %93, %91, %cst_20 {dimension_numbers = #tpu.dot_dimension_numbers<[1], [0], [0], [1], [0, 0, 1, 1], [], []>} : vector<15x8xbf16>, vector<8x512xbf16>, vector<15x512xf32> -> vector<15x512xf32>
    %95 = arith.addf %89, %94 : vector<15x512xf32>
    %96 = vector.extract_strided_slice %77 {offsets = [0, 1536], sizes = [8, 512], strides = [1, 1]} : vector<8x2560xf32> to vector<8x512xf32>
    %97 = arith.truncf %96 : vector<8x512xf32> to vector<8x512xbf16>
    %c3 = arith.constant 3 : index
    %c0_21 = arith.constant 0 : index
    %c0_22 = arith.constant 0 : index
    %98 = vector.load %arg6[%c3, %c0_21, %c0_22] : memref<5x15x8xbf16, #tpu.memory_space<vmem>>, vector<1x15x8xbf16>
    %99 = vector.shape_cast %98 : vector<1x15x8xbf16> to vector<15x8xbf16>
    %cst_23 = arith.constant dense<0.000000e+00> : vector<15x512xf32>
    %100 = tpu.matmul %99, %97, %cst_23 {dimension_numbers = #tpu.dot_dimension_numbers<[1], [0], [0], [1], [0, 0, 1, 1], [], []>} : vector<15x8xbf16>, vector<8x512xbf16>, vector<15x512xf32> -> vector<15x512xf32>
    %101 = arith.addf %95, %100 : vector<15x512xf32>
    %102 = vector.extract_strided_slice %77 {offsets = [0, 2048], sizes = [8, 512], strides = [1, 1]} : vector<8x2560xf32> to vector<8x512xf32>
    %103 = arith.truncf %102 : vector<8x512xf32> to vector<8x512xbf16>
    %c4 = arith.constant 4 : index
    %c0_24 = arith.constant 0 : index
    %c0_25 = arith.constant 0 : index
    %104 = vector.load %arg6[%c4, %c0_24, %c0_25] : memref<5x15x8xbf16, #tpu.memory_space<vmem>>, vector<1x15x8xbf16>
    %105 = vector.shape_cast %104 : vector<1x15x8xbf16> to vector<15x8xbf16>
    %cst_26 = arith.constant dense<0.000000e+00> : vector<15x512xf32>
    %106 = tpu.matmul %105, %103, %cst_26 {dimension_numbers = #tpu.dot_dimension_numbers<[1], [0], [0], [1], [0, 0, 1, 1], [], []>} : vector<15x8xbf16>, vector<8x512xbf16>, vector<15x512xf32> -> vector<15x512xf32>
    %107 = arith.addf %101, %106 : vector<15x512xf32>
    %c0_27 = arith.constant 0 : index
    %c0_28 = arith.constant 0 : index
    %108 = vector.load %arg5[%c0_27, %c0_28] : memref<1x512xf32, #tpu.memory_space<vmem>>, vector<1x512xf32>
    %109 = vector.broadcast %108 : vector<1x512xf32> to vector<15x512xf32>
    %110 = arith.addf %107, %109 : vector<15x512xf32>
    %cst_29 = arith.constant 0.000000e+00 : f32
    %111 = vector.broadcast %cst_29 : f32 to vector<15x512xf32>
    %112 = arith.cmpf ogt, %110, %111 : vector<15x512xf32>
    %113 = math.exp %110 : vector<15x512xf32>
    %cst_30 = arith.constant 1.000000e+00 : f32
    %114 = vector.broadcast %cst_30 : f32 to vector<15x512xf32>
    %115 = arith.subf %113, %114 : vector<15x512xf32>
    %116 = arith.select %112, %110, %115 : vector<15x512xi1>, vector<15x512xf32>
    %117 = arith.truncf %116 : vector<15x512xf32> to vector<15x512xbf16>
    %cst_31 = arith.constant 0.000000e+00 : f32
    %118 = vector.broadcast %cst_31 : f32 to vector<29x256xf32>
    %c0_32 = arith.constant 0 : index
    %c0_33 = arith.constant 0 : index
    %119 = vector.load %arg7[%c0_32, %c0_33] : memref<512x768xbf16, #tpu.memory_space<vmem>>, vector<512x768xbf16>
    %cst_34 = arith.constant dense<0.000000e+00> : vector<15x768xf32>
    %120 = tpu.matmul %117, %119, %cst_34 {dimension_numbers = #tpu.dot_dimension_numbers<[1], [0], [0], [1], [0, 0, 1, 1], [], []>} : vector<15x512xbf16>, vector<512x768xbf16>, vector<15x768xf32> -> vector<15x768xf32>
    %121 = vector.extract_strided_slice %120 {offsets = [0, 0], sizes = [15, 256], strides = [1, 1]} : vector<15x768xf32> to vector<15x256xf32>
    %122 = arith.truncf %121 : vector<15x256xf32> to vector<15x256xbf16>
    %c0_35 = arith.constant 0 : index
    %c0_36 = arith.constant 0 : index
    %c0_37 = arith.constant 0 : index
    %123 = vector.load %arg9[%c0_35, %c0_36, %c0_37] : memref<3x29x15xbf16, #tpu.memory_space<vmem>>, vector<1x29x15xbf16>
    %124 = vector.shape_cast %123 : vector<1x29x15xbf16> to vector<29x15xbf16>
    %cst_38 = arith.constant dense<0.000000e+00> : vector<29x256xf32>
    %125 = tpu.matmul %124, %122, %cst_38 {dimension_numbers = #tpu.dot_dimension_numbers<[1], [0], [0], [1], [0, 0, 1, 1], [], []>} : vector<29x15xbf16>, vector<15x256xbf16>, vector<29x256xf32> -> vector<29x256xf32>
    %126 = arith.addf %118, %125 : vector<29x256xf32>
    %127 = vector.extract_strided_slice %120 {offsets = [0, 256], sizes = [15, 256], strides = [1, 1]} : vector<15x768xf32> to vector<15x256xf32>
    %128 = arith.truncf %127 : vector<15x256xf32> to vector<15x256xbf16>
    %c1_39 = arith.constant 1 : index
    %c0_40 = arith.constant 0 : index
    %c0_41 = arith.constant 0 : index
    %129 = vector.load %arg9[%c1_39, %c0_40, %c0_41] : memref<3x29x15xbf16, #tpu.memory_space<vmem>>, vector<1x29x15xbf16>
    %130 = vector.shape_cast %129 : vector<1x29x15xbf16> to vector<29x15xbf16>
    %cst_42 = arith.constant dense<0.000000e+00> : vector<29x256xf32>
    %131 = tpu.matmul %130, %128, %cst_42 {dimension_numbers = #tpu.dot_dimension_numbers<[1], [0], [0], [1], [0, 0, 1, 1], [], []>} : vector<29x15xbf16>, vector<15x256xbf16>, vector<29x256xf32> -> vector<29x256xf32>
    %132 = arith.addf %126, %131 : vector<29x256xf32>
    %133 = vector.extract_strided_slice %120 {offsets = [0, 512], sizes = [15, 256], strides = [1, 1]} : vector<15x768xf32> to vector<15x256xf32>
    %134 = arith.truncf %133 : vector<15x256xf32> to vector<15x256xbf16>
    %c2_43 = arith.constant 2 : index
    %c0_44 = arith.constant 0 : index
    %c0_45 = arith.constant 0 : index
    %135 = vector.load %arg9[%c2_43, %c0_44, %c0_45] : memref<3x29x15xbf16, #tpu.memory_space<vmem>>, vector<1x29x15xbf16>
    %136 = vector.shape_cast %135 : vector<1x29x15xbf16> to vector<29x15xbf16>
    %cst_46 = arith.constant dense<0.000000e+00> : vector<29x256xf32>
    %137 = tpu.matmul %136, %134, %cst_46 {dimension_numbers = #tpu.dot_dimension_numbers<[1], [0], [0], [1], [0, 0, 1, 1], [], []>} : vector<29x15xbf16>, vector<15x256xbf16>, vector<29x256xf32> -> vector<29x256xf32>
    %138 = arith.addf %132, %137 : vector<29x256xf32>
    %c0_47 = arith.constant 0 : index
    %c0_48 = arith.constant 0 : index
    %139 = vector.load %arg8[%c0_47, %c0_48] : memref<1x256xf32, #tpu.memory_space<vmem>>, vector<1x256xf32>
    %140 = vector.broadcast %139 : vector<1x256xf32> to vector<29x256xf32>
    %141 = arith.addf %138, %140 : vector<29x256xf32>
    %cst_49 = arith.constant 0.000000e+00 : f32
    %142 = vector.broadcast %cst_49 : f32 to vector<29x256xf32>
    %143 = arith.cmpf ogt, %141, %142 : vector<29x256xf32>
    %144 = math.exp %141 : vector<29x256xf32>
    %cst_50 = arith.constant 1.000000e+00 : f32
    %145 = vector.broadcast %cst_50 : f32 to vector<29x256xf32>
    %146 = arith.subf %144, %145 : vector<29x256xf32>
    %147 = arith.select %143, %141, %146 : vector<29x256xi1>, vector<29x256xf32>
    %148 = arith.truncf %147 : vector<29x256xf32> to vector<29x256xbf16>
    %cst_51 = arith.constant 0.000000e+00 : f32
    %149 = vector.broadcast %cst_51 : f32 to vector<57x128xf32>
    %c0_52 = arith.constant 0 : index
    %c0_53 = arith.constant 0 : index
    %150 = vector.load %arg10[%c0_52, %c0_53] : memref<256x384xbf16, #tpu.memory_space<vmem>>, vector<256x384xbf16>
    %cst_54 = arith.constant dense<0.000000e+00> : vector<29x384xf32>
    %151 = tpu.matmul %148, %150, %cst_54 {dimension_numbers = #tpu.dot_dimension_numbers<[1], [0], [0], [1], [0, 0, 1, 1], [], []>} : vector<29x256xbf16>, vector<256x384xbf16>, vector<29x384xf32> -> vector<29x384xf32>
    %152 = vector.extract_strided_slice %151 {offsets = [0, 0], sizes = [29, 128], strides = [1, 1]} : vector<29x384xf32> to vector<29x128xf32>
    %153 = arith.truncf %152 : vector<29x128xf32> to vector<29x128xbf16>
    %c0_55 = arith.constant 0 : index
    %c0_56 = arith.constant 0 : index
    %c0_57 = arith.constant 0 : index
    %154 = vector.load %arg12[%c0_55, %c0_56, %c0_57] : memref<3x57x29xbf16, #tpu.memory_space<vmem>>, vector<1x57x29xbf16>
    %155 = vector.shape_cast %154 : vector<1x57x29xbf16> to vector<57x29xbf16>
    %cst_58 = arith.constant dense<0.000000e+00> : vector<57x128xf32>
    %156 = tpu.matmul %155, %153, %cst_58 {dimension_numbers = #tpu.dot_dimension_numbers<[1], [0], [0], [1], [0, 0, 1, 1], [], []>} : vector<57x29xbf16>, vector<29x128xbf16>, vector<57x128xf32> -> vector<57x128xf32>
    %157 = arith.addf %149, %156 : vector<57x128xf32>
    %158 = vector.extract_strided_slice %151 {offsets = [0, 128], sizes = [29, 128], strides = [1, 1]} : vector<29x384xf32> to vector<29x128xf32>
    %159 = arith.truncf %158 : vector<29x128xf32> to vector<29x128xbf16>
    %c1_59 = arith.constant 1 : index
    %c0_60 = arith.constant 0 : index
    %c0_61 = arith.constant 0 : index
    %160 = vector.load %arg12[%c1_59, %c0_60, %c0_61] : memref<3x57x29xbf16, #tpu.memory_space<vmem>>, vector<1x57x29xbf16>
    %161 = vector.shape_cast %160 : vector<1x57x29xbf16> to vector<57x29xbf16>
    %cst_62 = arith.constant dense<0.000000e+00> : vector<57x128xf32>
    %162 = tpu.matmul %161, %159, %cst_62 {dimension_numbers = #tpu.dot_dimension_numbers<[1], [0], [0], [1], [0, 0, 1, 1], [], []>} : vector<57x29xbf16>, vector<29x128xbf16>, vector<57x128xf32> -> vector<57x128xf32>
    %163 = arith.addf %157, %162 : vector<57x128xf32>
    %164 = vector.extract_strided_slice %151 {offsets = [0, 256], sizes = [29, 128], strides = [1, 1]} : vector<29x384xf32> to vector<29x128xf32>
    %165 = arith.truncf %164 : vector<29x128xf32> to vector<29x128xbf16>
    %c2_63 = arith.constant 2 : index
    %c0_64 = arith.constant 0 : index
    %c0_65 = arith.constant 0 : index
    %166 = vector.load %arg12[%c2_63, %c0_64, %c0_65] : memref<3x57x29xbf16, #tpu.memory_space<vmem>>, vector<1x57x29xbf16>
    %167 = vector.shape_cast %166 : vector<1x57x29xbf16> to vector<57x29xbf16>
    %cst_66 = arith.constant dense<0.000000e+00> : vector<57x128xf32>
    %168 = tpu.matmul %167, %165, %cst_66 {dimension_numbers = #tpu.dot_dimension_numbers<[1], [0], [0], [1], [0, 0, 1, 1], [], []>} : vector<57x29xbf16>, vector<29x128xbf16>, vector<57x128xf32> -> vector<57x128xf32>
    %169 = arith.addf %163, %168 : vector<57x128xf32>
    %c0_67 = arith.constant 0 : index
    %c0_68 = arith.constant 0 : index
    %170 = vector.load %arg11[%c0_67, %c0_68] : memref<1x128xf32, #tpu.memory_space<vmem>>, vector<1x128xf32>
    %171 = vector.broadcast %170 : vector<1x128xf32> to vector<57x128xf32>
    %172 = arith.addf %169, %171 : vector<57x128xf32>
    %cst_69 = arith.constant 0.000000e+00 : f32
    %173 = vector.broadcast %cst_69 : f32 to vector<57x128xf32>
    %174 = arith.cmpf ogt, %172, %173 : vector<57x128xf32>
    %175 = math.exp %172 : vector<57x128xf32>
    %cst_70 = arith.constant 1.000000e+00 : f32
    %176 = vector.broadcast %cst_70 : f32 to vector<57x128xf32>
    %177 = arith.subf %175, %176 : vector<57x128xf32>
    %178 = arith.select %174, %172, %177 : vector<57x128xi1>, vector<57x128xf32>
    %179 = arith.truncf %178 : vector<57x128xf32> to vector<57x128xbf16>
    %cst_71 = arith.constant 0.000000e+00 : f32
    %180 = vector.broadcast %cst_71 : f32 to vector<113x128xf32>
    %c0_72 = arith.constant 0 : index
    %c0_73 = arith.constant 0 : index
    %181 = vector.load %arg13[%c0_72, %c0_73] : memref<128x384xbf16, #tpu.memory_space<vmem>>, vector<128x384xbf16>
    %cst_74 = arith.constant dense<0.000000e+00> : vector<57x384xf32>
    %182 = tpu.matmul %179, %181, %cst_74 {dimension_numbers = #tpu.dot_dimension_numbers<[1], [0], [0], [1], [0, 0, 1, 1], [], []>} : vector<57x128xbf16>, vector<128x384xbf16>, vector<57x384xf32> -> vector<57x384xf32>
    %183 = vector.extract_strided_slice %182 {offsets = [0, 0], sizes = [57, 128], strides = [1, 1]} : vector<57x384xf32> to vector<57x128xf32>
    %184 = arith.truncf %183 : vector<57x128xf32> to vector<57x128xbf16>
    %c0_75 = arith.constant 0 : index
    %c0_76 = arith.constant 0 : index
    %c0_77 = arith.constant 0 : index
    %185 = vector.load %arg15[%c0_75, %c0_76, %c0_77] : memref<3x113x57xbf16, #tpu.memory_space<vmem>>, vector<1x113x57xbf16>
    %186 = vector.shape_cast %185 : vector<1x113x57xbf16> to vector<113x57xbf16>
    %cst_78 = arith.constant dense<0.000000e+00> : vector<113x128xf32>
    %187 = tpu.matmul %186, %184, %cst_78 {dimension_numbers = #tpu.dot_dimension_numbers<[1], [0], [0], [1], [0, 0, 1, 1], [], []>} : vector<113x57xbf16>, vector<57x128xbf16>, vector<113x128xf32> -> vector<113x128xf32>
    %188 = arith.addf %180, %187 : vector<113x128xf32>
    %189 = vector.extract_strided_slice %182 {offsets = [0, 128], sizes = [57, 128], strides = [1, 1]} : vector<57x384xf32> to vector<57x128xf32>
    %190 = arith.truncf %189 : vector<57x128xf32> to vector<57x128xbf16>
    %c1_79 = arith.constant 1 : index
    %c0_80 = arith.constant 0 : index
    %c0_81 = arith.constant 0 : index
    %191 = vector.load %arg15[%c1_79, %c0_80, %c0_81] : memref<3x113x57xbf16, #tpu.memory_space<vmem>>, vector<1x113x57xbf16>
    %192 = vector.shape_cast %191 : vector<1x113x57xbf16> to vector<113x57xbf16>
    %cst_82 = arith.constant dense<0.000000e+00> : vector<113x128xf32>
    %193 = tpu.matmul %192, %190, %cst_82 {dimension_numbers = #tpu.dot_dimension_numbers<[1], [0], [0], [1], [0, 0, 1, 1], [], []>} : vector<113x57xbf16>, vector<57x128xbf16>, vector<113x128xf32> -> vector<113x128xf32>
    %194 = arith.addf %188, %193 : vector<113x128xf32>
    %195 = vector.extract_strided_slice %182 {offsets = [0, 256], sizes = [57, 128], strides = [1, 1]} : vector<57x384xf32> to vector<57x128xf32>
    %196 = arith.truncf %195 : vector<57x128xf32> to vector<57x128xbf16>
    %c2_83 = arith.constant 2 : index
    %c0_84 = arith.constant 0 : index
    %c0_85 = arith.constant 0 : index
    %197 = vector.load %arg15[%c2_83, %c0_84, %c0_85] : memref<3x113x57xbf16, #tpu.memory_space<vmem>>, vector<1x113x57xbf16>
    %198 = vector.shape_cast %197 : vector<1x113x57xbf16> to vector<113x57xbf16>
    %cst_86 = arith.constant dense<0.000000e+00> : vector<113x128xf32>
    %199 = tpu.matmul %198, %196, %cst_86 {dimension_numbers = #tpu.dot_dimension_numbers<[1], [0], [0], [1], [0, 0, 1, 1], [], []>} : vector<113x57xbf16>, vector<57x128xbf16>, vector<113x128xf32> -> vector<113x128xf32>
    %200 = arith.addf %194, %199 : vector<113x128xf32>
    %c0_87 = arith.constant 0 : index
    %c0_88 = arith.constant 0 : index
    %201 = vector.load %arg14[%c0_87, %c0_88] : memref<1x128xf32, #tpu.memory_space<vmem>>, vector<1x128xf32>
    %202 = vector.broadcast %201 : vector<1x128xf32> to vector<113x128xf32>
    %203 = arith.addf %200, %202 : vector<113x128xf32>
    %cst_89 = arith.constant 0.000000e+00 : f32
    %204 = vector.broadcast %cst_89 : f32 to vector<113x128xf32>
    %205 = arith.cmpf ogt, %203, %204 : vector<113x128xf32>
    %206 = math.exp %203 : vector<113x128xf32>
    %cst_90 = arith.constant 1.000000e+00 : f32
    %207 = vector.broadcast %cst_90 : f32 to vector<113x128xf32>
    %208 = arith.subf %206, %207 : vector<113x128xf32>
    %209 = arith.select %205, %203, %208 : vector<113x128xi1>, vector<113x128xf32>
    %210 = arith.truncf %209 : vector<113x128xf32> to vector<113x128xbf16>
    %cst_91 = arith.constant 0.000000e+00 : f32
    %211 = vector.broadcast %cst_91 : f32 to vector<225x64xf32>
    %c0_92 = arith.constant 0 : index
    %c0_93 = arith.constant 0 : index
    %c0_94 = arith.constant 0 : index
    %212 = vector.load %arg16[%c0_92, %c0_93, %c0_94] : memref<3x128x64xbf16, #tpu.memory_space<vmem>>, vector<1x128x64xbf16>
    %213 = vector.shape_cast %212 : vector<1x128x64xbf16> to vector<128x64xbf16>
    %cst_95 = arith.constant dense<0.000000e+00> : vector<113x64xf32>
    %214 = tpu.matmul %210, %213, %cst_95 {dimension_numbers = #tpu.dot_dimension_numbers<[1], [0], [0], [1], [0, 0, 1, 1], [], []>} : vector<113x128xbf16>, vector<128x64xbf16>, vector<113x64xf32> -> vector<113x64xf32>
    %c0_96 = arith.constant 0 : index
    %c0_97 = arith.constant 0 : index
    %c0_98 = arith.constant 0 : index
    %215 = vector.load %arg18[%c0_96, %c0_97, %c0_98] : memref<3x225x113xbf16, #tpu.memory_space<vmem>>, vector<1x225x113xbf16>
    %216 = vector.shape_cast %215 : vector<1x225x113xbf16> to vector<225x113xbf16>
    %217 = arith.truncf %214 : vector<113x64xf32> to vector<113x64xbf16>
    %cst_99 = arith.constant dense<0.000000e+00> : vector<225x64xf32>
    %218 = tpu.matmul %216, %217, %cst_99 {dimension_numbers = #tpu.dot_dimension_numbers<[1], [0], [0], [1], [0, 0, 1, 1], [], []>} : vector<225x113xbf16>, vector<113x64xbf16>, vector<225x64xf32> -> vector<225x64xf32>
    %219 = arith.addf %211, %218 : vector<225x64xf32>
    %c1_100 = arith.constant 1 : index
    %c0_101 = arith.constant 0 : index
    %c0_102 = arith.constant 0 : index
    %220 = vector.load %arg16[%c1_100, %c0_101, %c0_102] : memref<3x128x64xbf16, #tpu.memory_space<vmem>>, vector<1x128x64xbf16>
    %221 = vector.shape_cast %220 : vector<1x128x64xbf16> to vector<128x64xbf16>
    %cst_103 = arith.constant dense<0.000000e+00> : vector<113x64xf32>
    %222 = tpu.matmul %210, %221, %cst_103 {dimension_numbers = #tpu.dot_dimension_numbers<[1], [0], [0], [1], [0, 0, 1, 1], [], []>} : vector<113x128xbf16>, vector<128x64xbf16>, vector<113x64xf32> -> vector<113x64xf32>
    %c1_104 = arith.constant 1 : index
    %c0_105 = arith.constant 0 : index
    %c0_106 = arith.constant 0 : index
    %223 = vector.load %arg18[%c1_104, %c0_105, %c0_106] : memref<3x225x113xbf16, #tpu.memory_space<vmem>>, vector<1x225x113xbf16>
    %224 = vector.shape_cast %223 : vector<1x225x113xbf16> to vector<225x113xbf16>
    %225 = arith.truncf %222 : vector<113x64xf32> to vector<113x64xbf16>
    %cst_107 = arith.constant dense<0.000000e+00> : vector<225x64xf32>
    %226 = tpu.matmul %224, %225, %cst_107 {dimension_numbers = #tpu.dot_dimension_numbers<[1], [0], [0], [1], [0, 0, 1, 1], [], []>} : vector<225x113xbf16>, vector<113x64xbf16>, vector<225x64xf32> -> vector<225x64xf32>
    %227 = arith.addf %219, %226 : vector<225x64xf32>
    %c2_108 = arith.constant 2 : index
    %c0_109 = arith.constant 0 : index
    %c0_110 = arith.constant 0 : index
    %228 = vector.load %arg16[%c2_108, %c0_109, %c0_110] : memref<3x128x64xbf16, #tpu.memory_space<vmem>>, vector<1x128x64xbf16>
    %229 = vector.shape_cast %228 : vector<1x128x64xbf16> to vector<128x64xbf16>
    %cst_111 = arith.constant dense<0.000000e+00> : vector<113x64xf32>
    %230 = tpu.matmul %210, %229, %cst_111 {dimension_numbers = #tpu.dot_dimension_numbers<[1], [0], [0], [1], [0, 0, 1, 1], [], []>} : vector<113x128xbf16>, vector<128x64xbf16>, vector<113x64xf32> -> vector<113x64xf32>
    %c2_112 = arith.constant 2 : index
    %c0_113 = arith.constant 0 : index
    %c0_114 = arith.constant 0 : index
    %231 = vector.load %arg18[%c2_112, %c0_113, %c0_114] : memref<3x225x113xbf16, #tpu.memory_space<vmem>>, vector<1x225x113xbf16>
    %232 = vector.shape_cast %231 : vector<1x225x113xbf16> to vector<225x113xbf16>
    %233 = arith.truncf %230 : vector<113x64xf32> to vector<113x64xbf16>
    %cst_115 = arith.constant dense<0.000000e+00> : vector<225x64xf32>
    %234 = tpu.matmul %232, %233, %cst_115 {dimension_numbers = #tpu.dot_dimension_numbers<[1], [0], [0], [1], [0, 0, 1, 1], [], []>} : vector<225x113xbf16>, vector<113x64xbf16>, vector<225x64xf32> -> vector<225x64xf32>
    %235 = arith.addf %227, %234 : vector<225x64xf32>
    %c0_116 = arith.constant 0 : index
    %c0_117 = arith.constant 0 : index
    %236 = vector.load %arg17[%c0_116, %c0_117] : memref<1x64xf32, #tpu.memory_space<vmem>>, vector<1x64xf32>
    %237 = vector.broadcast %236 : vector<1x64xf32> to vector<225x64xf32>
    %238 = arith.addf %235, %237 : vector<225x64xf32>
    %cst_118 = arith.constant 0.000000e+00 : f32
    %239 = vector.broadcast %cst_118 : f32 to vector<225x64xf32>
    %240 = arith.cmpf ogt, %238, %239 : vector<225x64xf32>
    %241 = math.exp %238 : vector<225x64xf32>
    %cst_119 = arith.constant 1.000000e+00 : f32
    %242 = vector.broadcast %cst_119 : f32 to vector<225x64xf32>
    %243 = arith.subf %241, %242 : vector<225x64xf32>
    %244 = arith.select %240, %238, %243 : vector<225x64xi1>, vector<225x64xf32>
    %245 = arith.truncf %244 : vector<225x64xf32> to vector<225x64xbf16>
    %cst_120 = arith.constant 0.000000e+00 : f32
    %246 = vector.broadcast %cst_120 : f32 to vector<227x32xf32>
    %c0_121 = arith.constant 0 : index
    %c0_122 = arith.constant 0 : index
    %247 = vector.load %arg23[%c0_121, %c0_122] : memref<227x32xf32, #tpu.memory_space<vmem>>, vector<227x32xf32>
    tpu.vector_store %arg23[%c0_121, %c0_122], %246 {strides = array<i32>} : memref<227x32xf32, #tpu.memory_space<vmem>>, vector<227x32xf32>,
    %c0_123 = arith.constant 0 : index
    %c0_124 = arith.constant 0 : index
    %c0_125 = arith.constant 0 : index
    %248 = vector.load %arg19[%c0_123, %c0_124, %c0_125] : memref<3x64x32xbf16, #tpu.memory_space<vmem>>, vector<1x64x32xbf16>
    %249 = vector.shape_cast %248 : vector<1x64x32xbf16> to vector<64x32xbf16>
    %cst_126 = arith.constant dense<0.000000e+00> : vector<225x32xf32>
    %250 = tpu.matmul %245, %249, %cst_126 {dimension_numbers = #tpu.dot_dimension_numbers<[1], [0], [0], [1], [0, 0, 1, 1], [], []>} : vector<225x64xbf16>, vector<64x32xbf16>, vector<225x32xf32> -> vector<225x32xf32>
    %c0_127 = arith.constant 0 : index
    %c0_128 = arith.constant 0 : index
    %251 = vector.load %arg23[%c0_127, %c0_128] : memref<227x32xf32, #tpu.memory_space<vmem>>, vector<225x32xf32>
    %252 = arith.addf %251, %250 : vector<225x32xf32>
    %c0_129 = arith.constant 0 : index
    %c0_130 = arith.constant 0 : index
    %253 = vector.load %arg23[%c0_129, %c0_130] : memref<227x32xf32, #tpu.memory_space<vmem>>, vector<225x32xf32>
    tpu.vector_store %arg23[%c0_129, %c0_130], %252 {strides = array<i32>} : memref<227x32xf32, #tpu.memory_space<vmem>>, vector<225x32xf32>,
    %c1_131 = arith.constant 1 : index
    %c0_132 = arith.constant 0 : index
    %c0_133 = arith.constant 0 : index
    %254 = vector.load %arg19[%c1_131, %c0_132, %c0_133] : memref<3x64x32xbf16, #tpu.memory_space<vmem>>, vector<1x64x32xbf16>
    %255 = vector.shape_cast %254 : vector<1x64x32xbf16> to vector<64x32xbf16>
    %cst_134 = arith.constant dense<0.000000e+00> : vector<225x32xf32>
    %256 = tpu.matmul %245, %255, %cst_134 {dimension_numbers = #tpu.dot_dimension_numbers<[1], [0], [0], [1], [0, 0, 1, 1], [], []>} : vector<225x64xbf16>, vector<64x32xbf16>, vector<225x32xf32> -> vector<225x32xf32>
    %c1_135 = arith.constant 1 : index
    %c0_136 = arith.constant 0 : index
    %257 = vector.load %arg23[%c1_135, %c0_136] : memref<227x32xf32, #tpu.memory_space<vmem>>, vector<225x32xf32>
    %258 = arith.addf %257, %256 : vector<225x32xf32>
    %c1_137 = arith.constant 1 : index
    %c0_138 = arith.constant 0 : index
    %259 = vector.load %arg23[%c1_137, %c0_138] : memref<227x32xf32, #tpu.memory_space<vmem>>, vector<225x32xf32>
    tpu.vector_store %arg23[%c1_137, %c0_138], %258 {strides = array<i32>} : memref<227x32xf32, #tpu.memory_space<vmem>>, vector<225x32xf32>,
    %c2_139 = arith.constant 2 : index
    %c0_140 = arith.constant 0 : index
    %c0_141 = arith.constant 0 : index
    %260 = vector.load %arg19[%c2_139, %c0_140, %c0_141] : memref<3x64x32xbf16, #tpu.memory_space<vmem>>, vector<1x64x32xbf16>
    %261 = vector.shape_cast %260 : vector<1x64x32xbf16> to vector<64x32xbf16>
    %cst_142 = arith.constant dense<0.000000e+00> : vector<225x32xf32>
    %262 = tpu.matmul %245, %261, %cst_142 {dimension_numbers = #tpu.dot_dimension_numbers<[1], [0], [0], [1], [0, 0, 1, 1], [], []>} : vector<225x64xbf16>, vector<64x32xbf16>, vector<225x32xf32> -> vector<225x32xf32>
    %c2_143 = arith.constant 2 : index
    %c0_144 = arith.constant 0 : index
    %263 = vector.load %arg23[%c2_143, %c0_144] : memref<227x32xf32, #tpu.memory_space<vmem>>, vector<225x32xf32>
    %264 = arith.addf %263, %262 : vector<225x32xf32>
    %c2_145 = arith.constant 2 : index
    %c0_146 = arith.constant 0 : index
    %265 = vector.load %arg23[%c2_145, %c0_146] : memref<227x32xf32, #tpu.memory_space<vmem>>, vector<225x32xf32>
    tpu.vector_store %arg23[%c2_145, %c0_146], %264 {strides = array<i32>} : memref<227x32xf32, #tpu.memory_space<vmem>>, vector<225x32xf32>,
    %c1_147 = arith.constant 1 : index
    %c0_148 = arith.constant 0 : index
    %266 = vector.load %arg23[%c1_147, %c0_148] : memref<227x32xf32, #tpu.memory_space<vmem>>, vector<225x32xf32>
    %c0_149 = arith.constant 0 : index
    %c0_150 = arith.constant 0 : index
    %267 = vector.load %arg20[%c0_149, %c0_150] : memref<1x32xf32, #tpu.memory_space<vmem>>, vector<1x32xf32>
    %268 = vector.broadcast %267 : vector<1x32xf32> to vector<225x32xf32>
    %269 = arith.addf %266, %268 : vector<225x32xf32>
    %270 = vector.extract_strided_slice %269 {offsets = [0, 0], sizes = [64, 32], strides = [1, 1]} : vector<225x32xf32> to vector<64x32xf32>
    %cst_151 = arith.constant 1.000000e+00 : f32
    %271 = vector.broadcast %cst_151 : f32 to vector<64x32xf32>
    %272 = arith.mulf %270, %271 : vector<64x32xf32>
    %cst_152 = arith.constant dense<0xFF800000> : vector<64xf32>
    %273 = vector.multi_reduction <maximumf>, %272, %cst_152 [1] : vector<64x32xf32> to vector<64xf32>
    %274 = vector.shape_cast %273 : vector<64xf32> to vector<64x1xf32>
    %275 = vector.broadcast %274 : vector<64x1xf32> to vector<64x32xf32>
    %276 = arith.subf %272, %275 : vector<64x32xf32>
    %277 = math.exp %276 : vector<64x32xf32>
    %cst_153 = arith.constant dense<0.000000e+00> : vector<64xf32>
    %278 = vector.multi_reduction <add>, %277, %cst_153 [1] : vector<64x32xf32> to vector<64xf32>
    %279 = vector.shape_cast %278 : vector<64xf32> to vector<64x1xf32>
    %280 = tpu.reciprocal %279 {approx = true} : vector<64x1xf32> -> vector<64x1xf32>
    %281 = vector.broadcast %280 : vector<64x1xf32> to vector<64x32xf32>
    %282 = arith.mulf %277, %281 : vector<64x32xf32>
    %c0_154 = arith.constant 0 : index
    %c0_155 = arith.constant 0 : index
    %283 = vector.load %arg21[%c0_154, %c0_155] : memref<1x32xf32, #tpu.memory_space<vmem>>, vector<1x32xf32>
    %284 = vector.broadcast %283 : vector<1x32xf32> to vector<64x32xf32>
    %285 = arith.mulf %282, %284 : vector<64x32xf32>
    %cst_156 = arith.constant dense<0.000000e+00> : vector<64xf32>
    %286 = vector.multi_reduction <add>, %285, %cst_156 [1] : vector<64x32xf32> to vector<64xf32>
    %287 = vector.shape_cast %286 : vector<64xf32> to vector<64x1xf32>
    %c0_157 = arith.constant 0 : index
    %c0_158 = arith.constant 0 : index
    %c0_159 = arith.constant 0 : index
    %288 = vector.load %arg22[%c0_157, %c0_158, %c0_159] : memref<1x64x1xf32, #tpu.memory_space<vmem>>, vector<1x64x1xf32>
    %289 = vector.shape_cast %288 : vector<1x64x1xf32> to vector<64x1xf32>
    %290 = vector.shape_cast %287 : vector<64x1xf32> to vector<1x64x1xf32>
    tpu.vector_store %arg22[%c0_157, %c0_158, %c0_159], %290 {strides = array<i32>} : memref<1x64x1xf32, #tpu.memory_space<vmem>>, vector<1x64x1xf32>,
    return
  }
  func.func @transform_0(%arg0: i32) -> (i32, i32, i32) {
    %c0_i32 = arith.constant 0 : i32
    %c0_i32_0 = arith.constant 0 : i32
    %c0_i32_1 = arith.constant 0 : i32
    return %arg0, %c0_i32, %c0_i32_0 : i32, i32, i32
  }
  func.func @transform_1(%arg0: i32) -> (i32, i32) {
    %c0_i32 = arith.constant 0 : i32
    %c0_i32_0 = arith.constant 0 : i32
    %c0_i32_1 = arith.constant 0 : i32
    return %c0_i32, %c0_i32_0 : i32, i32
  }
  func.func @transform_2(%arg0: i32) -> (i32, i32) {
    %c0_i32 = arith.constant 0 : i32
    %c0_i32_0 = arith.constant 0 : i32
    %c0_i32_1 = arith.constant 0 : i32
    return %c0_i32, %c0_i32_0 : i32, i32
  }
  func.func @transform_3(%arg0: i32) -> (i32, i32) {
    %c0_i32 = arith.constant 0 : i32
    %c0_i32_0 = arith.constant 0 : i32
    %c0_i32_1 = arith.constant 0 : i32
    return %c0_i32, %c0_i32_0 : i32, i32
  }
  func.func @transform_4(%arg0: i32) -> (i32, i32) {
    %c0_i32 = arith.constant 0 : i32
    %c0_i32_0 = arith.constant 0 : i32
    %c0_i32_1 = arith.constant 0 : i32
    return %c0_i32, %c0_i32_0 : i32, i32
  }
  func.func @transform_5(%arg0: i32) -> (i32, i32, i32) {
    %c0_i32 = arith.constant 0 : i32
    %c0_i32_0 = arith.constant 0 : i32
    %c0_i32_1 = arith.constant 0 : i32
    %c0_i32_2 = arith.constant 0 : i32
    return %c0_i32, %c0_i32_0, %c0_i32_1 : i32, i32, i32
  }
  func.func @transform_6(%arg0: i32) -> (i32, i32) {
    %c0_i32 = arith.constant 0 : i32
    %c0_i32_0 = arith.constant 0 : i32
    %c0_i32_1 = arith.constant 0 : i32
    return %c0_i32, %c0_i32_0 : i32, i32
  }
  func.func @transform_7(%arg0: i32) -> (i32, i32) {
    %c0_i32 = arith.constant 0 : i32
    %c0_i32_0 = arith.constant 0 : i32
    %c0_i32_1 = arith.constant 0 : i32
    return %c0_i32, %c0_i32_0 : i32, i32
  }
  func.func @transform_8(%arg0: i32) -> (i32, i32, i32) {
    %c0_i32 = arith.constant 0 : i32
    %c0_i32_0 = arith.constant 0 : i32
    %c0_i32_1 = arith.constant 0 : i32
    %c0_i32_2 = arith.constant 0 : i32
    return %c0_i32, %c0_i32_0, %c0_i32_1 : i32, i32, i32
  }
  func.func @transform_9(%arg0: i32) -> (i32, i32) {
    %c0_i32 = arith.constant 0 : i32
    %c0_i32_0 = arith.constant 0 : i32
    %c0_i32_1 = arith.constant 0 : i32
    return %c0_i32, %c0_i32_0 : i32, i32
  }
  func.func @transform_10(%arg0: i32) -> (i32, i32) {
    %c0_i32 = arith.constant 0 : i32
    %c0_i32_0 = arith.constant 0 : i32
    %c0_i32_1 = arith.constant 0 : i32
    return %c0_i32, %c0_i32_0 : i32, i32
  }
  func.func @transform_11(%arg0: i32) -> (i32, i32, i32) {
    %c0_i32 = arith.constant 0 : i32
    %c0_i32_0 = arith.constant 0 : i32
    %c0_i32_1 = arith.constant 0 : i32
    %c0_i32_2 = arith.constant 0 : i32
    return %c0_i32, %c0_i32_0, %c0_i32_1 : i32, i32, i32
  }
  func.func @transform_12(%arg0: i32) -> (i32, i32) {
    %c0_i32 = arith.constant 0 : i32
    %c0_i32_0 = arith.constant 0 : i32
    %c0_i32_1 = arith.constant 0 : i32
    return %c0_i32, %c0_i32_0 : i32, i32
  }
  func.func @transform_13(%arg0: i32) -> (i32, i32) {
    %c0_i32 = arith.constant 0 : i32
    %c0_i32_0 = arith.constant 0 : i32
    %c0_i32_1 = arith.constant 0 : i32
    return %c0_i32, %c0_i32_0 : i32, i32
  }
  func.func @transform_14(%arg0: i32) -> (i32, i32, i32) {
    %c0_i32 = arith.constant 0 : i32
    %c0_i32_0 = arith.constant 0 : i32
    %c0_i32_1 = arith.constant 0 : i32
    %c0_i32_2 = arith.constant 0 : i32
    return %c0_i32, %c0_i32_0, %c0_i32_1 : i32, i32, i32
  }
  func.func @transform_15(%arg0: i32) -> (i32, i32, i32) {
    %c0_i32 = arith.constant 0 : i32
    %c0_i32_0 = arith.constant 0 : i32
    %c0_i32_1 = arith.constant 0 : i32
    %c0_i32_2 = arith.constant 0 : i32
    return %c0_i32, %c0_i32_0, %c0_i32_1 : i32, i32, i32
  }
  func.func @transform_16(%arg0: i32) -> (i32, i32) {
    %c0_i32 = arith.constant 0 : i32
    %c0_i32_0 = arith.constant 0 : i32
    %c0_i32_1 = arith.constant 0 : i32
    return %c0_i32, %c0_i32_0 : i32, i32
  }
  func.func @transform_17(%arg0: i32) -> (i32, i32, i32) {
    %c0_i32 = arith.constant 0 : i32
    %c0_i32_0 = arith.constant 0 : i32
    %c0_i32_1 = arith.constant 0 : i32
    %c0_i32_2 = arith.constant 0 : i32
    return %c0_i32, %c0_i32_0, %c0_i32_1 : i32, i32, i32
  }
  func.func @transform_18(%arg0: i32) -> (i32, i32, i32) {
    %c0_i32 = arith.constant 0 : i32
    %c0_i32_0 = arith.constant 0 : i32
    %c0_i32_1 = arith.constant 0 : i32
    %c0_i32_2 = arith.constant 0 : i32
    return %c0_i32, %c0_i32_0, %c0_i32_1 : i32, i32, i32
  }
  func.func @transform_19(%arg0: i32) -> (i32, i32) {
    %c0_i32 = arith.constant 0 : i32
    %c0_i32_0 = arith.constant 0 : i32
    %c0_i32_1 = arith.constant 0 : i32
    return %c0_i32, %c0_i32_0 : i32, i32
  }
  func.func @transform_20(%arg0: i32) -> (i32, i32) {
    %c0_i32 = arith.constant 0 : i32
    %c0_i32_0 = arith.constant 0 : i32
    %c0_i32_1 = arith.constant 0 : i32
    return %c0_i32, %c0_i32_0 : i32, i32
  }
  func.func @transform_21(%arg0: i32) -> (i32, i32, i32) {
    %c0_i32 = arith.constant 0 : i32
    %c0_i32_0 = arith.constant 0 : i32
    %c0_i32_1 = arith.constant 0 : i32
    return %arg0, %c0_i32, %c0_i32_0 : i32, i32, i32
  }
}

</mosaic_0001>

<bundles_post_ra>
// kernel: tpu_custom_call.1
= control target key start
LH: loop header
LB: loop body
LE: loop exit
PB: predicated region body
PF: predicated region fallthrough
CT: control target
= control target key end

     0   :  { %s21161_s0 = inlined_call_operand.hbm [shape: f32[2,1,32], index: 0, kind: input, shape index: {}]   ;;  %s21162_s1 = inlined_call_operand.hbm [shape: bf16[32,4096], index: 1, kind: input, shape index: {}]   ;;  %s21163_s2 = inlined_call_operand.hbm [shape: f32[1,4096], index: 2, kind: input, shape index: {}]   ;;  %s21164_s3 = inlined_call_operand.hbm [shape: bf16[512,2560], index: 3, kind: input, shape index: {}]   ;;  %s21165_s4 = inlined_call_operand.hbm [shape: f32[1,512], index: 4, kind: input, shape index: {}]   ;;  %s21166_s5 = inlined_call_operand.vmem [shape: bf16[5,15,8], index: 5, kind: input, shape index: {}]   ;;  %s21167_s6 = inlined_call_operand.hbm [shape: bf16[512,768], index: 6, kind: input, shape index: {}]   ;;  %s21168_s7 = inlined_call_operand.hbm [shape: f32[1,256], index: 7, kind: input, shape index: {}]   ;;  %s21169_s8 = inlined_call_operand.vmem [shape: bf16[3,29,15], index: 8, kind: input, shape index: {}]   ;;  %s21170_s9 = inlined_call_operand.hbm [shape: bf16[256,384], index: 9, kind: input, shape index: {}]   ;;  %s21171_s10 = inlined_call_operand.hbm [shape: f32[1,128], index: 10, kind: input, shape index: {}]   ;;  %s21172_s11 = inlined_call_operand.vmem [shape: bf16[3,57,29], index: 11, kind: input, shape index: {}]   ;;  %s21173_s12 = inlined_call_operand.hbm [shape: bf16[128,384], index: 12, kind: input, shape index: {}]   ;;  %s21174_s13 = inlined_call_operand.hbm [shape: f32[1,128], index: 13, kind: input, shape index: {}]   ;;  %s21175_s14 = inlined_call_operand.vmem [shape: bf16[3,113,57], index: 14, kind: input, shape index: {}]   ;;  %s21176_s15 = inlined_call_operand.vmem [shape: bf16[3,128,64], index: 15, kind: input, shape index: {}]   ;;  %s21177_s16 = inlined_call_operand.hbm [shape: f32[1,64], index: 16, kind: input, shape index: {}]   ;;  %s21178_s17 = inlined_call_operand.hbm [shape: bf16[3,225,113], index: 17, kind: input, shape index: {}]   ;;  %s21179_s18 = inlined_call_operand.vmem [shape: bf16[3,64,32], index: 18, kind: input, shape index: {}]   ;;  %s21180_s19 = inlined_call_operand.hbm [shape: f32[1,32], index: 19, kind: input, shape index: {}]   ;;  %s21181_s20 = inlined_call_operand.hbm [shape: f32[1,32], index: 20, kind: input, shape index: {}]   ;;  %s21182_s21 = inlined_call_operand.vmem [shape: f32[2,64,1], index: 21, kind: output, shape index: {}]  }
   0x1   :  { %21201 = sst [smem:[#allocation37_spill]] %s21161_s0 }
   0x2   :  { %21202 = sst [smem:[#allocation38_spill]] %s21162_s1 }
   0x3   :  { %21203 = sst [smem:[#allocation39_spill]] %s21163_s2 }
   0x4   :  { %21204 = sst [smem:[#allocation40_spill]] %s21164_s3 }
   0x5   :  { %21205 = sst [smem:[#allocation41_spill]] %s21165_s4 }
   0x6   :  { %21206 = sst [smem:[#allocation42_spill]] %s21166_s5 }
   0x7   :  { %21207 = sst [smem:[#allocation43_spill]] %s21167_s6 }
   0x8   :  { %21208 = sst [smem:[#allocation44_spill]] %s21169_s8 }
   0x9   :  { %21209 = sst [smem:[#allocation45_spill]] %s21172_s11 }
   0xa   :  { %21210 = sst [smem:[#allocation46_spill]] %s21175_s14 }
   0xb   :  { %21211 = sst [smem:[#allocation47_spill]] %s21176_s15 }
   0xc   :  { %21212 = sst [smem:[#allocation48_spill]] %s21179_s18 }
   0xd   :  { %21213 = sst [smem:[#allocation49_spill]] %s21182_s21 }
   0xe   :  { %26 = vsyncpa [#allocation4], 0 }
   0xf   :  { %28 = vsyncpa [#allocation4 + $0x1], 0 }
  0x10   :  { %29 = vsyncpa [#allocation6], 0 }
  0x11   :  { %30 = vsyncpa [#allocation9], 0 }
  0x12   :  { %31 = vsyncpa [#allocation12], 0 }
  0x13   :  { %32 = vsyncpa [#allocation15], 0 }
  0x14   :  { %33 = vsyncpa [#allocation18], 0 }
  0x15   :  { %34 = vsyncpa [#allocation21], 0 }
  0x16   :  { %35 = vsyncpa [#allocation24], 0  ;;  %s19107_s2 = smov 0   ;;  %s19109_s25 = smov 0  }
  0x17   :  { %s19111_s26 = smov 0   ;;  %s19113_s27 = smov 0  }
  0x18 LB: > { %21214 = sst [smem:[#allocation34_spill]] %s18954_s2  ;;  %s18968_s3 = smov [#allocation5]   ;;  %s18966_s27 = sphi %s19113_s27, %s21258_s27   ;;  %s18962_s26 = sphi %s19111_s26, %s21257_s26   ;;  %s18958_s25 = sphi %s19109_s25, %s21256_s25   ;;  %s18954_s2 = sphi %s19107_s2, %s21255_s2  }
  0x19   : > { %s530_s28 = sshll.u32 %s18968_s3, 4  ;;  %s19128_s29 = sadd.s32 4294967295, %s18966_s27   ;;  %s19133_s28 = int_to_ptr.vmem [resolvable:$true] %s530_s28 }
  0x1a   : > { %21215 = sst [smem:[#allocation35_spill]] %s19128_s29  ;;  %p14032_p0 = scmp.ge.s32.totalorder %s18966_s27, 1 }
  0x1b   : > { %p21197_p1 = scmp.eq.s32.totalorder %s19128_s29, 0  ;;  %p518_p2 = scmp.lt.s32.totalorder %s18966_s27, 3 }
  0x1c   : > { %s18969_s4 = smov [#allocation8]   ;;  %s18970_s22 = smov [#allocation11]  }
  0x1d   : > { %p19135_p3 = pnand %p14032_p0, %p518_p2  ;;  %s554_s30 = sshll.u32 %s18969_s4, 4  ;;  %s19147_s30 = int_to_ptr.vmem [resolvable:$true] %s554_s30 }
  0x1e   : > { %s19149_s23 = sshll.u32 %s18970_s22, 4  ;;  %s21219_s3 = sld [smem:[#allocation38_spill]]  ;;  %s582_s23 = int_to_ptr.vmem [resolvable:$true] %s19149_s23 }
  0x1f   : > { %s21216_s0 = scalar_select %p19135_p3, 1, 0 }
  0x20   : > { %p16642_p4 = pneg %p19135_p3 }
  0x21   : > { %21217 = sst [smem:[#allocation36_spill]] %s21216_s0 }
  0x22   : > { %p19143_p5 = pnand %p16642_p4, %p21197_p1 }
  0x24   : > { %s18482_s21 = scalar_lea.hbm %s21219_s3, 8192  ;;  %p19159_p7 = pneg %p19143_p5 }
  0x25   : > { %p18483_p6 = scmp.ne.s32.totalorder %s21219_s3, %s18482_s21  ;;  %p18489_p10 = scmp.lt.u32.totalorder %s18482_s21, %s21219_s3 }
  0x27   : > { %p18485_p8 = pnand %p19159_p7, %p18483_p6 }
  0x29   : > { %p18486_p9 = pneg %p18485_p8 }
  0x2b   : > { %p18491_p11 = pnand %p18489_p10, %p18486_p9 }
  0x2d   : > { %18494 = shalt.err (!%p18491_p11)
}
  0x2e   : > { %s18495_s15 = scalar_lea.vmem %s19133_s28, 8192  ;;  %p18503_p2 = scmp.lt.s32.totalorder %s19133_s28, %s19133_s28 }
  0x2f   : > { %p18496_p12 = scmp.ne.s32.totalorder %s19133_s28, %s18495_s15  ;;  %p18504_p4 = scmp.lt.s32.totalorder %s18495_s15, %s18495_s15 }
  0x31   : > { %p18498_p13 = pnand %p18496_p12, %p19159_p7  ;;  %p18505_p6 = por %p18504_p4, %p18503_p2 }
  0x33   : > { %p18499_p0 = pneg %p18498_p13 }
  0x35   : > { %p18506_p8 = pnand %p18505_p6, %p18499_p0 }
  0x37   : > { %18509 = shalt.err (!%p18506_p8)
}
  0x38   : > { %s18971_s18 = smov 2048   ;;  %s18972_s14 = smov 128  }
  0x39   : > { %16645 = dma.hbm_to_vmem [thread:$0]  (!%p19143_p5), %s21219_s3, 8192, %s19133_s28, [#allocation6], %s18971_s18, %s18971_s18, %s18972_s14  }
  0x3a   : > { %s21221_s11 = sld [smem:[#allocation40_spill]] }
  0x40   : > { %s18510_s8 = scalar_lea.hbm %s21221_s11, 81920 }
  0x41   : > { %p18511_p9 = scmp.ne.s32.totalorder %s21221_s11, %s18510_s8  ;;  %p18517_p12 = scmp.lt.u32.totalorder %s18510_s8, %s21221_s11 }
  0x43   : > { %p18513_p10 = pnand %p18511_p9, %p19159_p7 }
  0x45   : > { %p18514_p11 = pneg %p18513_p10 }
  0x47   : > { %p18519_p13 = pnand %p18517_p12, %p18514_p11 }
  0x49   : > { %18522 = shalt.err (!%p18519_p13)
}
  0x4a   : > { %s18523_s28 = scalar_lea.vmem %s19147_s30, 81920  ;;  %p18531_p6 = scmp.lt.s32.totalorder %s19147_s30, %s19147_s30 }
  0x4b   : > { %p18524_p0 = scmp.ne.s32.totalorder %s19147_s30, %s18523_s28  ;;  %p18532_p8 = scmp.lt.s32.totalorder %s18523_s28, %s18523_s28 }
  0x4d   : > { %p18526_p2 = pnand %p18524_p0, %p19159_p7  ;;  %p18533_p9 = por %p18532_p8, %p18531_p6 }
  0x4f   : > { %p18527_p4 = pneg %p18526_p2 }
  0x51   : > { %p18534_p10 = pnand %p18533_p9, %p18527_p4 }
  0x53   : > { %18537 = shalt.err (!%p18534_p10)
}
  0x54   : > { %s18973_s29 = smov 1280   ;;  %s18974_s8 = smov 80  }
  0x55   : > { %16651 = dma.hbm_to_vmem [thread:$0]  (!%p19143_p5), %s21221_s11, 81920, %s19147_s30, [#allocation9], %s18973_s29, %s18973_s29, %s18974_s8  }
  0x56   : > { %s21222_s6 = sld [smem:[#allocation43_spill]] }
  0x5c   : > { %s18538_s21 = scalar_lea.hbm %s21222_s6, 24576 }
  0x5d   : > { %p18539_p11 = scmp.ne.s32.totalorder %s21222_s6, %s18538_s21  ;;  %p18545_p0 = scmp.lt.u32.totalorder %s18538_s21, %s21222_s6 }
  0x5f   : > { %p18541_p12 = pnand %p18539_p11, %p19159_p7 }
  0x61   : > { %p18542_p13 = pneg %p18541_p12 }
  0x63   : > { %p18547_p2 = pnand %p18545_p0, %p18542_p13 }
  0x65   : > { %18550 = shalt.err (!%p18547_p2)
}
  0x66   : > { %s18551_s28 = scalar_lea.vmem %s582_s23, 24576  ;;  %p18559_p9 = scmp.lt.s32.totalorder %s582_s23, %s582_s23 }
  0x67   : > { %p18552_p4 = scmp.ne.s32.totalorder %s582_s23, %s18551_s28  ;;  %p18560_p10 = scmp.lt.s32.totalorder %s18551_s28, %s18551_s28 }
  0x69   : > { %p18554_p6 = pnand %p18552_p4, %p19159_p7  ;;  %p18561_p1 = por %p18560_p10, %p18559_p9 }
  0x6b   : > { %p18555_p8 = pneg %p18554_p6 }
  0x6d   : > { %p18562_p3 = pnand %p18561_p1, %p18555_p8 }
  0x6f   : > { %18565 = shalt.err (!%p18562_p3)
}
  0x70   : > { %s18975_s30 = smov 384   ;;  %s18976_s29 = smov 24  }
  0x71   : > { %16657 = dma.hbm_to_vmem [thread:$0]  (!%p19143_p5), %s21222_s6, 24576, %s582_s23, [#allocation12], %s18975_s30, %s18975_s30, %s18976_s29  }
  0x72   : > { %s18977_s0 = smov [#allocation14]   ;;  %s18566_s1 = scalar_lea.hbm %s21170_s9, 6144 }
  0x73   : > { %s608_s18 = sshll.u32 %s18977_s0, 4  ;;  %p18567_p1 = scmp.ne.s32.totalorder %s21170_s9, %s18566_s1  ;;  %s609_s18 = int_to_ptr.vmem [resolvable:$true] %s608_s18 }
  0x74   : > { %p18573_p12 = scmp.lt.u32.totalorder %s18566_s1, %s21170_s9 }
  0x75   : > { %p18569_p3 = pnand %p18567_p1, %p19159_p7 }
  0x77   : > { %p18570_p11 = pneg %p18569_p3 }
  0x79   : > { %p18575_p13 = pnand %p18573_p12, %p18570_p11 }
  0x7b   : > { %18578 = shalt.err (!%p18575_p13)
}
  0x7c   : > { %s18579_s23 = scalar_lea.vmem %s609_s18, 6144  ;;  %p18587_p6 = scmp.lt.s32.totalorder %s609_s18, %s609_s18 }
  0x7d   : > { %p18580_p0 = scmp.ne.s32.totalorder %s609_s18, %s18579_s23  ;;  %p18588_p8 = scmp.lt.s32.totalorder %s18579_s23, %s18579_s23 }
  0x7f   : > { %p18582_p2 = pnand %p18580_p0, %p19159_p7  ;;  %p18589_p9 = por %p18588_p8, %p18587_p6 }
  0x81   : > { %p18583_p4 = pneg %p18582_p2 }
  0x83   : > { %p18590_p10 = pnand %p18589_p9, %p18583_p4 }
  0x85   : > { %18593 = shalt.err (!%p18590_p10)
}
  0x86   : > { %s18978_s30 = smov 192   ;;  %s18979_s29 = smov 12  }
  0x87   : > { %16663 = dma.hbm_to_vmem [thread:$0]  (!%p19143_p5), %s21170_s9, 6144, %s609_s18, [#allocation15], %s18978_s30, %s18978_s30, %s18979_s29  }
  0x88   : > { %s18980_s0 = smov [#allocation17]   ;;  %s18981_s21 = smov [#allocation20]  }
  0x89   : > { %s635_s14 = sshll.u32 %s18980_s0, 4  ;;  %s666_s1 = sshll.u32 %s18981_s21, 4  ;;  %s636_s14 = int_to_ptr.vmem [resolvable:$true] %s635_s14  ;;  %s19240_s1 = int_to_ptr.vmem [resolvable:$true] %s666_s1 }
  0x8a   : > { %s18594_s15 = scalar_lea.hbm %s21173_s12, 3072 }
  0x8b   : > { %p18595_p1 = scmp.ne.s32.totalorder %s21173_s12, %s18594_s15  ;;  %p18601_p12 = scmp.lt.u32.totalorder %s18594_s15, %s21173_s12 }
  0x8d   : > { %p18597_p3 = pnand %p18595_p1, %p19159_p7 }
  0x8f   : > { %p18598_p11 = pneg %p18597_p3 }
  0x91   : > { %p18603_p13 = pnand %p18601_p12, %p18598_p11 }
  0x93   : > { %18606 = shalt.err (!%p18603_p13)
}
  0x94   : > { %s18607_s2 = scalar_lea.vmem %s636_s14, 3072  ;;  %p18615_p6 = scmp.lt.s32.totalorder %s636_s14, %s636_s14 }
  0x95   : > { %p18608_p0 = scmp.ne.s32.totalorder %s636_s14, %s18607_s2  ;;  %p18616_p8 = scmp.lt.s32.totalorder %s18607_s2, %s18607_s2 }
  0x97   : > { %p18610_p2 = pnand %p18608_p0, %p19159_p7  ;;  %p18617_p9 = por %p18616_p8, %p18615_p6 }
  0x99   : > { %p18611_p4 = pneg %p18610_p2 }
  0x9b   : > { %p18618_p10 = pnand %p18617_p9, %p18611_p4 }
  0x9d   : > { %18621 = shalt.err (!%p18618_p10)
}
  0x9e   : > { %16669 = dma.hbm_to_vmem [thread:$0]  (!%p19143_p5), %s21173_s12, 3072, %s636_s14, [#allocation18], %s18978_s30, %s18978_s30, %s18979_s29  }
  0x9f   : > { %s18622_s15 = scalar_lea.hbm %s21177_s16, 16 }
  0xa0   : > { %p18623_p1 = scmp.ne.s32.totalorder %s21177_s16, %s18622_s15  ;;  %p18629_p12 = scmp.lt.u32.totalorder %s18622_s15, %s21177_s16 }
  0xa2   : > { %p18625_p3 = pnand %p18623_p1, %p19159_p7 }
  0xa4   : > { %p18626_p11 = pneg %p18625_p3 }
  0xa6   : > { %p18631_p13 = pnand %p18629_p12, %p18626_p11 }
  0xa8   : > { %18634 = shalt.err (!%p18631_p13)
}
  0xa9   : > { %s18635_s30 = scalar_lea.vmem %s19240_s1, 16  ;;  %s18642_s29 = scalar_lea.vmem %s19240_s1, 32 }
  0xaa   : > { %p18636_p0 = scmp.ne.s32.totalorder %s19240_s1, %s18635_s30  ;;  %p18643_p6 = scmp.lt.s32.totalorder %s19240_s1, %s19240_s1 }
  0xab   : > { %p18644_p8 = scmp.lt.s32.totalorder %s18642_s29, %s18635_s30 }
  0xac   : > { %p18638_p2 = pnand %p18636_p0, %p19159_p7 }
  0xad   : > { %p18645_p9 = por %p18644_p8, %p18643_p6 }
  0xae   : > { %p18639_p4 = pneg %p18638_p2 }
  0xb0   : > { %p18646_p10 = pnand %p18645_p9, %p18639_p4 }
  0xb2   : > { %18649 = shalt.err (!%p18646_p10)
}
  0xb3   : > { %16675 = dma.hbm_to_vmem [thread:$0]  (!%p19143_p5), %s21177_s16, 16, %s19240_s1, [#allocation21]  }
  0xb4   : > { %s18982_s0 = smov [#allocation23]   ;;  %s18983_s24 = smov [#allocation7]  }
  0xb5   : > { %s693_s21 = sshll.u32 %s18982_s0, 4  ;;  %s544_s22 = sshll.u32 %s18983_s24, 4  ;;  %s694_s21 = int_to_ptr.vmem [resolvable:$true] %s693_s21  ;;  %s19284_s22 = int_to_ptr.vmem [resolvable:$true] %s544_s22 }
  0xb6   : > { %s18650_s23 = scalar_lea.hbm %s21180_s19, 16 }
  0xb7   : > { %p18651_p1 = scmp.ne.s32.totalorder %s21180_s19, %s18650_s23  ;;  %p18657_p12 = scmp.lt.u32.totalorder %s18650_s23, %s21180_s19 }
  0xb9   : > { %p18653_p3 = pnand %p18651_p1, %p19159_p7 }
  0xbb   : > { %p18654_p11 = pneg %p18653_p3 }
  0xbd   : > { %p18659_p13 = pnand %p18657_p12, %p18654_p11 }
  0xbf   : > { %18662 = shalt.err (!%p18659_p13)
}
  0xc0   : > { %s18663_s29 = scalar_lea.vmem %s694_s21, 16  ;;  %s18670_s14 = scalar_lea.vmem %s694_s21, 32 }
  0xc1   : > { %p18664_p0 = scmp.ne.s32.totalorder %s694_s21, %s18663_s29  ;;  %p18671_p6 = scmp.lt.s32.totalorder %s694_s21, %s694_s21 }
  0xc2   : > { %p18672_p8 = scmp.lt.s32.totalorder %s18670_s14, %s18663_s29 }
  0xc3   : > { %p18666_p2 = pnand %p18664_p0, %p19159_p7 }
  0xc4   : > { %p18673_p9 = por %p18672_p8, %p18671_p6 }
  0xc5   : > { %p18667_p4 = pneg %p18666_p2 }
  0xc7   : > { %p18674_p10 = pnand %p18673_p9, %p18667_p4 }
  0xc9   : > { %18677 = shalt.err (!%p18674_p10)
}
  0xca   : > { %16681 = dma.hbm_to_vmem [thread:$0]  (!%p19143_p5), %s21180_s19, 16, %s694_s21, [#allocation24]  }
  0xcb   : > { %s21223_s28 = sld [smem:[#allocation39_spill]] }
  0xd1   : > { %s18678_s23 = scalar_lea.hbm %s21223_s28, 512 }
  0xd2   : > { %p18679_p1 = scmp.ne.s32.totalorder %s21223_s28, %s18678_s23  ;;  %p18685_p12 = scmp.lt.u32.totalorder %s18678_s23, %s21223_s28 }
  0xd4   : > { %p18681_p3 = pnand %p18679_p1, %p19159_p7 }
  0xd6   : > { %p18682_p11 = pneg %p18681_p3 }
  0xd8   : > { %p18687_p13 = pnand %p18685_p12, %p18682_p11 }
  0xda   : > { %18690 = shalt.err (!%p18687_p13)
}
  0xdb   : > { %s18691_s21 = scalar_lea.vmem %s19284_s22, 512  ;;  %p18699_p6 = scmp.lt.s32.totalorder %s19284_s22, %s19284_s22 }
  0xdc   : > { %p18692_p0 = scmp.ne.s32.totalorder %s19284_s22, %s18691_s21  ;;  %p18700_p8 = scmp.lt.s32.totalorder %s18691_s21, %s18691_s21 }
  0xde   : > { %p18694_p2 = pnand %p18692_p0, %p19159_p7  ;;  %p18701_p9 = por %p18700_p8, %p18699_p6 }
  0xe0   : > { %p18695_p4 = pneg %p18694_p2 }
  0xe2   : > { %p18702_p10 = pnand %p18701_p9, %p18695_p4 }
  0xe4   : > { %18705 = shalt.err (!%p18702_p10)
}
  0xe5   : > { %16648 = dma.hbm_to_vmem [thread:$0]  (!%p19143_p5), %s21223_s28, 512, %s19284_s22, [#allocation6]  }
  0xe6   : > { %s18984_s2 = smov [#allocation10]   ;;  %s18985_s24 = smov [#allocation13]  }
  0xe7   : > { %s568_s0 = sshll.u32 %s18984_s2, 4  ;;  %s595_s15 = sshll.u32 %s18985_s24, 4  ;;  %s569_s0 = int_to_ptr.vmem [resolvable:$true] %s568_s0  ;;  %s19327_s15 = int_to_ptr.vmem [resolvable:$true] %s595_s15 }
  0xe8   : > { %s21224_s18 = sld [smem:[#allocation41_spill]] }
  0xee   : > { %s18706_s30 = scalar_lea.hbm %s21224_s18, 64 }
  0xef   : > { %p18707_p1 = scmp.ne.s32.totalorder %s21224_s18, %s18706_s30  ;;  %p18713_p12 = scmp.lt.u32.totalorder %s18706_s30, %s21224_s18 }
  0xf1   : > { %p18709_p3 = pnand %p18707_p1, %p19159_p7 }
  0xf3   : > { %p18710_p11 = pneg %p18709_p3 }
  0xf5   : > { %p18715_p13 = pnand %p18713_p12, %p18710_p11 }
  0xf7   : > { %18718 = shalt.err (!%p18715_p13)
}
  0xf8   : > { %s18719_s14 = scalar_lea.vmem %s569_s0, 64  ;;  %p18727_p6 = scmp.lt.s32.totalorder %s569_s0, %s569_s0 }
  0xf9   : > { %p18720_p0 = scmp.ne.s32.totalorder %s569_s0, %s18719_s14  ;;  %p18728_p8 = scmp.lt.s32.totalorder %s18719_s14, %s18719_s14 }
  0xfb   : > { %p18722_p2 = pnand %p18720_p0, %p19159_p7  ;;  %p18729_p9 = por %p18728_p8, %p18727_p6 }
  0xfd   : > { %p18723_p4 = pneg %p18722_p2 }
  0xff   : > { %p18730_p10 = pnand %p18729_p9, %p18723_p4 }
 0x101   : > { %18733 = shalt.err (!%p18730_p10)
}
 0x102   : > { %16654 = dma.hbm_to_vmem [thread:$0]  (!%p19143_p5), %s21224_s18, 64, %s569_s0, [#allocation9]  }
 0x103   : > { %s18734_s30 = scalar_lea.hbm %s21168_s7, 32 }
 0x104   : > { %p18735_p1 = scmp.ne.s32.totalorder %s21168_s7, %s18734_s30  ;;  %p18741_p12 = scmp.lt.u32.totalorder %s18734_s30, %s21168_s7 }
 0x106   : > { %p18737_p3 = pnand %p18735_p1, %p19159_p7 }
 0x108   : > { %p18738_p11 = pneg %p18737_p3 }
 0x10a   : > { %p18743_p13 = pnand %p18741_p12, %p18738_p11 }
 0x10c   : > { %18746 = shalt.err (!%p18743_p13)
}
 0x10d   : > { %s18747_s0 = scalar_lea.vmem %s19327_s15, 32  ;;  %p18755_p6 = scmp.lt.s32.totalorder %s19327_s15, %s19327_s15 }
 0x10e   : > { %p18748_p0 = scmp.ne.s32.totalorder %s19327_s15, %s18747_s0  ;;  %p18756_p8 = scmp.lt.s32.totalorder %s18747_s0, %s18747_s0 }
 0x110   : > { %p18750_p2 = pnand %p18748_p0, %p19159_p7  ;;  %p18757_p9 = por %p18756_p8, %p18755_p6 }
 0x112   : > { %p18751_p4 = pneg %p18750_p2 }
 0x114   : > { %p18758_p10 = pnand %p18757_p9, %p18751_p4 }
 0x116   : > { %18761 = shalt.err (!%p18758_p10)
}
 0x117   : > { %16660 = dma.hbm_to_vmem [thread:$0]  (!%p19143_p5), %s21168_s7, 32, %s19327_s15, [#allocation12]  }
 0x118   : > { %s18986_s24 = smov [#allocation16]   ;;  %s18987_s8 = smov [#allocation19]  }
 0x119   : > { %s622_s23 = sshll.u32 %s18986_s24, 4  ;;  %s649_s30 = sshll.u32 %s18987_s8, 4  ;;  %s623_s23 = int_to_ptr.vmem [resolvable:$true] %s622_s23  ;;  %s19370_s30 = int_to_ptr.vmem [resolvable:$true] %s649_s30 }
 0x11a   : > { %s18762_s29 = scalar_lea.hbm %s21171_s10, 16 }
 0x11b   : > { %p18763_p1 = scmp.ne.s32.totalorder %s21171_s10, %s18762_s29  ;;  %p18769_p12 = scmp.lt.u32.totalorder %s18762_s29, %s21171_s10 }
 0x11d   : > { %p18765_p3 = pnand %p18763_p1, %p19159_p7 }
 0x11f   : > { %p18766_p11 = pneg %p18765_p3 }
 0x121   : > { %p18771_p13 = pnand %p18769_p12, %p18766_p11 }
 0x123   : > { %18774 = shalt.err (!%p18771_p13)
}
 0x124   : > { %s18775_s2 = scalar_lea.vmem %s623_s23, 16  ;;  %s18782_s24 = scalar_lea.vmem %s623_s23, 32 }
 0x125   : > { %p18776_p0 = scmp.ne.s32.totalorder %s623_s23, %s18775_s2  ;;  %p18783_p6 = scmp.lt.s32.totalorder %s623_s23, %s623_s23 }
 0x126   : > { %p18784_p8 = scmp.lt.s32.totalorder %s18782_s24, %s18775_s2 }
 0x127   : > { %p18778_p2 = pnand %p18776_p0, %p19159_p7 }
 0x128   : > { %p18785_p9 = por %p18784_p8, %p18783_p6 }
 0x129   : > { %p18779_p4 = pneg %p18778_p2 }
 0x12b   : > { %p18786_p10 = pnand %p18785_p9, %p18779_p4 }
 0x12d   : > { %18789 = shalt.err (!%p18786_p10)
}
 0x12e   : > { %16666 = dma.hbm_to_vmem [thread:$0]  (!%p19143_p5), %s21171_s10, 16, %s623_s23, [#allocation15]  }
 0x12f   : > { %s18790_s22 = scalar_lea.hbm %s21174_s13, 16 }
 0x130   : > { %p18791_p1 = scmp.ne.s32.totalorder %s21174_s13, %s18790_s22  ;;  %p18797_p12 = scmp.lt.u32.totalorder %s18790_s22, %s21174_s13 }
 0x132   : > { %p18793_p3 = pnand %p18791_p1, %p19159_p7 }
 0x134   : > { %p18794_p11 = pneg %p18793_p3 }
 0x136   : > { %p18799_p13 = pnand %p18797_p12, %p18794_p11 }
 0x138   : > { %18802 = shalt.err (!%p18799_p13)
}
 0x139   : > { %s18803_s23 = scalar_lea.vmem %s19370_s30, 16  ;;  %s18810_s24 = scalar_lea.vmem %s19370_s30, 32 }
 0x13a   : > { %p18804_p0 = scmp.ne.s32.totalorder %s19370_s30, %s18803_s23  ;;  %p18811_p6 = scmp.lt.s32.totalorder %s19370_s30, %s19370_s30 }
 0x13b   : > { %p18812_p8 = scmp.lt.s32.totalorder %s18810_s24, %s18803_s23 }
 0x13c   : > { %p18806_p2 = pnand %p18804_p0, %p19159_p7 }
 0x13d   : > { %p18813_p9 = por %p18812_p8, %p18811_p6 }
 0x13e   : > { %p18807_p4 = pneg %p18806_p2 }
 0x140   : > { %p18814_p10 = pnand %p18813_p9, %p18807_p4 }
 0x142   : > { %18817 = shalt.err (!%p18814_p10)
}
 0x143   : > { %16672 = dma.hbm_to_vmem [thread:$0]  (!%p19143_p5), %s21174_s13, 16, %s19370_s30, [#allocation18]  }
 0x144   : > { %s18988_s21 = smov [#allocation22]   ;;  %s18818_s14 = scalar_lea.hbm %s21178_s17, 5568 }
 0x145   : > { %s676_s29 = sshll.u32 %s18988_s21, 4  ;;  %p18819_p1 = scmp.ne.s32.totalorder %s21178_s17, %s18818_s14  ;;  %s677_s29 = int_to_ptr.vmem [resolvable:$true] %s676_s29 }
 0x146   : > { %p18825_p12 = scmp.lt.u32.totalorder %s18818_s14, %s21178_s17 }
 0x147   : > { %p18821_p3 = pnand %p18819_p1, %p19159_p7 }
 0x149   : > { %p18822_p11 = pneg %p18821_p3 }
 0x14b   : > { %p18827_p13 = pnand %p18825_p12, %p18822_p11 }
 0x14d   : > { %18830 = shalt.err (!%p18827_p13)
}
 0x14e   : > { %s18831_s30 = scalar_lea.vmem %s677_s29, 5568  ;;  %p18839_p6 = scmp.lt.s32.totalorder %s677_s29, %s677_s29 }
 0x14f   : > { %p18832_p0 = scmp.ne.s32.totalorder %s677_s29, %s18831_s30  ;;  %p18840_p8 = scmp.lt.s32.totalorder %s18831_s30, %s18831_s30 }
 0x151   : > { %p18834_p2 = pnand %p18832_p0, %p19159_p7  ;;  %p18841_p9 = por %p18840_p8, %p18839_p6 }
 0x153   : > { %p18835_p4 = pneg %p18834_p2 }
 0x155   : > { %p18842_p10 = pnand %p18841_p9, %p18835_p4 }
 0x157   : > { %18845 = shalt.err (!%p18842_p10)
}
 0x158   : > { %s18989_s8 = smov 64   ;;  %s18990_s1 = smov 4  }
 0x159   : > { %16678 = dma.hbm_to_vmem [thread:$0]  (!%p19143_p5), %s21178_s17, 5568, %s677_s29, [#allocation21], %s18989_s8, %s18989_s8, %s18990_s1  }
 0x15a   : > { %s18991_s0 = smov [#allocation25]   ;;  %s18846_s23 = scalar_lea.hbm %s21181_s20, 16 }
 0x15b   : > { %s704_s14 = sshll.u32 %s18991_s0, 4  ;;  %p18847_p1 = scmp.ne.s32.totalorder %s21181_s20, %s18846_s23  ;;  %s705_s14 = int_to_ptr.vmem [resolvable:$true] %s704_s14 }
 0x15c   : > { %p18853_p12 = scmp.lt.u32.totalorder %s18846_s23, %s21181_s20 }
 0x15d   : > { %p18849_p3 = pnand %p18847_p1, %p19159_p7 }
 0x15f   : > { %p18850_p11 = pneg %p18849_p3 }
 0x161   : > { %p18855_p13 = pnand %p18853_p12, %p18850_p11 }
 0x163   : > { %18858 = shalt.err (!%p18855_p13)
}
 0x164   : > { %s18859_s29 = scalar_lea.vmem %s705_s14, 16  ;;  %s18866_s8 = scalar_lea.vmem %s705_s14, 32 }
 0x165   : > { %p18860_p0 = scmp.ne.s32.totalorder %s705_s14, %s18859_s29  ;;  %p18867_p6 = scmp.lt.s32.totalorder %s705_s14, %s705_s14 }
 0x166   : > { %p18868_p8 = scmp.lt.s32.totalorder %s18866_s8, %s18859_s29 }
 0x167   : > { %p18862_p2 = pnand %p18860_p0, %p19159_p7 }
 0x168   : > { %p18869_p9 = por %p18868_p8, %p18867_p6 }
 0x169   : > { %p18863_p4 = pneg %p18862_p2 }
 0x16b   : > { %p18870_p10 = pnand %p18869_p9, %p18863_p4 }
 0x16d   : > { %18873 = shalt.err (!%p18870_p10)
}
 0x16e   : > { %s21225_s6 = sld [smem:[#allocation34_spill]]  ;;  %s21226_s3 = sld [smem:[#allocation35_spill]] }
 0x16f   : > { %16684 = dma.hbm_to_vmem [thread:$0]  (!%p19143_p5), %s21181_s20, 16, %s705_s14, [#allocation24]  }
 0x170   : > { %s19451_s4 = sadd.s32 1, %s18966_s27   ;;  %s48_s5 = sadd.s32 1, %s18962_s26 }
 0x171   : > { %s45_s22 = ssub.s32 %s18966_s27, %s19451_s4  ;;  %p55_p7 = scmp.ne.s32.totalorder %s18962_s26, %s18958_s25 }
 0x172   : > { %p46_p1 = scmp.eq.s32.totalorder %s45_s22, 0  ;;  %p56_p3 = scmp.eq.s32.totalorder %s18966_s27, 0 }
 0x173   : > { %p16703_p12 = scmp.lt.s32.totalorder %s18966_s27, 2  ;;  %s715_s2 = sand.u32 1, %s18962_s26  }
 0x174   : > { %p61_p11 = scmp.ne.s32.totalorder %s18958_s25, %s21225_s6  ;;  %p57_p13 = por %p56_p3, %p55_p7 }
 0x175   : > { %s19463_s0 = scalar_select %p46_p1, %s18962_s26, %s48_s5  }
 0x176   : > { %p21227_p0 = scmp.eq.s32.totalorder %s21226_s3, 0  ;;  %s14048_s14 = sshll.u32 %s18966_s27, 4 }
 0x177   : > { %s21229_s30 = sld [smem:[#allocation37_spill]]  ;;  %s718_s8 = scalar_lea.vmem [#allocation3], %s715_s2 }
 0x178   : > { %p19467_p2 = por %p21227_p0, %p61_p11  ;;  %s725_s1 = sshll.u32 %s718_s8, 4  ;;  %s19478_s1 = int_to_ptr.vmem [resolvable:$true] %s725_s1 }
 0x179   : > { %p19480_p5 = pnand %p16703_p12, %p57_p13  ;;  %s716_s27 = scalar_lea.sflag [#allocation4], %s715_s2 }
 0x17b   : > { %p18876_p6 = pneg %p19480_p5 }
 0x17d   : > { %s19476_s29 = scalar_lea.hbm %s21229_s30, %s14048_s14  ;;  %s18879_s22 = scalar_lea.hbm %s21229_s30, 32 }
 0x17e   : > { %s18874_s6 = scalar_lea.hbm %s19476_s29, 16  ;;  %p18880_p10 = scmp.lt.u32.totalorder %s19476_s29, %s21229_s30 }
 0x17f   : > { %p18875_p4 = scmp.ne.s32.totalorder %s19476_s29, %s18874_s6  ;;  %p18881_p7 = scmp.lt.u32.totalorder %s18879_s22, %s18874_s6 }
 0x180   : > { %p18883_p3 = scmp.lt.u32.totalorder %s18874_s6, %s19476_s29 }
 0x181   : > { %p18877_p8 = pnand %p18876_p6, %p18875_p4  ;;  %p18882_p1 = por %p18881_p7, %p18880_p10 }
 0x183   : > { %p18878_p9 = pneg %p18877_p8  ;;  %p18884_p11 = por %p18883_p3, %p18882_p1 }
 0x185   : > { %p18885_p12 = pnand %p18884_p11, %p18878_p9 }
 0x187   : > { %18888 = shalt.err (!%p18885_p12)
}
 0x188   : > { %s18889_s2 = scalar_lea.vmem %s19478_s1, 16  ;;  %s18992_s24 = smov [#allocation3]  }
 0x189   : > { %p18890_p13 = scmp.ne.s32.totalorder %s19478_s1, %s18889_s2  ;;  %s18894_s8 = sshll.u32 %s18992_s24, 4  ;;  %s18895_s8 = int_to_ptr.vmem [resolvable:$false] %s18894_s8 }
 0x18a   : > { %s18896_s3 = scalar_lea.vmem %s18895_s8, 32  ;;  %p18897_p8 = scmp.lt.s32.totalorder %s19478_s1, %s18895_s8 }
 0x18b   : > { %p18892_p0 = pnand %p18890_p13, %p18876_p6  ;;  %p18898_p10 = scmp.lt.s32.totalorder %s18896_s3, %s18889_s2 }
 0x18d   : > { %p18893_p4 = pneg %p18892_p0  ;;  %p18899_p7 = por %p18898_p10, %p18897_p8 }
 0x18f   : > { %p18900_p1 = pnand %p18899_p7, %p18893_p4 }
 0x191   : > { %18903 = shalt.err (!%p18900_p1)
}
 0x192   : > { %16688 = dma.hbm_to_vmem [thread:$0]  (!%p19480_p5), %s19476_s29, 16, %s19478_s1, %s716_s27  }
 0x193   : > { %s21231_s6 = sld [smem:[#allocation36_spill]] }
 0x199   : > { %p21232_p9 = scmp.ne.s32.totalorder %s21231_s6, 0 }
 0x19a   : > { %s736_s5 = sand.u32 (!%p21232_p9), 1, %s18958_s25  }
 0x19b   : > { %734 = sbr.rel (%p21232_p9) target bundleno = 5198 (0x144e), region = 104  ;;  %s737_s22 = scalar_lea.sflag (!%p21232_p9), [#allocation4], %s736_s5 }
 0x19c   : > { %s19512_s14 = scalar_lea.vmem (!%p21232_p9), [#allocation3], %s736_s5 }
 0x1a2   : > { %18921 = dma.done.wait (%p19467_p2), %s737_s22, 16  }
 0x1a3   : > { %18923 = vsyncadd (%p19467_p2), %s737_s22, 4294967280  ;;  %s21233_s23 = sld [smem:[#allocation35_spill]] }
 0x1a9   : > { %p21234_p6 = scmp.eq.s32.totalorder %s21233_s23, 0 }
 0x1ab   : > { %18925 = dma.done.wait (%p21234_p6), [#allocation6], 8704   ;;  %p21235_p3 = pmov %p21234_p6 }
 0x1ad   : > { %18927 = vsyncadd (%p21235_p3), [#allocation6], 4294958592  ;;  %p21236_p5 = pmov %p21235_p3 }
 0x1ae   : > { %p21237_p11 = pmov %p21235_p3 }
 0x1af   : > { %18929 = dma.done.wait (%p21236_p5), [#allocation9], 81984  }
 0x1b0   : > { %18931 = vsyncadd (%p21237_p11), [#allocation9], 4294885312  ;;  %p21238_p12 = pmov %p21235_p3 }
 0x1b1   : > { %p21239_p13 = pmov %p21235_p3 }
 0x1b2   : > { %18933 = dma.done.wait (%p21238_p12), [#allocation12], 24608  }
 0x1b3   : > { %18935 = vsyncadd (%p21239_p13), [#allocation12], 4294942688  ;;  %p21240_p2 = pmov %p21235_p3 }
 0x1b5   : > { %18937 = dma.done.wait (%p21240_p2), [#allocation15], 6160   ;;  %p21241_p0 = pmov %p21240_p2 }
 0x1b7   : > { %18939 = vsyncadd (%p21241_p0), [#allocation15], 4294961136  ;;  %p21242_p4 = pmov %p21241_p0 }
 0x1b8   : > { %p21243_p8 = pmov %p21241_p0 }
 0x1b9   : > { %18941 = dma.done.wait (%p21242_p4), [#allocation18], 3088  }
 0x1ba   : > { %18943 = vsyncadd (%p21243_p8), [#allocation18], 4294964208  ;;  %p21244_p10 = pmov %p21241_p0 }
 0x1bb   : > { %p21245_p7 = pmov %p21241_p0 }
 0x1bc   : > { %18945 = dma.done.wait (%p21244_p10), [#allocation21], 5584  }
 0x1bd   : > { %18947 = vsyncadd (%p21245_p7), [#allocation21], 4294961712  ;;  %p21246_p1 = pmov %p21241_p0 }
 0x1be   : > { %p21247_p9 = pmov %p21241_p0 }
 0x1bf   : > { %18949 = dma.done.wait (%p21246_p1), [#allocation24], 32  }
 0x1c0   : > { %18951 = vsyncadd (%p21247_p9), [#allocation24], 4294967264  ;;  %v18993_v0 = vmov 0   ;;  %v861_v1 = vld [vmem:[#allocation5] sm:$0xff]  ;;  %v863_v8 = vld [vmem:[#allocation5 + $0x10] sm:$0xff]  ;;  %vm1413_vm0 = vcmask 261120  }
 0x1c1   : > { %1449 = vmatprep.mubr.bf16.mxu0 %v18993_v0  ;;  %1490 = vmatprep.mubr.bf16.mxu1 %v18993_v0  ;;  %v877_v2 = vld [vmem:[#allocation5 + $0x80] sm:$0xff]  ;;  %v879_v9 = vld [vmem:[#allocation5 + $0x90] sm:$0xff]  ;;  %v862_v10 = vld [vmem:[#allocation5 + $0x8] sm:$0xff]  ;;  %vm6977_vm9 = vcmask 1043456   ;;  %s21248_s1 = sld [smem:[#allocation42_spill]]  ;;  %vm6973_vm10 = vcmask 64512  }
 0x1c2   : > { %v893_v3 = vld [vmem:[#allocation5 + $0x100] sm:$0xff]  ;;  %v14067_v4 = vcombine.high %v861_v1, %v877_v2  ;;  %v14066_v5 = vcombine.low %v861_v1, %v877_v2  ;;  %v878_v11 = vld [vmem:[#allocation5 + $0x88] sm:$0xff]  ;;  %v859_v13 = vld [vmem:[%s19512_s14] sm:$0x1]  ;;  %v14071_v18 = vcombine.high %v863_v8, %v879_v9  ;;  %v14070_v26 = vcombine.low %v863_v8, %v879_v9  ;;  %s21249_s15 = sld [smem:[#allocation44_spill]]  ;;  %s21250_s21 = sld [smem:[#allocation45_spill]] }
 0x1c3   : > { %v909_v6 = vld [vmem:[#allocation5 + $0x180] sm:$0xff]  ;;  %v14069_v14 = vcombine.high %v862_v10, %v878_v11  ;;  %v14068_v15 = vcombine.low %v862_v10, %v878_v11  ;;  %v894_v16 = vld [vmem:[#allocation5 + $0x108] sm:$0xff]  ;;  %v895_v19 = vld [vmem:[#allocation5 + $0x110] sm:$0xff]  ;;  %v19549_v24 = vpack.c.bf16 %v859_v13, %v859_v13  ;;  %s21251_s3 = sld [smem:[#allocation46_spill]]  ;;  %s21252_s14 = sld [smem:[#allocation47_spill]] }
 0x1c4   : > { %v14099_v7 = vcombine.high %v893_v3, %v909_v6  ;;  %1417 = vmatprep.subr.bf16.mxu0 %v14067_v4  ;;  %v14098_v12 = vcombine.low %v893_v3, %v909_v6  ;;  %v910_v17 = vld [vmem:[#allocation5 + $0x188] sm:$0xff]  ;;  %v911_v21 = vld [vmem:[#allocation5 + $0x190] sm:$0xff]  ;;  %v864_v22 = vld [vmem:[#allocation5 + $0x18] sm:$0xff]  ;;  %s21253_s29 = sld [smem:[#allocation48_spill]]  ;;  %p853_p6 = scmp.lt.s32.totalorder %s21233_s23, 1 }
 0x1c5   : > { %1418 = vmatpush1.bf16.msra.mxu0 %v14066_v5  ;;  %v14101_v20 = vcombine.high %v894_v16, %v910_v17  ;;  %1458 = vmatprep.subr.bf16.mxu1 %v14069_v14  ;;  %v880_v23 = vld [vmem:[#allocation5 + $0x98] sm:$0xff]  ;;  %v14100_v25 = vcombine.low %v894_v16, %v910_v17  ;;  %v14103_v27 = vcombine.high %v895_v19, %v911_v21  ;;  %v865_v31 = vld [vmem:[#allocation5 + $0x20] sm:$0xff]  ;;  %v866_v39 = vld [vmem:[#allocation5 + $0x28] sm:$0xff]  ;;  %s21254_s2 = sld [smem:[#allocation49_spill]] }
 0x1c6   : > { %1419 = vmatprep.subr.bf16.mxu0 %v14099_v7  ;;  %1459 = vmatpush1.bf16.msra.mxu1 %v14068_v15  ;;  %v14073_v28 = vcombine.high %v864_v22, %v880_v23  ;;  %v896_v29 = vld [vmem:[#allocation5 + $0x118] sm:$0xff]  ;;  %v881_v32 = vld [vmem:[#allocation5 + $0xa0] sm:$0xff]  ;;  %v14072_v33 = vcombine.low %v864_v22, %v880_v23  ;;  %v14102_v34 = vcombine.low %v895_v19, %v911_v21  ;;  %v882_v40 = vld [vmem:[#allocation5 + $0xa8] sm:$0xff]  ;;  %s21260_s23 = smov (!%p853_p6, %s21233_s23), 1 }
 0x1c7   : > { %1460 = vmatprep.subr.bf16.mxu1 %v14101_v20  ;;  %v912_v30 = vld [vmem:[#allocation5 + $0x198] sm:$0xff]  ;;  %v14075_v36 = vcombine.high %v865_v31, %v881_v32  ;;  %v897_v37 = vld [vmem:[#allocation5 + $0x120] sm:$0xff]  ;;  %v14074_v42 = vcombine.low %v865_v31, %v881_v32  ;;  %v14077_v44 = vcombine.high %v866_v39, %v882_v40  ;;  %v898_v45 = vld [vmem:[#allocation5 + $0x128] sm:$0xff]  ;;  %v14076_v49 = vcombine.low %v866_v39, %v882_v40 }
 0x1c8   : > { %v14105_v35 = vcombine.high %v896_v29, %v912_v30  ;;  %v913_v38 = vld [vmem:[#allocation5 + $0x1a0] sm:$0xff]  ;;  %v14104_v41 = vcombine.low %v896_v29, %v912_v30  ;;  %v914_v46 = vld [vmem:[#allocation5 + $0x1a8] sm:$0xff]  ;;  %v867_v47 = vld [vmem:[#allocation5 + $0x30] sm:$0xff] }
 0x1c9   : > { %1420 = vmatpush1.bf16.msra.mxu0 %v14098_v12  ;;  %v14107_v43 = vcombine.high %v897_v37, %v913_v38  ;;  %v883_v48 = vld [vmem:[#allocation5 + $0xb0] sm:$0xff]  ;;  %v14106_v50 = vcombine.low %v897_v37, %v913_v38  ;;  %v14109_v52 = vcombine.high %v898_v45, %v914_v46  ;;  %v868_v55 = vld [vmem:[#allocation5 + $0x38] sm:$0xff]  ;;  %v14108_v57 = vcombine.low %v898_v45, %v914_v46  ;;  %v869_v61 = vld [vmem:[#allocation5 + $0x40] sm:$0xff] }
 0x1ca   : > { %1499 = vmatprep.subr.bf16.mxu0 %v14071_v18  ;;  %1461 = vmatpush1.bf16.msra.mxu1 %v14100_v25  ;;  %v899_v51 = vld [vmem:[#allocation5 + $0x130] sm:$0xff]  ;;  %v14079_v53 = vcombine.high %v867_v47, %v883_v48  ;;  %v884_v56 = vld [vmem:[#allocation5 + $0xb8] sm:$0xff]  ;;  %v14078_v60 = vcombine.low %v867_v47, %v883_v48  ;;  %v885_v62 = vld [vmem:[#allocation5 + $0xc0] sm:$0xff] }
 0x1cb   : > { %1540 = vmatprep.subr.bf16.mxu1 %v14073_v28  ;;  %v915_v54 = vld [vmem:[#allocation5 + $0x1b0] sm:$0xff]  ;;  %v900_v58 = vld [vmem:[#allocation5 + $0x138] sm:$0xff]  ;;  %v14081_v1 = vcombine.high %v868_v55, %v884_v56  ;;  %v14080_v2 = vcombine.low %v868_v55, %v884_v56  ;;  %v901_v4 = vld [vmem:[#allocation5 + $0x140] sm:$0xff]  ;;  %v14083_v9 = vcombine.high %v869_v61, %v885_v62  ;;  %v14082_v13 = vcombine.low %v869_v61, %v885_v62 }
 0x1cc   : > { %14130 = vmatmul.mubr.msk.bf16.vlgmr.msra.gmra.mrb[0].mxu0 %vm1413_vm0, %v19549_v24  ;;  %v916_v59 = vld [vmem:[#allocation5 + $0x1b8] sm:$0xff]  ;;  %v14111_v63 = vcombine.high %v899_v51, %v915_v54  ;;  %v14110_v3 = vcombine.low %v899_v51, %v915_v54  ;;  %v917_v5 = vld [vmem:[#allocation5 + $0x1c0] sm:$0xff]  ;;  %v870_v7 = vld [vmem:[#allocation5 + $0x48] sm:$0xff] }
 0x1cd   : > { %1500 = vmatpush1.bf16.msra.mxu0 %v14070_v26  ;;  %1531 = vmatprep.mubr.bf16.mxu0 %v18993_v0  ;;  %v14113_v6 = vcombine.high %v900_v58, %v916_v59  ;;  %v886_v8 = vld [vmem:[#allocation5 + $0xc8] sm:$0xff]  ;;  %v14112_v10 = vcombine.low %v900_v58, %v916_v59  ;;  %v871_v14 = vld [vmem:[#allocation5 + $0x50] sm:$0xff]  ;;  %v14115_v16 = vcombine.high %v901_v4, %v917_v5  ;;  %v872_v23 = vld [vmem:[#allocation5 + $0x58] sm:$0xff] }
 0x1ce   : > { %1501 = vmatprep.subr.bf16.mxu0 %v14103_v27  ;;  %14131 = vmatmul.mubr.msk.bf16.vlgmr.msra.gmra.mrb[0].mxu1 %vm1413_vm0, %v19549_v24  ;;  %v902_v11 = vld [vmem:[#allocation5 + $0x148] sm:$0xff]  ;;  %v887_v15 = vld [vmem:[#allocation5 + $0xd0] sm:$0xff]  ;;  %v14085_v17 = vcombine.high %v870_v7, %v886_v8  ;;  %v14084_v18 = vcombine.low %v870_v7, %v886_v8  ;;  %v14114_v19 = vcombine.low %v901_v4, %v917_v5  ;;  %v888_v25 = vld [vmem:[#allocation5 + $0xd8] sm:$0xff] }
 0x1cf   : > { %1541 = vmatpush1.bf16.msra.mxu1 %v14072_v33  ;;  %1572 = vmatprep.mubr.bf16.mxu1 %v18993_v0  ;;  %v918_v12 = vld [vmem:[#allocation5 + $0x1c8] sm:$0xff]  ;;  %v903_v20 = vld [vmem:[#allocation5 + $0x150] sm:$0xff]  ;;  %v14087_v26 = vcombine.high %v871_v14, %v887_v15  ;;  %v904_v28 = vld [vmem:[#allocation5 + $0x158] sm:$0xff]  ;;  %v14086_v30 = vcombine.low %v871_v14, %v887_v15 }
 0x1d0   : > { %1542 = vmatprep.subr.bf16.mxu1 %v14105_v35  ;;  %v919_v21 = vld [vmem:[#allocation5 + $0x1d0] sm:$0xff]  ;;  %v14117_v22 = vcombine.high %v902_v11, %v918_v12  ;;  %v14116_v27 = vcombine.low %v902_v11, %v918_v12  ;;  %v920_v29 = vld [vmem:[#allocation5 + $0x1d8] sm:$0xff]  ;;  %v873_v31 = vld [vmem:[#allocation5 + $0x60] sm:$0xff]  ;;  %v14088_v35 = vcombine.low %v872_v23, %v888_v25 }
 0x1d1   : > { %1502 = vmatpush1.bf16.msra.mxu0 %v14102_v34  ;;  %v889_v32 = vld [vmem:[#allocation5 + $0xe0] sm:$0xff]  ;;  %v14119_v33 = vcombine.high %v903_v20, %v919_v21  ;;  %v14089_v34 = vcombine.high %v872_v23, %v888_v25  ;;  %v14121_v39 = vcombine.high %v904_v28, %v920_v29  ;;  %v874_v40 = vld [vmem:[#allocation5 + $0x68] sm:$0xff]  ;;  %v875_v47 = vld [vmem:[#allocation5 + $0x70] sm:$0xff] }
 0x1d2   : > { %1581 = vmatprep.subr.bf16.mxu0 %v14075_v36  ;;  %v14118_v36 = vcombine.low %v903_v20, %v919_v21  ;;  %v905_v37 = vld [vmem:[#allocation5 + $0x160] sm:$0xff]  ;;  %v922_v45 = vld [vmem:[#allocation5 + $0x1e8] sm:$0xff]  ;;  %v14090_v46 = vcombine.low %v873_v31, %v889_v32  ;;  %v891_v48 = vld [vmem:[#allocation5 + $0xf0] sm:$0xff] }
 0x1d3   : > { %1543 = vmatpush1.bf16.msra.mxu1 %v14104_v41  ;;  %v921_v38 = vld [vmem:[#allocation5 + $0x1e0] sm:$0xff]  ;;  %v890_v41 = vld [vmem:[#allocation5 + $0xe8] sm:$0xff]  ;;  %v923_v54 = vld [vmem:[#allocation5 + $0x1f0] sm:$0xff]  ;;  %v14095_v58 = vcombine.high %v875_v47, %v891_v48  ;;  %v14094_v62 = vcombine.low %v875_v47, %v891_v48 }
 0x1d4   : > { %14132 = vmatmul.mubr.msk.bf16.vlgmr.msra.gmra.mrb[4].mxu0 %vm1413_vm0, %v19549_v24  ;;  %1622 = vmatprep.subr.bf16.mxu1 %v14077_v44  ;;  %v906_v44 = vld [vmem:[#allocation5 + $0x168] sm:$0xff]  ;;  %v14092_v51 = vcombine.low %v874_v40, %v890_v41  ;;  %v876_v56 = vld [vmem:[#allocation5 + $0x78] sm:$0xff]  ;;  %v16778_v8 = vld [vmem:[#allocation8] ss:$80 sps:$4 sm:$0xff]  }
 0x1d5   : > { %1582 = vmatpush1.bf16.msra.mxu0 %v14074_v42  ;;  %1613 = vmatprep.mubr.bf16.mxu0 %v18993_v0  ;;  %v14091_v42 = vcombine.high %v873_v31, %v889_v32  ;;  %v14125_v55 = vcombine.high %v906_v44, %v922_v45  ;;  %v14124_v59 = vcombine.low %v906_v44, %v922_v45  ;;  %v924_v61 = vld [vmem:[#allocation5 + $0x1f8] sm:$0xff]  ;;  %v16784_v12 = vld [vmem:[#allocation8 + $0xa0] ss:$80 sps:$4 sm:$0xff]   ;;  %v16792_v14 = vld [vmem:[#allocation8 + $0x144] ss:$80 sps:$4 sm:$0xff]  }
 0x1d6   : > { %1583 = vmatprep.subr.bf16.mxu0 %v14107_v43  ;;  %14133 = vmatmul.mubr.msk.bf16.vlgmr.msra.gmra.mrb[4].mxu1 %vm1413_vm0, %v19549_v24  ;;  %v14120_v43 = vcombine.low %v904_v28, %v920_v29  ;;  %v16783_v7 = vld [vmem:[#allocation8 + $0xc] ss:$80 sps:$4 sm:$0xff]   ;;  %v16799_v20 = vld [vmem:[#allocation8 + $0x1e8] ss:$80 sps:$4 sm:$0xff]   ;;  %v16804_v21 = vld [vmem:[#allocation8 + $0x284] ss:$80 sps:$4 sm:$0xff]  }
 0x1d7   : > { %1623 = vmatpush1.bf16.msra.mxu1 %v14076_v49  ;;  %1654 = vmatprep.mubr.bf16.mxu1 %v18993_v0  ;;  %v14123_v49 = vcombine.high %v905_v37, %v921_v38  ;;  %v16789_v11 = vld [vmem:[#allocation8 + $0xac] ss:$80 sps:$4 sm:$0xff]   ;;  %v16802_v23 = vld [vmem:[#allocation8 + $0x280] ss:$80 sps:$4 sm:$0xff]   ;;  %v16805_v25 = vld [vmem:[#allocation8 + $0x288] ss:$80 sps:$4 sm:$0xff]  }
 0x1d8   : > { %1624 = vmatprep.subr.bf16.mxu1 %v14109_v52  ;;  %v14122_v52 = vcombine.low %v905_v37, %v921_v38  ;;  %v16795_v15 = vld [vmem:[#allocation8 + $0x14c] ss:$80 sps:$4 sm:$0xff]   ;;  %v16808_v28 = vld [vmem:[#allocation8 + $0x320] ss:$80 sps:$4 sm:$0xff]   ;;  %v16811_v29 = vld [vmem:[#allocation8 + $0x328] ss:$80 sps:$4 sm:$0xff]  }
 0x1d9   : > { %1584 = vmatpush1.bf16.msra.mxu0 %v14106_v50  ;;  %v14093_v50 = vcombine.high %v874_v40, %v890_v41  ;;  %v16819_v31 = vld [vmem:[#allocation8 + $0x3cc] ss:$80 sps:$4 sm:$0xff]   ;;  %v16814_v32 = vld [vmem:[#allocation8 + $0x3c0] ss:$80 sps:$4 sm:$0xff]   ;;  %v16823_v37 = vld [vmem:[#allocation8 + $0x468] ss:$80 sps:$4 sm:$0xff]  }
 0x1da   : > { %1663 = vmatprep.subr.bf16.mxu0 %v14079_v53  ;;  %v907_v53 = vld [vmem:[#allocation5 + $0x170] sm:$0xff]  ;;  %v16829_v41 = vld [vmem:[#allocation8 + $0x508] ss:$80 sps:$4 sm:$0xff]   ;;  %v16843_v47 = vld [vmem:[#allocation8 + $0x64c] ss:$80 sps:$4 sm:$0xff]  }
 0x1db   : > { %1625 = vmatpush1.bf16.msra.mxu1 %v14108_v57  ;;  %v892_v57 = vld [vmem:[#allocation5 + $0xf8] sm:$0xff]  ;;  %v16828_v38 = vld [vmem:[#allocation8 + $0x504] ss:$80 sps:$4 sm:$0xff]   ;;  %v16826_v40 = vld [vmem:[#allocation8 + $0x500] ss:$80 sps:$4 sm:$0xff]  }
 0x1dc   : > { %14134 = vmatmul.mubr.msk.bf16.vlgmr.msra.gmra.mrb[8].mxu0 %vm1413_vm0, %v19549_v24  ;;  %1704 = vmatprep.subr.bf16.mxu1 %v14081_v1  ;;  %v14097_v1 = vcombine.high %v876_v56, %v892_v57  ;;  %v16832_v44 = vld [vmem:[#allocation8 + $0x5a0] ss:$80 sps:$4 sm:$0xff]   ;;  %v16835_v45 = vld [vmem:[#allocation8 + $0x5a8] ss:$80 sps:$4 sm:$0xff]  }
 0x1dd   : > { %1664 = vmatpush1.bf16.msra.mxu0 %v14078_v60  ;;  %1695 = vmatprep.mubr.bf16.mxu0 %v18993_v0  ;;  %v908_v60 = vld [vmem:[#allocation5 + $0x178] sm:$0xff]  ;;  %v16838_v48 = vld [vmem:[#allocation8 + $0x640] ss:$80 sps:$4 sm:$0xff]  }
 0x1de   : > { %1665 = vmatprep.subr.bf16.mxu0 %v14111_v63  ;;  %14135 = vmatmul.mubr.msk.bf16.vlgmr.msra.gmra.mrb[8].mxu1 %vm1413_vm0, %v19549_v24  ;;  %v14127_v63 = vcombine.high %v907_v53, %v923_v54  ;;  %v14129_v4 = vcombine.high %v908_v60, %v924_v61  ;;  %v14128_v5 = vcombine.low %v908_v60, %v924_v61  ;;  %v16856_v60 = vld [vmem:[#allocation8 + $0x820] ss:$80 sps:$4 sm:$0xff]   ;;  %v16859_v61 = vld [vmem:[#allocation8 + $0x828] ss:$80 sps:$4 sm:$0xff]  }
 0x1df   : > { %1705 = vmatpush1.bf16.msra.mxu1 %v14080_v2  ;;  %1736 = vmatprep.mubr.bf16.mxu1 %v18993_v0  ;;  %v14096_v2 = vcombine.low %v876_v56, %v892_v57  ;;  %v16850_v56 = vld [vmem:[#allocation8 + $0x780] ss:$80 sps:$4 sm:$0xff]   ;;  %v16853_v57 = vld [vmem:[#allocation8 + $0x788] ss:$80 sps:$4 sm:$0xff]  }
 0x1e0   : > { %1706 = vmatprep.subr.bf16.mxu1 %v14113_v6  ;;  %v16780_v6 = vld [vmem:[#allocation8 + $0x4] ss:$80 sps:$4 sm:$0xff]  }
 0x1e1   : > { %1666 = vmatpush1.bf16.msra.mxu0 %v14110_v3  ;;  %v14126_v3 = vcombine.low %v907_v53, %v923_v54  ;;  %v16847_v53 = vld [vmem:[#allocation8 + $0x6e8] ss:$80 sps:$4 sm:$0xff]   ;;  %v16852_v54 = vld [vmem:[#allocation8 + $0x784] ss:$80 sps:$4 sm:$0xff]  }
 0x1e2   : > { %1745 = vmatprep.subr.bf16.mxu0 %v14083_v9  ;;  %v16781_v9 = vld [vmem:[#allocation8 + $0x8] ss:$80 sps:$4 sm:$0xff]  }
 0x1e3   : > { %1707 = vmatpush1.bf16.msra.mxu1 %v14112_v10  ;;  %v16786_v10 = vld [vmem:[#allocation8 + $0xa4] ss:$80 sps:$4 sm:$0xff]  }
 0x1e4   : > { %14136 = vmatmul.mubr.msk.bf16.vlgmr.msra.gmra.mrb[12].mxu0 %vm1413_vm0, %v19549_v24  ;;  %1786 = vmatprep.subr.bf16.mxu1 %v14085_v17  ;;  %v16798_v17 = vld [vmem:[#allocation8 + $0x1e4] ss:$80 sps:$4 sm:$0xff]  }
 0x1e5   : > { %1746 = vmatpush1.bf16.msra.mxu0 %v14082_v13  ;;  %1777 = vmatprep.mubr.bf16.mxu0 %v18993_v0  ;;  %v16787_v13 = vld [vmem:[#allocation8 + $0xa8] ss:$80 sps:$4 sm:$0xff]  }
 0x1e6   : > { %1747 = vmatprep.subr.bf16.mxu0 %v14115_v16  ;;  %14137 = vmatmul.mubr.msk.bf16.vlgmr.msra.gmra.mrb[12].mxu1 %vm1413_vm0, %v19549_v24  ;;  %v16790_v16 = vld [vmem:[#allocation8 + $0x140] ss:$80 sps:$4 sm:$0xff]  }
 0x1e7   : > { %1787 = vmatpush1.bf16.msra.mxu1 %v14084_v18  ;;  %1818 = vmatprep.mubr.bf16.mxu1 %v18993_v0  ;;  %v16801_v18 = vld [vmem:[#allocation8 + $0x1ec] ss:$80 sps:$4 sm:$0xff]  }
 0x1e8   : > { %1788 = vmatprep.subr.bf16.mxu1 %v14117_v22  ;;  %v16807_v22 = vld [vmem:[#allocation8 + $0x28c] ss:$80 sps:$4 sm:$0xff]  }
 0x1e9   : > { %1748 = vmatpush1.bf16.msra.mxu0 %v14114_v19  ;;  %v16796_v19 = vld [vmem:[#allocation8 + $0x1e0] ss:$80 sps:$4 sm:$0xff]  }
 0x1ea   : > { %1827 = vmatprep.subr.bf16.mxu0 %v14087_v26  ;;  %v16810_v26 = vld [vmem:[#allocation8 + $0x324] ss:$80 sps:$4 sm:$0xff]  }
 0x1eb   : > { %1789 = vmatpush1.bf16.msra.mxu1 %v14116_v27  ;;  %v16813_v27 = vld [vmem:[#allocation8 + $0x32c] ss:$80 sps:$4 sm:$0xff]  }
 0x1ec   : > { %14138 = vmatmul.mubr.msk.bf16.vlgmr.msra.gmra.mrb[16].mxu0 %vm1413_vm0, %v19549_v24  ;;  %1868 = vmatprep.subr.bf16.mxu1 %v14089_v34  ;;  %v16822_v34 = vld [vmem:[#allocation8 + $0x464] ss:$80 sps:$4 sm:$0xff]  }
 0x1ed   : > { %1828 = vmatpush1.bf16.msra.mxu0 %v14086_v30  ;;  %1859 = vmatprep.mubr.bf16.mxu0 %v18993_v0  ;;  %v16816_v30 = vld [vmem:[#allocation8 + $0x3c4] ss:$80 sps:$4 sm:$0xff]  }
 0x1ee   : > { %1829 = vmatprep.subr.bf16.mxu0 %v14119_v33  ;;  %14139 = vmatmul.mubr.msk.bf16.vlgmr.msra.gmra.mrb[16].mxu1 %vm1413_vm0, %v19549_v24  ;;  %v16817_v33 = vld [vmem:[#allocation8 + $0x3c8] ss:$80 sps:$4 sm:$0xff]  }
 0x1ef   : > { %1869 = vmatpush1.bf16.msra.mxu1 %v14088_v35  ;;  %1900 = vmatprep.mubr.bf16.mxu1 %v18993_v0  ;;  %v16825_v35 = vld [vmem:[#allocation8 + $0x46c] ss:$80 sps:$4 sm:$0xff]  }
 0x1f0   : > { %1870 = vmatprep.subr.bf16.mxu1 %v14121_v39  ;;  %v16831_v39 = vld [vmem:[#allocation8 + $0x50c] ss:$80 sps:$4 sm:$0xff]  }
 0x1f1   : > { %1830 = vmatpush1.bf16.msra.mxu0 %v14118_v36  ;;  %v16820_v36 = vld [vmem:[#allocation8 + $0x460] ss:$80 sps:$4 sm:$0xff]  }
 0x1f2   : > { %1909 = vmatprep.subr.bf16.mxu0 %v14091_v42  ;;  %v16834_v42 = vld [vmem:[#allocation8 + $0x5a4] ss:$80 sps:$4 sm:$0xff]  }
 0x1f3   : > { %1871 = vmatpush1.bf16.msra.mxu1 %v14120_v43  ;;  %v16837_v43 = vld [vmem:[#allocation8 + $0x5ac] ss:$80 sps:$4 sm:$0xff]  }
 0x1f4   : > { %14140 = vmatmul.mubr.msk.bf16.vlgmr.msra.gmra.mrb[20].mxu0 %vm1413_vm0, %v19549_v24  ;;  %1950 = vmatprep.subr.bf16.mxu1 %v14093_v50  ;;  %v16846_v50 = vld [vmem:[#allocation8 + $0x6e4] ss:$80 sps:$4 sm:$0xff]  }
 0x1f5   : > { %1910 = vmatpush1.bf16.msra.mxu0 %v14090_v46  ;;  %1941 = vmatprep.mubr.bf16.mxu0 %v18993_v0  ;;  %v16840_v46 = vld [vmem:[#allocation8 + $0x644] ss:$80 sps:$4 sm:$0xff]  }
 0x1f6   : > { %1911 = vmatprep.subr.bf16.mxu0 %v14123_v49  ;;  %14141 = vmatmul.mubr.msk.bf16.vlgmr.msra.gmra.mrb[20].mxu1 %vm1413_vm0, %v19549_v24  ;;  %v16841_v49 = vld [vmem:[#allocation8 + $0x648] ss:$80 sps:$4 sm:$0xff]  }
 0x1f7   : > { %1951 = vmatpush1.bf16.msra.mxu1 %v14092_v51  ;;  %1982 = vmatprep.mubr.bf16.mxu1 %v18993_v0  ;;  %v16849_v51 = vld [vmem:[#allocation8 + $0x6ec] ss:$80 sps:$4 sm:$0xff]  }
 0x1f8   : > { %1952 = vmatprep.subr.bf16.mxu1 %v14125_v55  ;;  %v16855_v55 = vld [vmem:[#allocation8 + $0x78c] ss:$80 sps:$4 sm:$0xff]  }
 0x1f9   : > { %1912 = vmatpush1.bf16.msra.mxu0 %v14122_v52  ;;  %v16844_v52 = vld [vmem:[#allocation8 + $0x6e0] ss:$80 sps:$4 sm:$0xff]  }
 0x1fa   : > { %1991 = vmatprep.subr.bf16.mxu0 %v14095_v58  ;;  %v16858_v58 = vld [vmem:[#allocation8 + $0x824] ss:$80 sps:$4 sm:$0xff]  }
 0x1fb   : > { %1953 = vmatpush1.bf16.msra.mxu1 %v14124_v59  ;;  %v16861_v59 = vld [vmem:[#allocation8 + $0x82c] ss:$80 sps:$4 sm:$0xff]  }
 0x1fc   : > { %14142 = vmatmul.mubr.msk.bf16.vlgmr.msra.gmra.mrb[24].mxu0 %vm1413_vm0, %v19549_v24  ;;  %2032 = vmatprep.subr.bf16.mxu1 %v14097_v1  ;;  %v16862_v1 = vld [vmem:[#allocation8 + $0x8c0] ss:$80 sps:$4 sm:$0xff]  }
 0x1fd   : > { %1992 = vmatpush1.bf16.msra.mxu0 %v14094_v62  ;;  %2023 = vmatprep.mubr.bf16.mxu0 %v18993_v0  ;;  %v16864_v62 = vld [vmem:[#allocation8 + $0x8c4] ss:$80 sps:$4 sm:$0xff]  }
 0x1fe   : > { %1993 = vmatprep.subr.bf16.mxu0 %v14127_v63  ;;  %14143 = vmatmul.mubr.msk.bf16.vlgmr.msra.gmra.mrb[24].mxu1 %vm1413_vm0, %v19549_v24  ;;  %v16867_v63 = vld [vmem:[#allocation8 + $0x8cc] ss:$80 sps:$4 sm:$0xff]  }
 0x1ff   : > { %2033 = vmatpush1.bf16.msra.mxu1 %v14096_v2  ;;  %2064 = vmatprep.mubr.bf16.mxu1 %v18993_v0  ;;  %v16865_v2 = vld [vmem:[#allocation8 + $0x8c8] ss:$80 sps:$4 sm:$0xff]  }
 0x200   : > { %2034 = vmatprep.subr.bf16.mxu1 %v14129_v4  ;;  %v16873_v4 = vld [vmem:[#allocation8 + $0x96c] ss:$80 sps:$4 sm:$0xff]  }
 0x201   : > { %1994 = vmatpush1.bf16.msra.mxu0 %v14126_v3  ;;  %v16870_v3 = vld [vmem:[#allocation8 + $0x964] ss:$80 sps:$4 sm:$0xff]  }
 0x202   : > { %6135 = vmatprep.subr.bf16.mxu0 %v16780_v6  ;;  %v16871_v6 = vld [vmem:[#allocation8 + $0x968] ss:$80 sps:$4 sm:$0xff]  }
 0x203   : > { %2035 = vmatpush1.bf16.msra.mxu1 %v14128_v5  ;;  %v16868_v5 = vld [vmem:[#allocation8 + $0x960] ss:$80 sps:$4 sm:$0xff]  }
 0x204   : > { %14144 = vmatmul.mubr.msk.bf16.vlgmr.msra.gmra.mrb[28].mxu0 %vm1413_vm0, %v19549_v24  ;;  %6217 = vmatprep.subr.bf16.mxu1 %v16783_v7  ;;  %v16876_v7 = vld [vmem:[#allocation8 + $0xa04] ss:$80 sps:$4 sm:$0xff]  }
 0x205   : > { %6136 = vmatpush1.bf16.msra.mxu0 %v16778_v8  ;;  %v16879_v8 = vld [vmem:[#allocation8 + $0xa0c] ss:$80 sps:$4 sm:$0xff]  }
 0x206   : > { %14145 = vmatmul.mubr.msk.bf16.vlgmr.msra.gmra.mrb[28].mxu1 %vm1413_vm0, %v19549_v24  ;;  %6137 = vmatprep.subr.bf16.mxu0 %v16786_v10  ;;  %v16793_v24 = vld [vmem:[#allocation8 + $0x148] ss:$80 sps:$4 sm:$0xff]  }
 0x207   : > { %6218 = vmatpush1.bf16.msra.mxu1 %v16781_v9  ;;  %v1253_v9 = vlaneseq }
 0x208   : > { %6219 = vmatprep.subr.bf16.mxu1 %v16789_v11 }
 0x209   : > { %6138 = vmatpush1.bf16.msra.mxu0 %v16784_v12  ;;  %v19597_v10 = vshrl.u32 %v1253_v9, 7  ;;  %v925_v12 = vld [vmem:[#allocation7] sm:$0xff] }
 0x20a   : > { %6139 = vmatprep.subr.bf16.mxu0 %v16792_v14 }
 0x20b   : > { %6220 = vmatpush1.bf16.msra.mxu1 %v16787_v13  ;;  %v19600_v11 = vsub.s32 0, %v19597_v10  ;;  %v19603_v13 = vsub.s32 1, %v19597_v10  ;;  %v19606_v14 = vsub.s32 2, %v19597_v10  ;;  %vm2107_vm1 = vcmp.eq.s32.totalorder %v19597_v10, 0 }
 0x20c   : > { %6221 = vmatprep.subr.bf16.mxu1 %v16795_v15  ;;  %vm2130_vm2 = vcmp.eq.s32.totalorder %v19597_v10, 1  ;;  %vm2153_vm3 = vcmp.eq.s32.totalorder %v19597_v10, 2  ;;  %vm2176_vm4 = vcmp.eq.s32.totalorder %v19597_v10, 3  ;;  %vm2199_vm5 = vcmp.eq.s32.totalorder %v19597_v10, 4 }
 0x20d   : > { %6140 = vmatpush1.bf16.msra.mxu0 %v16790_v16  ;;  %v1256_v15 = vrot.slane %v925_v12, %v19600_v11  ;;  %v19610_v16 = vsub.s32 3, %v19597_v10  ;;  %vm2222_vm6 = vcmp.eq.s32.totalorder %v19597_v10, 5  ;;  %vm2245_vm7 = vcmp.eq.s32.totalorder %v19597_v10, 6 }
 0x20e   : > { %6141 = vmatprep.subr.bf16.mxu0 %v16798_v17  ;;  %vm2268_vm8 = vcmp.eq.s32.totalorder %v19597_v10, 7 }
 0x20f   : > { %6222 = vmatpush1.bf16.msra.mxu1 %v16793_v24  ;;  %v1260_v24 = vrot.slane %v925_v12, %v19603_v13 }
 0x210   : > { %6223 = vmatprep.subr.bf16.mxu1 %v16801_v18  ;;  %v1264_v18 = vrot.slane %v925_v12, %v19606_v14 }
 0x211   : > { %6142 = vmatpush1.bf16.msra.mxu0 %v16796_v19 }
 0x212   : > { %6143 = vmatprep.subr.bf16.mxu0 %v16804_v21  ;;  %v19615_v21 = vsub.s32 4, %v19597_v10 }
 0x213   : > { %6224 = vmatpush1.bf16.msra.mxu1 %v16799_v20 }
 0x214   : > { %6225 = vmatprep.subr.bf16.mxu1 %v16807_v22  ;;  %v1268_v22 = vrot.slane %v925_v12, %v19610_v16 }
 0x215   : > { %6144 = vmatpush1.bf16.msra.mxu0 %v16802_v23 }
 0x216   : > { %6145 = vmatprep.subr.bf16.mxu0 %v16810_v26 }
 0x217   : > { %6226 = vmatpush1.bf16.msra.mxu1 %v16805_v25  ;;  %v19619_v25 = vsub.s32 5, %v19597_v10 }
 0x218   : > { %6227 = vmatprep.subr.bf16.mxu1 %v16813_v27 }
 0x219   : > { %6146 = vmatpush1.bf16.msra.mxu0 %v16808_v28 }
 0x21a   : > { %6147 = vmatprep.subr.bf16.mxu0 %v16816_v30 }
 0x21b   : > { %6228 = vmatpush1.bf16.msra.mxu1 %v16811_v29 }
 0x21c   : > { %6229 = vmatprep.subr.bf16.mxu1 %v16819_v31  ;;  %v19622_v31 = vsub.s32 6, %v19597_v10 }
 0x21d   : > { %6148 = vmatpush1.bf16.msra.mxu0 %v16814_v32  ;;  %v1272_v32 = vrot.slane %v925_v12, %v19615_v21 }
 0x21e   : > { %6149 = vmatprep.subr.bf16.mxu0 %v16822_v34 }
 0x21f   : > { %6230 = vmatpush1.bf16.msra.mxu1 %v16817_v33 }
 0x220   : > { %6231 = vmatprep.subr.bf16.mxu1 %v16825_v35  ;;  %v19626_v35 = vsub.s32 7, %v19597_v10  ;;  %v16886_v10 = vld [vmem:[#allocation8 + $0xb40] ss:$80 sps:$4 sm:$0xff]  }
 0x221   : > { %6150 = vmatpush1.bf16.msra.mxu0 %v16820_v36  ;;  %v1276_v36 = vrot.slane %v925_v12, %v19619_v25 }
 0x222   : > { %6151 = vmatprep.subr.bf16.mxu0 %v16828_v38 }
 0x223   : > { %6232 = vmatpush1.bf16.msra.mxu1 %v16823_v37 }
 0x224   : > { %6233 = vmatprep.subr.bf16.mxu1 %v16831_v39  ;;  %v19629_v39 = vld [vmem:[#allocation7 + $0x8] sm:$0xff] }
 0x225   : > { %6152 = vmatpush1.bf16.msra.mxu0 %v16826_v40  ;;  %v1280_v40 = vrot.slane %v925_v12, %v19622_v31 }
 0x226   : > { %6153 = vmatprep.subr.bf16.mxu0 %v16834_v42 }
 0x227   : > { %6234 = vmatpush1.bf16.msra.mxu1 %v16829_v41 }
 0x228   : > { %6235 = vmatprep.subr.bf16.mxu1 %v16837_v43  ;;  %v1284_v43 = vrot.slane %v925_v12, %v19626_v35 }
 0x229   : > { %6154 = vmatpush1.bf16.msra.mxu0 %v16832_v44 }
 0x22a   : > { %6155 = vmatprep.subr.bf16.mxu0 %v16840_v46 }
 0x22b   : > { %6236 = vmatpush1.bf16.msra.mxu1 %v16835_v45 }
 0x22c   : > { %6237 = vmatprep.subr.bf16.mxu1 %v16843_v47 }
 0x22d   : > { %6156 = vmatpush1.bf16.msra.mxu0 %v16838_v48 }
 0x22e   : > { %6157 = vmatprep.subr.bf16.mxu0 %v16846_v50  ;;  %v1288_v50 = vrot.slane %v19629_v39, %v19600_v11 }
 0x22f   : > { %6238 = vmatpush1.bf16.msra.mxu1 %v16841_v49 }
 0x230   : > { %6239 = vmatprep.subr.bf16.mxu1 %v16849_v51 }
 0x231   : > { %6158 = vmatpush1.bf16.msra.mxu0 %v16844_v52 }
 0x232   : > { %6159 = vmatprep.subr.bf16.mxu0 %v16852_v54 }
 0x233   : > { %6240 = vmatpush1.bf16.msra.mxu1 %v16847_v53  ;;  %v1292_v53 = vrot.slane %v19629_v39, %v19603_v13 }
 0x234   : > { %6241 = vmatprep.subr.bf16.mxu1 %v16855_v55 }
 0x235   : > { %6160 = vmatpush1.bf16.msra.mxu0 %v16850_v56 }
 0x236   : > { %6161 = vmatprep.subr.bf16.mxu0 %v16858_v58  ;;  %v1296_v58 = vrot.slane %v19629_v39, %v19606_v14 }
 0x237   : > { %6242 = vmatpush1.bf16.msra.mxu1 %v16853_v57 }
 0x238   : > { %6243 = vmatprep.subr.bf16.mxu1 %v16861_v59 }
 0x239   : > { %6162 = vmatpush1.bf16.msra.mxu0 %v16856_v60 }
 0x23a   : > { %6163 = vmatprep.subr.bf16.mxu0 %v16864_v62 }
 0x23b   : > { %6244 = vmatpush1.bf16.msra.mxu1 %v16859_v61 }
 0x23c   : > { %6245 = vmatprep.subr.bf16.mxu1 %v16867_v63  ;;  %v1300_v63 = vrot.slane %v19629_v39, %v19610_v16 }
 0x23d   : > { %6164 = vmatpush1.bf16.msra.mxu0 %v16862_v1 }
 0x23e   : > { %6165 = vmatprep.subr.bf16.mxu0 %v16870_v3 }
 0x23f   : > { %6246 = vmatpush1.bf16.msra.mxu1 %v16865_v2 }
 0x240   : > { %6247 = vmatprep.subr.bf16.mxu1 %v16873_v4 }
 0x241   : > { %6166 = vmatpush1.bf16.msra.mxu0 %v16868_v5 }
 0x242   : > { %6176 = vmatprep.subr.bf16.mxu0 %v16876_v7 }
 0x243   : > { %6248 = vmatpush1.bf16.msra.mxu1 %v16871_v6 }
 0x244   : > { %6258 = vmatprep.subr.bf16.mxu1 %v16879_v8 }
 0x29f   : > { %v1451_v17 = vpop.f32.mrb[0].mxu0 }
 0x2a0   : > { %v1452_v19 = vadd.f32 %v1451_v17, %v1256_v15  ;;  %v1453_v20 = vpop.f32.mrb[1].mxu0 }
 0x2a1   : > { %v1455_v23 = vpop.f32.mrb[2].mxu0  ;;  %v1454_v26 = vadd.f32 %v1453_v20, %v1260_v24  ;;  %v1492_v28 = vpop.f32.mrb[0].mxu1  ;;  %v1304_v24 = vrot.slane %v19629_v39, %v19615_v21 }
 0x2a2   : > { %v1456_v27 = vpop.f32.mrb[3].mxu0  ;;  %v1493_v29 = vadd.f32 %v1492_v28, %v1264_v18  ;;  %v1494_v30 = vpop.f32.mrb[1].mxu1  ;;  %18250 = vtanh.f32 %v1452_v19  ;;  %v1308_v23 = vrot.slane %v19629_v39, %v19619_v25 }
 0x2a3   : > { %v1495_v33 = vadd.f32 %v1494_v30, %v1268_v22  ;;  %v1496_v34 = vpop.f32.mrb[2].mxu1 }
 0x2a4   : > { %18252 = vtanh.f32 %v1493_v29  ;;  %v1497_v37 = vpop.f32.mrb[3].mxu1  ;;  %v19661_v34 = vld [vmem:[#allocation7 + $0x10] sm:$0xff] }
 0x2a5   : > { %18254 = vtanh.f32 %v1454_v26  ;;  %v1316_v37 = vrot.slane %v19629_v39, %v19626_v35 }
 0x2a6   : > { %18256 = vtanh.f32 %v1495_v33 }
 0x2a7   : > { %v1533_v38 = vpop.f32.mrb[4].mxu0 }
 0x2a8   : > { %v1534_v41 = vadd.f32 %v1533_v38, %v1272_v32  ;;  %v1535_v42 = vpop.f32.mrb[5].mxu0 }
 0x2a9   : > { %v1536_v44 = vadd.f32 %v1535_v42, %v1276_v36  ;;  %v1537_v45 = vpop.f32.mrb[6].mxu0  ;;  %v1574_v47 = vpop.f32.mrb[4].mxu1  ;;  %v1312_v36 = vrot.slane %v19629_v39, %v19622_v31 }
 0x2aa   : > { %18258 = vtanh.f32 %v1534_v41  ;;  %v1538_v46 = vpop.f32.mrb[7].mxu0  ;;  %v1575_v48 = vadd.f32 %v1574_v47, %v1280_v40  ;;  %v1576_v49 = vpop.f32.mrb[5].mxu1 }
 0x2ab   : > { %18260 = vtanh.f32 %v1536_v44  ;;  %v1577_v51 = vadd.f32 %v1576_v49, %v1284_v43  ;;  %v1578_v52 = vpop.f32.mrb[6].mxu1 }
 0x2ac   : > { %18262 = vtanh.f32 %v1575_v48  ;;  %v1579_v54 = vpop.f32.mrb[7].mxu1  ;;  %v18251_v55 = vpop.eup %18250 }
 0x2ad   : > { %18264 = vtanh.f32 %v1577_v51  ;;  %v2113_v4 = vrot.slane %v18251_v55, %v19600_v11  ;;  %v1320_v54 = vrot.slane %v19661_v34, %v19600_v11 }
 0x2ae   : > { %v18253_v56 = vpop.eup %18252 }
 0x2af   : > { %v1615_v57 = vpop.f32.mrb[8].mxu0  ;;  %v18255_v59 = vpop.eup %18254  ;;  %v2121_v62 = vrot.slane %v18253_v56, %v19600_v11  ;;  %v2126_v27 = vsel %vm2107_vm1, %v2113_v4, 0.0 }
 0x2b0   : > { %v1616_v60 = vadd.f32 %v1615_v57, %v1288_v50  ;;  %v1617_v61 = vpop.f32.mrb[9].mxu0  ;;  %v18257_v1 = vpop.eup %18256  ;;  %v2117_v8 = vrot.slane %v18255_v59, %v19600_v11  ;;  %v1324_v59 = vrot.slane %v19661_v34, %v19603_v13 }
 0x2b1   : > { %v1618_v2 = vadd.f32 %v1617_v61, %v1292_v53  ;;  %v1619_v3 = vpop.f32.mrb[10].mxu0  ;;  %v2128_v6 = vsel %vm2107_vm1, %v2121_v62, 0.0  ;;  %v1656_v7 = vpop.f32.mrb[8].mxu1  ;;  %v2125_v17 = vrot.slane %v18257_v1, %v19600_v11 }
 0x2b2   : > { %18266 = vtanh.f32 %v1616_v60  ;;  %v1620_v5 = vpop.f32.mrb[11].mxu0  ;;  %v1657_v9 = vadd.f32 %v1656_v7, %v1296_v58  ;;  %v1658_v12 = vpop.f32.mrb[9].mxu1  ;;  %v2127_v30 = vsel %vm2107_vm1, %v2117_v8, 0.0  ;;  %v1332_v8 = vrot.slane %v19661_v34, %v19610_v16 }
 0x2b3   : > { %18268 = vtanh.f32 %v1618_v2  ;;  %v1659_v18 = vadd.f32 %v1658_v12, %v1300_v63  ;;  %v1660_v19 = vpop.f32.mrb[10].mxu1  ;;  %v2129_v43 = vsel %vm2107_vm1, %v2125_v17, 0.0  ;;  %v1328_v2 = vrot.slane %v19661_v34, %v19606_v14 }
 0x2b4   : > { %v18259_v15 = vpop.eup %18258  ;;  %18270 = vtanh.f32 %v1657_v9  ;;  %v1661_v26 = vpop.f32.mrb[11].mxu1 }
 0x2b5   : > { %v18261_v20 = vpop.eup %18260  ;;  %v2136_v22 = vrot.slane %v18259_v15, %v19600_v11  ;;  %18272 = vtanh.f32 %v1659_v18  ;;  %v1336_v26 = vrot.slane %v19661_v34, %v19615_v21 }
 0x2b6   : > { %v2140_v28 = vrot.slane %v18261_v20, %v19600_v11  ;;  %v18263_v29 = vpop.eup %18262 }
 0x2b7   : > { %v2149_v32 = vsel %vm2130_vm2, %v2136_v22, %v2126_v27  ;;  %v1697_v33 = vpop.f32.mrb[12].mxu0  ;;  %v18265_v38 = vpop.eup %18264  ;;  %v2144_v44 = vrot.slane %v18263_v29, %v19600_v11 }
 0x2b8   : > { %v2150_v40 = vsel %vm2130_vm2, %v2140_v28, %v2127_v30  ;;  %v1698_v41 = vadd.f32 %v1697_v33, %v1304_v24  ;;  %v1699_v42 = vpop.f32.mrb[13].mxu0  ;;  %v2148_v47 = vrot.slane %v18265_v38, %v19600_v11 }
 0x2b9   : > { %v1700_v45 = vadd.f32 %v1699_v42, %v1308_v23  ;;  %v1701_v46 = vpop.f32.mrb[14].mxu0  ;;  %v2151_v39 = vsel %vm2130_vm2, %v2144_v44, %v2128_v6  ;;  %v1738_v49 = vpop.f32.mrb[12].mxu1  ;;  %v1344_v42 = vrot.slane %v19661_v34, %v19622_v31 }
 0x2ba   : > { %18274 = vtanh.f32 %v1698_v41  ;;  %v1702_v48 = vpop.f32.mrb[15].mxu0  ;;  %v2152_v50 = vsel %vm2130_vm2, %v2148_v47, %v2129_v43  ;;  %v1739_v51 = vadd.f32 %v1738_v49, %v1312_v36  ;;  %v1740_v52 = vpop.f32.mrb[13].mxu1  ;;  %v19707_v41 = vld [vmem:[#allocation7 + $0x18] sm:$0xff] }
 0x2bb   : > { %18276 = vtanh.f32 %v1700_v45  ;;  %v1741_v55 = vadd.f32 %v1740_v52, %v1316_v37  ;;  %v1742_v56 = vpop.f32.mrb[14].mxu1  ;;  %v1348_v48 = vrot.slane %v19661_v34, %v19626_v35 }
 0x2bc   : > { %v18267_v53 = vpop.eup %18266  ;;  %18278 = vtanh.f32 %v1739_v51  ;;  %v1743_v60 = vpop.f32.mrb[15].mxu1 }
 0x2bd   : > { %v18269_v57 = vpop.eup %18268  ;;  %v2159_v58 = vrot.slane %v18267_v53, %v19600_v11  ;;  %18280 = vtanh.f32 %v1741_v55 }
 0x2be   : > { %v2163_v61 = vrot.slane %v18269_v57, %v19600_v11  ;;  %v18271_v62 = vpop.eup %18270 }
 0x2bf   : > { %v2172_v63 = vsel %vm2153_vm3, %v2159_v58, %v2149_v32  ;;  %v1779_v1 = vpop.f32.mrb[16].mxu0  ;;  %v18273_v3 = vpop.eup %18272  ;;  %v2167_v7 = vrot.slane %v18271_v62, %v19600_v11  ;;  %v1340_v32 = vrot.slane %v19661_v34, %v19619_v25  ;;  %v1352_v34 = vrot.slane %v19707_v41, %v19600_v11 }
 0x2c0   : > { %v2173_v4 = vsel %vm2153_vm3, %v2163_v61, %v2150_v40  ;;  %v1780_v5 = vadd.f32 %v1779_v1, %v1320_v54  ;;  %v1781_v6 = vpop.f32.mrb[17].mxu0  ;;  %v2171_v15 = vrot.slane %v18273_v3, %v19600_v11  ;;  %v1356_v62 = vrot.slane %v19707_v41, %v19603_v13 }
 0x2c1   : > { %v1782_v9 = vadd.f32 %v1781_v6, %v1324_v59  ;;  %v1783_v12 = vpop.f32.mrb[18].mxu0  ;;  %v2174_v17 = vsel %vm2153_vm3, %v2167_v7, %v2151_v39  ;;  %v1820_v18 = vpop.f32.mrb[16].mxu1 }
 0x2c2   : > { %18282 = vtanh.f32 %v1780_v5  ;;  %v1784_v24 = vpop.f32.mrb[19].mxu0  ;;  %v2175_v19 = vsel %vm2153_vm3, %v2171_v15, %v2152_v50  ;;  %v1821_v20 = vadd.f32 %v1820_v18, %v1328_v2  ;;  %v1822_v22 = vpop.f32.mrb[17].mxu1  ;;  %v1360_v5 = vrot.slane %v19707_v41, %v19606_v14 }
 0x2c3   : > { %18284 = vtanh.f32 %v1782_v9  ;;  %v1823_v27 = vadd.f32 %v1822_v22, %v1332_v8  ;;  %v1824_v28 = vpop.f32.mrb[18].mxu1  ;;  %v1364_v15 = vrot.slane %v19707_v41, %v19610_v16 }
 0x2c4   : > { %v18275_v23 = vpop.eup %18274  ;;  %18286 = vtanh.f32 %v1821_v20  ;;  %v1825_v33 = vpop.f32.mrb[19].mxu1 }
 0x2c5   : > { %v18277_v29 = vpop.eup %18276  ;;  %v2182_v30 = vrot.slane %v18275_v23, %v19600_v11  ;;  %18288 = vtanh.f32 %v1823_v27 }
 0x2c6   : > { %v2186_v36 = vrot.slane %v18277_v29, %v19600_v11  ;;  %v18279_v37 = vpop.eup %18278  ;;  %v1368_v29 = vrot.slane %v19707_v41, %v19615_v21  ;;  %v1376_v21 = vrot.slane %v19707_v41, %v19622_v31 }
 0x2c7   : > { %v2195_v38 = vsel %vm2176_vm4, %v2182_v30, %v2172_v63  ;;  %v1861_v40 = vpop.f32.mrb[20].mxu0  ;;  %v18281_v43 = vpop.eup %18280  ;;  %v2190_v47 = vrot.slane %v18279_v37, %v19600_v11  ;;  %v1372_v37 = vrot.slane %v19707_v41, %v19619_v25 }
 0x2c8   : > { %v2196_v44 = vsel %vm2176_vm4, %v2186_v36, %v2173_v4  ;;  %v1862_v45 = vadd.f32 %v1861_v40, %v1336_v26  ;;  %v1863_v46 = vpop.f32.mrb[21].mxu0  ;;  %v2194_v50 = vrot.slane %v18281_v43, %v19600_v11 }
 0x2c9   : > { %v1864_v39 = vadd.f32 %v1863_v46, %v1340_v32  ;;  %v1865_v49 = vpop.f32.mrb[22].mxu0  ;;  %v2197_v52 = vsel %vm2176_vm4, %v2190_v47, %v2174_v17  ;;  %v1902_v53 = vpop.f32.mrb[20].mxu1 }
 0x2ca   : > { %18290 = vtanh.f32 %v1862_v45  ;;  %v1866_v51 = vpop.f32.mrb[23].mxu0  ;;  %v2198_v54 = vsel %vm2176_vm4, %v2194_v50, %v2175_v19  ;;  %v1903_v55 = vadd.f32 %v1902_v53, %v1344_v42  ;;  %v1904_v56 = vpop.f32.mrb[21].mxu1  ;;  %vm9059_vm4 = vcmask 1046528  }
 0x2cb   : > { %18292 = vtanh.f32 %v1864_v39  ;;  %v1905_v58 = vadd.f32 %v1904_v56, %v1348_v48  ;;  %v1906_v59 = vpop.f32.mrb[22].mxu1  ;;  %v1380_v39 = vrot.slane %v19707_v41, %v19626_v35 }
 0x2cc   : > { %v18283_v57 = vpop.eup %18282  ;;  %18294 = vtanh.f32 %v1903_v55  ;;  %v1907_v63 = vpop.f32.mrb[23].mxu1 }
 0x2cd   : > { %v18285_v60 = vpop.eup %18284  ;;  %v2205_v61 = vrot.slane %v18283_v57, %v19600_v11  ;;  %18296 = vtanh.f32 %v1905_v58 }
 0x2ce   : > { %v2209_v1 = vrot.slane %v18285_v60, %v19600_v11  ;;  %v18287_v2 = vpop.eup %18286 }
 0x2cf   : > { %v2218_v3 = vsel %vm2199_vm5, %v2205_v61, %v2195_v38  ;;  %v1943_v4 = vpop.f32.mrb[24].mxu0  ;;  %v18289_v6 = vpop.eup %18288  ;;  %v2213_v12 = vrot.slane %v18287_v2, %v19600_v11 }
 0x2d0   : > { %v2219_v7 = vsel %vm2199_vm5, %v2209_v1, %v2196_v44  ;;  %v1944_v8 = vadd.f32 %v1943_v4, %v1352_v34  ;;  %v1945_v9 = vpop.f32.mrb[25].mxu0  ;;  %v2217_v18 = vrot.slane %v18289_v6, %v19600_v11 }
 0x2d1   : > { %v1946_v24 = vadd.f32 %v1945_v9, %v1356_v62  ;;  %v1947_v17 = vpop.f32.mrb[26].mxu0  ;;  %v2220_v20 = vsel %vm2199_vm5, %v2213_v12, %v2197_v52  ;;  %v1984_v22 = vpop.f32.mrb[24].mxu1 }
 0x2d2   : > { %18298 = vtanh.f32 %v1944_v8  ;;  %v1948_v19 = vpop.f32.mrb[27].mxu0  ;;  %v2221_v23 = vsel %vm2199_vm5, %v2217_v18, %v2198_v54  ;;  %v1985_v26 = vadd.f32 %v1984_v22, %v1360_v5  ;;  %v1986_v27 = vpop.f32.mrb[25].mxu1  ;;  %v16877_v17 = vld [vmem:[#allocation8 + $0xa08] ss:$80 sps:$4 sm:$0xff]   ;;  %v16882_v22 = vld [vmem:[#allocation8 + $0xaa4] ss:$80 sps:$4 sm:$0xff]  }
 0x2d3   : > { %18300 = vtanh.f32 %v1946_v24  ;;  %v1987_v30 = vadd.f32 %v1986_v27, %v1364_v15  ;;  %v1988_v32 = vpop.f32.mrb[26].mxu1  ;;  %v16874_v24 = vld [vmem:[#allocation8 + $0xa00] ss:$80 sps:$4 sm:$0xff]   ;;  %vm9060_vm5 = vcmask 1047552  }
 0x2d4   : > { %v18291_v28 = vpop.eup %18290  ;;  %18302 = vtanh.f32 %v1985_v26  ;;  %v1989_v38 = vpop.f32.mrb[27].mxu1  ;;  %v16880_v32 = vld [vmem:[#allocation8 + $0xaa0] ss:$80 sps:$4 sm:$0xff]  }
 0x2d5   : > { %v18293_v33 = vpop.eup %18292  ;;  %v2228_v36 = vrot.slane %v18291_v28, %v19600_v11  ;;  %18304 = vtanh.f32 %v1987_v30  ;;  %v16891_v38 = vld [vmem:[#allocation8 + $0xb4c] ss:$80 sps:$4 sm:$0xff]  }
 0x2d6   : > { %v2232_v40 = vrot.slane %v18293_v33, %v19600_v11  ;;  %v18295_v42 = vpop.eup %18294  ;;  %v16883_v33 = vld [vmem:[#allocation8 + $0xaa8] ss:$80 sps:$4 sm:$0xff]  }
 0x2d7   : > { %v2241_v43 = vsel %vm2222_vm6, %v2228_v36, %v2218_v3  ;;  %v2025_v44 = vpop.f32.mrb[28].mxu0  ;;  %v18297_v45 = vpop.eup %18296  ;;  %v2236_v25 = vrot.slane %v18295_v42, %v19600_v11  ;;  %v16894_v42 = vld [vmem:[#allocation8 + $0xbe4] ss:$80 sps:$4 sm:$0xff]  }
 0x2d8   : > { %v2242_v46 = vsel %vm2222_vm6, %v2232_v40, %v2219_v7  ;;  %v2026_v47 = vadd.f32 %v2025_v44, %v1368_v29  ;;  %v2027_v48 = vpop.f32.mrb[29].mxu0  ;;  %v2240_v51 = vrot.slane %v18297_v45, %v19600_v11  ;;  %v16889_v40 = vld [vmem:[#allocation8 + $0xb48] ss:$80 sps:$4 sm:$0xff]   ;;  %v16892_v44 = vld [vmem:[#allocation8 + $0xbe0] ss:$80 sps:$4 sm:$0xff]  }
 0x2d9   : > { %v2028_v49 = vadd.f32 %v2027_v48, %v1372_v37  ;;  %v2029_v50 = vpop.f32.mrb[30].mxu0  ;;  %v2243_v31 = vsel %vm2222_vm6, %v2236_v25, %v2220_v20  ;;  %v2066_v53 = vpop.f32.mrb[28].mxu1  ;;  %v16888_v37 = vld [vmem:[#allocation8 + $0xb44] ss:$80 sps:$4 sm:$0xff]   ;;  %v16901_v48 = vld [vmem:[#allocation8 + $0xc88] ss:$80 sps:$4 sm:$0xff]  }
 0x2da   : > { %18306 = vtanh.f32 %v2026_v47  ;;  %v2030_v52 = vpop.f32.mrb[31].mxu0  ;;  %v2244_v54 = vsel %vm2222_vm6, %v2240_v51, %v2221_v23  ;;  %v2067_v55 = vadd.f32 %v2066_v53, %v1376_v21  ;;  %v2068_v56 = vpop.f32.mrb[29].mxu1  ;;  %v16885_v23 = vld [vmem:[#allocation8 + $0xaac] ss:$80 sps:$4 sm:$0xff]   ;;  %v16895_v21 = vld [vmem:[#allocation8 + $0xbe8] ss:$80 sps:$4 sm:$0xff]  }
 0x2db   : > { %18308 = vtanh.f32 %v2028_v49  ;;  %v2069_v35 = vadd.f32 %v2068_v56, %v1380_v39  ;;  %v2070_v41 = vpop.f32.mrb[30].mxu1  ;;  %v16900_v45 = vld [vmem:[#allocation8 + $0xc84] ss:$80 sps:$4 sm:$0xff]   ;;  %v16898_v47 = vld [vmem:[#allocation8 + $0xc80] ss:$80 sps:$4 sm:$0xff]   ;;  %vm9052_vm6 = vcmask 121856  }
 0x2dc   : > { %v18299_v57 = vpop.eup %18298  ;;  %18310 = vtanh.f32 %v2067_v55  ;;  %v2071_v59 = vpop.f32.mrb[31].mxu1  ;;  %v16906_v25 = vld [vmem:[#allocation8 + $0xd24] ss:$80 sps:$4 sm:$0xff]   ;;  %v16909_v39 = vld [vmem:[#allocation8 + $0xd2c] ss:$80 sps:$4 sm:$0xff]  }
 0x2dd   : > { %v18301_v34 = vpop.eup %18300  ;;  %v2251_v58 = vrot.slane %v18299_v57, %v19600_v11  ;;  %18312 = vtanh.f32 %v2069_v35  ;;  %v16904_v49 = vld [vmem:[#allocation8 + $0xd20] ss:$80 sps:$4 sm:$0xff]   ;;  %v16907_v50 = vld [vmem:[#allocation8 + $0xd28] ss:$80 sps:$4 sm:$0xff]   ;;  %v16912_v51 = vld [vmem:[#allocation8 + $0xdc4] ss:$80 sps:$4 sm:$0xff]  }
 0x2de   : > { %v2255_v60 = vrot.slane %v18301_v34, %v19600_v11  ;;  %v18303_v61 = vpop.eup %18302  ;;  %v16915_v52 = vld [vmem:[#allocation8 + $0xdcc] ss:$80 sps:$4 sm:$0xff]   ;;  %v16913_v53 = vld [vmem:[#allocation8 + $0xdc8] ss:$80 sps:$4 sm:$0xff]   ;;  %v16916_v56 = vld [vmem:[#allocation8 + $0xe60] ss:$80 sps:$4 sm:$0xff]  }
 0x2df   : > { %v2264_v62 = vsel %vm2245_vm7, %v2251_v58, %v2241_v43  ;;  %v18305_v63 = vpop.eup %18304  ;;  %v2259_v2 = vrot.slane %v18303_v61, %v19600_v11  ;;  %v16897_v43 = vld [vmem:[#allocation8 + $0xbec] ss:$80 sps:$4 sm:$0xff]   ;;  %v16919_v57 = vld [vmem:[#allocation8 + $0xe68] ss:$80 sps:$4 sm:$0xff]   ;;  %v16924_v35 = vld [vmem:[#allocation8 + $0xf04] ss:$80 sps:$4 sm:$0xff]  }
 0x2e0   : > { %v2265_v1 = vsel %vm2245_vm7, %v2255_v60, %v2242_v46  ;;  %v2263_v3 = vrot.slane %v18305_v63, %v19600_v11  ;;  %v16903_v46 = vld [vmem:[#allocation8 + $0xc8c] ss:$80 sps:$4 sm:$0xff]   ;;  %v16922_v34 = vld [vmem:[#allocation8 + $0xf00] ss:$80 sps:$4 sm:$0xff]   ;;  %v16925_v58 = vld [vmem:[#allocation8 + $0xf08] ss:$80 sps:$4 sm:$0xff]  }
 0x2e1   : > { %v2266_v4 = vsel %vm2245_vm7, %v2259_v2, %v2243_v31  ;;  %v16910_v31 = vld [vmem:[#allocation8 + $0xdc0] ss:$80 sps:$4 sm:$0xff]   ;;  %v16921_v55 = vld [vmem:[#allocation8 + $0xe6c] ss:$80 sps:$4 sm:$0xff]   ;;  %v16930_v59 = vld [vmem:[#allocation8 + $0xfa4] ss:$80 sps:$4 sm:$0xff]  }
 0x2e2   : > { %v2267_v5 = vsel %vm2245_vm7, %v2263_v3, %v2244_v54  ;;  %v16918_v54 = vld [vmem:[#allocation8 + $0xe64] ss:$80 sps:$4 sm:$0xff]   ;;  %v16927_v41 = vld [vmem:[#allocation8 + $0xf0c] ss:$80 sps:$4 sm:$0xff]   ;;  %v16928_v61 = vld [vmem:[#allocation8 + $0xfa0] ss:$80 sps:$4 sm:$0xff]  }
 0x2e3   : > { %v16933_v60 = vld [vmem:[#allocation8 + $0xfac] ss:$80 sps:$4 sm:$0xff]   ;;  %v16936_v63 = vld [vmem:[#allocation8 + $0x1044] ss:$80 sps:$4 sm:$0xff]   ;;  %v16934_v2 = vld [vmem:[#allocation8 + $0x1040] ss:$80 sps:$4 sm:$0xff]  }
 0x2e4   : > { %v18307_v6 = vpop.eup %18306  ;;  %v16937_v3 = vld [vmem:[#allocation8 + $0x1048] ss:$80 sps:$4 sm:$0xff]  }
 0x2e5   : > { %v18309_v7 = vpop.eup %18308  ;;  %v2274_v8 = vrot.slane %v18307_v6, %v19600_v11  ;;  %v16940_v6 = vld [vmem:[#allocation8 + $0x10e0] ss:$80 sps:$4 sm:$0xff]  }
 0x2e6   : > { %v2278_v9 = vrot.slane %v18309_v7, %v19600_v11  ;;  %v18311_v12 = vpop.eup %18310  ;;  %v16943_v7 = vld [vmem:[#allocation8 + $0x10e8] ss:$80 sps:$4 sm:$0xff]  }
 0x2e7   : > { %v2287_v15 = vsel %vm2268_vm8, %v2274_v8, %v2264_v62  ;;  %v18313_v18 = vpop.eup %18312  ;;  %v2282_v20 = vrot.slane %v18311_v12, %v19600_v11  ;;  %v16931_v62 = vld [vmem:[#allocation8 + $0xfa8] ss:$80 sps:$4 sm:$0xff]   ;;  %v16948_v8 = vld [vmem:[#allocation8 + $0x1184] ss:$80 sps:$4 sm:$0xff]   ;;  %v16946_v12 = vld [vmem:[#allocation8 + $0x1180] ss:$80 sps:$4 sm:$0xff]  }
 0x2e8   : > { %v2288_v19 = vsel %vm2268_vm8, %v2278_v9, %v2265_v1  ;;  %v2286_v27 = vrot.slane %v18313_v18, %v19600_v11  ;;  %v19787_v28 = vpack.c.bf16 %v2287_v15, %v2287_v15  ;;  %v16939_v1 = vld [vmem:[#allocation8 + $0x104c] ss:$80 sps:$4 sm:$0xff]   ;;  %v16949_v15 = vld [vmem:[#allocation8 + $0x1188] ss:$80 sps:$4 sm:$0xff]   ;;  %v16952_v18 = vld [vmem:[#allocation8 + $0x1220] ss:$80 sps:$4 sm:$0xff]  }
 0x2e9   : > { %v19784_v26 = vpack.c.bf16 %v2288_v19, %v2288_v19  ;;  %v19791_v29 = vsel %vm2268_vm8, %v2282_v20, %v2266_v4  ;;  %v16942_v4 = vld [vmem:[#allocation8 + $0x10e4] ss:$80 sps:$4 sm:$0xff]   ;;  %v16951_v9 = vld [vmem:[#allocation8 + $0x118c] ss:$80 sps:$4 sm:$0xff]   ;;  %v16955_v19 = vld [vmem:[#allocation8 + $0x1228] ss:$80 sps:$4 sm:$0xff]  }
 0x2ea   : > { %v2290_v30 = vsel %vm2268_vm8, %v2286_v27, %v2267_v5  ;;  %v16945_v5 = vld [vmem:[#allocation8 + $0x10ec] ss:$80 sps:$4 sm:$0xff]   ;;  %v16960_v20 = vld [vmem:[#allocation8 + $0x12c4] ss:$80 sps:$4 sm:$0xff]   ;;  %v16961_v27 = vld [vmem:[#allocation8 + $0x12c8] ss:$80 sps:$4 sm:$0xff]  }
 0x2eb   : > { %6167 = vmatprep.mubr.bf16.mxu0 %v19784_v26  ;;  %6249 = vmatprep.mubr.bf16.mxu1 %v19784_v26  ;;  %v19797_v36 = vpack.c.bf16 %v2290_v30, %v2290_v30  ;;  %v16966_v30 = vld [vmem:[#allocation8 + $0x1364] ss:$80 sps:$4 sm:$0xff]  }
 0x2ec   : > { %6168 = vmatmul.mubr.bf16.vlgmr.msra.gmra.mrb[32].mxu0 %v19787_v28  ;;  %6250 = vmatmul.mubr.bf16.vlgmr.msra.gmra.mrb[32].mxu1 %v19787_v28 }
 0x2ed   : > { %6177 = vmatpush1.bf16.msra.mxu0 %v16874_v24  ;;  %6259 = vmatpush1.bf16.msra.mxu1 %v16877_v17  ;;  %v16954_v24 = vld [vmem:[#allocation8 + $0x1224] ss:$80 sps:$4 sm:$0xff]   ;;  %v16957_v17 = vld [vmem:[#allocation8 + $0x122c] ss:$80 sps:$4 sm:$0xff]  }
 0x2ee   : > { %6178 = vmatprep.subr.bf16.mxu0 %v16882_v22  ;;  %6260 = vmatprep.subr.bf16.mxu1 %v16885_v23  ;;  %v16963_v22 = vld [vmem:[#allocation8 + $0x12cc] ss:$80 sps:$4 sm:$0xff]   ;;  %v16958_v23 = vld [vmem:[#allocation8 + $0x12c0] ss:$80 sps:$4 sm:$0xff]  }
 0x2ef   : > { %6208 = vmatprep.mubr.bf16.mxu0 %v19797_v36  ;;  %6290 = vmatprep.mubr.bf16.mxu1 %v19797_v36 }
 0x2f1   : > { %6179 = vmatpush1.bf16.msra.mxu0 %v16880_v32  ;;  %6261 = vmatpush1.bf16.msra.mxu1 %v16883_v33  ;;  %v16969_v32 = vld [vmem:[#allocation8 + $0x136c] ss:$80 sps:$4 sm:$0xff]   ;;  %v16964_v33 = vld [vmem:[#allocation8 + $0x1360] ss:$80 sps:$4 sm:$0xff]  }
 0x2f2   : > { %6180 = vmatprep.subr.bf16.mxu0 %v16888_v37  ;;  %6262 = vmatprep.subr.bf16.mxu1 %v16891_v38  ;;  %v16967_v37 = vld [vmem:[#allocation8 + $0x1368] ss:$80 sps:$4 sm:$0xff]   ;;  %v16972_v38 = vld [vmem:[#allocation8 + $0x14] ss:$80 sps:$4 sm:$0xff]  }
 0x2f5   : > { %6181 = vmatpush1.bf16.msra.mxu0 %v16886_v10  ;;  %6263 = vmatpush1.bf16.msra.mxu1 %v16889_v40  ;;  %v16975_v10 = vld [vmem:[#allocation8 + $0x1c] ss:$80 sps:$4 sm:$0xff]   ;;  %v16970_v40 = vld [vmem:[#allocation8 + $0x10] ss:$80 sps:$4 sm:$0xff]  }
 0x2f6   : > { %6182 = vmatprep.subr.bf16.mxu0 %v16894_v42  ;;  %6264 = vmatprep.subr.bf16.mxu1 %v16897_v43  ;;  %v16973_v42 = vld [vmem:[#allocation8 + $0x18] ss:$80 sps:$4 sm:$0xff]   ;;  %v16978_v43 = vld [vmem:[#allocation8 + $0xb4] ss:$80 sps:$4 sm:$0xff]  }
 0x2f9   : > { %6183 = vmatpush1.bf16.msra.mxu0 %v16892_v44  ;;  %6265 = vmatpush1.bf16.msra.mxu1 %v16895_v21  ;;  %v16981_v44 = vld [vmem:[#allocation8 + $0xbc] ss:$80 sps:$4 sm:$0xff]   ;;  %v19805_v21 = vpack.c.bf16 %v19791_v29, %v19791_v29  ;;  %v16982_v29 = vld [vmem:[#allocation8 + $0x150] ss:$80 sps:$4 sm:$0xff]  }
 0x2fa   : > { %6184 = vmatprep.subr.bf16.mxu0 %v16900_v45  ;;  %6266 = vmatprep.subr.bf16.mxu1 %v16903_v46  ;;  %v16976_v45 = vld [vmem:[#allocation8 + $0xb0] ss:$80 sps:$4 sm:$0xff]   ;;  %v16979_v46 = vld [vmem:[#allocation8 + $0xb8] ss:$80 sps:$4 sm:$0xff]  }
 0x2fd   : > { %6185 = vmatpush1.bf16.msra.mxu0 %v16898_v47  ;;  %6267 = vmatpush1.bf16.msra.mxu1 %v16901_v48  ;;  %v16984_v47 = vld [vmem:[#allocation8 + $0x154] ss:$80 sps:$4 sm:$0xff]   ;;  %v16987_v48 = vld [vmem:[#allocation8 + $0x15c] ss:$80 sps:$4 sm:$0xff]  }
 0x2fe   : > { %6186 = vmatprep.subr.bf16.mxu0 %v16906_v25  ;;  %6268 = vmatprep.subr.bf16.mxu1 %v16909_v39  ;;  %v16985_v25 = vld [vmem:[#allocation8 + $0x158] ss:$80 sps:$4 sm:$0xff]   ;;  %v16990_v39 = vld [vmem:[#allocation8 + $0x1f4] ss:$80 sps:$4 sm:$0xff]  }
 0x301   : > { %6187 = vmatpush1.bf16.msra.mxu0 %v16904_v49  ;;  %6269 = vmatpush1.bf16.msra.mxu1 %v16907_v50  ;;  %v16988_v49 = vld [vmem:[#allocation8 + $0x1f0] ss:$80 sps:$4 sm:$0xff]   ;;  %v16993_v50 = vld [vmem:[#allocation8 + $0x1fc] ss:$80 sps:$4 sm:$0xff]  }
 0x302   : > { %6188 = vmatprep.subr.bf16.mxu0 %v16912_v51  ;;  %6270 = vmatprep.subr.bf16.mxu1 %v16915_v52  ;;  %v16991_v51 = vld [vmem:[#allocation8 + $0x1f8] ss:$80 sps:$4 sm:$0xff]   ;;  %v16996_v52 = vld [vmem:[#allocation8 + $0x294] ss:$80 sps:$4 sm:$0xff]  }
 0x305   : > { %6189 = vmatpush1.bf16.msra.mxu0 %v16910_v31  ;;  %6271 = vmatpush1.bf16.msra.mxu1 %v16913_v53  ;;  %v16994_v31 = vld [vmem:[#allocation8 + $0x290] ss:$80 sps:$4 sm:$0xff]   ;;  %v16999_v53 = vld [vmem:[#allocation8 + $0x29c] ss:$80 sps:$4 sm:$0xff]  }
 0x306   : > { %6190 = vmatprep.subr.bf16.mxu0 %v16918_v54  ;;  %6272 = vmatprep.subr.bf16.mxu1 %v16921_v55  ;;  %v16997_v54 = vld [vmem:[#allocation8 + $0x298] ss:$80 sps:$4 sm:$0xff]   ;;  %v17002_v55 = vld [vmem:[#allocation8 + $0x334] ss:$80 sps:$4 sm:$0xff]  }
 0x309   : > { %6191 = vmatpush1.bf16.msra.mxu0 %v16916_v56  ;;  %6273 = vmatpush1.bf16.msra.mxu1 %v16919_v57  ;;  %v17000_v56 = vld [vmem:[#allocation8 + $0x330] ss:$80 sps:$4 sm:$0xff]   ;;  %v17005_v57 = vld [vmem:[#allocation8 + $0x33c] ss:$80 sps:$4 sm:$0xff]  }
 0x30a   : > { %6192 = vmatprep.subr.bf16.mxu0 %v16924_v35  ;;  %6274 = vmatprep.subr.bf16.mxu1 %v16927_v41  ;;  %v17003_v35 = vld [vmem:[#allocation8 + $0x338] ss:$80 sps:$4 sm:$0xff]   ;;  %v17008_v41 = vld [vmem:[#allocation8 + $0x3d4] ss:$80 sps:$4 sm:$0xff]  }
 0x30d   : > { %6193 = vmatpush1.bf16.msra.mxu0 %v16922_v34  ;;  %6275 = vmatpush1.bf16.msra.mxu1 %v16925_v58  ;;  %v17006_v34 = vld [vmem:[#allocation8 + $0x3d0] ss:$80 sps:$4 sm:$0xff]   ;;  %v17011_v58 = vld [vmem:[#allocation8 + $0x3dc] ss:$80 sps:$4 sm:$0xff]  }
 0x30e   : > { %6194 = vmatprep.subr.bf16.mxu0 %v16930_v59  ;;  %6276 = vmatprep.subr.bf16.mxu1 %v16933_v60  ;;  %v17009_v59 = vld [vmem:[#allocation8 + $0x3d8] ss:$80 sps:$4 sm:$0xff]   ;;  %v17014_v60 = vld [vmem:[#allocation8 + $0x474] ss:$80 sps:$4 sm:$0xff]  }
 0x311   : > { %6195 = vmatpush1.bf16.msra.mxu0 %v16928_v61  ;;  %6277 = vmatpush1.bf16.msra.mxu1 %v16931_v62  ;;  %v17012_v61 = vld [vmem:[#allocation8 + $0x470] ss:$80 sps:$4 sm:$0xff]   ;;  %v17017_v62 = vld [vmem:[#allocation8 + $0x47c] ss:$80 sps:$4 sm:$0xff]  }
 0x312   : > { %6196 = vmatprep.subr.bf16.mxu0 %v16936_v63  ;;  %6278 = vmatprep.subr.bf16.mxu1 %v16939_v1  ;;  %v17015_v63 = vld [vmem:[#allocation8 + $0x478] ss:$80 sps:$4 sm:$0xff]   ;;  %v17020_v1 = vld [vmem:[#allocation8 + $0x514] ss:$80 sps:$4 sm:$0xff]  }
 0x315   : > { %6197 = vmatpush1.bf16.msra.mxu0 %v16934_v2  ;;  %6279 = vmatpush1.bf16.msra.mxu1 %v16937_v3  ;;  %v17018_v2 = vld [vmem:[#allocation8 + $0x510] ss:$80 sps:$4 sm:$0xff]   ;;  %v17023_v3 = vld [vmem:[#allocation8 + $0x51c] ss:$80 sps:$4 sm:$0xff]  }
 0x316   : > { %6198 = vmatprep.subr.bf16.mxu0 %v16942_v4  ;;  %6280 = vmatprep.subr.bf16.mxu1 %v16945_v5  ;;  %v17021_v4 = vld [vmem:[#allocation8 + $0x518] ss:$80 sps:$4 sm:$0xff]   ;;  %v17026_v5 = vld [vmem:[#allocation8 + $0x5b4] ss:$80 sps:$4 sm:$0xff]  }
 0x319   : > { %6199 = vmatpush1.bf16.msra.mxu0 %v16940_v6  ;;  %6281 = vmatpush1.bf16.msra.mxu1 %v16943_v7  ;;  %v17024_v6 = vld [vmem:[#allocation8 + $0x5b0] ss:$80 sps:$4 sm:$0xff]   ;;  %v17029_v7 = vld [vmem:[#allocation8 + $0x5bc] ss:$80 sps:$4 sm:$0xff]  }
 0x31a   : > { %6200 = vmatprep.subr.bf16.mxu0 %v16948_v8  ;;  %6282 = vmatprep.subr.bf16.mxu1 %v16951_v9  ;;  %v17027_v8 = vld [vmem:[#allocation8 + $0x5b8] ss:$80 sps:$4 sm:$0xff]   ;;  %v17032_v9 = vld [vmem:[#allocation8 + $0x654] ss:$80 sps:$4 sm:$0xff]  }
 0x31d   : > { %6201 = vmatpush1.bf16.msra.mxu0 %v16946_v12  ;;  %6283 = vmatpush1.bf16.msra.mxu1 %v16949_v15  ;;  %v17030_v12 = vld [vmem:[#allocation8 + $0x650] ss:$80 sps:$4 sm:$0xff]   ;;  %v17035_v15 = vld [vmem:[#allocation8 + $0x65c] ss:$80 sps:$4 sm:$0xff]  }
 0x31e   : > { %6202 = vmatprep.subr.bf16.mxu0 %v16954_v24  ;;  %6284 = vmatprep.subr.bf16.mxu1 %v16957_v17  ;;  %v17033_v24 = vld [vmem:[#allocation8 + $0x658] ss:$80 sps:$4 sm:$0xff]   ;;  %v17038_v17 = vld [vmem:[#allocation8 + $0x6f4] ss:$80 sps:$4 sm:$0xff]  }
 0x321   : > { %6203 = vmatpush1.bf16.msra.mxu0 %v16952_v18  ;;  %6285 = vmatpush1.bf16.msra.mxu1 %v16955_v19  ;;  %v17036_v18 = vld [vmem:[#allocation8 + $0x6f0] ss:$80 sps:$4 sm:$0xff]   ;;  %v17041_v19 = vld [vmem:[#allocation8 + $0x6fc] ss:$80 sps:$4 sm:$0xff]  }
 0x322   : > { %6204 = vmatprep.subr.bf16.mxu0 %v16960_v20  ;;  %6286 = vmatprep.subr.bf16.mxu1 %v16963_v22  ;;  %v17039_v20 = vld [vmem:[#allocation8 + $0x6f8] ss:$80 sps:$4 sm:$0xff]   ;;  %v17044_v22 = vld [vmem:[#allocation8 + $0x794] ss:$80 sps:$4 sm:$0xff]  }
 0x325   : > { %6205 = vmatpush1.bf16.msra.mxu0 %v16958_v23  ;;  %6287 = vmatpush1.bf16.msra.mxu1 %v16961_v27  ;;  %v17042_v23 = vld [vmem:[#allocation8 + $0x790] ss:$80 sps:$4 sm:$0xff]   ;;  %v17047_v27 = vld [vmem:[#allocation8 + $0x79c] ss:$80 sps:$4 sm:$0xff]  }
 0x326   : > { %6206 = vmatprep.subr.bf16.mxu0 %v16966_v30  ;;  %6288 = vmatprep.subr.bf16.mxu1 %v16969_v32  ;;  %v17045_v30 = vld [vmem:[#allocation8 + $0x798] ss:$80 sps:$4 sm:$0xff]   ;;  %v17050_v32 = vld [vmem:[#allocation8 + $0x834] ss:$80 sps:$4 sm:$0xff]  }
 0x329   : > { %6207 = vmatpush1.bf16.msra.mxu0 %v16964_v33  ;;  %6289 = vmatpush1.bf16.msra.mxu1 %v16967_v37  ;;  %v17048_v33 = vld [vmem:[#allocation8 + $0x830] ss:$80 sps:$4 sm:$0xff]   ;;  %v17053_v37 = vld [vmem:[#allocation8 + $0x83c] ss:$80 sps:$4 sm:$0xff]  }
 0x32a   : > { %6299 = vmatprep.subr.bf16.mxu0 %v16972_v38  ;;  %6381 = vmatprep.subr.bf16.mxu1 %v16975_v10  ;;  %v17051_v38 = vld [vmem:[#allocation8 + $0x838] ss:$80 sps:$4 sm:$0xff]   ;;  %v17056_v10 = vld [vmem:[#allocation8 + $0x8d4] ss:$80 sps:$4 sm:$0xff]  }
 0x32c   : > { %6209 = vmatmul.mubr.bf16.vlgmr.msra.gmra.mrb[32].mxu0 %v19805_v21  ;;  %6291 = vmatmul.mubr.bf16.vlgmr.msra.gmra.mrb[32].mxu1 %v19805_v21 }
 0x32d   : > { %6300 = vmatpush1.bf16.msra.mxu0 %v16970_v40  ;;  %6331 = vmatprep.mubr.bf16.mxu0 %v19784_v26  ;;  %v17054_v40 = vld [vmem:[#allocation8 + $0x8d0] ss:$80 sps:$4 sm:$0xff]  }
 0x32e   : > { %6382 = vmatpush1.bf16.msra.mxu1 %v16973_v42  ;;  %6413 = vmatprep.mubr.bf16.mxu1 %v19784_v26  ;;  %v17059_v42 = vld [vmem:[#allocation8 + $0x8dc] ss:$80 sps:$4 sm:$0xff]  }
 0x32f   : > { %6301 = vmatprep.subr.bf16.mxu0 %v16978_v43  ;;  %6383 = vmatprep.subr.bf16.mxu1 %v16981_v44  ;;  %v17057_v43 = vld [vmem:[#allocation8 + $0x8d8] ss:$80 sps:$4 sm:$0xff]   ;;  %v17062_v44 = vld [vmem:[#allocation8 + $0x974] ss:$80 sps:$4 sm:$0xff]  }
 0x331   : > { %6302 = vmatpush1.bf16.msra.mxu0 %v16976_v45  ;;  %v17060_v45 = vld [vmem:[#allocation8 + $0x970] ss:$80 sps:$4 sm:$0xff]  }
 0x332   : > { %6384 = vmatpush1.bf16.msra.mxu1 %v16979_v46  ;;  %6303 = vmatprep.subr.bf16.mxu0 %v16984_v47  ;;  %v17065_v46 = vld [vmem:[#allocation8 + $0x97c] ss:$80 sps:$4 sm:$0xff]   ;;  %v17063_v47 = vld [vmem:[#allocation8 + $0x978] ss:$80 sps:$4 sm:$0xff]  }
 0x333   : > { %6385 = vmatprep.subr.bf16.mxu1 %v16987_v48  ;;  %v17068_v48 = vld [vmem:[#allocation8 + $0xa14] ss:$80 sps:$4 sm:$0xff]  }
 0x335   : > { %6304 = vmatpush1.bf16.msra.mxu0 %v16982_v29  ;;  %v17071_v29 = vld [vmem:[#allocation8 + $0xa1c] ss:$80 sps:$4 sm:$0xff]  }
 0x336   : > { %6386 = vmatpush1.bf16.msra.mxu1 %v16985_v25  ;;  %6305 = vmatprep.subr.bf16.mxu0 %v16990_v39  ;;  %v17066_v25 = vld [vmem:[#allocation8 + $0xa10] ss:$80 sps:$4 sm:$0xff]   ;;  %v17069_v39 = vld [vmem:[#allocation8 + $0xa18] ss:$80 sps:$4 sm:$0xff]  }
 0x337   : > { %6387 = vmatprep.subr.bf16.mxu1 %v16993_v50  ;;  %v17072_v50 = vld [vmem:[#allocation8 + $0xab0] ss:$80 sps:$4 sm:$0xff]  }
 0x339   : > { %6306 = vmatpush1.bf16.msra.mxu0 %v16988_v49  ;;  %v17074_v49 = vld [vmem:[#allocation8 + $0xab4] ss:$80 sps:$4 sm:$0xff]  }
 0x33a   : > { %6388 = vmatpush1.bf16.msra.mxu1 %v16991_v51  ;;  %6307 = vmatprep.subr.bf16.mxu0 %v16996_v52  ;;  %v17075_v51 = vld [vmem:[#allocation8 + $0xab8] ss:$80 sps:$4 sm:$0xff]   ;;  %v17077_v52 = vld [vmem:[#allocation8 + $0xabc] ss:$80 sps:$4 sm:$0xff]  }
 0x33b   : > { %6389 = vmatprep.subr.bf16.mxu1 %v16999_v53  ;;  %v17083_v53 = vld [vmem:[#allocation8 + $0xb5c] ss:$80 sps:$4 sm:$0xff]  }
 0x33d   : > { %6308 = vmatpush1.bf16.msra.mxu0 %v16994_v31  ;;  %v17080_v31 = vld [vmem:[#allocation8 + $0xb54] ss:$80 sps:$4 sm:$0xff]  }
 0x33e   : > { %6390 = vmatpush1.bf16.msra.mxu1 %v16997_v54  ;;  %6309 = vmatprep.subr.bf16.mxu0 %v17002_v55  ;;  %v17078_v54 = vld [vmem:[#allocation8 + $0xb50] ss:$80 sps:$4 sm:$0xff]   ;;  %v17081_v55 = vld [vmem:[#allocation8 + $0xb58] ss:$80 sps:$4 sm:$0xff]  }
 0x33f   : > { %6391 = vmatprep.subr.bf16.mxu1 %v17005_v57  ;;  %v17084_v57 = vld [vmem:[#allocation8 + $0xbf0] ss:$80 sps:$4 sm:$0xff]  }
 0x341   : > { %6310 = vmatpush1.bf16.msra.mxu0 %v17000_v56  ;;  %v17086_v56 = vld [vmem:[#allocation8 + $0xbf4] ss:$80 sps:$4 sm:$0xff]  }
 0x342   : > { %6392 = vmatpush1.bf16.msra.mxu1 %v17003_v35  ;;  %6311 = vmatprep.subr.bf16.mxu0 %v17008_v41  ;;  %v17089_v35 = vld [vmem:[#allocation8 + $0xbfc] ss:$80 sps:$4 sm:$0xff]   ;;  %v17087_v41 = vld [vmem:[#allocation8 + $0xbf8] ss:$80 sps:$4 sm:$0xff]  }
 0x343   : > { %6393 = vmatprep.subr.bf16.mxu1 %v17011_v58  ;;  %v17090_v58 = vld [vmem:[#allocation8 + $0xc90] ss:$80 sps:$4 sm:$0xff]  }
 0x345   : > { %6312 = vmatpush1.bf16.msra.mxu0 %v17006_v34  ;;  %v17092_v34 = vld [vmem:[#allocation8 + $0xc94] ss:$80 sps:$4 sm:$0xff]  }
 0x346   : > { %6394 = vmatpush1.bf16.msra.mxu1 %v17009_v59  ;;  %6313 = vmatprep.subr.bf16.mxu0 %v17014_v60  ;;  %v17095_v59 = vld [vmem:[#allocation8 + $0xc9c] ss:$80 sps:$4 sm:$0xff]   ;;  %v17093_v60 = vld [vmem:[#allocation8 + $0xc98] ss:$80 sps:$4 sm:$0xff]  }
 0x347   : > { %6395 = vmatprep.subr.bf16.mxu1 %v17017_v62  ;;  %v17096_v62 = vld [vmem:[#allocation8 + $0xd30] ss:$80 sps:$4 sm:$0xff]  }
 0x349   : > { %6314 = vmatpush1.bf16.msra.mxu0 %v17012_v61  ;;  %v17098_v61 = vld [vmem:[#allocation8 + $0xd34] ss:$80 sps:$4 sm:$0xff]  }
 0x34a   : > { %6396 = vmatpush1.bf16.msra.mxu1 %v17015_v63  ;;  %6315 = vmatprep.subr.bf16.mxu0 %v17020_v1  ;;  %v17101_v63 = vld [vmem:[#allocation8 + $0xd3c] ss:$80 sps:$4 sm:$0xff]   ;;  %v17099_v1 = vld [vmem:[#allocation8 + $0xd38] ss:$80 sps:$4 sm:$0xff]  }
 0x34b   : > { %6397 = vmatprep.subr.bf16.mxu1 %v17023_v3  ;;  %v17107_v3 = vld [vmem:[#allocation8 + $0xddc] ss:$80 sps:$4 sm:$0xff]  }
 0x34d   : > { %6316 = vmatpush1.bf16.msra.mxu0 %v17018_v2  ;;  %v17104_v2 = vld [vmem:[#allocation8 + $0xdd4] ss:$80 sps:$4 sm:$0xff]  }
 0x34e   : > { %6398 = vmatpush1.bf16.msra.mxu1 %v17021_v4  ;;  %6317 = vmatprep.subr.bf16.mxu0 %v17026_v5  ;;  %v17102_v4 = vld [vmem:[#allocation8 + $0xdd0] ss:$80 sps:$4 sm:$0xff]   ;;  %v17105_v5 = vld [vmem:[#allocation8 + $0xdd8] ss:$80 sps:$4 sm:$0xff]  }
 0x34f   : > { %6399 = vmatprep.subr.bf16.mxu1 %v17029_v7  ;;  %v17108_v7 = vld [vmem:[#allocation8 + $0xe70] ss:$80 sps:$4 sm:$0xff]  }
 0x351   : > { %6318 = vmatpush1.bf16.msra.mxu0 %v17024_v6  ;;  %v17110_v6 = vld [vmem:[#allocation8 + $0xe74] ss:$80 sps:$4 sm:$0xff]  }
 0x352   : > { %6400 = vmatpush1.bf16.msra.mxu1 %v17027_v8  ;;  %6319 = vmatprep.subr.bf16.mxu0 %v17032_v9  ;;  %v17113_v8 = vld [vmem:[#allocation8 + $0xe7c] ss:$80 sps:$4 sm:$0xff]   ;;  %v17111_v9 = vld [vmem:[#allocation8 + $0xe78] ss:$80 sps:$4 sm:$0xff]  }
 0x353   : > { %6401 = vmatprep.subr.bf16.mxu1 %v17035_v15  ;;  %v17114_v15 = vld [vmem:[#allocation8 + $0xf10] ss:$80 sps:$4 sm:$0xff]  }
 0x355   : > { %6320 = vmatpush1.bf16.msra.mxu0 %v17030_v12  ;;  %v17116_v12 = vld [vmem:[#allocation8 + $0xf14] ss:$80 sps:$4 sm:$0xff]  }
 0x356   : > { %6402 = vmatpush1.bf16.msra.mxu1 %v17033_v24  ;;  %6321 = vmatprep.subr.bf16.mxu0 %v17038_v17  ;;  %v17119_v24 = vld [vmem:[#allocation8 + $0xf1c] ss:$80 sps:$4 sm:$0xff]   ;;  %v17117_v17 = vld [vmem:[#allocation8 + $0xf18] ss:$80 sps:$4 sm:$0xff]  }
 0x357   : > { %6403 = vmatprep.subr.bf16.mxu1 %v17041_v19  ;;  %v17120_v19 = vld [vmem:[#allocation8 + $0xfb0] ss:$80 sps:$4 sm:$0xff]  }
 0x359   : > { %6322 = vmatpush1.bf16.msra.mxu0 %v17036_v18  ;;  %v17122_v18 = vld [vmem:[#allocation8 + $0xfb4] ss:$80 sps:$4 sm:$0xff]  }
 0x35a   : > { %6404 = vmatpush1.bf16.msra.mxu1 %v17039_v20  ;;  %6323 = vmatprep.subr.bf16.mxu0 %v17044_v22  ;;  %v17125_v20 = vld [vmem:[#allocation8 + $0xfbc] ss:$80 sps:$4 sm:$0xff]   ;;  %v17123_v22 = vld [vmem:[#allocation8 + $0xfb8] ss:$80 sps:$4 sm:$0xff]  }
 0x35b   : > { %6405 = vmatprep.subr.bf16.mxu1 %v17047_v27  ;;  %v17126_v27 = vld [vmem:[#allocation8 + $0x1050] ss:$80 sps:$4 sm:$0xff]  }
 0x35d   : > { %6324 = vmatpush1.bf16.msra.mxu0 %v17042_v23  ;;  %v17128_v23 = vld [vmem:[#allocation8 + $0x1054] ss:$80 sps:$4 sm:$0xff]  }
 0x35e   : > { %6406 = vmatpush1.bf16.msra.mxu1 %v17045_v30  ;;  %6325 = vmatprep.subr.bf16.mxu0 %v17050_v32  ;;  %v17131_v30 = vld [vmem:[#allocation8 + $0x105c] ss:$80 sps:$4 sm:$0xff]   ;;  %v17129_v32 = vld [vmem:[#allocation8 + $0x1058] ss:$80 sps:$4 sm:$0xff]  }
 0x35f   : > { %6407 = vmatprep.subr.bf16.mxu1 %v17053_v37  ;;  %v17132_v37 = vld [vmem:[#allocation8 + $0x10f0] ss:$80 sps:$4 sm:$0xff]  }
 0x361   : > { %6326 = vmatpush1.bf16.msra.mxu0 %v17048_v33  ;;  %v17134_v33 = vld [vmem:[#allocation8 + $0x10f4] ss:$80 sps:$4 sm:$0xff]  }
 0x362   : > { %6408 = vmatpush1.bf16.msra.mxu1 %v17051_v38  ;;  %6327 = vmatprep.subr.bf16.mxu0 %v17056_v10  ;;  %v17137_v38 = vld [vmem:[#allocation8 + $0x10fc] ss:$80 sps:$4 sm:$0xff]   ;;  %v17135_v10 = vld [vmem:[#allocation8 + $0x10f8] ss:$80 sps:$4 sm:$0xff]  }
 0x363   : > { %6409 = vmatprep.subr.bf16.mxu1 %v17059_v42  ;;  %v17138_v42 = vld [vmem:[#allocation8 + $0x1190] ss:$80 sps:$4 sm:$0xff]  }
 0x365   : > { %6328 = vmatpush1.bf16.msra.mxu0 %v17054_v40  ;;  %v17140_v40 = vld [vmem:[#allocation8 + $0x1194] ss:$80 sps:$4 sm:$0xff]  }
 0x366   : > { %6410 = vmatpush1.bf16.msra.mxu1 %v17057_v43  ;;  %6329 = vmatprep.subr.bf16.mxu0 %v17062_v44  ;;  %v17143_v43 = vld [vmem:[#allocation8 + $0x119c] ss:$80 sps:$4 sm:$0xff]   ;;  %v17141_v44 = vld [vmem:[#allocation8 + $0x1198] ss:$80 sps:$4 sm:$0xff]  }
 0x367   : > { %6411 = vmatprep.subr.bf16.mxu1 %v17065_v46  ;;  %v17144_v46 = vld [vmem:[#allocation8 + $0x1230] ss:$80 sps:$4 sm:$0xff]  }
 0x369   : > { %6330 = vmatpush1.bf16.msra.mxu0 %v17060_v45  ;;  %v17146_v45 = vld [vmem:[#allocation8 + $0x1234] ss:$80 sps:$4 sm:$0xff]  }
 0x36a   : > { %6412 = vmatpush1.bf16.msra.mxu1 %v17063_v47  ;;  %6340 = vmatprep.subr.bf16.mxu0 %v17068_v48  ;;  %v17149_v47 = vld [vmem:[#allocation8 + $0x123c] ss:$80 sps:$4 sm:$0xff]   ;;  %v17147_v48 = vld [vmem:[#allocation8 + $0x1238] ss:$80 sps:$4 sm:$0xff]  }
 0x36b   : > { %6422 = vmatprep.subr.bf16.mxu1 %v17071_v29  ;;  %v17152_v29 = vld [vmem:[#allocation8 + $0x12d4] ss:$80 sps:$4 sm:$0xff]  }
 0x36c   : > { %6332 = vmatmul.mubr.bf16.vlgmr.msra.gmra.mrb[36].mxu0 %v19787_v28 }
 0x36d   : > { %6414 = vmatmul.mubr.bf16.vlgmr.msra.gmra.mrb[36].mxu1 %v19787_v28  ;;  %6341 = vmatpush1.bf16.msra.mxu0 %v17066_v25  ;;  %v17150_v25 = vld [vmem:[#allocation8 + $0x12d0] ss:$80 sps:$4 sm:$0xff]  }
 0x36e   : > { %6372 = vmatprep.mubr.bf16.mxu0 %v19797_v36  ;;  %6423 = vmatpush1.bf16.msra.mxu1 %v17069_v39  ;;  %v17155_v39 = vld [vmem:[#allocation8 + $0x12dc] ss:$80 sps:$4 sm:$0xff]  }
 0x36f   : > { %6454 = vmatprep.mubr.bf16.mxu1 %v19797_v36  ;;  %6342 = vmatprep.subr.bf16.mxu0 %v17074_v49  ;;  %v17153_v49 = vld [vmem:[#allocation8 + $0x12d8] ss:$80 sps:$4 sm:$0xff]  }
 0x370   : > { %6424 = vmatprep.subr.bf16.mxu1 %v17077_v52  ;;  %v17161_v52 = vld [vmem:[#allocation8 + $0x137c] ss:$80 sps:$4 sm:$0xff]  }
 0x371   : > { %6343 = vmatpush1.bf16.msra.mxu0 %v17072_v50  ;;  %v17158_v50 = vld [vmem:[#allocation8 + $0x1374] ss:$80 sps:$4 sm:$0xff]  }
 0x372   : > { %6425 = vmatpush1.bf16.msra.mxu1 %v17075_v51  ;;  %6344 = vmatprep.subr.bf16.mxu0 %v17080_v31  ;;  %v17156_v51 = vld [vmem:[#allocation8 + $0x1370] ss:$80 sps:$4 sm:$0xff]   ;;  %v17159_v31 = vld [vmem:[#allocation8 + $0x1378] ss:$80 sps:$4 sm:$0xff]  }
 0x373   : > { %6426 = vmatprep.subr.bf16.mxu1 %v17083_v53  ;;  %v17164_v53 = vld [vmem:[#allocation8 + $0x24] ss:$80 sps:$4 sm:$0xff]  }
 0x375   : > { %6345 = vmatpush1.bf16.msra.mxu0 %v17078_v54  ;;  %v17167_v54 = vld [vmem:[#allocation8 + $0x2c] ss:$80 sps:$4 sm:$0xff]  }
 0x376   : > { %6427 = vmatpush1.bf16.msra.mxu1 %v17081_v55  ;;  %6346 = vmatprep.subr.bf16.mxu0 %v17086_v56  ;;  %v17162_v55 = vld [vmem:[#allocation8 + $0x20] ss:$80 sps:$4 sm:$0xff]   ;;  %v17165_v56 = vld [vmem:[#allocation8 + $0x28] ss:$80 sps:$4 sm:$0xff]  }
 0x377   : > { %6428 = vmatprep.subr.bf16.mxu1 %v17089_v35  ;;  %v17168_v35 = vld [vmem:[#allocation8 + $0xc0] ss:$80 sps:$4 sm:$0xff]  }
 0x379   : > { %6347 = vmatpush1.bf16.msra.mxu0 %v17084_v57  ;;  %v17170_v57 = vld [vmem:[#allocation8 + $0xc4] ss:$80 sps:$4 sm:$0xff]  }
 0x37a   : > { %6429 = vmatpush1.bf16.msra.mxu1 %v17087_v41  ;;  %6348 = vmatprep.subr.bf16.mxu0 %v17092_v34  ;;  %v17173_v41 = vld [vmem:[#allocation8 + $0xcc] ss:$80 sps:$4 sm:$0xff]   ;;  %v17171_v34 = vld [vmem:[#allocation8 + $0xc8] ss:$80 sps:$4 sm:$0xff]  }
 0x37b   : > { %6430 = vmatprep.subr.bf16.mxu1 %v17095_v59  ;;  %v17179_v59 = vld [vmem:[#allocation8 + $0x16c] ss:$80 sps:$4 sm:$0xff]  }
 0x37d   : > { %6349 = vmatpush1.bf16.msra.mxu0 %v17090_v58  ;;  %v17176_v58 = vld [vmem:[#allocation8 + $0x164] ss:$80 sps:$4 sm:$0xff]  }
 0x37e   : > { %6431 = vmatpush1.bf16.msra.mxu1 %v17093_v60  ;;  %6350 = vmatprep.subr.bf16.mxu0 %v17098_v61  ;;  %v17174_v60 = vld [vmem:[#allocation8 + $0x160] ss:$80 sps:$4 sm:$0xff]   ;;  %v17177_v61 = vld [vmem:[#allocation8 + $0x168] ss:$80 sps:$4 sm:$0xff]  }
 0x37f   : > { %6432 = vmatprep.subr.bf16.mxu1 %v17101_v63  ;;  %v17180_v63 = vld [vmem:[#allocation8 + $0x200] ss:$80 sps:$4 sm:$0xff]  }
 0x381   : > { %6351 = vmatpush1.bf16.msra.mxu0 %v17096_v62  ;;  %v17182_v62 = vld [vmem:[#allocation8 + $0x204] ss:$80 sps:$4 sm:$0xff]  }
 0x382   : > { %6433 = vmatpush1.bf16.msra.mxu1 %v17099_v1  ;;  %6352 = vmatprep.subr.bf16.mxu0 %v17104_v2  ;;  %v17185_v1 = vld [vmem:[#allocation8 + $0x20c] ss:$80 sps:$4 sm:$0xff]   ;;  %v17183_v2 = vld [vmem:[#allocation8 + $0x208] ss:$80 sps:$4 sm:$0xff]  }
 0x383   : > { %6434 = vmatprep.subr.bf16.mxu1 %v17107_v3  ;;  %v17188_v3 = vld [vmem:[#allocation8 + $0x2a4] ss:$80 sps:$4 sm:$0xff]  }
 0x385   : > { %6353 = vmatpush1.bf16.msra.mxu0 %v17102_v4  ;;  %v17186_v4 = vld [vmem:[#allocation8 + $0x2a0] ss:$80 sps:$4 sm:$0xff]  }
 0x386   : > { %6435 = vmatpush1.bf16.msra.mxu1 %v17105_v5  ;;  %6354 = vmatprep.subr.bf16.mxu0 %v17110_v6  ;;  %v17191_v5 = vld [vmem:[#allocation8 + $0x2ac] ss:$80 sps:$4 sm:$0xff]   ;;  %v17189_v6 = vld [vmem:[#allocation8 + $0x2a8] ss:$80 sps:$4 sm:$0xff]  }
 0x387   : > { %6436 = vmatprep.subr.bf16.mxu1 %v17113_v8  ;;  %v17192_v8 = vld [vmem:[#allocation8 + $0x340] ss:$80 sps:$4 sm:$0xff]  }
 0x389   : > { %6355 = vmatpush1.bf16.msra.mxu0 %v17108_v7  ;;  %v17194_v7 = vld [vmem:[#allocation8 + $0x344] ss:$80 sps:$4 sm:$0xff]  }
 0x38a   : > { %6437 = vmatpush1.bf16.msra.mxu1 %v17111_v9  ;;  %6356 = vmatprep.subr.bf16.mxu0 %v17116_v12  ;;  %v17197_v9 = vld [vmem:[#allocation8 + $0x34c] ss:$80 sps:$4 sm:$0xff]   ;;  %v17195_v12 = vld [vmem:[#allocation8 + $0x348] ss:$80 sps:$4 sm:$0xff]  }
 0x38b   : > { %6438 = vmatprep.subr.bf16.mxu1 %v17119_v24  ;;  %v17198_v24 = vld [vmem:[#allocation8 + $0x3e0] ss:$80 sps:$4 sm:$0xff]  }
 0x38d   : > { %6357 = vmatpush1.bf16.msra.mxu0 %v17114_v15  ;;  %v17200_v15 = vld [vmem:[#allocation8 + $0x3e4] ss:$80 sps:$4 sm:$0xff]  }
 0x38e   : > { %6439 = vmatpush1.bf16.msra.mxu1 %v17117_v17  ;;  %6358 = vmatprep.subr.bf16.mxu0 %v17122_v18  ;;  %v17203_v17 = vld [vmem:[#allocation8 + $0x3ec] ss:$80 sps:$4 sm:$0xff]   ;;  %v17201_v18 = vld [vmem:[#allocation8 + $0x3e8] ss:$80 sps:$4 sm:$0xff]  }
 0x38f   : > { %6440 = vmatprep.subr.bf16.mxu1 %v17125_v20  ;;  %v17204_v20 = vld [vmem:[#allocation8 + $0x480] ss:$80 sps:$4 sm:$0xff]  }
 0x391   : > { %6359 = vmatpush1.bf16.msra.mxu0 %v17120_v19  ;;  %v17206_v19 = vld [vmem:[#allocation8 + $0x484] ss:$80 sps:$4 sm:$0xff]  }
 0x392   : > { %6441 = vmatpush1.bf16.msra.mxu1 %v17123_v22  ;;  %6360 = vmatprep.subr.bf16.mxu0 %v17128_v23  ;;  %v17209_v22 = vld [vmem:[#allocation8 + $0x48c] ss:$80 sps:$4 sm:$0xff]   ;;  %v17207_v23 = vld [vmem:[#allocation8 + $0x488] ss:$80 sps:$4 sm:$0xff]  }
 0x393   : > { %6442 = vmatprep.subr.bf16.mxu1 %v17131_v30  ;;  %v17210_v30 = vld [vmem:[#allocation8 + $0x520] ss:$80 sps:$4 sm:$0xff]  }
 0x395   : > { %6361 = vmatpush1.bf16.msra.mxu0 %v17126_v27  ;;  %v17212_v27 = vld [vmem:[#allocation8 + $0x524] ss:$80 sps:$4 sm:$0xff]  }
 0x396   : > { %6443 = vmatpush1.bf16.msra.mxu1 %v17129_v32  ;;  %6362 = vmatprep.subr.bf16.mxu0 %v17134_v33  ;;  %v17215_v32 = vld [vmem:[#allocation8 + $0x52c] ss:$80 sps:$4 sm:$0xff]   ;;  %v17213_v33 = vld [vmem:[#allocation8 + $0x528] ss:$80 sps:$4 sm:$0xff]  }
 0x397   : > { %6444 = vmatprep.subr.bf16.mxu1 %v17137_v38  ;;  %v17216_v38 = vld [vmem:[#allocation8 + $0x5c0] ss:$80 sps:$4 sm:$0xff]  }
 0x399   : > { %6363 = vmatpush1.bf16.msra.mxu0 %v17132_v37  ;;  %v17218_v37 = vld [vmem:[#allocation8 + $0x5c4] ss:$80 sps:$4 sm:$0xff]  }
 0x39a   : > { %6445 = vmatpush1.bf16.msra.mxu1 %v17135_v10  ;;  %6364 = vmatprep.subr.bf16.mxu0 %v17140_v40  ;;  %v17221_v10 = vld [vmem:[#allocation8 + $0x5cc] ss:$80 sps:$4 sm:$0xff]   ;;  %v17219_v40 = vld [vmem:[#allocation8 + $0x5c8] ss:$80 sps:$4 sm:$0xff]  }
 0x39b   : > { %6446 = vmatprep.subr.bf16.mxu1 %v17143_v43  ;;  %v17222_v43 = vld [vmem:[#allocation8 + $0x660] ss:$80 sps:$4 sm:$0xff]  }
 0x39d   : > { %6365 = vmatpush1.bf16.msra.mxu0 %v17138_v42  ;;  %v17224_v42 = vld [vmem:[#allocation8 + $0x664] ss:$80 sps:$4 sm:$0xff]  }
 0x39e   : > { %6447 = vmatpush1.bf16.msra.mxu1 %v17141_v44  ;;  %6366 = vmatprep.subr.bf16.mxu0 %v17146_v45  ;;  %v17227_v44 = vld [vmem:[#allocation8 + $0x66c] ss:$80 sps:$4 sm:$0xff]   ;;  %v17225_v45 = vld [vmem:[#allocation8 + $0x668] ss:$80 sps:$4 sm:$0xff]  }
 0x39f   : > { %6448 = vmatprep.subr.bf16.mxu1 %v17149_v47  ;;  %v17228_v47 = vld [vmem:[#allocation8 + $0x700] ss:$80 sps:$4 sm:$0xff]  }
 0x3a1   : > { %6367 = vmatpush1.bf16.msra.mxu0 %v17144_v46  ;;  %v17230_v46 = vld [vmem:[#allocation8 + $0x704] ss:$80 sps:$4 sm:$0xff]  }
 0x3a2   : > { %6449 = vmatpush1.bf16.msra.mxu1 %v17147_v48  ;;  %6368 = vmatprep.subr.bf16.mxu0 %v17152_v29  ;;  %v17233_v48 = vld [vmem:[#allocation8 + $0x70c] ss:$80 sps:$4 sm:$0xff]   ;;  %v17231_v29 = vld [vmem:[#allocation8 + $0x708] ss:$80 sps:$4 sm:$0xff]  }
 0x3a3   : > { %6450 = vmatprep.subr.bf16.mxu1 %v17155_v39  ;;  %v17234_v39 = vld [vmem:[#allocation8 + $0x7a0] ss:$80 sps:$4 sm:$0xff]  }
 0x3a5   : > { %6369 = vmatpush1.bf16.msra.mxu0 %v17150_v25  ;;  %v17236_v25 = vld [vmem:[#allocation8 + $0x7a4] ss:$80 sps:$4 sm:$0xff]  }
 0x3a6   : > { %6451 = vmatpush1.bf16.msra.mxu1 %v17153_v49  ;;  %6370 = vmatprep.subr.bf16.mxu0 %v17158_v50  ;;  %v17239_v49 = vld [vmem:[#allocation8 + $0x7ac] ss:$80 sps:$4 sm:$0xff]   ;;  %v17237_v50 = vld [vmem:[#allocation8 + $0x7a8] ss:$80 sps:$4 sm:$0xff]  }
 0x3a7   : > { %6452 = vmatprep.subr.bf16.mxu1 %v17161_v52  ;;  %v17240_v52 = vld [vmem:[#allocation8 + $0x840] ss:$80 sps:$4 sm:$0xff]  }
 0x3a9   : > { %6371 = vmatpush1.bf16.msra.mxu0 %v17156_v51  ;;  %v17242_v51 = vld [vmem:[#allocation8 + $0x844] ss:$80 sps:$4 sm:$0xff]  }
 0x3aa   : > { %6453 = vmatpush1.bf16.msra.mxu1 %v17159_v31  ;;  %6463 = vmatprep.subr.bf16.mxu0 %v17164_v53  ;;  %v17245_v31 = vld [vmem:[#allocation8 + $0x84c] ss:$80 sps:$4 sm:$0xff]   ;;  %v17243_v53 = vld [vmem:[#allocation8 + $0x848] ss:$80 sps:$4 sm:$0xff]  }
 0x3ab   : > { %6545 = vmatprep.subr.bf16.mxu1 %v17167_v54  ;;  %v17248_v54 = vld [vmem:[#allocation8 + $0x8e4] ss:$80 sps:$4 sm:$0xff]  }
 0x3ac   : > { %6373 = vmatmul.mubr.bf16.vlgmr.msra.gmra.mrb[36].mxu0 %v19805_v21 }
 0x3ad   : > { %6455 = vmatmul.mubr.bf16.vlgmr.msra.gmra.mrb[36].mxu1 %v19805_v21  ;;  %6464 = vmatpush1.bf16.msra.mxu0 %v17162_v55  ;;  %v17246_v55 = vld [vmem:[#allocation8 + $0x8e0] ss:$80 sps:$4 sm:$0xff]  }
 0x3ae   : > { %6495 = vmatprep.mubr.bf16.mxu0 %v19784_v26  ;;  %6546 = vmatpush1.bf16.msra.mxu1 %v17165_v56  ;;  %v17251_v56 = vld [vmem:[#allocation8 + $0x8ec] ss:$80 sps:$4 sm:$0xff]  }
 0x3af   : > { %6577 = vmatprep.mubr.bf16.mxu1 %v19784_v26  ;;  %6465 = vmatprep.subr.bf16.mxu0 %v17170_v57  ;;  %v17249_v57 = vld [vmem:[#allocation8 + $0x8e8] ss:$80 sps:$4 sm:$0xff]  }
 0x3b0   : > { %6547 = vmatprep.subr.bf16.mxu1 %v17173_v41  ;;  %v17252_v41 = vld [vmem:[#allocation8 + $0x980] ss:$80 sps:$4 sm:$0xff]  }
 0x3b1   : > { %6466 = vmatpush1.bf16.msra.mxu0 %v17168_v35  ;;  %v17254_v35 = vld [vmem:[#allocation8 + $0x984] ss:$80 sps:$4 sm:$0xff]  }
 0x3b2   : > { %6548 = vmatpush1.bf16.msra.mxu1 %v17171_v34  ;;  %6467 = vmatprep.subr.bf16.mxu0 %v17176_v58  ;;  %v17257_v34 = vld [vmem:[#allocation8 + $0x98c] ss:$80 sps:$4 sm:$0xff]   ;;  %v17255_v58 = vld [vmem:[#allocation8 + $0x988] ss:$80 sps:$4 sm:$0xff]  }
 0x3b3   : > { %6549 = vmatprep.subr.bf16.mxu1 %v17179_v59  ;;  %v17260_v59 = vld [vmem:[#allocation8 + $0xa24] ss:$80 sps:$4 sm:$0xff]  }
 0x3b5   : > { %6468 = vmatpush1.bf16.msra.mxu0 %v17174_v60  ;;  %v17258_v60 = vld [vmem:[#allocation8 + $0xa20] ss:$80 sps:$4 sm:$0xff]  }
 0x3b6   : > { %6550 = vmatpush1.bf16.msra.mxu1 %v17177_v61  ;;  %6469 = vmatprep.subr.bf16.mxu0 %v17182_v62  ;;  %v17263_v61 = vld [vmem:[#allocation8 + $0xa2c] ss:$80 sps:$4 sm:$0xff]   ;;  %v17261_v62 = vld [vmem:[#allocation8 + $0xa28] ss:$80 sps:$4 sm:$0xff]  }
 0x3b7   : > { %6551 = vmatprep.subr.bf16.mxu1 %v17185_v1  ;;  %v17264_v1 = vld [vmem:[#allocation8 + $0xac0] ss:$80 sps:$4 sm:$0xff]  }
 0x3b9   : > { %6470 = vmatpush1.bf16.msra.mxu0 %v17180_v63  ;;  %v17266_v63 = vld [vmem:[#allocation8 + $0xac4] ss:$80 sps:$4 sm:$0xff]  }
 0x3ba   : > { %6552 = vmatpush1.bf16.msra.mxu1 %v17183_v2  ;;  %6471 = vmatprep.subr.bf16.mxu0 %v17188_v3  ;;  %v17267_v2 = vld [vmem:[#allocation8 + $0xac8] ss:$80 sps:$4 sm:$0xff]   ;;  %v17269_v3 = vld [vmem:[#allocation8 + $0xacc] ss:$80 sps:$4 sm:$0xff]  }
 0x3bb   : > { %6553 = vmatprep.subr.bf16.mxu1 %v17191_v5  ;;  %v17275_v5 = vld [vmem:[#allocation8 + $0xb6c] ss:$80 sps:$4 sm:$0xff]  }
 0x3bd   : > { %6472 = vmatpush1.bf16.msra.mxu0 %v17186_v4  ;;  %v17272_v4 = vld [vmem:[#allocation8 + $0xb64] ss:$80 sps:$4 sm:$0xff]  }
 0x3be   : > { %6554 = vmatpush1.bf16.msra.mxu1 %v17189_v6  ;;  %6473 = vmatprep.subr.bf16.mxu0 %v17194_v7  ;;  %v17270_v6 = vld [vmem:[#allocation8 + $0xb60] ss:$80 sps:$4 sm:$0xff]   ;;  %v17273_v7 = vld [vmem:[#allocation8 + $0xb68] ss:$80 sps:$4 sm:$0xff]  }
 0x3bf   : > { %6555 = vmatprep.subr.bf16.mxu1 %v17197_v9  ;;  %v17276_v9 = vld [vmem:[#allocation8 + $0xc00] ss:$80 sps:$4 sm:$0xff]  }
 0x3c1   : > { %6474 = vmatpush1.bf16.msra.mxu0 %v17192_v8  ;;  %v17278_v8 = vld [vmem:[#allocation8 + $0xc04] ss:$80 sps:$4 sm:$0xff]  }
 0x3c2   : > { %6556 = vmatpush1.bf16.msra.mxu1 %v17195_v12  ;;  %6475 = vmatprep.subr.bf16.mxu0 %v17200_v15  ;;  %v17281_v12 = vld [vmem:[#allocation8 + $0xc0c] ss:$80 sps:$4 sm:$0xff]   ;;  %v17279_v15 = vld [vmem:[#allocation8 + $0xc08] ss:$80 sps:$4 sm:$0xff]  }
 0x3c3   : > { %6557 = vmatprep.subr.bf16.mxu1 %v17203_v17  ;;  %v17282_v17 = vld [vmem:[#allocation8 + $0xca0] ss:$80 sps:$4 sm:$0xff]  }
 0x3c5   : > { %6476 = vmatpush1.bf16.msra.mxu0 %v17198_v24  ;;  %v17284_v24 = vld [vmem:[#allocation8 + $0xca4] ss:$80 sps:$4 sm:$0xff]  }
 0x3c6   : > { %6558 = vmatpush1.bf16.msra.mxu1 %v17201_v18  ;;  %6477 = vmatprep.subr.bf16.mxu0 %v17206_v19  ;;  %v17287_v18 = vld [vmem:[#allocation8 + $0xcac] ss:$80 sps:$4 sm:$0xff]   ;;  %v17285_v19 = vld [vmem:[#allocation8 + $0xca8] ss:$80 sps:$4 sm:$0xff]  }
 0x3c7   : > { %6559 = vmatprep.subr.bf16.mxu1 %v17209_v22  ;;  %v17293_v22 = vld [vmem:[#allocation8 + $0xd4c] ss:$80 sps:$4 sm:$0xff]  }
 0x3c9   : > { %6478 = vmatpush1.bf16.msra.mxu0 %v17204_v20  ;;  %v17290_v20 = vld [vmem:[#allocation8 + $0xd44] ss:$80 sps:$4 sm:$0xff]  }
 0x3ca   : > { %6560 = vmatpush1.bf16.msra.mxu1 %v17207_v23  ;;  %6479 = vmatprep.subr.bf16.mxu0 %v17212_v27  ;;  %v17288_v23 = vld [vmem:[#allocation8 + $0xd40] ss:$80 sps:$4 sm:$0xff]   ;;  %v17291_v27 = vld [vmem:[#allocation8 + $0xd48] ss:$80 sps:$4 sm:$0xff]  }
 0x3cb   : > { %6561 = vmatprep.subr.bf16.mxu1 %v17215_v32  ;;  %v17299_v32 = vld [vmem:[#allocation8 + $0xdec] ss:$80 sps:$4 sm:$0xff]  }
 0x3cd   : > { %6480 = vmatpush1.bf16.msra.mxu0 %v17210_v30  ;;  %v17296_v30 = vld [vmem:[#allocation8 + $0xde4] ss:$80 sps:$4 sm:$0xff]  }
 0x3ce   : > { %6562 = vmatpush1.bf16.msra.mxu1 %v17213_v33  ;;  %6481 = vmatprep.subr.bf16.mxu0 %v17218_v37 }
 0x3cf   : > { %6563 = vmatprep.subr.bf16.mxu1 %v17221_v10 }
 0x3d1   : > { %6482 = vmatpush1.bf16.msra.mxu0 %v17216_v38 }
 0x3d2   : > { %6564 = vmatpush1.bf16.msra.mxu1 %v17219_v40  ;;  %6483 = vmatprep.subr.bf16.mxu0 %v17224_v42 }
 0x3d3   : > { %6565 = vmatprep.subr.bf16.mxu1 %v17227_v44  ;;  %v17297_v44 = vld [vmem:[#allocation8 + $0xde8] ss:$80 sps:$4 sm:$0xff]  }
 0x3d5   : > { %6484 = vmatpush1.bf16.msra.mxu0 %v17222_v43  ;;  %v17294_v43 = vld [vmem:[#allocation8 + $0xde0] ss:$80 sps:$4 sm:$0xff]  }
 0x3d6   : > { %6566 = vmatpush1.bf16.msra.mxu1 %v17225_v45  ;;  %6485 = vmatprep.subr.bf16.mxu0 %v17230_v46 }
 0x3d7   : > { %6567 = vmatprep.subr.bf16.mxu1 %v17233_v48  ;;  %v17305_v48 = vld [vmem:[#allocation8 + $0xe8c] ss:$80 sps:$4 sm:$0xff]  }
 0x3d9   : > { %6486 = vmatpush1.bf16.msra.mxu0 %v17228_v47  ;;  %v17302_v47 = vld [vmem:[#allocation8 + $0xe84] ss:$80 sps:$4 sm:$0xff]  }
 0x3da   : > { %6568 = vmatpush1.bf16.msra.mxu1 %v17231_v29  ;;  %6487 = vmatprep.subr.bf16.mxu0 %v17236_v25  ;;  %v17300_v29 = vld [vmem:[#allocation8 + $0xe80] ss:$80 sps:$4 sm:$0xff]   ;;  %v17303_v25 = vld [vmem:[#allocation8 + $0xe88] ss:$80 sps:$4 sm:$0xff]  }
 0x3db   : > { %6569 = vmatprep.subr.bf16.mxu1 %v17239_v49  ;;  %v17311_v49 = vld [vmem:[#allocation8 + $0xf2c] ss:$80 sps:$4 sm:$0xff]  }
 0x3dd   : > { %6488 = vmatpush1.bf16.msra.mxu0 %v17234_v39  ;;  %v17308_v39 = vld [vmem:[#allocation8 + $0xf24] ss:$80 sps:$4 sm:$0xff]  }
 0x3de   : > { %6570 = vmatpush1.bf16.msra.mxu1 %v17237_v50  ;;  %6489 = vmatprep.subr.bf16.mxu0 %v17242_v51  ;;  %v17306_v50 = vld [vmem:[#allocation8 + $0xf20] ss:$80 sps:$4 sm:$0xff]   ;;  %v17309_v51 = vld [vmem:[#allocation8 + $0xf28] ss:$80 sps:$4 sm:$0xff]  }
 0x3df   : > { %6571 = vmatprep.subr.bf16.mxu1 %v17245_v31  ;;  %v17317_v31 = vld [vmem:[#allocation8 + $0xfcc] ss:$80 sps:$4 sm:$0xff]  }
 0x3e1   : > { %6490 = vmatpush1.bf16.msra.mxu0 %v17240_v52  ;;  %v17314_v52 = vld [vmem:[#allocation8 + $0xfc4] ss:$80 sps:$4 sm:$0xff]  }
 0x3e2   : > { %6572 = vmatpush1.bf16.msra.mxu1 %v17243_v53  ;;  %6491 = vmatprep.subr.bf16.mxu0 %v17248_v54  ;;  %v17312_v53 = vld [vmem:[#allocation8 + $0xfc0] ss:$80 sps:$4 sm:$0xff]   ;;  %v17315_v54 = vld [vmem:[#allocation8 + $0xfc8] ss:$80 sps:$4 sm:$0xff]  }
 0x3e3   : > { %6573 = vmatprep.subr.bf16.mxu1 %v17251_v56  ;;  %v17323_v56 = vld [vmem:[#allocation8 + $0x106c] ss:$80 sps:$4 sm:$0xff]  }
 0x3e5   : > { %6492 = vmatpush1.bf16.msra.mxu0 %v17246_v55  ;;  %v17320_v55 = vld [vmem:[#allocation8 + $0x1064] ss:$80 sps:$4 sm:$0xff]  }
 0x3e6   : > { %6574 = vmatpush1.bf16.msra.mxu1 %v17249_v57  ;;  %6493 = vmatprep.subr.bf16.mxu0 %v17254_v35  ;;  %v17318_v57 = vld [vmem:[#allocation8 + $0x1060] ss:$80 sps:$4 sm:$0xff]   ;;  %v17321_v35 = vld [vmem:[#allocation8 + $0x1068] ss:$80 sps:$4 sm:$0xff]  }
 0x3e7   : > { %6575 = vmatprep.subr.bf16.mxu1 %v17257_v34  ;;  %v17329_v34 = vld [vmem:[#allocation8 + $0x110c] ss:$80 sps:$4 sm:$0xff]  }
 0x3e9   : > { %6494 = vmatpush1.bf16.msra.mxu0 %v17252_v41  ;;  %v17326_v41 = vld [vmem:[#allocation8 + $0x1104] ss:$80 sps:$4 sm:$0xff]  }
 0x3ea   : > { %6576 = vmatpush1.bf16.msra.mxu1 %v17255_v58  ;;  %6504 = vmatprep.subr.bf16.mxu0 %v17260_v59  ;;  %v17324_v58 = vld [vmem:[#allocation8 + $0x1100] ss:$80 sps:$4 sm:$0xff]   ;;  %v17327_v59 = vld [vmem:[#allocation8 + $0x1108] ss:$80 sps:$4 sm:$0xff]  }
 0x3eb   : > { %6586 = vmatprep.subr.bf16.mxu1 %v17263_v61  ;;  %v17335_v61 = vld [vmem:[#allocation8 + $0x11ac] ss:$80 sps:$4 sm:$0xff]  }
 0x3ec   : > { %6496 = vmatmul.mubr.bf16.vlgmr.msra.gmra.mrb[40].mxu0 %v19787_v28 }
 0x3ed   : > { %6578 = vmatmul.mubr.bf16.vlgmr.msra.gmra.mrb[40].mxu1 %v19787_v28  ;;  %6505 = vmatpush1.bf16.msra.mxu0 %v17258_v60  ;;  %v17332_v60 = vld [vmem:[#allocation8 + $0x11a4] ss:$80 sps:$4 sm:$0xff]  }
 0x3ee   : > { %6536 = vmatprep.mubr.bf16.mxu0 %v19797_v36  ;;  %6587 = vmatpush1.bf16.msra.mxu1 %v17261_v62  ;;  %v17330_v62 = vld [vmem:[#allocation8 + $0x11a0] ss:$80 sps:$4 sm:$0xff]  }
 0x3ef   : > { %6618 = vmatprep.mubr.bf16.mxu1 %v19797_v36  ;;  %6506 = vmatprep.subr.bf16.mxu0 %v17266_v63  ;;  %v17333_v63 = vld [vmem:[#allocation8 + $0x11a8] ss:$80 sps:$4 sm:$0xff]  }
 0x3f0   : > { %6588 = vmatprep.subr.bf16.mxu1 %v17269_v3  ;;  %v17336_v3 = vld [vmem:[#allocation8 + $0x1240] ss:$80 sps:$4 sm:$0xff]  }
 0x3f1   : > { %6507 = vmatpush1.bf16.msra.mxu0 %v17264_v1  ;;  %v17338_v1 = vld [vmem:[#allocation8 + $0x1244] ss:$80 sps:$4 sm:$0xff]  }
 0x3f2   : > { %6589 = vmatpush1.bf16.msra.mxu1 %v17267_v2  ;;  %6508 = vmatprep.subr.bf16.mxu0 %v17272_v4  ;;  %v17341_v2 = vld [vmem:[#allocation8 + $0x124c] ss:$80 sps:$4 sm:$0xff]   ;;  %v17339_v4 = vld [vmem:[#allocation8 + $0x1248] ss:$80 sps:$4 sm:$0xff]  }
 0x3f3   : > { %6590 = vmatprep.subr.bf16.mxu1 %v17275_v5  ;;  %v17344_v5 = vld [vmem:[#allocation8 + $0x12e4] ss:$80 sps:$4 sm:$0xff]  }
 0x3f5   : > { %6509 = vmatpush1.bf16.msra.mxu0 %v17270_v6  ;;  %v17347_v6 = vld [vmem:[#allocation8 + $0x12ec] ss:$80 sps:$4 sm:$0xff]  }
 0x3f6   : > { %6591 = vmatpush1.bf16.msra.mxu1 %v17273_v7  ;;  %6510 = vmatprep.subr.bf16.mxu0 %v17278_v8  ;;  %v17342_v7 = vld [vmem:[#allocation8 + $0x12e0] ss:$80 sps:$4 sm:$0xff]   ;;  %v17345_v8 = vld [vmem:[#allocation8 + $0x12e8] ss:$80 sps:$4 sm:$0xff]  }
 0x3f7   : > { %6592 = vmatprep.subr.bf16.mxu1 %v17281_v12  ;;  %v17353_v12 = vld [vmem:[#allocation8 + $0x138c] ss:$80 sps:$4 sm:$0xff]  }
 0x3f9   : > { %6511 = vmatpush1.bf16.msra.mxu0 %v17276_v9  ;;  %v17350_v9 = vld [vmem:[#allocation8 + $0x1384] ss:$80 sps:$4 sm:$0xff]  }
 0x3fa   : > { %6593 = vmatpush1.bf16.msra.mxu1 %v17279_v15  ;;  %6512 = vmatprep.subr.bf16.mxu0 %v17284_v24  ;;  %v17348_v15 = vld [vmem:[#allocation8 + $0x1380] ss:$80 sps:$4 sm:$0xff]   ;;  %v17351_v24 = vld [vmem:[#allocation8 + $0x1388] ss:$80 sps:$4 sm:$0xff]  }
 0x3fb   : > { %6594 = vmatprep.subr.bf16.mxu1 %v17287_v18  ;;  %v17359_v18 = vld [vmem:[#allocation8 + $0x3c] ss:$80 sps:$4 sm:$0xff]  }
 0x3fd   : > { %6513 = vmatpush1.bf16.msra.mxu0 %v17282_v17  ;;  %v17356_v17 = vld [vmem:[#allocation8 + $0x34] ss:$80 sps:$4 sm:$0xff]  }
 0x3fe   : > { %6595 = vmatpush1.bf16.msra.mxu1 %v17285_v19  ;;  %6514 = vmatprep.subr.bf16.mxu0 %v17290_v20  ;;  %v17354_v19 = vld [vmem:[#allocation8 + $0x30] ss:$80 sps:$4 sm:$0xff]   ;;  %v17357_v20 = vld [vmem:[#allocation8 + $0x38] ss:$80 sps:$4 sm:$0xff]  }
 0x3ff   : > { %v19823_v33 = vpop.f32.mrb[32].mxu0  ;;  %v19825_v37 = vpop.f32.mrb[32].mxu1  ;;  %6596 = vmatprep.subr.bf16.mxu1 %v17293_v22  ;;  %v17362_v22 = vld [vmem:[#allocation8 + $0xd4] ss:$80 sps:$4 sm:$0xff]  }
 0x400   : > { %v19827_v38 = vpop.f32.mrb[33].mxu0  ;;  %v19829_v10 = vpop.f32.mrb[33].mxu1 }
 0x401   : > { %v6214_v40 = vpop.f32.mrb[34].mxu0  ;;  %v6296_v42 = vpop.f32.mrb[34].mxu1  ;;  %6515 = vmatpush1.bf16.msra.mxu0 %v17288_v23  ;;  %v17365_v23 = vld [vmem:[#allocation8 + $0xdc] ss:$80 sps:$4 sm:$0xff]  }
 0x402   : > { %6597 = vmatpush1.bf16.msra.mxu1 %v17291_v27  ;;  %v6215_v45 = vpop.f32.mrb[35].mxu0  ;;  %v6297_v46 = vpop.f32.mrb[35].mxu1  ;;  %6516 = vmatprep.subr.bf16.mxu0 %v17296_v30  ;;  %v17360_v27 = vld [vmem:[#allocation8 + $0xd0] ss:$80 sps:$4 sm:$0xff]   ;;  %v17363_v30 = vld [vmem:[#allocation8 + $0xd8] ss:$80 sps:$4 sm:$0xff]  }
 0x403   : > { %6598 = vmatprep.subr.bf16.mxu1 %v17299_v32  ;;  %v17368_v32 = vld [vmem:[#allocation8 + $0x174] ss:$80 sps:$4 sm:$0xff]   ;;  %v17371_v40 = vld [vmem:[#allocation8 + $0x17c] ss:$80 sps:$4 sm:$0xff]   ;;  %v17366_v42 = vld [vmem:[#allocation8 + $0x170] ss:$80 sps:$4 sm:$0xff]  }
 0x404   : > { %v17377_v45 = vld [vmem:[#allocation8 + $0x21c] ss:$80 sps:$4 sm:$0xff]   ;;  %v17372_v46 = vld [vmem:[#allocation8 + $0x210] ss:$80 sps:$4 sm:$0xff]  }
 0x405   : > { %6517 = vmatpush1.bf16.msra.mxu0 %v17294_v43  ;;  %v17369_v43 = vld [vmem:[#allocation8 + $0x178] ss:$80 sps:$4 sm:$0xff]  }
 0x406   : > { %6599 = vmatpush1.bf16.msra.mxu1 %v17297_v44  ;;  %6518 = vmatprep.subr.bf16.mxu0 %v17302_v47  ;;  %v17374_v44 = vld [vmem:[#allocation8 + $0x214] ss:$80 sps:$4 sm:$0xff]   ;;  %v17375_v47 = vld [vmem:[#allocation8 + $0x218] ss:$80 sps:$4 sm:$0xff]  }
 0x407   : > { %6600 = vmatprep.subr.bf16.mxu1 %v17305_v48  ;;  %v17380_v48 = vld [vmem:[#allocation8 + $0x2b4] ss:$80 sps:$4 sm:$0xff]  }
 0x409   : > { %6519 = vmatpush1.bf16.msra.mxu0 %v17300_v29  ;;  %v17383_v29 = vld [vmem:[#allocation8 + $0x2bc] ss:$80 sps:$4 sm:$0xff]  }
 0x40a   : > { %6601 = vmatpush1.bf16.msra.mxu1 %v17303_v25  ;;  %6520 = vmatprep.subr.bf16.mxu0 %v17308_v39  ;;  %v17378_v25 = vld [vmem:[#allocation8 + $0x2b0] ss:$80 sps:$4 sm:$0xff]   ;;  %v17381_v39 = vld [vmem:[#allocation8 + $0x2b8] ss:$80 sps:$4 sm:$0xff]  }
 0x40b   : > { %6602 = vmatprep.subr.bf16.mxu1 %v17311_v49  ;;  %v17386_v49 = vld [vmem:[#allocation8 + $0x354] ss:$80 sps:$4 sm:$0xff]  }
 0x40d   : > { %6521 = vmatpush1.bf16.msra.mxu0 %v17306_v50  ;;  %v17389_v50 = vld [vmem:[#allocation8 + $0x35c] ss:$80 sps:$4 sm:$0xff]  }
 0x40e   : > { %6603 = vmatpush1.bf16.msra.mxu1 %v17309_v51  ;;  %6522 = vmatprep.subr.bf16.mxu0 %v17314_v52  ;;  %v17384_v51 = vld [vmem:[#allocation8 + $0x350] ss:$80 sps:$4 sm:$0xff]   ;;  %v17387_v52 = vld [vmem:[#allocation8 + $0x358] ss:$80 sps:$4 sm:$0xff]  }
 0x40f   : > { %6604 = vmatprep.subr.bf16.mxu1 %v17317_v31  ;;  %v17392_v31 = vld [vmem:[#allocation8 + $0x3f4] ss:$80 sps:$4 sm:$0xff]  }
 0x411   : > { %6523 = vmatpush1.bf16.msra.mxu0 %v17312_v53  ;;  %v17395_v53 = vld [vmem:[#allocation8 + $0x3fc] ss:$80 sps:$4 sm:$0xff]  }
 0x412   : > { %6605 = vmatpush1.bf16.msra.mxu1 %v17315_v54  ;;  %6524 = vmatprep.subr.bf16.mxu0 %v17320_v55  ;;  %v17390_v54 = vld [vmem:[#allocation8 + $0x3f0] ss:$80 sps:$4 sm:$0xff]   ;;  %v17393_v55 = vld [vmem:[#allocation8 + $0x3f8] ss:$80 sps:$4 sm:$0xff]  }
 0x413   : > { %6606 = vmatprep.subr.bf16.mxu1 %v17323_v56  ;;  %v17398_v56 = vld [vmem:[#allocation8 + $0x494] ss:$80 sps:$4 sm:$0xff]  }
 0x415   : > { %6525 = vmatpush1.bf16.msra.mxu0 %v17318_v57  ;;  %v17401_v57 = vld [vmem:[#allocation8 + $0x49c] ss:$80 sps:$4 sm:$0xff]  }
 0x416   : > { %6607 = vmatpush1.bf16.msra.mxu1 %v17321_v35  ;;  %6526 = vmatprep.subr.bf16.mxu0 %v17326_v41  ;;  %v17396_v35 = vld [vmem:[#allocation8 + $0x490] ss:$80 sps:$4 sm:$0xff]   ;;  %v17399_v41 = vld [vmem:[#allocation8 + $0x498] ss:$80 sps:$4 sm:$0xff]  }
 0x417   : > { %6608 = vmatprep.subr.bf16.mxu1 %v17329_v34  ;;  %v17404_v34 = vld [vmem:[#allocation8 + $0x534] ss:$80 sps:$4 sm:$0xff]  }
 0x419   : > { %6527 = vmatpush1.bf16.msra.mxu0 %v17324_v58  ;;  %v17407_v58 = vld [vmem:[#allocation8 + $0x53c] ss:$80 sps:$4 sm:$0xff]  }
 0x41a   : > { %6609 = vmatpush1.bf16.msra.mxu1 %v17327_v59  ;;  %6528 = vmatprep.subr.bf16.mxu0 %v17332_v60  ;;  %v17402_v59 = vld [vmem:[#allocation8 + $0x530] ss:$80 sps:$4 sm:$0xff]   ;;  %v17405_v60 = vld [vmem:[#allocation8 + $0x538] ss:$80 sps:$4 sm:$0xff]  }
 0x41b   : > { %6610 = vmatprep.subr.bf16.mxu1 %v17335_v61  ;;  %v17410_v61 = vld [vmem:[#allocation8 + $0x5d4] ss:$80 sps:$4 sm:$0xff]  }
 0x41d   : > { %6529 = vmatpush1.bf16.msra.mxu0 %v17330_v62  ;;  %v17413_v62 = vld [vmem:[#allocation8 + $0x5dc] ss:$80 sps:$4 sm:$0xff]  }
 0x41e   : > { %6611 = vmatpush1.bf16.msra.mxu1 %v17333_v63  ;;  %6530 = vmatprep.subr.bf16.mxu0 %v17338_v1  ;;  %v17408_v63 = vld [vmem:[#allocation8 + $0x5d0] ss:$80 sps:$4 sm:$0xff]   ;;  %v17411_v1 = vld [vmem:[#allocation8 + $0x5d8] ss:$80 sps:$4 sm:$0xff]  }
 0x41f   : > { %6612 = vmatprep.subr.bf16.mxu1 %v17341_v2  ;;  %v17416_v2 = vld [vmem:[#allocation8 + $0x674] ss:$80 sps:$4 sm:$0xff]  }
 0x421   : > { %6531 = vmatpush1.bf16.msra.mxu0 %v17336_v3  ;;  %v17419_v3 = vld [vmem:[#allocation8 + $0x67c] ss:$80 sps:$4 sm:$0xff]  }
 0x422   : > { %6613 = vmatpush1.bf16.msra.mxu1 %v17339_v4  ;;  %6532 = vmatprep.subr.bf16.mxu0 %v17344_v5  ;;  %v17414_v4 = vld [vmem:[#allocation8 + $0x670] ss:$80 sps:$4 sm:$0xff]   ;;  %v17417_v5 = vld [vmem:[#allocation8 + $0x678] ss:$80 sps:$4 sm:$0xff]  }
 0x423   : > { %6614 = vmatprep.subr.bf16.mxu1 %v17347_v6  ;;  %v17422_v6 = vld [vmem:[#allocation8 + $0x714] ss:$80 sps:$4 sm:$0xff]  }
 0x425   : > { %6533 = vmatpush1.bf16.msra.mxu0 %v17342_v7  ;;  %v17425_v7 = vld [vmem:[#allocation8 + $0x71c] ss:$80 sps:$4 sm:$0xff]  }
 0x426   : > { %6615 = vmatpush1.bf16.msra.mxu1 %v17345_v8  ;;  %6534 = vmatprep.subr.bf16.mxu0 %v17350_v9  ;;  %v17420_v8 = vld [vmem:[#allocation8 + $0x710] ss:$80 sps:$4 sm:$0xff]   ;;  %v17423_v9 = vld [vmem:[#allocation8 + $0x718] ss:$80 sps:$4 sm:$0xff]  }
 0x427   : > { %6616 = vmatprep.subr.bf16.mxu1 %v17353_v12  ;;  %v17428_v12 = vld [vmem:[#allocation8 + $0x7b4] ss:$80 sps:$4 sm:$0xff]  }
 0x429   : > { %6535 = vmatpush1.bf16.msra.mxu0 %v17348_v15  ;;  %v17431_v15 = vld [vmem:[#allocation8 + $0x7bc] ss:$80 sps:$4 sm:$0xff]  }
 0x42a   : > { %6617 = vmatpush1.bf16.msra.mxu1 %v17351_v24  ;;  %6627 = vmatprep.subr.bf16.mxu0 %v17356_v17  ;;  %v17426_v24 = vld [vmem:[#allocation8 + $0x7b0] ss:$80 sps:$4 sm:$0xff]   ;;  %v17429_v17 = vld [vmem:[#allocation8 + $0x7b8] ss:$80 sps:$4 sm:$0xff]  }
 0x42b   : > { %6709 = vmatprep.subr.bf16.mxu1 %v17359_v18  ;;  %v17434_v18 = vld [vmem:[#allocation8 + $0x854] ss:$80 sps:$4 sm:$0xff]  }
 0x42c   : > { %6537 = vmatmul.mubr.bf16.vlgmr.msra.gmra.mrb[40].mxu0 %v19805_v21 }
 0x42d   : > { %6619 = vmatmul.mubr.bf16.vlgmr.msra.gmra.mrb[40].mxu1 %v19805_v21  ;;  %6628 = vmatpush1.bf16.msra.mxu0 %v17354_v19  ;;  %v17437_v19 = vld [vmem:[#allocation8 + $0x85c] ss:$80 sps:$4 sm:$0xff]  }
 0x42e   : > { %6659 = vmatprep.mubr.bf16.mxu0 %v19784_v26  ;;  %6710 = vmatpush1.bf16.msra.mxu1 %v17357_v20  ;;  %v17432_v20 = vld [vmem:[#allocation8 + $0x850] ss:$80 sps:$4 sm:$0xff]  }
 0x42f   : > { %6741 = vmatprep.mubr.bf16.mxu1 %v19784_v26  ;;  %6629 = vmatprep.subr.bf16.mxu0 %v17362_v22  ;;  %v17435_v22 = vld [vmem:[#allocation8 + $0x858] ss:$80 sps:$4 sm:$0xff]  }
 0x430   : > { %6711 = vmatprep.subr.bf16.mxu1 %v17365_v23  ;;  %v17440_v23 = vld [vmem:[#allocation8 + $0x8f4] ss:$80 sps:$4 sm:$0xff]  }
 0x431   : > { %6630 = vmatpush1.bf16.msra.mxu0 %v17360_v27  ;;  %v17443_v27 = vld [vmem:[#allocation8 + $0x8fc] ss:$80 sps:$4 sm:$0xff]  }
 0x432   : > { %6712 = vmatpush1.bf16.msra.mxu1 %v17363_v30  ;;  %6631 = vmatprep.subr.bf16.mxu0 %v17368_v32  ;;  %v17438_v30 = vld [vmem:[#allocation8 + $0x8f0] ss:$80 sps:$4 sm:$0xff]   ;;  %v17441_v32 = vld [vmem:[#allocation8 + $0x8f8] ss:$80 sps:$4 sm:$0xff]  }
 0x433   : > { %6713 = vmatprep.subr.bf16.mxu1 %v17371_v40  ;;  %v17446_v40 = vld [vmem:[#allocation8 + $0x994] ss:$80 sps:$4 sm:$0xff]  }
 0x435   : > { %6632 = vmatpush1.bf16.msra.mxu0 %v17366_v42  ;;  %v17449_v42 = vld [vmem:[#allocation8 + $0x99c] ss:$80 sps:$4 sm:$0xff]  }
 0x436   : > { %6714 = vmatpush1.bf16.msra.mxu1 %v17369_v43  ;;  %6633 = vmatprep.subr.bf16.mxu0 %v17374_v44  ;;  %v17444_v43 = vld [vmem:[#allocation8 + $0x990] ss:$80 sps:$4 sm:$0xff]   ;;  %v17447_v44 = vld [vmem:[#allocation8 + $0x998] ss:$80 sps:$4 sm:$0xff]  }
 0x437   : > { %6715 = vmatprep.subr.bf16.mxu1 %v17377_v45  ;;  %v17452_v45 = vld [vmem:[#allocation8 + $0xa34] ss:$80 sps:$4 sm:$0xff]  }
 0x439   : > { %6634 = vmatpush1.bf16.msra.mxu0 %v17372_v46  ;;  %v17455_v46 = vld [vmem:[#allocation8 + $0xa3c] ss:$80 sps:$4 sm:$0xff]  }
 0x43a   : > { %6716 = vmatpush1.bf16.msra.mxu1 %v17375_v47  ;;  %6635 = vmatprep.subr.bf16.mxu0 %v17380_v48  ;;  %v17450_v47 = vld [vmem:[#allocation8 + $0xa30] ss:$80 sps:$4 sm:$0xff]   ;;  %v17453_v48 = vld [vmem:[#allocation8 + $0xa38] ss:$80 sps:$4 sm:$0xff]  }
 0x43b   : > { %6717 = vmatprep.subr.bf16.mxu1 %v17383_v29  ;;  %v17458_v29 = vld [vmem:[#allocation8 + $0xad4] ss:$80 sps:$4 sm:$0xff]  }
 0x43d   : > { %6636 = vmatpush1.bf16.msra.mxu0 %v17378_v25  ;;  %v17461_v25 = vld [vmem:[#allocation8 + $0xadc] ss:$80 sps:$4 sm:$0xff]  }
 0x43e   : > { %6718 = vmatpush1.bf16.msra.mxu1 %v17381_v39  ;;  %6637 = vmatprep.subr.bf16.mxu0 %v17386_v49  ;;  %v17456_v39 = vld [vmem:[#allocation8 + $0xad0] ss:$80 sps:$4 sm:$0xff]   ;;  %v17459_v49 = vld [vmem:[#allocation8 + $0xad8] ss:$80 sps:$4 sm:$0xff]  }
 0x43f   : > { %6719 = vmatprep.subr.bf16.mxu1 %v17389_v50  ;;  %v17464_v50 = vld [vmem:[#allocation8 + $0xb74] ss:$80 sps:$4 sm:$0xff]  }
 0x441   : > { %6638 = vmatpush1.bf16.msra.mxu0 %v17384_v51  ;;  %v17467_v51 = vld [vmem:[#allocation8 + $0xb7c] ss:$80 sps:$4 sm:$0xff]  }
 0x442   : > { %6720 = vmatpush1.bf16.msra.mxu1 %v17387_v52  ;;  %6639 = vmatprep.subr.bf16.mxu0 %v17392_v31  ;;  %v17462_v52 = vld [vmem:[#allocation8 + $0xb70] ss:$80 sps:$4 sm:$0xff]   ;;  %v17465_v31 = vld [vmem:[#allocation8 + $0xb78] ss:$80 sps:$4 sm:$0xff]  }
 0x443   : > { %6721 = vmatprep.subr.bf16.mxu1 %v17395_v53  ;;  %v17470_v53 = vld [vmem:[#allocation8 + $0xc14] ss:$80 sps:$4 sm:$0xff]  }
 0x445   : > { %6640 = vmatpush1.bf16.msra.mxu0 %v17390_v54  ;;  %v17473_v54 = vld [vmem:[#allocation8 + $0xc1c] ss:$80 sps:$4 sm:$0xff]  }
 0x446   : > { %6722 = vmatpush1.bf16.msra.mxu1 %v17393_v55  ;;  %6641 = vmatprep.subr.bf16.mxu0 %v17398_v56  ;;  %v17468_v55 = vld [vmem:[#allocation8 + $0xc10] ss:$80 sps:$4 sm:$0xff]   ;;  %v17471_v56 = vld [vmem:[#allocation8 + $0xc18] ss:$80 sps:$4 sm:$0xff]  }
 0x447   : > { %6723 = vmatprep.subr.bf16.mxu1 %v17401_v57  ;;  %v17476_v57 = vld [vmem:[#allocation8 + $0xcb4] ss:$80 sps:$4 sm:$0xff]  }
 0x449   : > { %6642 = vmatpush1.bf16.msra.mxu0 %v17396_v35  ;;  %v17479_v35 = vld [vmem:[#allocation8 + $0xcbc] ss:$80 sps:$4 sm:$0xff]  }
 0x44a   : > { %6724 = vmatpush1.bf16.msra.mxu1 %v17399_v41  ;;  %6643 = vmatprep.subr.bf16.mxu0 %v17404_v34  ;;  %v17474_v41 = vld [vmem:[#allocation8 + $0xcb0] ss:$80 sps:$4 sm:$0xff]   ;;  %v17477_v34 = vld [vmem:[#allocation8 + $0xcb8] ss:$80 sps:$4 sm:$0xff]  }
 0x44b   : > { %6725 = vmatprep.subr.bf16.mxu1 %v17407_v58  ;;  %v17482_v58 = vld [vmem:[#allocation8 + $0xd54] ss:$80 sps:$4 sm:$0xff]  }
 0x44d   : > { %6644 = vmatpush1.bf16.msra.mxu0 %v17402_v59  ;;  %v17485_v59 = vld [vmem:[#allocation8 + $0xd5c] ss:$80 sps:$4 sm:$0xff]  }
 0x44e   : > { %6726 = vmatpush1.bf16.msra.mxu1 %v17405_v60  ;;  %6645 = vmatprep.subr.bf16.mxu0 %v17410_v61  ;;  %v17480_v60 = vld [vmem:[#allocation8 + $0xd50] ss:$80 sps:$4 sm:$0xff]   ;;  %v17483_v61 = vld [vmem:[#allocation8 + $0xd58] ss:$80 sps:$4 sm:$0xff]  }
 0x44f   : > { %6727 = vmatprep.subr.bf16.mxu1 %v17413_v62  ;;  %v17488_v62 = vld [vmem:[#allocation8 + $0xdf4] ss:$80 sps:$4 sm:$0xff]  }
 0x451   : > { %6646 = vmatpush1.bf16.msra.mxu0 %v17408_v63 }
 0x452   : > { %6728 = vmatpush1.bf16.msra.mxu1 %v17411_v1  ;;  %6647 = vmatprep.subr.bf16.mxu0 %v17416_v2  ;;  %v17491_v1 = vld [vmem:[#allocation8 + $0xdfc] ss:$80 sps:$4 sm:$0xff]  }
 0x453   : > { %6729 = vmatprep.subr.bf16.mxu1 %v17419_v3 }
 0x455   : > { %6648 = vmatpush1.bf16.msra.mxu0 %v17414_v4 }
 0x456   : > { %6730 = vmatpush1.bf16.msra.mxu1 %v17417_v5  ;;  %6649 = vmatprep.subr.bf16.mxu0 %v17422_v6  ;;  %v17486_v6 = vld [vmem:[#allocation8 + $0xdf0] ss:$80 sps:$4 sm:$0xff]  }
 0x457   : > { %6731 = vmatprep.subr.bf16.mxu1 %v17425_v7 }
 0x459   : > { %6650 = vmatpush1.bf16.msra.mxu0 %v17420_v8 }
 0x45a   : > { %6732 = vmatpush1.bf16.msra.mxu1 %v17423_v9  ;;  %6651 = vmatprep.subr.bf16.mxu0 %v17428_v12  ;;  %v17489_v9 = vld [vmem:[#allocation8 + $0xdf8] ss:$80 sps:$4 sm:$0xff]   ;;  %v17494_v12 = vld [vmem:[#allocation8 + $0xe94] ss:$80 sps:$4 sm:$0xff]  }
 0x45b   : > { %6733 = vmatprep.subr.bf16.mxu1 %v17431_v15 }
 0x45d   : > { %6652 = vmatpush1.bf16.msra.mxu0 %v17426_v24  ;;  %v17497_v24 = vld [vmem:[#allocation8 + $0xe9c] ss:$80 sps:$4 sm:$0xff]  }
 0x45e   : > { %6734 = vmatpush1.bf16.msra.mxu1 %v17429_v17  ;;  %6653 = vmatprep.subr.bf16.mxu0 %v17434_v18  ;;  %v17492_v17 = vld [vmem:[#allocation8 + $0xe90] ss:$80 sps:$4 sm:$0xff]   ;;  %v17495_v18 = vld [vmem:[#allocation8 + $0xe98] ss:$80 sps:$4 sm:$0xff]  }
 0x45f   : > { %6735 = vmatprep.subr.bf16.mxu1 %v17437_v19  ;;  %v17500_v19 = vld [vmem:[#allocation8 + $0xf34] ss:$80 sps:$4 sm:$0xff]  }
 0x461   : > { %6654 = vmatpush1.bf16.msra.mxu0 %v17432_v20  ;;  %v17503_v20 = vld [vmem:[#allocation8 + $0xf3c] ss:$80 sps:$4 sm:$0xff]  }
 0x462   : > { %6736 = vmatpush1.bf16.msra.mxu1 %v17435_v22  ;;  %6655 = vmatprep.subr.bf16.mxu0 %v17440_v23  ;;  %v17498_v22 = vld [vmem:[#allocation8 + $0xf30] ss:$80 sps:$4 sm:$0xff]   ;;  %v17501_v23 = vld [vmem:[#allocation8 + $0xf38] ss:$80 sps:$4 sm:$0xff]  }
 0x463   : > { %6737 = vmatprep.subr.bf16.mxu1 %v17443_v27  ;;  %v17506_v27 = vld [vmem:[#allocation8 + $0xfd4] ss:$80 sps:$4 sm:$0xff]  }
 0x465   : > { %6656 = vmatpush1.bf16.msra.mxu0 %v17438_v30  ;;  %v17509_v30 = vld [vmem:[#allocation8 + $0xfdc] ss:$80 sps:$4 sm:$0xff]  }
 0x466   : > { %6738 = vmatpush1.bf16.msra.mxu1 %v17441_v32  ;;  %6657 = vmatprep.subr.bf16.mxu0 %v17446_v40  ;;  %v17504_v32 = vld [vmem:[#allocation8 + $0xfd0] ss:$80 sps:$4 sm:$0xff]   ;;  %v17507_v40 = vld [vmem:[#allocation8 + $0xfd8] ss:$80 sps:$4 sm:$0xff]  }
 0x467   : > { %6739 = vmatprep.subr.bf16.mxu1 %v17449_v42  ;;  %v17512_v42 = vld [vmem:[#allocation8 + $0x1074] ss:$80 sps:$4 sm:$0xff]  }
 0x469   : > { %6658 = vmatpush1.bf16.msra.mxu0 %v17444_v43  ;;  %v17515_v43 = vld [vmem:[#allocation8 + $0x107c] ss:$80 sps:$4 sm:$0xff]  }
 0x46a   : > { %6740 = vmatpush1.bf16.msra.mxu1 %v17447_v44  ;;  %6668 = vmatprep.subr.bf16.mxu0 %v17452_v45  ;;  %v17510_v44 = vld [vmem:[#allocation8 + $0x1070] ss:$80 sps:$4 sm:$0xff]   ;;  %v17513_v45 = vld [vmem:[#allocation8 + $0x1078] ss:$80 sps:$4 sm:$0xff]  }
 0x46b   : > { %6750 = vmatprep.subr.bf16.mxu1 %v17455_v46  ;;  %v17518_v46 = vld [vmem:[#allocation8 + $0x1114] ss:$80 sps:$4 sm:$0xff]  }
 0x46c   : > { %6660 = vmatmul.mubr.bf16.vlgmr.msra.gmra.mrb[44].mxu0 %v19787_v28 }
 0x46d   : > { %6742 = vmatmul.mubr.bf16.vlgmr.msra.gmra.mrb[44].mxu1 %v19787_v28  ;;  %6669 = vmatpush1.bf16.msra.mxu0 %v17450_v47  ;;  %v17521_v47 = vld [vmem:[#allocation8 + $0x111c] ss:$80 sps:$4 sm:$0xff]  }
 0x46e   : > { %6700 = vmatprep.mubr.bf16.mxu0 %v19797_v36  ;;  %6751 = vmatpush1.bf16.msra.mxu1 %v17453_v48  ;;  %v17516_v48 = vld [vmem:[#allocation8 + $0x1110] ss:$80 sps:$4 sm:$0xff]  }
 0x46f   : > { %6782 = vmatprep.mubr.bf16.mxu1 %v19797_v36  ;;  %6670 = vmatprep.subr.bf16.mxu0 %v17458_v29  ;;  %v17519_v29 = vld [vmem:[#allocation8 + $0x1118] ss:$80 sps:$4 sm:$0xff]  }
 0x470   : > { %6752 = vmatprep.subr.bf16.mxu1 %v17461_v25  ;;  %v17524_v25 = vld [vmem:[#allocation8 + $0x11b4] ss:$80 sps:$4 sm:$0xff]  }
 0x471   : > { %6671 = vmatpush1.bf16.msra.mxu0 %v17456_v39  ;;  %v17527_v39 = vld [vmem:[#allocation8 + $0x11bc] ss:$80 sps:$4 sm:$0xff]  }
 0x472   : > { %6753 = vmatpush1.bf16.msra.mxu1 %v17459_v49  ;;  %6672 = vmatprep.subr.bf16.mxu0 %v17464_v50  ;;  %v17522_v49 = vld [vmem:[#allocation8 + $0x11b0] ss:$80 sps:$4 sm:$0xff]   ;;  %v17525_v50 = vld [vmem:[#allocation8 + $0x11b8] ss:$80 sps:$4 sm:$0xff]  }
 0x473   : > { %6754 = vmatprep.subr.bf16.mxu1 %v17467_v51  ;;  %v17530_v51 = vld [vmem:[#allocation8 + $0x1254] ss:$80 sps:$4 sm:$0xff]  }
 0x475   : > { %6673 = vmatpush1.bf16.msra.mxu0 %v17462_v52  ;;  %v17533_v52 = vld [vmem:[#allocation8 + $0x125c] ss:$80 sps:$4 sm:$0xff]  }
 0x476   : > { %6755 = vmatpush1.bf16.msra.mxu1 %v17465_v31  ;;  %6674 = vmatprep.subr.bf16.mxu0 %v17470_v53  ;;  %v17528_v31 = vld [vmem:[#allocation8 + $0x1250] ss:$80 sps:$4 sm:$0xff]   ;;  %v17531_v53 = vld [vmem:[#allocation8 + $0x1258] ss:$80 sps:$4 sm:$0xff]  }
 0x477   : > { %6756 = vmatprep.subr.bf16.mxu1 %v17473_v54  ;;  %v17536_v54 = vld [vmem:[#allocation8 + $0x12f4] ss:$80 sps:$4 sm:$0xff]  }
 0x479   : > { %6675 = vmatpush1.bf16.msra.mxu0 %v17468_v55  ;;  %v17539_v55 = vld [vmem:[#allocation8 + $0x12fc] ss:$80 sps:$4 sm:$0xff]  }
 0x47a   : > { %6757 = vmatpush1.bf16.msra.mxu1 %v17471_v56  ;;  %6676 = vmatprep.subr.bf16.mxu0 %v17476_v57  ;;  %v17534_v56 = vld [vmem:[#allocation8 + $0x12f0] ss:$80 sps:$4 sm:$0xff]   ;;  %v17537_v57 = vld [vmem:[#allocation8 + $0x12f8] ss:$80 sps:$4 sm:$0xff]  }
 0x47b   : > { %6758 = vmatprep.subr.bf16.mxu1 %v17479_v35  ;;  %v17542_v35 = vld [vmem:[#allocation8 + $0x1394] ss:$80 sps:$4 sm:$0xff]  }
 0x47d   : > { %6677 = vmatpush1.bf16.msra.mxu0 %v17474_v41  ;;  %v17545_v41 = vld [vmem:[#allocation8 + $0x139c] ss:$80 sps:$4 sm:$0xff]  }
 0x47e   : > { %6759 = vmatpush1.bf16.msra.mxu1 %v17477_v34  ;;  %6678 = vmatprep.subr.bf16.mxu0 %v17482_v58  ;;  %v17540_v34 = vld [vmem:[#allocation8 + $0x1390] ss:$80 sps:$4 sm:$0xff]   ;;  %v17543_v58 = vld [vmem:[#allocation8 + $0x1398] ss:$80 sps:$4 sm:$0xff]  }
 0x47f   : > { %v19839_v63 = vpop.f32.mrb[36].mxu0  ;;  %6760 = vmatprep.subr.bf16.mxu1 %v17485_v59  ;;  %v17548_v59 = vld [vmem:[#allocation8 + $0x44] ss:$80 sps:$4 sm:$0xff]  }
 0x480   : > { %v19841_v2 = vpop.f32.mrb[36].mxu1  ;;  %v19843_v3 = vpop.f32.mrb[37].mxu0 }
 0x481   : > { %v19845_v4 = vpop.f32.mrb[37].mxu1  ;;  %v6378_v5 = vpop.f32.mrb[38].mxu0  ;;  %6679 = vmatpush1.bf16.msra.mxu0 %v17480_v60  ;;  %v17551_v60 = vld [vmem:[#allocation8 + $0x4c] ss:$80 sps:$4 sm:$0xff]  }
 0x482   : > { %v6460_v7 = vpop.f32.mrb[38].mxu1  ;;  %6761 = vmatpush1.bf16.msra.mxu1 %v17483_v61  ;;  %v6379_v8 = vpop.f32.mrb[39].mxu0  ;;  %6680 = vmatprep.subr.bf16.mxu0 %v17488_v62  ;;  %v17546_v61 = vld [vmem:[#allocation8 + $0x40] ss:$80 sps:$4 sm:$0xff]   ;;  %v17549_v62 = vld [vmem:[#allocation8 + $0x48] ss:$80 sps:$4 sm:$0xff]  }
 0x483   : > { %v6461_v15 = vpop.f32.mrb[39].mxu1  ;;  %6762 = vmatprep.subr.bf16.mxu1 %v17491_v1  ;;  %v17554_v1 = vld [vmem:[#allocation8 + $0xe4] ss:$80 sps:$4 sm:$0xff]   ;;  %v17557_v5 = vld [vmem:[#allocation8 + $0xec] ss:$80 sps:$4 sm:$0xff]  }
 0x484   : > { %v17555_v7 = vld [vmem:[#allocation8 + $0xe8] ss:$80 sps:$4 sm:$0xff]   ;;  %v17560_v8 = vld [vmem:[#allocation8 + $0x184] ss:$80 sps:$4 sm:$0xff]  }
 0x485   : > { %6681 = vmatpush1.bf16.msra.mxu0 %v17486_v6  ;;  %v17552_v6 = vld [vmem:[#allocation8 + $0xe0] ss:$80 sps:$4 sm:$0xff]   ;;  %v17561_v15 = vld [vmem:[#allocation8 + $0x188] ss:$80 sps:$4 sm:$0xff]  }
 0x486   : > { %6763 = vmatpush1.bf16.msra.mxu1 %v17489_v9  ;;  %6682 = vmatprep.subr.bf16.mxu0 %v17494_v12  ;;  %v17563_v9 = vld [vmem:[#allocation8 + $0x18c] ss:$80 sps:$4 sm:$0xff]   ;;  %v17558_v12 = vld [vmem:[#allocation8 + $0x180] ss:$80 sps:$4 sm:$0xff]  }
 0x487   : > { %6764 = vmatprep.subr.bf16.mxu1 %v17497_v24  ;;  %v17566_v24 = vld [vmem:[#allocation8 + $0x224] ss:$80 sps:$4 sm:$0xff]  }
 0x489   : > { %6683 = vmatpush1.bf16.msra.mxu0 %v17492_v17  ;;  %v17569_v17 = vld [vmem:[#allocation8 + $0x22c] ss:$80 sps:$4 sm:$0xff]  }
 0x48a   : > { %6765 = vmatpush1.bf16.msra.mxu1 %v17495_v18  ;;  %6684 = vmatprep.subr.bf16.mxu0 %v17500_v19  ;;  %v17564_v18 = vld [vmem:[#allocation8 + $0x220] ss:$80 sps:$4 sm:$0xff]   ;;  %v17567_v19 = vld [vmem:[#allocation8 + $0x228] ss:$80 sps:$4 sm:$0xff]  }
 0x48b   : > { %6766 = vmatprep.subr.bf16.mxu1 %v17503_v20  ;;  %v17572_v20 = vld [vmem:[#allocation8 + $0x2c4] ss:$80 sps:$4 sm:$0xff]  }
 0x48d   : > { %6685 = vmatpush1.bf16.msra.mxu0 %v17498_v22  ;;  %v17575_v22 = vld [vmem:[#allocation8 + $0x2cc] ss:$80 sps:$4 sm:$0xff]  }
 0x48e   : > { %6767 = vmatpush1.bf16.msra.mxu1 %v17501_v23  ;;  %6686 = vmatprep.subr.bf16.mxu0 %v17506_v27  ;;  %v17573_v23 = vld [vmem:[#allocation8 + $0x2c8] ss:$80 sps:$4 sm:$0xff]   ;;  %v17578_v27 = vld [vmem:[#allocation8 + $0x364] ss:$80 sps:$4 sm:$0xff]  }
 0x48f   : > { %6768 = vmatprep.subr.bf16.mxu1 %v17509_v30  ;;  %v17581_v30 = vld [vmem:[#allocation8 + $0x36c] ss:$80 sps:$4 sm:$0xff]  }
 0x491   : > { %6687 = vmatpush1.bf16.msra.mxu0 %v17504_v32  ;;  %v17576_v32 = vld [vmem:[#allocation8 + $0x360] ss:$80 sps:$4 sm:$0xff]  }
 0x492   : > { %6769 = vmatpush1.bf16.msra.mxu1 %v17507_v40  ;;  %6688 = vmatprep.subr.bf16.mxu0 %v17512_v42  ;;  %v17579_v40 = vld [vmem:[#allocation8 + $0x368] ss:$80 sps:$4 sm:$0xff]   ;;  %v17584_v42 = vld [vmem:[#allocation8 + $0x404] ss:$80 sps:$4 sm:$0xff]  }
 0x493   : > { %6770 = vmatprep.subr.bf16.mxu1 %v17515_v43  ;;  %v17587_v43 = vld [vmem:[#allocation8 + $0x40c] ss:$80 sps:$4 sm:$0xff]  }
 0x495   : > { %6689 = vmatpush1.bf16.msra.mxu0 %v17510_v44  ;;  %v17582_v44 = vld [vmem:[#allocation8 + $0x400] ss:$80 sps:$4 sm:$0xff]  }
 0x496   : > { %6771 = vmatpush1.bf16.msra.mxu1 %v17513_v45  ;;  %6690 = vmatprep.subr.bf16.mxu0 %v17518_v46  ;;  %v17585_v45 = vld [vmem:[#allocation8 + $0x408] ss:$80 sps:$4 sm:$0xff]   ;;  %v17590_v46 = vld [vmem:[#allocation8 + $0x4a4] ss:$80 sps:$4 sm:$0xff]  }
 0x497   : > { %6772 = vmatprep.subr.bf16.mxu1 %v17521_v47  ;;  %v17593_v47 = vld [vmem:[#allocation8 + $0x4ac] ss:$80 sps:$4 sm:$0xff]  }
 0x499   : > { %6691 = vmatpush1.bf16.msra.mxu0 %v17516_v48  ;;  %v17588_v48 = vld [vmem:[#allocation8 + $0x4a0] ss:$80 sps:$4 sm:$0xff]  }
 0x49a   : > { %6773 = vmatpush1.bf16.msra.mxu1 %v17519_v29  ;;  %6692 = vmatprep.subr.bf16.mxu0 %v17524_v25  ;;  %v17591_v29 = vld [vmem:[#allocation8 + $0x4a8] ss:$80 sps:$4 sm:$0xff]   ;;  %v17596_v25 = vld [vmem:[#allocation8 + $0x544] ss:$80 sps:$4 sm:$0xff]  }
 0x49b   : > { %6774 = vmatprep.subr.bf16.mxu1 %v17527_v39  ;;  %v17599_v39 = vld [vmem:[#allocation8 + $0x54c] ss:$80 sps:$4 sm:$0xff]  }
 0x49d   : > { %6693 = vmatpush1.bf16.msra.mxu0 %v17522_v49  ;;  %v17594_v49 = vld [vmem:[#allocation8 + $0x540] ss:$80 sps:$4 sm:$0xff]  }
 0x49e   : > { %6775 = vmatpush1.bf16.msra.mxu1 %v17525_v50  ;;  %6694 = vmatprep.subr.bf16.mxu0 %v17530_v51  ;;  %v17597_v50 = vld [vmem:[#allocation8 + $0x548] ss:$80 sps:$4 sm:$0xff]   ;;  %v17602_v51 = vld [vmem:[#allocation8 + $0x5e4] ss:$80 sps:$4 sm:$0xff]  }
 0x49f   : > { %6776 = vmatprep.subr.bf16.mxu1 %v17533_v52  ;;  %v17605_v52 = vld [vmem:[#allocation8 + $0x5ec] ss:$80 sps:$4 sm:$0xff]  }
 0x4a1   : > { %6695 = vmatpush1.bf16.msra.mxu0 %v17528_v31  ;;  %v17600_v31 = vld [vmem:[#allocation8 + $0x5e0] ss:$80 sps:$4 sm:$0xff]  }
 0x4a2   : > { %6777 = vmatpush1.bf16.msra.mxu1 %v17531_v53  ;;  %6696 = vmatprep.subr.bf16.mxu0 %v17536_v54  ;;  %v17603_v53 = vld [vmem:[#allocation8 + $0x5e8] ss:$80 sps:$4 sm:$0xff]   ;;  %v17608_v54 = vld [vmem:[#allocation8 + $0x684] ss:$80 sps:$4 sm:$0xff]  }
 0x4a3   : > { %6778 = vmatprep.subr.bf16.mxu1 %v17539_v55  ;;  %v17611_v55 = vld [vmem:[#allocation8 + $0x68c] ss:$80 sps:$4 sm:$0xff]  }
 0x4a5   : > { %6697 = vmatpush1.bf16.msra.mxu0 %v17534_v56  ;;  %v17606_v56 = vld [vmem:[#allocation8 + $0x680] ss:$80 sps:$4 sm:$0xff]  }
 0x4a6   : > { %6779 = vmatpush1.bf16.msra.mxu1 %v17537_v57  ;;  %6698 = vmatprep.subr.bf16.mxu0 %v17542_v35  ;;  %v17609_v57 = vld [vmem:[#allocation8 + $0x688] ss:$80 sps:$4 sm:$0xff]   ;;  %v17614_v35 = vld [vmem:[#allocation8 + $0x724] ss:$80 sps:$4 sm:$0xff]  }
 0x4a7   : > { %6780 = vmatprep.subr.bf16.mxu1 %v17545_v41  ;;  %v17617_v41 = vld [vmem:[#allocation8 + $0x72c] ss:$80 sps:$4 sm:$0xff]  }
 0x4a9   : > { %6699 = vmatpush1.bf16.msra.mxu0 %v17540_v34  ;;  %v17612_v34 = vld [vmem:[#allocation8 + $0x720] ss:$80 sps:$4 sm:$0xff]  }
 0x4aa   : > { %6781 = vmatpush1.bf16.msra.mxu1 %v17543_v58  ;;  %6791 = vmatprep.subr.bf16.mxu0 %v17548_v59  ;;  %v17615_v58 = vld [vmem:[#allocation8 + $0x728] ss:$80 sps:$4 sm:$0xff]   ;;  %v17620_v59 = vld [vmem:[#allocation8 + $0x7c4] ss:$80 sps:$4 sm:$0xff]  }
 0x4ab   : > { %6873 = vmatprep.subr.bf16.mxu1 %v17551_v60  ;;  %v17623_v60 = vld [vmem:[#allocation8 + $0x7cc] ss:$80 sps:$4 sm:$0xff]  }
 0x4ac   : > { %6701 = vmatmul.mubr.bf16.vlgmr.msra.gmra.mrb[44].mxu0 %v19805_v21 }
 0x4ad   : > { %6783 = vmatmul.mubr.bf16.vlgmr.msra.gmra.mrb[44].mxu1 %v19805_v21  ;;  %6792 = vmatpush1.bf16.msra.mxu0 %v17546_v61  ;;  %v17618_v61 = vld [vmem:[#allocation8 + $0x7c0] ss:$80 sps:$4 sm:$0xff]  }
 0x4ae   : > { %6823 = vmatprep.mubr.bf16.mxu0 %v19784_v26  ;;  %6874 = vmatpush1.bf16.msra.mxu1 %v17549_v62  ;;  %v17621_v62 = vld [vmem:[#allocation8 + $0x7c8] ss:$80 sps:$4 sm:$0xff]  }
 0x4af   : > { %6905 = vmatprep.mubr.bf16.mxu1 %v19784_v26  ;;  %6793 = vmatprep.subr.bf16.mxu0 %v17554_v1  ;;  %v17570_v26 = vld [vmem:[#allocation8 + $0x2c0] ss:$80 sps:$4 sm:$0xff]   ;;  %v17626_v1 = vld [vmem:[#allocation8 + $0x864] ss:$80 sps:$4 sm:$0xff]  }
 0x4b0   : > { %6875 = vmatprep.subr.bf16.mxu1 %v17557_v5  ;;  %v17629_v5 = vld [vmem:[#allocation8 + $0x86c] ss:$80 sps:$4 sm:$0xff]  }
 0x4b1   : > { %6794 = vmatpush1.bf16.msra.mxu0 %v17552_v6  ;;  %v17624_v6 = vld [vmem:[#allocation8 + $0x860] ss:$80 sps:$4 sm:$0xff]  }
 0x4b2   : > { %6876 = vmatpush1.bf16.msra.mxu1 %v17555_v7  ;;  %6795 = vmatprep.subr.bf16.mxu0 %v17560_v8  ;;  %v17627_v7 = vld [vmem:[#allocation8 + $0x868] ss:$80 sps:$4 sm:$0xff]   ;;  %v17632_v8 = vld [vmem:[#allocation8 + $0x904] ss:$80 sps:$4 sm:$0xff]  }
 0x4b3   : > { %6877 = vmatprep.subr.bf16.mxu1 %v17563_v9  ;;  %v17635_v9 = vld [vmem:[#allocation8 + $0x90c] ss:$80 sps:$4 sm:$0xff]  }
 0x4b5   : > { %6796 = vmatpush1.bf16.msra.mxu0 %v17558_v12  ;;  %v17630_v12 = vld [vmem:[#allocation8 + $0x900] ss:$80 sps:$4 sm:$0xff]  }
 0x4b6   : > { %6878 = vmatpush1.bf16.msra.mxu1 %v17561_v15  ;;  %6797 = vmatprep.subr.bf16.mxu0 %v17566_v24  ;;  %v17633_v15 = vld [vmem:[#allocation8 + $0x908] ss:$80 sps:$4 sm:$0xff]   ;;  %v17638_v24 = vld [vmem:[#allocation8 + $0x9a4] ss:$80 sps:$4 sm:$0xff]  }
 0x4b7   : > { %6879 = vmatprep.subr.bf16.mxu1 %v17569_v17  ;;  %v17641_v17 = vld [vmem:[#allocation8 + $0x9ac] ss:$80 sps:$4 sm:$0xff]  }
 0x4b9   : > { %6798 = vmatpush1.bf16.msra.mxu0 %v17564_v18  ;;  %v17636_v18 = vld [vmem:[#allocation8 + $0x9a0] ss:$80 sps:$4 sm:$0xff]  }
 0x4ba   : > { %6880 = vmatpush1.bf16.msra.mxu1 %v17567_v19  ;;  %6799 = vmatprep.subr.bf16.mxu0 %v17572_v20  ;;  %v17639_v19 = vld [vmem:[#allocation8 + $0x9a8] ss:$80 sps:$4 sm:$0xff]   ;;  %v17644_v20 = vld [vmem:[#allocation8 + $0xa44] ss:$80 sps:$4 sm:$0xff]  }
 0x4bb   : > { %6881 = vmatprep.subr.bf16.mxu1 %v17575_v22  ;;  %v17647_v22 = vld [vmem:[#allocation8 + $0xa4c] ss:$80 sps:$4 sm:$0xff]  }
 0x4bd   : > { %6800 = vmatpush1.bf16.msra.mxu0 %v17570_v26  ;;  %v17642_v26 = vld [vmem:[#allocation8 + $0xa40] ss:$80 sps:$4 sm:$0xff]  }
 0x4be   : > { %6882 = vmatpush1.bf16.msra.mxu1 %v17573_v23  ;;  %6801 = vmatprep.subr.bf16.mxu0 %v17578_v27  ;;  %v17645_v23 = vld [vmem:[#allocation8 + $0xa48] ss:$80 sps:$4 sm:$0xff]   ;;  %v17650_v27 = vld [vmem:[#allocation8 + $0xae4] ss:$80 sps:$4 sm:$0xff]  }
 0x4bf   : > { %6883 = vmatprep.subr.bf16.mxu1 %v17581_v30  ;;  %v17653_v30 = vld [vmem:[#allocation8 + $0xaec] ss:$80 sps:$4 sm:$0xff]  }
 0x4c1   : > { %6802 = vmatpush1.bf16.msra.mxu0 %v17576_v32  ;;  %v17648_v32 = vld [vmem:[#allocation8 + $0xae0] ss:$80 sps:$4 sm:$0xff]  }
 0x4c2   : > { %6884 = vmatpush1.bf16.msra.mxu1 %v17579_v40  ;;  %6803 = vmatprep.subr.bf16.mxu0 %v17584_v42  ;;  %v17651_v40 = vld [vmem:[#allocation8 + $0xae8] ss:$80 sps:$4 sm:$0xff]   ;;  %v17656_v42 = vld [vmem:[#allocation8 + $0xb84] ss:$80 sps:$4 sm:$0xff]  }
 0x4c3   : > { %6885 = vmatprep.subr.bf16.mxu1 %v17587_v43  ;;  %v17659_v43 = vld [vmem:[#allocation8 + $0xb8c] ss:$80 sps:$4 sm:$0xff]  }
 0x4c5   : > { %6804 = vmatpush1.bf16.msra.mxu0 %v17582_v44  ;;  %v17654_v44 = vld [vmem:[#allocation8 + $0xb80] ss:$80 sps:$4 sm:$0xff]  }
 0x4c6   : > { %6886 = vmatpush1.bf16.msra.mxu1 %v17585_v45  ;;  %6805 = vmatprep.subr.bf16.mxu0 %v17590_v46  ;;  %v17657_v45 = vld [vmem:[#allocation8 + $0xb88] ss:$80 sps:$4 sm:$0xff]   ;;  %v17662_v46 = vld [vmem:[#allocation8 + $0xc24] ss:$80 sps:$4 sm:$0xff]  }
 0x4c7   : > { %6887 = vmatprep.subr.bf16.mxu1 %v17593_v47  ;;  %v17660_v47 = vld [vmem:[#allocation8 + $0xc20] ss:$80 sps:$4 sm:$0xff]  }
 0x4c9   : > { %6806 = vmatpush1.bf16.msra.mxu0 %v17588_v48  ;;  %v17663_v48 = vld [vmem:[#allocation8 + $0xc28] ss:$80 sps:$4 sm:$0xff]  }
 0x4ca   : > { %6888 = vmatpush1.bf16.msra.mxu1 %v17591_v29  ;;  %6807 = vmatprep.subr.bf16.mxu0 %v17596_v25  ;;  %v17668_v29 = vld [vmem:[#allocation8 + $0xcc4] ss:$80 sps:$4 sm:$0xff]   ;;  %v17671_v25 = vld [vmem:[#allocation8 + $0xccc] ss:$80 sps:$4 sm:$0xff]  }
 0x4cb   : > { %6889 = vmatprep.subr.bf16.mxu1 %v17599_v39  ;;  %v17669_v39 = vld [vmem:[#allocation8 + $0xcc8] ss:$80 sps:$4 sm:$0xff]  }
 0x4cd   : > { %6808 = vmatpush1.bf16.msra.mxu0 %v17594_v49  ;;  %v17674_v49 = vld [vmem:[#allocation8 + $0xd64] ss:$80 sps:$4 sm:$0xff]  }
 0x4ce   : > { %6890 = vmatpush1.bf16.msra.mxu1 %v17597_v50  ;;  %6809 = vmatprep.subr.bf16.mxu0 %v17602_v51  ;;  %v17677_v50 = vld [vmem:[#allocation8 + $0xd6c] ss:$80 sps:$4 sm:$0xff]   ;;  %v17672_v51 = vld [vmem:[#allocation8 + $0xd60] ss:$80 sps:$4 sm:$0xff]  }
 0x4cf   : > { %6891 = vmatprep.subr.bf16.mxu1 %v17605_v52  ;;  %v17675_v52 = vld [vmem:[#allocation8 + $0xd68] ss:$80 sps:$4 sm:$0xff]  }
 0x4d1   : > { %6810 = vmatpush1.bf16.msra.mxu0 %v17600_v31  ;;  %v17680_v31 = vld [vmem:[#allocation8 + $0xe04] ss:$80 sps:$4 sm:$0xff]  }
 0x4d2   : > { %6892 = vmatpush1.bf16.msra.mxu1 %v17603_v53  ;;  %6811 = vmatprep.subr.bf16.mxu0 %v17608_v54  ;;  %v17683_v54 = vld [vmem:[#allocation8 + $0xe0c] ss:$80 sps:$4 sm:$0xff]  }
 0x4d3   : > { %6893 = vmatprep.subr.bf16.mxu1 %v17611_v55 }
 0x4d5   : > { %6812 = vmatpush1.bf16.msra.mxu0 %v17606_v56 }
 0x4d6   : > { %6894 = vmatpush1.bf16.msra.mxu1 %v17609_v57  ;;  %6813 = vmatprep.subr.bf16.mxu0 %v17614_v35 }
 0x4d7   : > { %6895 = vmatprep.subr.bf16.mxu1 %v17617_v41  ;;  %v17678_v41 = vld [vmem:[#allocation8 + $0xe00] ss:$80 sps:$4 sm:$0xff]  }
 0x4d9   : > { %6814 = vmatpush1.bf16.msra.mxu0 %v17612_v34 }
 0x4da   : > { %6896 = vmatpush1.bf16.msra.mxu1 %v17615_v58  ;;  %6815 = vmatprep.subr.bf16.mxu0 %v17620_v59  ;;  %v17681_v59 = vld [vmem:[#allocation8 + $0xe08] ss:$80 sps:$4 sm:$0xff]  }
 0x4db   : > { %6897 = vmatprep.subr.bf16.mxu1 %v17623_v60  ;;  %v17686_v60 = vld [vmem:[#allocation8 + $0xea4] ss:$80 sps:$4 sm:$0xff]  }
 0x4dd   : > { %6816 = vmatpush1.bf16.msra.mxu0 %v17618_v61 }
 0x4de   : > { %6898 = vmatpush1.bf16.msra.mxu1 %v17621_v62  ;;  %6817 = vmatprep.subr.bf16.mxu0 %v17626_v1  ;;  %v17689_v62 = vld [vmem:[#allocation8 + $0xeac] ss:$80 sps:$4 sm:$0xff]   ;;  %v17684_v1 = vld [vmem:[#allocation8 + $0xea0] ss:$80 sps:$4 sm:$0xff]  }
 0x4df   : > { %6899 = vmatprep.subr.bf16.mxu1 %v17629_v5  ;;  %v17687_v5 = vld [vmem:[#allocation8 + $0xea8] ss:$80 sps:$4 sm:$0xff]  }
 0x4e1   : > { %6818 = vmatpush1.bf16.msra.mxu0 %v17624_v6  ;;  %v17692_v6 = vld [vmem:[#allocation8 + $0xf44] ss:$80 sps:$4 sm:$0xff]  }
 0x4e2   : > { %6900 = vmatpush1.bf16.msra.mxu1 %v17627_v7  ;;  %6819 = vmatprep.subr.bf16.mxu0 %v17632_v8  ;;  %v17695_v7 = vld [vmem:[#allocation8 + $0xf4c] ss:$80 sps:$4 sm:$0xff]   ;;  %v17690_v8 = vld [vmem:[#allocation8 + $0xf40] ss:$80 sps:$4 sm:$0xff]  }
 0x4e3   : > { %6901 = vmatprep.subr.bf16.mxu1 %v17635_v9  ;;  %v17693_v9 = vld [vmem:[#allocation8 + $0xf48] ss:$80 sps:$4 sm:$0xff]  }
 0x4e5   : > { %6820 = vmatpush1.bf16.msra.mxu0 %v17630_v12  ;;  %v17698_v12 = vld [vmem:[#allocation8 + $0xfe4] ss:$80 sps:$4 sm:$0xff]  }
 0x4e6   : > { %6902 = vmatpush1.bf16.msra.mxu1 %v17633_v15  ;;  %6821 = vmatprep.subr.bf16.mxu0 %v17638_v24  ;;  %v17701_v15 = vld [vmem:[#allocation8 + $0xfec] ss:$80 sps:$4 sm:$0xff]   ;;  %v17696_v24 = vld [vmem:[#allocation8 + $0xfe0] ss:$80 sps:$4 sm:$0xff]  }
 0x4e7   : > { %6903 = vmatprep.subr.bf16.mxu1 %v17641_v17  ;;  %v17699_v17 = vld [vmem:[#allocation8 + $0xfe8] ss:$80 sps:$4 sm:$0xff]  }
 0x4e9   : > { %6822 = vmatpush1.bf16.msra.mxu0 %v17636_v18  ;;  %v17704_v18 = vld [vmem:[#allocation8 + $0x1084] ss:$80 sps:$4 sm:$0xff]  }
 0x4ea   : > { %6904 = vmatpush1.bf16.msra.mxu1 %v17639_v19  ;;  %6832 = vmatprep.subr.bf16.mxu0 %v17644_v20  ;;  %v17707_v19 = vld [vmem:[#allocation8 + $0x108c] ss:$80 sps:$4 sm:$0xff]   ;;  %v17702_v20 = vld [vmem:[#allocation8 + $0x1080] ss:$80 sps:$4 sm:$0xff]  }
 0x4eb   : > { %6914 = vmatprep.subr.bf16.mxu1 %v17647_v22  ;;  %v17705_v22 = vld [vmem:[#allocation8 + $0x1088] ss:$80 sps:$4 sm:$0xff]  }
 0x4ec   : > { %6824 = vmatmul.mubr.bf16.vlgmr.msra.gmra.mrb[48].mxu0 %v19787_v28 }
 0x4ed   : > { %6906 = vmatmul.mubr.bf16.vlgmr.msra.gmra.mrb[48].mxu1 %v19787_v28  ;;  %6833 = vmatpush1.bf16.msra.mxu0 %v17642_v26  ;;  %v17665_v28 = vld [vmem:[#allocation8 + $0xc2c] ss:$80 sps:$4 sm:$0xff]   ;;  %v17710_v26 = vld [vmem:[#allocation8 + $0x1124] ss:$80 sps:$4 sm:$0xff]  }
 0x4ee   : > { %6864 = vmatprep.mubr.bf16.mxu0 %v19797_v36  ;;  %6915 = vmatpush1.bf16.msra.mxu1 %v17645_v23  ;;  %v17713_v23 = vld [vmem:[#allocation8 + $0x112c] ss:$80 sps:$4 sm:$0xff]  }
 0x4ef   : > { %6946 = vmatprep.mubr.bf16.mxu1 %v19797_v36  ;;  %6834 = vmatprep.subr.bf16.mxu0 %v17650_v27  ;;  %v17666_v36 = vld [vmem:[#allocation8 + $0xcc0] ss:$80 sps:$4 sm:$0xff]  }
 0x4f0   : > { %6916 = vmatprep.subr.bf16.mxu1 %v17653_v30  ;;  %v17708_v27 = vld [vmem:[#allocation8 + $0x1120] ss:$80 sps:$4 sm:$0xff]   ;;  %v17711_v30 = vld [vmem:[#allocation8 + $0x1128] ss:$80 sps:$4 sm:$0xff]  }
 0x4f1   : > { %6835 = vmatpush1.bf16.msra.mxu0 %v17648_v32  ;;  %v17716_v32 = vld [vmem:[#allocation8 + $0x11c4] ss:$80 sps:$4 sm:$0xff]  }
 0x4f2   : > { %6917 = vmatpush1.bf16.msra.mxu1 %v17651_v40  ;;  %6836 = vmatprep.subr.bf16.mxu0 %v17656_v42  ;;  %v17719_v40 = vld [vmem:[#allocation8 + $0x11cc] ss:$80 sps:$4 sm:$0xff]   ;;  %v17714_v42 = vld [vmem:[#allocation8 + $0x11c0] ss:$80 sps:$4 sm:$0xff]  }
 0x4f3   : > { %6918 = vmatprep.subr.bf16.mxu1 %v17659_v43  ;;  %v17717_v43 = vld [vmem:[#allocation8 + $0x11c8] ss:$80 sps:$4 sm:$0xff]  }
 0x4f5   : > { %6837 = vmatpush1.bf16.msra.mxu0 %v17654_v44  ;;  %v17722_v44 = vld [vmem:[#allocation8 + $0x1264] ss:$80 sps:$4 sm:$0xff]  }
 0x4f6   : > { %6919 = vmatpush1.bf16.msra.mxu1 %v17657_v45  ;;  %6838 = vmatprep.subr.bf16.mxu0 %v17662_v46  ;;  %v17725_v45 = vld [vmem:[#allocation8 + $0x126c] ss:$80 sps:$4 sm:$0xff]   ;;  %v17720_v46 = vld [vmem:[#allocation8 + $0x1260] ss:$80 sps:$4 sm:$0xff]  }
 0x4f7   : > { %6920 = vmatprep.subr.bf16.mxu1 %v17665_v28  ;;  %v17723_v28 = vld [vmem:[#allocation8 + $0x1268] ss:$80 sps:$4 sm:$0xff]  }
 0x4f9   : > { %6839 = vmatpush1.bf16.msra.mxu0 %v17660_v47  ;;  %v17728_v47 = vld [vmem:[#allocation8 + $0x1304] ss:$80 sps:$4 sm:$0xff]  }
 0x4fa   : > { %6921 = vmatpush1.bf16.msra.mxu1 %v17663_v48  ;;  %6840 = vmatprep.subr.bf16.mxu0 %v17668_v29  ;;  %v17731_v48 = vld [vmem:[#allocation8 + $0x130c] ss:$80 sps:$4 sm:$0xff]   ;;  %v17726_v29 = vld [vmem:[#allocation8 + $0x1300] ss:$80 sps:$4 sm:$0xff]  }
 0x4fb   : > { %6922 = vmatprep.subr.bf16.mxu1 %v17671_v25  ;;  %v17729_v25 = vld [vmem:[#allocation8 + $0x1308] ss:$80 sps:$4 sm:$0xff]  }
 0x4fd   : > { %6841 = vmatpush1.bf16.msra.mxu0 %v17666_v36  ;;  %v17734_v36 = vld [vmem:[#allocation8 + $0x13a4] ss:$80 sps:$4 sm:$0xff]  }
 0x4fe   : > { %6923 = vmatpush1.bf16.msra.mxu1 %v17669_v39  ;;  %6842 = vmatprep.subr.bf16.mxu0 %v17674_v49  ;;  %v17737_v39 = vld [vmem:[#allocation8 + $0x13ac] ss:$80 sps:$4 sm:$0xff]   ;;  %v17732_v49 = vld [vmem:[#allocation8 + $0x13a0] ss:$80 sps:$4 sm:$0xff]  }
 0x4ff   : > { %v19855_v53 = vpop.f32.mrb[40].mxu0  ;;  %6924 = vmatprep.subr.bf16.mxu1 %v17677_v50  ;;  %v17735_v50 = vld [vmem:[#allocation8 + $0x13a8] ss:$80 sps:$4 sm:$0xff]  }
 0x500   : > { %v19857_v55 = vpop.f32.mrb[40].mxu1  ;;  %v19859_v56 = vpop.f32.mrb[41].mxu0 }
 0x501   : > { %v19861_v57 = vpop.f32.mrb[41].mxu1  ;;  %v6542_v35 = vpop.f32.mrb[42].mxu0  ;;  %6843 = vmatpush1.bf16.msra.mxu0 %v17672_v51  ;;  %v6961_v51 = vpack.c.bf16 %v19839_v63, %v19839_v63 }
 0x502   : > { %v6624_v34 = vpop.f32.mrb[42].mxu1  ;;  %6925 = vmatpush1.bf16.msra.mxu1 %v17675_v52  ;;  %v6543_v58 = vpop.f32.mrb[43].mxu0  ;;  %6844 = vmatprep.subr.bf16.mxu0 %v17680_v31  ;;  %v6962_v52 = vpack.c.bf16 %v19843_v3, %v19843_v3  ;;  %v6963_v31 = vpack.c.bf16 %v19841_v2, %v19841_v2  ;;  %v6956_v35 = vpack.c.bf16 %v19827_v38, %v19827_v38 }
 0x503   : > { %v6625_v61 = vpop.f32.mrb[43].mxu1  ;;  %6926 = vmatprep.subr.bf16.mxu1 %v17683_v54  ;;  %v6964_v54 = vpack.c.bf16 %v19845_v4, %v19845_v4  ;;  %v6979_v63 = vsel %vm6977_vm9, %v6961_v51, 0  ;;  %v6958_v2 = vpack.c.bf16 %v19829_v10, %v19829_v10  ;;  %v6955_v38 = vpack.c.bf16 %v19823_v33, %v19823_v33  ;;  %v17738_v10 = vld [vmem:[%s21248_s1 + $0x8] sm:$0xff]  }
 0x504   : > { %v6985_v3 = vsel %vm6977_vm9, %v6963_v31, 0  ;;  %v7183_v4 = vpack.c.bf16 %v19859_v56, %v19859_v56  ;;  %v7185_v33 = vpack.c.bf16 %v19861_v57, %v19861_v57  ;;  %v17739_v56 = vld [vmem:[%s21248_s1] sm:$0xff]   ;;  %v7184_v57 = vpack.c.bf16 %v19857_v55, %v19857_v55  ;;  %v17757_v51 = vld [vmem:[#allocation11 + $0x64] ss:$24 sps:$4 sm:$0xff]  }
 0x505   : > { %6845 = vmatpush1.bf16.msra.mxu0 %v17678_v41  ;;  %v7085_v41 = vsel %vm6977_vm9, %v6955_v38, 0  ;;  %v17755_v31 = vld [vmem:[#allocation11 + $0x60] ss:$24 sps:$4 sm:$0xff]   ;;  %v17769_v38 = vld [vmem:[#allocation11 + $0xc4] ss:$24 sps:$4 sm:$0xff]  }
 0x506   : > { %6927 = vmatpush1.bf16.msra.mxu1 %v17681_v59  ;;  %6846 = vmatprep.subr.bf16.mxu0 %v17686_v60  ;;  %v7204_v59 = vsel %vm6977_vm9, %v7184_v57, 0  ;;  %v17784_v57 = vld [vmem:[#allocation11 + $0x12c] ss:$24 sps:$4 sm:$0xff]  }
 0x507   : > { %6928 = vmatprep.subr.bf16.mxu1 %v17689_v62 }
 0x509   : > { %6847 = vmatpush1.bf16.msra.mxu0 %v17684_v1 }
 0x50a   : > { %6929 = vmatpush1.bf16.msra.mxu1 %v17687_v5  ;;  %6848 = vmatprep.subr.bf16.mxu0 %v17692_v6 }
 0x50b   : > { %6930 = vmatprep.subr.bf16.mxu1 %v17695_v7 }
 0x50d   : > { %6849 = vmatpush1.bf16.msra.mxu0 %v17690_v8 }
 0x50e   : > { %6931 = vmatpush1.bf16.msra.mxu1 %v17693_v9  ;;  %6850 = vmatprep.subr.bf16.mxu0 %v17698_v12 }
 0x50f   : > { %6932 = vmatprep.subr.bf16.mxu1 %v17701_v15 }
 0x511   : > { %6851 = vmatpush1.bf16.msra.mxu0 %v17696_v24 }
 0x512   : > { %6933 = vmatpush1.bf16.msra.mxu1 %v17699_v17  ;;  %6852 = vmatprep.subr.bf16.mxu0 %v17704_v18  ;;  %v17741_v18 = vld [vmem:[%s21248_s1 + $0x18] sm:$0xff]  }
 0x513   : > { %6934 = vmatprep.subr.bf16.mxu1 %v17707_v19 }
 0x515   : > { %6853 = vmatpush1.bf16.msra.mxu0 %v17702_v20 }
 0x516   : > { %6935 = vmatpush1.bf16.msra.mxu1 %v17705_v22  ;;  %6854 = vmatprep.subr.bf16.mxu0 %v17710_v26 }
 0x517   : > { %6936 = vmatprep.subr.bf16.mxu1 %v17713_v23 }
 0x519   : > { %6855 = vmatpush1.bf16.msra.mxu0 %v17708_v27 }
 0x51a   : > { %6937 = vmatpush1.bf16.msra.mxu1 %v17711_v30  ;;  %6856 = vmatprep.subr.bf16.mxu0 %v17716_v32 }
 0x51b   : > { %6938 = vmatprep.subr.bf16.mxu1 %v17719_v40  ;;  %v17745_v40 = vld [vmem:[#allocation11 + $0x4] ss:$24 sps:$4 sm:$0xff]  }
 0x51d   : > { %6857 = vmatpush1.bf16.msra.mxu0 %v17714_v42 }
 0x51e   : > { %6939 = vmatpush1.bf16.msra.mxu1 %v17717_v43  ;;  %6858 = vmatprep.subr.bf16.mxu0 %v17722_v44 }
 0x51f   : > { %6940 = vmatprep.subr.bf16.mxu1 %v17725_v45 }
 0x521   : > { %6859 = vmatpush1.bf16.msra.mxu0 %v17720_v46  ;;  %v17748_v46 = vld [vmem:[#allocation11 + $0xc] ss:$24 sps:$4 sm:$0xff]  }
 0x522   : > { %6941 = vmatpush1.bf16.msra.mxu1 %v17723_v28  ;;  %6860 = vmatprep.subr.bf16.mxu0 %v17728_v47 }
 0x523   : > { %6942 = vmatprep.subr.bf16.mxu1 %v17731_v48  ;;  %v17742_v48 = vld [vmem:[%s21248_s1 + $0x20] sm:$0xff]  }
 0x525   : > { %6861 = vmatpush1.bf16.msra.mxu0 %v17726_v29  ;;  %v17743_v29 = vld [vmem:[#allocation11] ss:$24 sps:$4 sm:$0xff]  }
 0x526   : > { %6943 = vmatpush1.bf16.msra.mxu1 %v17729_v25  ;;  %6862 = vmatprep.subr.bf16.mxu0 %v17734_v36  ;;  %v17746_v25 = vld [vmem:[#allocation11 + $0x8] ss:$24 sps:$4 sm:$0xff]   ;;  %v17751_v36 = vld [vmem:[#allocation11 + $0x34] ss:$24 sps:$4 sm:$0xff]  }
 0x527   : > { %6944 = vmatprep.subr.bf16.mxu1 %v17737_v39  ;;  %v17754_v39 = vld [vmem:[#allocation11 + $0x3c] ss:$24 sps:$4 sm:$0xff]  }
 0x529   : > { %6863 = vmatpush1.bf16.msra.mxu0 %v17732_v49  ;;  %v17749_v49 = vld [vmem:[#allocation11 + $0x30] ss:$24 sps:$4 sm:$0xff]  }
 0x52a   : > { %6945 = vmatpush1.bf16.msra.mxu1 %v17735_v50  ;;  %14789 = vmatprep.subr.msk.bf16.mxu0 %vm6977_vm9, %v6962_v52  ;;  %v17752_v50 = vld [vmem:[#allocation11 + $0x38] ss:$24 sps:$4 sm:$0xff]   ;;  %v17760_v52 = vld [vmem:[#allocation11 + $0x6c] ss:$24 sps:$4 sm:$0xff]  }
 0x52b   : > { %14791 = vmatprep.subr.msk.bf16.mxu1 %vm6977_vm9, %v6964_v54  ;;  %v17758_v54 = vld [vmem:[#allocation11 + $0x68] ss:$24 sps:$4 sm:$0xff]  }
 0x52c   : > { %6865 = vmatmul.mubr.bf16.vlgmr.msra.gmra.mrb[48].mxu0 %v19805_v21 }
 0x52d   : > { %6947 = vmatmul.mubr.bf16.vlgmr.msra.gmra.mrb[48].mxu1 %v19805_v21  ;;  %6991 = vmatpush1.bf16.msra.mxu0 %v6979_v63  ;;  %v6957_v21 = vpack.c.bf16 %v19825_v37, %v19825_v37  ;;  %v7182_v37 = vpack.c.bf16 %v19855_v53, %v19855_v53  ;;  %v17740_v53 = vld [vmem:[%s21248_s1 + $0x10] sm:$0xff]   ;;  %v17766_v63 = vld [vmem:[#allocation11 + $0x9c] ss:$24 sps:$4 sm:$0xff]   ;;  %s15515_s1 = sshll.u32 %s21260_s23, 6 }
 0x52e   : > { %7034 = vmatpush1.bf16.msra.mxu1 %v6985_v3  ;;  %14794 = vmatprep.subr.msk.bf16.mxu0 %vm6977_vm9, %v6956_v35  ;;  %v17763_v35 = vld [vmem:[#allocation11 + $0x94] ss:$24 sps:$4 sm:$0xff]   ;;  %v17764_v3 = vld [vmem:[#allocation11 + $0x98] ss:$24 sps:$4 sm:$0xff]   ;;  %s857_s24 = scalar_lea.vmem %s21254_s2, %s15515_s1 }
 0x52f   : > { %14796 = vmatprep.subr.msk.bf16.mxu1 %vm6977_vm9, %v6958_v2  ;;  %7022 = vmatprep.mubr.bf16.mxu0 %v18993_v0  ;;  %v7091_v34 = vsel %vm6977_vm9, %v6957_v21, 0  ;;  %v7198_v58 = vsel %vm6977_vm9, %v7182_v37, 0  ;;  %v17761_v2 = vld [vmem:[#allocation11 + $0x90] ss:$24 sps:$4 sm:$0xff]   ;;  %v17767_v21 = vld [vmem:[#allocation11 + $0xc0] ss:$24 sps:$4 sm:$0xff]  }
 0x530   : > { %7065 = vmatprep.mubr.bf16.mxu1 %v18993_v0  ;;  %v17776_v37 = vld [vmem:[#allocation11 + $0xf8] ss:$24 sps:$4 sm:$0xff]  }
 0x534   : > { %14790 = vmatmul.mubr.msk.bf16.vlgmr.msra.gmra.mrb[52].mxu0 %vm6973_vm10, %v17738_v10 }
 0x535   : > { %14792 = vmatmul.mubr.msk.bf16.vlgmr.msra.gmra.mrb[52].mxu1 %vm6973_vm10, %v17738_v10  ;;  %7097 = vmatpush1.bf16.msra.mxu0 %v7085_v41  ;;  %v17772_v10 = vld [vmem:[#allocation11 + $0xcc] ss:$24 sps:$4 sm:$0xff]  }
 0x536   : > { %7140 = vmatpush1.bf16.msra.mxu1 %v7091_v34  ;;  %14801 = vmatprep.subr.msk.bf16.mxu0 %vm6977_vm9, %v7183_v4  ;;  %v17770_v4 = vld [vmem:[#allocation11 + $0xc8] ss:$24 sps:$4 sm:$0xff]   ;;  %v17775_v41 = vld [vmem:[#allocation11 + $0xf4] ss:$24 sps:$4 sm:$0xff]  }
 0x537   : > { %14803 = vmatprep.subr.msk.bf16.mxu1 %vm6977_vm9, %v7185_v33  ;;  %7128 = vmatprep.mubr.bf16.mxu0 %v18993_v0  ;;  %v17778_v33 = vld [vmem:[#allocation11 + $0xfc] ss:$24 sps:$4 sm:$0xff]   ;;  %v17773_v34 = vld [vmem:[#allocation11 + $0xf0] ss:$24 sps:$4 sm:$0xff]  }
 0x538   : > { %7171 = vmatprep.mubr.bf16.mxu1 %v18993_v0 }
 0x540   : > { %14795 = vmatmul.mubr.msk.bf16.vlgmr.msra.gmra.mrb[52].mxu0 %vm6973_vm10, %v17739_v56 }
 0x541   : > { %14797 = vmatmul.mubr.msk.bf16.vlgmr.msra.gmra.mrb[52].mxu1 %vm6973_vm10, %v17739_v56  ;;  %7210 = vmatpush1.bf16.msra.mxu0 %v7198_v58  ;;  %v17781_v56 = vld [vmem:[#allocation11 + $0x124] ss:$24 sps:$4 sm:$0xff]   ;;  %v17779_v58 = vld [vmem:[#allocation11 + $0x120] ss:$24 sps:$4 sm:$0xff]  }
 0x542   : > { %7253 = vmatpush1.bf16.msra.mxu1 %v7204_v59  ;;  %7241 = vmatprep.mubr.bf16.mxu0 %v18993_v0  ;;  %v17782_v59 = vld [vmem:[#allocation11 + $0x128] ss:$24 sps:$4 sm:$0xff]  }
 0x543   : > { %7284 = vmatprep.mubr.bf16.mxu1 %v18993_v0 }
 0x54c   : > { %14802 = vmatmul.mubr.msk.bf16.vlgmr.msra.gmra.mrb[52].mxu0 %vm6973_vm10, %v17740_v53 }
 0x54d   : > { %14804 = vmatmul.mubr.msk.bf16.vlgmr.msra.gmra.mrb[52].mxu1 %vm6973_vm10, %v17740_v53  ;;  %7362 = vmatprep.mubr.bf16.mxu0 %v18993_v0  ;;  %v17787_v53 = vld [vmem:[#allocation11 + $0x154] ss:$24 sps:$4 sm:$0xff]  }
 0x54e   : > { %7405 = vmatprep.mubr.bf16.mxu1 %v18993_v0 }
 0x57f   : > { %v6702_v55 = vpop.f32.mrb[44].mxu0 }
 0x580   : > { %v7303_v60 = vpack.c.bf16 %v6702_v55, %v6702_v55  ;;  %v6784_v61 = vpop.f32.mrb[44].mxu1  ;;  %v6704_v62 = vpop.f32.mrb[45].mxu0  ;;  %v17790_v55 = vld [vmem:[#allocation11 + $0x15c] ss:$24 sps:$4 sm:$0xff]  }
 0x581   : > { %v7305_v1 = vpack.c.bf16 %v6784_v61, %v6784_v61  ;;  %v7304_v5 = vpack.c.bf16 %v6704_v62, %v6704_v62  ;;  %v6786_v6 = vpop.f32.mrb[45].mxu1  ;;  %v6706_v7 = vpop.f32.mrb[46].mxu0  ;;  %v17788_v61 = vld [vmem:[#allocation11 + $0x158] ss:$24 sps:$4 sm:$0xff]   ;;  %v17793_v62 = vld [vmem:[#allocation11 + $0x184] ss:$24 sps:$4 sm:$0xff]  }
 0x582   : > { %v7306_v8 = vpack.c.bf16 %v6786_v6, %v6786_v6  ;;  %v6788_v9 = vpop.f32.mrb[46].mxu1  ;;  %v6707_v12 = vpop.f32.mrb[47].mxu0  ;;  %v7319_v15 = vsel %vm6977_vm9, %v7303_v60, 0  ;;  %v17785_v60 = vld [vmem:[#allocation11 + $0x150] ss:$24 sps:$4 sm:$0xff]  }
 0x583   : > { %v6789_v24 = vpop.f32.mrb[47].mxu1  ;;  %14808 = vmatprep.subr.msk.bf16.mxu0 %vm6977_vm9, %v7304_v5  ;;  %v7325_v17 = vsel %vm6977_vm9, %v7305_v1, 0  ;;  %v17796_v1 = vld [vmem:[#allocation11 + $0x18c] ss:$24 sps:$4 sm:$0xff]   ;;  %v17791_v5 = vld [vmem:[#allocation11 + $0x180] ss:$24 sps:$4 sm:$0xff]  }
 0x584   : > { %14810 = vmatprep.subr.msk.bf16.mxu1 %vm6977_vm9, %v7306_v8  ;;  %7331 = vmatpush1.bf16.msra.mxu0 %v7319_v15  ;;  %v17794_v6 = vld [vmem:[#allocation11 + $0x188] ss:$24 sps:$4 sm:$0xff]   ;;  %v17799_v7 = vld [vmem:[#allocation11 + $0x1b4] ss:$24 sps:$4 sm:$0xff]   ;;  %v17800_v12 = vld [vmem:[#allocation11 + $0x1b8] ss:$24 sps:$4 sm:$0xff]  }
 0x585   : > { %7374 = vmatpush1.bf16.msra.mxu1 %v7325_v17  ;;  %v17802_v8 = vld [vmem:[#allocation11 + $0x1bc] ss:$24 sps:$4 sm:$0xff]   ;;  %v17797_v9 = vld [vmem:[#allocation11 + $0x1b0] ss:$24 sps:$4 sm:$0xff]   ;;  %v17808_v24 = vld [vmem:[#allocation11 + $0x1ec] ss:$24 sps:$4 sm:$0xff]  }
 0x586   : > { %v17805_v15 = vld [vmem:[#allocation11 + $0x1e4] ss:$24 sps:$4 sm:$0xff]   ;;  %v17803_v17 = vld [vmem:[#allocation11 + $0x1e0] ss:$24 sps:$4 sm:$0xff]  }
 0x587   : > { %14809 = vmatmul.mubr.msk.bf16.vlgmr.msra.gmra.mrb[52].mxu0 %vm6973_vm10, %v17741_v18 }
 0x588   : > { %14811 = vmatmul.mubr.msk.bf16.vlgmr.msra.gmra.mrb[52].mxu1 %vm6973_vm10, %v17741_v18  ;;  %7483 = vmatprep.mubr.bf16.mxu0 %v18993_v0  ;;  %v17806_v18 = vld [vmem:[#allocation11 + $0x1e8] ss:$24 sps:$4 sm:$0xff]  }
 0x589   : > { %7526 = vmatprep.mubr.bf16.mxu1 %v18993_v0 }
 0x5ff   : > { %v6866_v19 = vpop.f32.mrb[48].mxu0 }
 0x600   : > { %v7424_v20 = vpack.c.bf16 %v6866_v19, %v6866_v19  ;;  %v6948_v22 = vpop.f32.mrb[48].mxu1  ;;  %v6868_v26 = vpop.f32.mrb[49].mxu0  ;;  %v17811_v19 = vld [vmem:[#allocation11 + $0x214] ss:$24 sps:$4 sm:$0xff]  }
 0x601   : > { %v7426_v23 = vpack.c.bf16 %v6948_v22, %v6948_v22  ;;  %v7425_v27 = vpack.c.bf16 %v6868_v26, %v6868_v26  ;;  %v6950_v30 = vpop.f32.mrb[49].mxu1  ;;  %v6870_v32 = vpop.f32.mrb[50].mxu0  ;;  %v17809_v22 = vld [vmem:[#allocation11 + $0x210] ss:$24 sps:$4 sm:$0xff]  }
 0x602   : > { %v7427_v42 = vpack.c.bf16 %v6950_v30, %v6950_v30  ;;  %v6952_v43 = vpop.f32.mrb[50].mxu1  ;;  %v6871_v44 = vpop.f32.mrb[51].mxu0  ;;  %v7440_v45 = vsel %vm6977_vm9, %v7424_v20, 0  ;;  %v17814_v20 = vld [vmem:[#allocation11 + $0x21c] ss:$24 sps:$4 sm:$0xff]  }
 0x603   : > { %v6953_v28 = vpop.f32.mrb[51].mxu1  ;;  %14815 = vmatprep.subr.msk.bf16.mxu0 %vm6977_vm9, %v7425_v27  ;;  %v7446_v47 = vsel %vm6977_vm9, %v7426_v23, 0  ;;  %v17812_v26 = vld [vmem:[#allocation11 + $0x218] ss:$24 sps:$4 sm:$0xff]   ;;  %v17817_v23 = vld [vmem:[#allocation11 + $0x244] ss:$24 sps:$4 sm:$0xff]  }
 0x604   : > { %14817 = vmatprep.subr.msk.bf16.mxu1 %vm6977_vm9, %v7427_v42  ;;  %7452 = vmatpush1.bf16.msra.mxu0 %v7440_v45  ;;  %v17820_v27 = vld [vmem:[#allocation11 + $0x24c] ss:$24 sps:$4 sm:$0xff]   ;;  %v17815_v30 = vld [vmem:[#allocation11 + $0x240] ss:$24 sps:$4 sm:$0xff]   ;;  %v17826_v42 = vld [vmem:[#allocation11 + $0x27c] ss:$24 sps:$4 sm:$0xff]  }
 0x605   : > { %7495 = vmatpush1.bf16.msra.mxu1 %v7446_v47  ;;  %8771 = vmatprep.subr.bf16.mxu0 %v17745_v40  ;;  %v17818_v32 = vld [vmem:[#allocation11 + $0x248] ss:$24 sps:$4 sm:$0xff]   ;;  %v17823_v40 = vld [vmem:[#allocation11 + $0x274] ss:$24 sps:$4 sm:$0xff]   ;;  %v17824_v44 = vld [vmem:[#allocation11 + $0x278] ss:$24 sps:$4 sm:$0xff]  }
 0x606   : > { %8857 = vmatprep.subr.bf16.mxu1 %v17748_v46  ;;  %v17821_v43 = vld [vmem:[#allocation11 + $0x270] ss:$24 sps:$4 sm:$0xff]   ;;  %v17829_v45 = vld [vmem:[#allocation11 + $0x2a4] ss:$24 sps:$4 sm:$0xff]   ;;  %v17827_v28 = vld [vmem:[#allocation11 + $0x2a0] ss:$24 sps:$4 sm:$0xff]  }
 0x607   : > { %14816 = vmatmul.mubr.msk.bf16.vlgmr.msra.gmra.mrb[52].mxu0 %vm6973_vm10, %v17742_v48  ;;  %v17832_v46 = vld [vmem:[#allocation11 + $0x2ac] ss:$24 sps:$4 sm:$0xff]   ;;  %v17830_v47 = vld [vmem:[#allocation11 + $0x2a8] ss:$24 sps:$4 sm:$0xff]  }
 0x608   : > { %14818 = vmatmul.mubr.msk.bf16.vlgmr.msra.gmra.mrb[52].mxu1 %vm6973_vm10, %v17742_v48  ;;  %8772 = vmatpush1.bf16.msra.mxu0 %v17743_v29  ;;  %v17835_v48 = vld [vmem:[#allocation11 + $0x2d4] ss:$24 sps:$4 sm:$0xff]  }
 0x609   : > { %8858 = vmatpush1.bf16.msra.mxu1 %v17746_v25  ;;  %8773 = vmatprep.subr.bf16.mxu0 %v17751_v36  ;;  %v17838_v29 = vld [vmem:[#allocation11 + $0x2dc] ss:$24 sps:$4 sm:$0xff]   ;;  %v17833_v25 = vld [vmem:[#allocation11 + $0x2d0] ss:$24 sps:$4 sm:$0xff]  }
 0x60a   : > { %8859 = vmatprep.subr.bf16.mxu1 %v17754_v39  ;;  %v17836_v36 = vld [vmem:[#allocation11 + $0x2d8] ss:$24 sps:$4 sm:$0xff]   ;;  %v17841_v39 = vld [vmem:[#allocation11 + $0x304] ss:$24 sps:$4 sm:$0xff]  }
 0x60c   : > { %8774 = vmatpush1.bf16.msra.mxu0 %v17749_v49  ;;  %v17844_v49 = vld [vmem:[#allocation11 + $0x30c] ss:$24 sps:$4 sm:$0xff]  }
 0x60d   : > { %8860 = vmatpush1.bf16.msra.mxu1 %v17752_v50  ;;  %8775 = vmatprep.subr.bf16.mxu0 %v17757_v51  ;;  %v7545_v50 = vld [vmem:[#allocation10] sm:$0xf] }
 0x60e   : > { %8861 = vmatprep.subr.bf16.mxu1 %v17760_v52  ;;  %v7550_v51 = vrot.slane %v7545_v50, %v19600_v11  ;;  %v7558_v52 = vrot.slane %v7545_v50, %v19606_v14 }
 0x610   : > { %8776 = vmatpush1.bf16.msra.mxu0 %v17755_v31  ;;  %v7554_v31 = vrot.slane %v7545_v50, %v19603_v13 }
 0x611   : > { %8862 = vmatpush1.bf16.msra.mxu1 %v17758_v54  ;;  %8777 = vmatprep.subr.bf16.mxu0 %v17763_v35  ;;  %v7562_v54 = vrot.slane %v7545_v50, %v19610_v16  ;;  %v17845_v50 = vld [vmem:[#allocation11 + $0x330] ss:$24 sps:$4 sm:$0xff]  }
 0x612   : > { %8863 = vmatprep.subr.bf16.mxu1 %v17766_v63 }
 0x614   : > { %8778 = vmatpush1.bf16.msra.mxu0 %v17761_v2 }
 0x615   : > { %8864 = vmatpush1.bf16.msra.mxu1 %v17764_v3  ;;  %8779 = vmatprep.subr.bf16.mxu0 %v17769_v38 }
 0x616   : > { %8865 = vmatprep.subr.bf16.mxu1 %v17772_v10 }
 0x618   : > { %8780 = vmatpush1.bf16.msra.mxu0 %v17767_v21 }
 0x619   : > { %8866 = vmatpush1.bf16.msra.mxu1 %v17770_v4  ;;  %8781 = vmatprep.subr.bf16.mxu0 %v17775_v41 }
 0x61a   : > { %8867 = vmatprep.subr.bf16.mxu1 %v17778_v33 }
 0x61c   : > { %8782 = vmatpush1.bf16.msra.mxu0 %v17773_v34 }
 0x61d   : > { %8868 = vmatpush1.bf16.msra.mxu1 %v17776_v37  ;;  %8783 = vmatprep.subr.bf16.mxu0 %v17781_v56 }
 0x61e   : > { %8869 = vmatprep.subr.bf16.mxu1 %v17784_v57 }
 0x620   : > { %8784 = vmatpush1.bf16.msra.mxu0 %v17779_v58 }
 0x621   : > { %8870 = vmatpush1.bf16.msra.mxu1 %v17782_v59  ;;  %8785 = vmatprep.subr.bf16.mxu0 %v17787_v53 }
 0x622   : > { %8871 = vmatprep.subr.bf16.mxu1 %v17790_v55 }
 0x624   : > { %8786 = vmatpush1.bf16.msra.mxu0 %v17785_v60 }
 0x625   : > { %8872 = vmatpush1.bf16.msra.mxu1 %v17788_v61  ;;  %8787 = vmatprep.subr.bf16.mxu0 %v17793_v62 }
 0x626   : > { %8873 = vmatprep.subr.bf16.mxu1 %v17796_v1 }
 0x628   : > { %8788 = vmatpush1.bf16.msra.mxu0 %v17791_v5 }
 0x629   : > { %8874 = vmatpush1.bf16.msra.mxu1 %v17794_v6  ;;  %8789 = vmatprep.subr.bf16.mxu0 %v17799_v7 }
 0x62a   : > { %8875 = vmatprep.subr.bf16.mxu1 %v17802_v8 }
 0x62c   : > { %8790 = vmatpush1.bf16.msra.mxu0 %v17797_v9 }
 0x62d   : > { %8876 = vmatpush1.bf16.msra.mxu1 %v17800_v12  ;;  %8791 = vmatprep.subr.bf16.mxu0 %v17805_v15 }
 0x62e   : > { %8877 = vmatprep.subr.bf16.mxu1 %v17808_v24 }
 0x630   : > { %8792 = vmatpush1.bf16.msra.mxu0 %v17803_v17 }
 0x631   : > { %8878 = vmatpush1.bf16.msra.mxu1 %v17806_v18  ;;  %8793 = vmatprep.subr.bf16.mxu0 %v17811_v19 }
 0x632   : > { %8879 = vmatprep.subr.bf16.mxu1 %v17814_v20 }
 0x634   : > { %8794 = vmatpush1.bf16.msra.mxu0 %v17809_v22 }
 0x635   : > { %8880 = vmatpush1.bf16.msra.mxu1 %v17812_v26  ;;  %8795 = vmatprep.subr.bf16.mxu0 %v17817_v23 }
 0x636   : > { %8881 = vmatprep.subr.bf16.mxu1 %v17820_v27 }
 0x638   : > { %8796 = vmatpush1.bf16.msra.mxu0 %v17815_v30 }
 0x639   : > { %8882 = vmatpush1.bf16.msra.mxu1 %v17818_v32  ;;  %8797 = vmatprep.subr.bf16.mxu0 %v17823_v40 }
 0x63a   : > { %8883 = vmatprep.subr.bf16.mxu1 %v17826_v42 }
 0x63c   : > { %8798 = vmatpush1.bf16.msra.mxu0 %v17821_v43 }
 0x63d   : > { %8884 = vmatpush1.bf16.msra.mxu1 %v17824_v44  ;;  %8799 = vmatprep.subr.bf16.mxu0 %v17829_v45 }
 0x63e   : > { %8885 = vmatprep.subr.bf16.mxu1 %v17832_v46 }
 0x640   : > { %8800 = vmatpush1.bf16.msra.mxu0 %v17827_v28 }
 0x641   : > { %8886 = vmatpush1.bf16.msra.mxu1 %v17830_v47  ;;  %8801 = vmatprep.subr.bf16.mxu0 %v17835_v48  ;;  %v17839_v47 = vld [vmem:[#allocation11 + $0x300] ss:$24 sps:$4 sm:$0xff]  }
 0x642   : > { %8887 = vmatprep.subr.bf16.mxu1 %v17838_v29  ;;  %v17842_v48 = vld [vmem:[#allocation11 + $0x308] ss:$24 sps:$4 sm:$0xff]  }
 0x644   : > { %8802 = vmatpush1.bf16.msra.mxu0 %v17833_v25 }
 0x645   : > { %8888 = vmatpush1.bf16.msra.mxu1 %v17836_v36  ;;  %8814 = vmatprep.subr.bf16.mxu0 %v17841_v39  ;;  %v17847_v39 = vld [vmem:[#allocation11 + $0x334] ss:$24 sps:$4 sm:$0xff]  }
 0x646   : > { %8900 = vmatprep.subr.bf16.mxu1 %v17844_v49  ;;  %v17850_v49 = vld [vmem:[#allocation11 + $0x33c] ss:$24 sps:$4 sm:$0xff]  }
 0x6da   : > { %v7485_v35 = vpop.f32.mrb[52].mxu0 }
 0x6db   : > { %v7567_v63 = vadd.f32 %v7550_v51, %v7485_v35  ;;  %v7528_v2 = vpop.f32.mrb[52].mxu1  ;;  %v7487_v3 = vpop.f32.mrb[53].mxu0  ;;  %v17854_v35 = vld [vmem:[#allocation11 + $0x368] ss:$24 sps:$4 sm:$0xff]  }
 0x6dc   : > { %v7569_v38 = vadd.f32 %v7558_v52, %v7528_v2  ;;  %v7568_v10 = vadd.f32 %v7554_v31, %v7487_v3  ;;  %v7530_v21 = vpop.f32.mrb[53].mxu1  ;;  %v7489_v4 = vpop.f32.mrb[54].mxu0  ;;  %v17862_v2 = vld [vmem:[#allocation11 + $0x39c] ss:$24 sps:$4 sm:$0xff]   ;;  %v17857_v3 = vld [vmem:[#allocation11 + $0x390] ss:$24 sps:$4 sm:$0xff]  }
 0x6dd   : > { %v7583_v41 = vmul.f32 1.442695, %v7567_v63  ;;  %v7570_v33 = vadd.f32 %v7562_v54, %v7530_v21  ;;  %v7571_v34 = vadd.f32 %v7550_v51, %v7489_v4  ;;  %v7532_v37 = vpop.f32.mrb[54].mxu1  ;;  %v7491_v56 = vpop.f32.mrb[55].mxu0  ;;  %vm7575_vm12 = vcmp.gt.f32.partialorder %v7567_v63, 0.0 }
 0x6de   : > { %v7587_v57 = vmul.f32 1.442695, %v7569_v38  ;;  %v7585_v58 = vmul.f32 1.442695, %v7568_v10  ;;  %v7534_v53 = vpop.f32.mrb[55].mxu1  ;;  %v7573_v16 = vadd.f32 %v7558_v52, %v7532_v37  ;;  %v7572_v55 = vadd.f32 %v7554_v31, %v7491_v56 }
 0x6df   : > { %18314 = vpow2.f32 %v7583_v41  ;;  %v7589_v14 = vmul.f32 1.442695, %v7570_v33  ;;  %v7591_v59 = vmul.f32 1.442695, %v7571_v34  ;;  %v7574_v60 = vadd.f32 %v7562_v54, %v7534_v53  ;;  %v17848_v51 = vld [vmem:[#allocation11 + $0x338] ss:$24 sps:$4 sm:$0xff]  }
 0x6e0   : > { %18316 = vpow2.f32 %v7587_v57  ;;  %v7595_v61 = vmul.f32 1.442695, %v7573_v16  ;;  %v7593_v62 = vmul.f32 1.442695, %v7572_v55  ;;  %vm7577_vm11 = vcmp.gt.f32.partialorder %v7569_v38, 0.0 }
 0x6e1   : > { %18318 = vpow2.f32 %v7585_v58  ;;  %v7597_v1 = vmul.f32 1.442695, %v7574_v60  ;;  %vm7576_vm13 = vcmp.gt.f32.partialorder %v7568_v10, 0.0  ;;  %vm7579_vm14 = vcmp.gt.f32.partialorder %v7571_v34, 0.0  ;;  %v17853_v52 = vld [vmem:[#allocation11 + $0x364] ss:$24 sps:$4 sm:$0xff]  }
 0x6e2   : > { %18320 = vpow2.f32 %v7589_v14  ;;  %vm7581_vm15 = vcmp.gt.f32.partialorder %v7573_v16, 0.0  ;;  %vm7578_vm1 = vcmp.gt.f32.partialorder %v7570_v33, 0.0  ;;  %vm7582_vm2 = vcmp.gt.f32.partialorder %v7574_v60, 0.0  ;;  %v17856_v31 = vld [vmem:[#allocation11 + $0x36c] ss:$24 sps:$4 sm:$0xff]  }
 0x6e3   : > { %18322 = vpow2.f32 %v7591_v59  ;;  %vm7580_vm3 = vcmp.gt.f32.partialorder %v7572_v55, 0.0  ;;  %v17851_v54 = vld [vmem:[#allocation11 + $0x360] ss:$24 sps:$4 sm:$0xff]   ;;  %v17868_v21 = vld [vmem:[#allocation11 + $0x3cc] ss:$24 sps:$4 sm:$0xff]  }
 0x6e4   : > { %18324 = vpow2.f32 %v7595_v61  ;;  %v17863_v4 = vld [vmem:[#allocation11 + $0x3c0] ss:$24 sps:$4 sm:$0xff]   ;;  %v17869_v37 = vld [vmem:[#allocation11 + $0x3f0] ss:$24 sps:$4 sm:$0xff]   ;;  %v17877_v57 = vld [vmem:[#allocation11 + $0x424] ss:$24 sps:$4 sm:$0xff]  }
 0x6e5   : > { %18326 = vpow2.f32 %v7593_v62  ;;  %v17866_v41 = vld [vmem:[#allocation11 + $0x3c8] ss:$24 sps:$4 sm:$0xff]   ;;  %v17872_v56 = vld [vmem:[#allocation11 + $0x3f8] ss:$24 sps:$4 sm:$0xff]   ;;  %v17880_v58 = vld [vmem:[#allocation11 + $0x42c] ss:$24 sps:$4 sm:$0xff]  }
 0x6e6   : > { %18328 = vpow2.f32 %v7597_v1  ;;  %v17875_v14 = vld [vmem:[#allocation11 + $0x420] ss:$24 sps:$4 sm:$0xff]   ;;  %v17883_v53 = vld [vmem:[#allocation11 + $0x454] ss:$24 sps:$4 sm:$0xff]   ;;  %v17889_v61 = vld [vmem:[#allocation11 + $0x484] ss:$24 sps:$4 sm:$0xff]  }
 0x6e7   : > { %v17878_v59 = vld [vmem:[#allocation11 + $0x428] ss:$24 sps:$4 sm:$0xff]   ;;  %v17892_v62 = vld [vmem:[#allocation11 + $0x48c] ss:$24 sps:$4 sm:$0xff]  }
 0x6e8   : > { %v17887_v1 = vld [vmem:[#allocation11 + $0x480] ss:$24 sps:$4 sm:$0xff]  }
 0x6e9   : > { %v18315_v5 = vpop.eup %18314 }
 0x6ea   : > { %v18317_v6 = vpop.eup %18316  ;;  %v14819_v12 = vadd.f32 -1.0, %v18315_v5  ;;  %v17890_v5 = vld [vmem:[#allocation11 + $0x488] ss:$24 sps:$4 sm:$0xff]  }
 0x6eb   : > { %v18319_v7 = vpop.eup %18318  ;;  %v14821_v8 = vadd.f32 -1.0, %v18317_v6  ;;  %v17895_v6 = vld [vmem:[#allocation11 + $0x4b4] ss:$24 sps:$4 sm:$0xff]  }
 0x6ec   : > { %v18321_v9 = vpop.eup %18320  ;;  %v14820_v17 = vadd.f32 -1.0, %v18319_v7  ;;  %v7607_v27 = vsel %vm7575_vm12, %v7567_v63, %v14819_v12  ;;  %v17859_v63 = vld [vmem:[#allocation11 + $0x394] ss:$24 sps:$4 sm:$0xff]   ;;  %v17901_v12 = vld [vmem:[#allocation11 + $0x4e4] ss:$24 sps:$4 sm:$0xff]  }
 0x6ed   : > { %v18323_v15 = vpop.eup %18322  ;;  %v7609_v20 = vsel %vm7577_vm11, %v7569_v38, %v14821_v8  ;;  %v14822_v26 = vadd.f32 -1.0, %v18321_v9  ;;  %v17860_v38 = vld [vmem:[#allocation11 + $0x398] ss:$24 sps:$4 sm:$0xff]   ;;  %v17898_v7 = vld [vmem:[#allocation11 + $0x4bc] ss:$24 sps:$4 sm:$0xff]  }
 0x6ee   : > { %v18325_v24 = vpop.eup %18324  ;;  %v14823_v18 = vadd.f32 -1.0, %v18323_v15  ;;  %v7608_v44 = vsel %vm7576_vm13, %v7568_v10, %v14820_v17  ;;  %v17865_v10 = vld [vmem:[#allocation11 + $0x3c4] ss:$24 sps:$4 sm:$0xff]   ;;  %v17893_v8 = vld [vmem:[#allocation11 + $0x4b0] ss:$24 sps:$4 sm:$0xff]  }
 0x6ef   : > { %v18327_v19 = vpop.eup %18326  ;;  %v14825_v22 = vadd.f32 -1.0, %v18325_v24  ;;  %v7610_v29 = vsel %vm7578_vm1, %v7570_v33, %v14822_v26  ;;  %v17871_v33 = vld [vmem:[#allocation11 + $0x3f4] ss:$24 sps:$4 sm:$0xff]   ;;  %v17896_v9 = vld [vmem:[#allocation11 + $0x4b8] ss:$24 sps:$4 sm:$0xff]   ;;  %vm9814_vm1 = vcmask 236544  }
 0x6f0   : > { %v18329_v23 = vpop.eup %18328  ;;  %v7611_v30 = vsel %vm7579_vm14, %v7571_v34, %v14823_v18  ;;  %v14824_v32 = vadd.f32 -1.0, %v18327_v19  ;;  %v17874_v34 = vld [vmem:[#allocation11 + $0x3fc] ss:$24 sps:$4 sm:$0xff]   ;;  %v17904_v15 = vld [vmem:[#allocation11 + $0x4ec] ss:$24 sps:$4 sm:$0xff]  }
 0x6f1   : > { %v19948_v40 = vpack.c.bf16 %v7611_v30, %v7607_v27  ;;  %v7613_v42 = vsel %vm7581_vm15, %v7573_v16, %v14825_v22  ;;  %v14826_v43 = vadd.f32 -1.0, %v18329_v23  ;;  %v17886_v16 = vld [vmem:[#allocation11 + $0x45c] ss:$24 sps:$4 sm:$0xff]   ;;  %v17899_v24 = vld [vmem:[#allocation11 + $0x4e0] ss:$24 sps:$4 sm:$0xff]  }
 0x6f2   : > { %v7612_v45 = vsel %vm7580_vm3, %v7572_v55, %v14824_v32  ;;  %v19951_v46 = vpack.c.bf16 %v7613_v42, %v7609_v20  ;;  %v17881_v55 = vld [vmem:[#allocation11 + $0x450] ss:$24 sps:$4 sm:$0xff]   ;;  %v17907_v18 = vld [vmem:[#allocation11 + $0x514] ss:$24 sps:$4 sm:$0xff]   ;;  %v17913_v26 = vld [vmem:[#allocation11 + $0x544] ss:$24 sps:$4 sm:$0xff]  }
 0x6f3   : > { %v19953_v28 = vpack.c.bf16 %v7612_v45, %v7608_v44  ;;  %v7614_v25 = vsel %vm7582_vm2, %v7574_v60, %v14826_v43  ;;  %v17884_v60 = vld [vmem:[#allocation11 + $0x458] ss:$24 sps:$4 sm:$0xff]   ;;  %v17902_v17 = vld [vmem:[#allocation11 + $0x4e8] ss:$24 sps:$4 sm:$0xff]   ;;  %v17910_v19 = vld [vmem:[#allocation11 + $0x51c] ss:$24 sps:$4 sm:$0xff]  }
 0x6f4   : > { %v19956_v36 = vpack.c.bf16 %v7614_v25, %v7610_v29  ;;  %v17905_v20 = vld [vmem:[#allocation11 + $0x510] ss:$24 sps:$4 sm:$0xff]   ;;  %v17916_v23 = vld [vmem:[#allocation11 + $0x54c] ss:$24 sps:$4 sm:$0xff]   ;;  %v17911_v27 = vld [vmem:[#allocation11 + $0x540] ss:$24 sps:$4 sm:$0xff]  }
 0x6f5   : > { %8803 = vmatprep.mubr.bf16.mxu0 %v19953_v28  ;;  %8889 = vmatprep.mubr.bf16.mxu1 %v19953_v28  ;;  %v17908_v22 = vld [vmem:[#allocation11 + $0x518] ss:$24 sps:$4 sm:$0xff]   ;;  %v17914_v30 = vld [vmem:[#allocation11 + $0x548] ss:$24 sps:$4 sm:$0xff]   ;;  %v17919_v32 = vld [vmem:[#allocation11 + $0x574] ss:$24 sps:$4 sm:$0xff]  }
 0x6f6   : > { %8804 = vmatmul.mubr.bf16.vlgmr.msra.gmra.mrb[56].mxu0 %v19948_v40  ;;  %8890 = vmatmul.mubr.bf16.vlgmr.msra.gmra.mrb[56].mxu1 %v19948_v40  ;;  %v17922_v42 = vld [vmem:[#allocation11 + $0x57c] ss:$24 sps:$4 sm:$0xff]   ;;  %v17917_v43 = vld [vmem:[#allocation11 + $0x570] ss:$24 sps:$4 sm:$0xff]   ;;  %vm9827_vm2 = vcmask 1045504  }
 0x6f7   : > { %8815 = vmatpush1.bf16.msra.mxu0 %v17839_v47  ;;  %8901 = vmatpush1.bf16.msra.mxu1 %v17842_v48  ;;  %v17920_v44 = vld [vmem:[#allocation11 + $0x578] ss:$24 sps:$4 sm:$0xff]   ;;  %v17925_v45 = vld [vmem:[#allocation11 + $0x5a4] ss:$24 sps:$4 sm:$0xff]   ;;  %v17926_v29 = vld [vmem:[#allocation11 + $0x5a8] ss:$24 sps:$4 sm:$0xff]  }
 0x6f8   : > { %8846 = vmatprep.mubr.bf16.mxu0 %v19956_v36  ;;  %8932 = vmatprep.mubr.bf16.mxu1 %v19956_v36  ;;  %v17928_v47 = vld [vmem:[#allocation11 + $0x5ac] ss:$24 sps:$4 sm:$0xff]   ;;  %v17923_v48 = vld [vmem:[#allocation11 + $0x5a0] ss:$24 sps:$4 sm:$0xff]  }
 0x6f9   : > { %8816 = vmatprep.subr.bf16.mxu0 %v17847_v39  ;;  %8902 = vmatprep.subr.bf16.mxu1 %v17850_v49  ;;  %v17931_v25 = vld [vmem:[#allocation11 + $0x5d4] ss:$24 sps:$4 sm:$0xff]   ;;  %v17929_v49 = vld [vmem:[#allocation11 + $0x5d0] ss:$24 sps:$4 sm:$0xff]  }
 0x6fa   : > { %v17934_v39 = vld [vmem:[#allocation11 + $0x5dc] ss:$24 sps:$4 sm:$0xff]  }
 0x6fb   : > { %8817 = vmatpush1.bf16.msra.mxu0 %v17845_v50  ;;  %8903 = vmatpush1.bf16.msra.mxu1 %v17848_v51  ;;  %v17932_v50 = vld [vmem:[#allocation11 + $0x5d8] ss:$24 sps:$4 sm:$0xff]   ;;  %v17937_v51 = vld [vmem:[#allocation11 + $0x14] ss:$24 sps:$4 sm:$0xff]  }
 0x6fc   : > { %8818 = vmatprep.subr.bf16.mxu0 %v17853_v52  ;;  %8904 = vmatprep.subr.bf16.mxu1 %v17856_v31  ;;  %v17935_v52 = vld [vmem:[#allocation11 + $0x10] ss:$24 sps:$4 sm:$0xff]   ;;  %v17940_v31 = vld [vmem:[#allocation11 + $0x44] ss:$24 sps:$4 sm:$0xff]  }
 0x6ff   : > { %8819 = vmatpush1.bf16.msra.mxu0 %v17851_v54  ;;  %8905 = vmatpush1.bf16.msra.mxu1 %v17854_v35  ;;  %v17938_v54 = vld [vmem:[#allocation11 + $0x40] ss:$24 sps:$4 sm:$0xff]   ;;  %v17943_v35 = vld [vmem:[#allocation11 + $0x74] ss:$24 sps:$4 sm:$0xff]  }
 0x700   : > { %8820 = vmatprep.subr.bf16.mxu0 %v17859_v63  ;;  %8906 = vmatprep.subr.bf16.mxu1 %v17862_v2  ;;  %v17941_v63 = vld [vmem:[#allocation11 + $0x70] ss:$24 sps:$4 sm:$0xff]   ;;  %v17946_v2 = vld [vmem:[#allocation11 + $0xa4] ss:$24 sps:$4 sm:$0xff]  }
 0x703   : > { %8821 = vmatpush1.bf16.msra.mxu0 %v17857_v3  ;;  %8907 = vmatpush1.bf16.msra.mxu1 %v17860_v38  ;;  %v17944_v3 = vld [vmem:[#allocation11 + $0xa0] ss:$24 sps:$4 sm:$0xff]   ;;  %v17949_v38 = vld [vmem:[#allocation11 + $0xd4] ss:$24 sps:$4 sm:$0xff]  }
 0x704   : > { %8822 = vmatprep.subr.bf16.mxu0 %v17865_v10  ;;  %8908 = vmatprep.subr.bf16.mxu1 %v17868_v21  ;;  %v17947_v10 = vld [vmem:[#allocation11 + $0xd0] ss:$24 sps:$4 sm:$0xff]   ;;  %v17952_v21 = vld [vmem:[#allocation11 + $0x104] ss:$24 sps:$4 sm:$0xff]  }
 0x707   : > { %8823 = vmatpush1.bf16.msra.mxu0 %v17863_v4  ;;  %8909 = vmatpush1.bf16.msra.mxu1 %v17866_v41  ;;  %v17950_v4 = vld [vmem:[#allocation11 + $0x100] ss:$24 sps:$4 sm:$0xff]   ;;  %v17953_v41 = vld [vmem:[#allocation11 + $0x130] ss:$24 sps:$4 sm:$0xff]  }
 0x708   : > { %8824 = vmatprep.subr.bf16.mxu0 %v17871_v33  ;;  %8910 = vmatprep.subr.bf16.mxu1 %v17874_v34  ;;  %v17958_v33 = vld [vmem:[#allocation11 + $0x164] ss:$24 sps:$4 sm:$0xff]   ;;  %v17956_v34 = vld [vmem:[#allocation11 + $0x160] ss:$24 sps:$4 sm:$0xff]  }
 0x70b   : > { %8825 = vmatpush1.bf16.msra.mxu0 %v17869_v37  ;;  %8911 = vmatpush1.bf16.msra.mxu1 %v17872_v56  ;;  %v17961_v37 = vld [vmem:[#allocation11 + $0x194] ss:$24 sps:$4 sm:$0xff]   ;;  %v17959_v56 = vld [vmem:[#allocation11 + $0x190] ss:$24 sps:$4 sm:$0xff]  }
 0x70c   : > { %8826 = vmatprep.subr.bf16.mxu0 %v17877_v57  ;;  %8912 = vmatprep.subr.bf16.mxu1 %v17880_v58  ;;  %v17964_v57 = vld [vmem:[#allocation11 + $0x1c4] ss:$24 sps:$4 sm:$0xff]   ;;  %v17962_v58 = vld [vmem:[#allocation11 + $0x1c0] ss:$24 sps:$4 sm:$0xff]  }
 0x70f   : > { %8827 = vmatpush1.bf16.msra.mxu0 %v17875_v14  ;;  %8913 = vmatpush1.bf16.msra.mxu1 %v17878_v59  ;;  %v17967_v14 = vld [vmem:[#allocation11 + $0x1f4] ss:$24 sps:$4 sm:$0xff]   ;;  %v17965_v59 = vld [vmem:[#allocation11 + $0x1f0] ss:$24 sps:$4 sm:$0xff]  }
 0x710   : > { %8828 = vmatprep.subr.bf16.mxu0 %v17883_v53  ;;  %8914 = vmatprep.subr.bf16.mxu1 %v17886_v16  ;;  %v17970_v53 = vld [vmem:[#allocation11 + $0x224] ss:$24 sps:$4 sm:$0xff]   ;;  %v17968_v16 = vld [vmem:[#allocation11 + $0x220] ss:$24 sps:$4 sm:$0xff]  }
 0x713   : > { %8829 = vmatpush1.bf16.msra.mxu0 %v17881_v55  ;;  %8915 = vmatpush1.bf16.msra.mxu1 %v17884_v60  ;;  %v17973_v55 = vld [vmem:[#allocation11 + $0x254] ss:$24 sps:$4 sm:$0xff]   ;;  %v17971_v60 = vld [vmem:[#allocation11 + $0x250] ss:$24 sps:$4 sm:$0xff]  }
 0x714   : > { %8830 = vmatprep.subr.bf16.mxu0 %v17889_v61  ;;  %8916 = vmatprep.subr.bf16.mxu1 %v17892_v62  ;;  %v17976_v61 = vld [vmem:[#allocation11 + $0x284] ss:$24 sps:$4 sm:$0xff]   ;;  %v17974_v62 = vld [vmem:[#allocation11 + $0x280] ss:$24 sps:$4 sm:$0xff]  }
 0x717   : > { %8831 = vmatpush1.bf16.msra.mxu0 %v17887_v1  ;;  %8917 = vmatpush1.bf16.msra.mxu1 %v17890_v5  ;;  %v17979_v1 = vld [vmem:[#allocation11 + $0x2b4] ss:$24 sps:$4 sm:$0xff]   ;;  %v17977_v5 = vld [vmem:[#allocation11 + $0x2b0] ss:$24 sps:$4 sm:$0xff]  }
 0x718   : > { %8832 = vmatprep.subr.bf16.mxu0 %v17895_v6  ;;  %8918 = vmatprep.subr.bf16.mxu1 %v17898_v7  ;;  %v17982_v6 = vld [vmem:[#allocation11 + $0x2e4] ss:$24 sps:$4 sm:$0xff]   ;;  %v17980_v7 = vld [vmem:[#allocation11 + $0x2e0] ss:$24 sps:$4 sm:$0xff]  }
 0x71b   : > { %8833 = vmatpush1.bf16.msra.mxu0 %v17893_v8  ;;  %8919 = vmatpush1.bf16.msra.mxu1 %v17896_v9  ;;  %v17985_v8 = vld [vmem:[#allocation11 + $0x314] ss:$24 sps:$4 sm:$0xff]   ;;  %v17983_v9 = vld [vmem:[#allocation11 + $0x310] ss:$24 sps:$4 sm:$0xff]  }
 0x71c   : > { %8834 = vmatprep.subr.bf16.mxu0 %v17901_v12  ;;  %8920 = vmatprep.subr.bf16.mxu1 %v17904_v15  ;;  %v17988_v12 = vld [vmem:[#allocation11 + $0x344] ss:$24 sps:$4 sm:$0xff]   ;;  %v17986_v15 = vld [vmem:[#allocation11 + $0x340] ss:$24 sps:$4 sm:$0xff]  }
 0x71f   : > { %8835 = vmatpush1.bf16.msra.mxu0 %v17899_v24  ;;  %8921 = vmatpush1.bf16.msra.mxu1 %v17902_v17  ;;  %v17991_v24 = vld [vmem:[#allocation11 + $0x374] ss:$24 sps:$4 sm:$0xff]   ;;  %v17989_v17 = vld [vmem:[#allocation11 + $0x370] ss:$24 sps:$4 sm:$0xff]  }
 0x720   : > { %8836 = vmatprep.subr.bf16.mxu0 %v17907_v18  ;;  %8922 = vmatprep.subr.bf16.mxu1 %v17910_v19  ;;  %v17994_v18 = vld [vmem:[#allocation11 + $0x3a4] ss:$24 sps:$4 sm:$0xff]   ;;  %v17992_v19 = vld [vmem:[#allocation11 + $0x3a0] ss:$24 sps:$4 sm:$0xff]  }
 0x723   : > { %8837 = vmatpush1.bf16.msra.mxu0 %v17905_v20  ;;  %8923 = vmatpush1.bf16.msra.mxu1 %v17908_v22  ;;  %v17997_v20 = vld [vmem:[#allocation11 + $0x3d4] ss:$24 sps:$4 sm:$0xff]   ;;  %v17995_v22 = vld [vmem:[#allocation11 + $0x3d0] ss:$24 sps:$4 sm:$0xff]  }
 0x724   : > { %8838 = vmatprep.subr.bf16.mxu0 %v17913_v26  ;;  %8924 = vmatprep.subr.bf16.mxu1 %v17916_v23  ;;  %v18000_v26 = vld [vmem:[#allocation11 + $0x404] ss:$24 sps:$4 sm:$0xff]   ;;  %v18003_v23 = vld [vmem:[#allocation11 + $0x434] ss:$24 sps:$4 sm:$0xff]  }
 0x727   : > { %8839 = vmatpush1.bf16.msra.mxu0 %v17911_v27  ;;  %8925 = vmatpush1.bf16.msra.mxu1 %v17914_v30  ;;  %v18006_v27 = vld [vmem:[#allocation11 + $0x464] ss:$24 sps:$4 sm:$0xff]   ;;  %v18004_v30 = vld [vmem:[#allocation11 + $0x460] ss:$24 sps:$4 sm:$0xff]  }
 0x728   : > { %8840 = vmatprep.subr.bf16.mxu0 %v17919_v32  ;;  %8926 = vmatprep.subr.bf16.mxu1 %v17922_v42  ;;  %v18009_v32 = vld [vmem:[#allocation11 + $0x494] ss:$24 sps:$4 sm:$0xff]   ;;  %v18007_v42 = vld [vmem:[#allocation11 + $0x490] ss:$24 sps:$4 sm:$0xff]  }
 0x72b   : > { %8841 = vmatpush1.bf16.msra.mxu0 %v17917_v43  ;;  %8927 = vmatpush1.bf16.msra.mxu1 %v17920_v44  ;;  %v18012_v43 = vld [vmem:[#allocation11 + $0x4c4] ss:$24 sps:$4 sm:$0xff]   ;;  %v18010_v44 = vld [vmem:[#allocation11 + $0x4c0] ss:$24 sps:$4 sm:$0xff]  }
 0x72c   : > { %8842 = vmatprep.subr.bf16.mxu0 %v17925_v45  ;;  %8928 = vmatprep.subr.bf16.mxu1 %v17928_v47  ;;  %v18015_v45 = vld [vmem:[#allocation11 + $0x4f4] ss:$24 sps:$4 sm:$0xff]   ;;  %v18013_v47 = vld [vmem:[#allocation11 + $0x4f0] ss:$24 sps:$4 sm:$0xff]  }
 0x72f   : > { %8843 = vmatpush1.bf16.msra.mxu0 %v17923_v48  ;;  %8929 = vmatpush1.bf16.msra.mxu1 %v17926_v29  ;;  %v18018_v48 = vld [vmem:[#allocation11 + $0x524] ss:$24 sps:$4 sm:$0xff]   ;;  %v18016_v29 = vld [vmem:[#allocation11 + $0x520] ss:$24 sps:$4 sm:$0xff]  }
 0x730   : > { %8844 = vmatprep.subr.bf16.mxu0 %v17931_v25  ;;  %8930 = vmatprep.subr.bf16.mxu1 %v17934_v39  ;;  %v18021_v25 = vld [vmem:[#allocation11 + $0x554] ss:$24 sps:$4 sm:$0xff]   ;;  %v18019_v39 = vld [vmem:[#allocation11 + $0x550] ss:$24 sps:$4 sm:$0xff]  }
 0x733   : > { %8845 = vmatpush1.bf16.msra.mxu0 %v17929_v49  ;;  %8931 = vmatpush1.bf16.msra.mxu1 %v17932_v50  ;;  %v18024_v49 = vld [vmem:[#allocation11 + $0x584] ss:$24 sps:$4 sm:$0xff]   ;;  %v18022_v50 = vld [vmem:[#allocation11 + $0x580] ss:$24 sps:$4 sm:$0xff]  }
 0x734   : > { %8943 = vmatprep.subr.bf16.mxu0 %v17937_v51  ;;  %v18027_v51 = vld [vmem:[#allocation11 + $0x5b4] ss:$24 sps:$4 sm:$0xff]  }
 0x736   : > { %8847 = vmatmul.mubr.bf16.vlgmr.msra.gmra.mrb[56].mxu0 %v19951_v46  ;;  %8933 = vmatmul.mubr.bf16.vlgmr.msra.gmra.mrb[56].mxu1 %v19951_v46 }
 0x737   : > { %8944 = vmatpush1.bf16.msra.mxu0 %v17935_v52  ;;  %8975 = vmatprep.mubr.bf16.mxu0 %v19953_v28  ;;  %v17955_v28 = vld [vmem:[#allocation11 + $0x134] ss:$24 sps:$4 sm:$0xff]   ;;  %v18025_v52 = vld [vmem:[#allocation11 + $0x5b0] ss:$24 sps:$4 sm:$0xff]  }
 0x738   : > { %8945 = vmatprep.subr.bf16.mxu0 %v17940_v31  ;;  %9101 = vmatprep.mubr.bf16.mxu1 %v18993_v0  ;;  %v18030_v31 = vld [vmem:[#allocation11 + $0x5e4] ss:$24 sps:$4 sm:$0xff]  }
 0x73b   : > { %8946 = vmatpush1.bf16.msra.mxu0 %v17938_v54  ;;  %v18028_v54 = vld [vmem:[#allocation11 + $0x5e0] ss:$24 sps:$4 sm:$0xff]  }
 0x73c   : > { %8947 = vmatprep.subr.bf16.mxu0 %v17943_v35 }
 0x73f   : > { %8948 = vmatpush1.bf16.msra.mxu0 %v17941_v63 }
 0x740   : > { %8949 = vmatprep.subr.bf16.mxu0 %v17946_v2  ;;  %v18994_v2 = vmov 65535  }
 0x743   : > { %8950 = vmatpush1.bf16.msra.mxu0 %v17944_v3  ;;  %v9061_v3 = vsel %vm9059_vm4, 4294967295, %v18994_v2 }
 0x744   : > { %8951 = vmatprep.subr.bf16.mxu0 %v17949_v38 }
 0x747   : > { %8952 = vmatpush1.bf16.msra.mxu0 %v17947_v10 }
 0x748   : > { %8953 = vmatprep.subr.bf16.mxu0 %v17952_v21 }
 0x74b   : > { %8954 = vmatpush1.bf16.msra.mxu0 %v17950_v4 }
 0x74c   : > { %8955 = vmatprep.subr.bf16.mxu0 %v17955_v28 }
 0x74f   : > { %8956 = vmatpush1.bf16.msra.mxu0 %v17953_v41  ;;  %v9062_v41 = vsel %vm9060_vm5, %v9061_v3, 0  ;;  %v18084_v3 = vld [vmem:[#allocation14 + $0x16c] ss:$12 sps:$4 sm:$0xff]  }
 0x750   : > { %8957 = vmatprep.subr.bf16.mxu0 %v17958_v33 }
 0x753   : > { %8958 = vmatpush1.bf16.msra.mxu0 %v17956_v34 }
 0x754   : > { %8959 = vmatprep.subr.bf16.mxu0 %v17961_v37 }
 0x757   : > { %8960 = vmatpush1.bf16.msra.mxu0 %v17959_v56 }
 0x758   : > { %8961 = vmatprep.subr.bf16.mxu0 %v17964_v57 }
 0x75b   : > { %8962 = vmatpush1.bf16.msra.mxu0 %v17962_v58 }
 0x75c   : > { %8963 = vmatprep.subr.bf16.mxu0 %v17967_v14 }
 0x75f   : > { %8964 = vmatpush1.bf16.msra.mxu0 %v17965_v59  ;;  %v18031_v59 = vld [vmem:[%s21249_s15 + $0x10] sm:$0xff]  }
 0x760   : > { %8965 = vmatprep.subr.bf16.mxu0 %v17970_v53 }
 0x763   : > { %8966 = vmatpush1.bf16.msra.mxu0 %v17968_v16  ;;  %v18032_v16 = vld [vmem:[%s21249_s15 + $0x18] sm:$0x7f]  }
 0x764   : > { %8967 = vmatprep.subr.bf16.mxu0 %v17973_v55  ;;  %v18033_v55 = vld [vmem:[%s21249_s15] sm:$0xff]  }
 0x767   : > { %8968 = vmatpush1.bf16.msra.mxu0 %v17971_v60  ;;  %v18034_v60 = vld [vmem:[%s21249_s15 + $0x8] sm:$0x7f]  }
 0x768   : > { %8969 = vmatprep.subr.bf16.mxu0 %v17976_v61 }
 0x76b   : > { %8970 = vmatpush1.bf16.msra.mxu0 %v17974_v62 }
 0x76c   : > { %8971 = vmatprep.subr.bf16.mxu0 %v17979_v1 }
 0x76f   : > { %8972 = vmatpush1.bf16.msra.mxu0 %v17977_v5 }
 0x770   : > { %8973 = vmatprep.subr.bf16.mxu0 %v17982_v6 }
 0x773   : > { %8974 = vmatpush1.bf16.msra.mxu0 %v17980_v7 }
 0x774   : > { %8986 = vmatprep.subr.bf16.mxu0 %v17985_v8 }
 0x776   : > { %8976 = vmatmul.mubr.bf16.vlgmr.msra.gmra.mrb[60].mxu0 %v19948_v40  ;;  %v17998_v40 = vld [vmem:[#allocation11 + $0x400] ss:$24 sps:$4 sm:$0xff]  }
 0x777   : > { %8987 = vmatpush1.bf16.msra.mxu0 %v17983_v9  ;;  %9018 = vmatprep.mubr.bf16.mxu0 %v19956_v36  ;;  %v18001_v36 = vld [vmem:[#allocation11 + $0x430] ss:$24 sps:$4 sm:$0xff]  }
 0x778   : > { %8988 = vmatprep.subr.bf16.mxu0 %v17988_v12  ;;  %v18039_v9 = vld [vmem:[#allocation14 + $0x4] ss:$12 sps:$4 sm:$0xff]  }
 0x77b   : > { %8989 = vmatpush1.bf16.msra.mxu0 %v17986_v15  ;;  %v18035_v15 = vld [vmem:[%s21249_s15 + $0x20] sm:$0xff]  }
 0x77c   : > { %8990 = vmatprep.subr.bf16.mxu0 %v17991_v24  ;;  %v18037_v24 = vld [vmem:[#allocation14] ss:$12 sps:$4 sm:$0xff]  }
 0x77f   : > { %8991 = vmatpush1.bf16.msra.mxu0 %v17989_v17  ;;  %v18042_v17 = vld [vmem:[#allocation14 + $0x1c] ss:$12 sps:$4 sm:$0xff]  }
 0x780   : > { %8992 = vmatprep.subr.bf16.mxu0 %v17994_v18  ;;  %v18040_v18 = vld [vmem:[#allocation14 + $0x18] ss:$12 sps:$4 sm:$0xff]  }
 0x783   : > { %8993 = vmatpush1.bf16.msra.mxu0 %v17992_v19  ;;  %v18045_v19 = vld [vmem:[#allocation14 + $0x34] ss:$12 sps:$4 sm:$0xff]  }
 0x784   : > { %8994 = vmatprep.subr.bf16.mxu0 %v17997_v20  ;;  %v18036_v20 = vld [vmem:[%s21249_s15 + $0x28] sm:$0x7f]  }
 0x787   : > { %8995 = vmatpush1.bf16.msra.mxu0 %v17995_v22  ;;  %v18043_v22 = vld [vmem:[#allocation14 + $0x30] ss:$12 sps:$4 sm:$0xff]  }
 0x788   : > { %8996 = vmatprep.subr.bf16.mxu0 %v18000_v26  ;;  %v18048_v26 = vld [vmem:[#allocation14 + $0x4c] ss:$12 sps:$4 sm:$0xff]  }
 0x78b   : > { %8997 = vmatpush1.bf16.msra.mxu0 %v17998_v40  ;;  %v18046_v40 = vld [vmem:[#allocation14 + $0x48] ss:$12 sps:$4 sm:$0xff]  }
 0x78c   : > { %8998 = vmatprep.subr.bf16.mxu0 %v18003_v23  ;;  %v18051_v23 = vld [vmem:[#allocation14 + $0x64] ss:$12 sps:$4 sm:$0xff]  }
 0x78f   : > { %8999 = vmatpush1.bf16.msra.mxu0 %v18001_v36  ;;  %v18049_v36 = vld [vmem:[#allocation14 + $0x60] ss:$12 sps:$4 sm:$0xff]  }
 0x790   : > { %9000 = vmatprep.subr.bf16.mxu0 %v18006_v27  ;;  %v18054_v27 = vld [vmem:[#allocation14 + $0x7c] ss:$12 sps:$4 sm:$0xff]  }
 0x793   : > { %9001 = vmatpush1.bf16.msra.mxu0 %v18004_v30  ;;  %v18052_v30 = vld [vmem:[#allocation14 + $0x78] ss:$12 sps:$4 sm:$0xff]  }
 0x794   : > { %9002 = vmatprep.subr.bf16.mxu0 %v18009_v32  ;;  %v18057_v32 = vld [vmem:[#allocation14 + $0x94] ss:$12 sps:$4 sm:$0xff]  }
 0x797   : > { %9003 = vmatpush1.bf16.msra.mxu0 %v18007_v42  ;;  %v18055_v42 = vld [vmem:[#allocation14 + $0x90] ss:$12 sps:$4 sm:$0xff]  }
 0x798   : > { %9004 = vmatprep.subr.bf16.mxu0 %v18012_v43  ;;  %v18060_v43 = vld [vmem:[#allocation14 + $0xac] ss:$12 sps:$4 sm:$0xff]  }
 0x79b   : > { %9005 = vmatpush1.bf16.msra.mxu0 %v18010_v44  ;;  %v18058_v44 = vld [vmem:[#allocation14 + $0xa8] ss:$12 sps:$4 sm:$0xff]  }
 0x79c   : > { %9006 = vmatprep.subr.bf16.mxu0 %v18015_v45  ;;  %v18063_v45 = vld [vmem:[#allocation14 + $0xc4] ss:$12 sps:$4 sm:$0xff]  }
 0x79f   : > { %9007 = vmatpush1.bf16.msra.mxu0 %v18013_v47  ;;  %v18061_v47 = vld [vmem:[#allocation14 + $0xc0] ss:$12 sps:$4 sm:$0xff]  }
 0x7a0   : > { %9008 = vmatprep.subr.bf16.mxu0 %v18018_v48  ;;  %v18066_v48 = vld [vmem:[#allocation14 + $0xdc] ss:$12 sps:$4 sm:$0xff]  }
 0x7a3   : > { %9009 = vmatpush1.bf16.msra.mxu0 %v18016_v29  ;;  %v18064_v29 = vld [vmem:[#allocation14 + $0xd8] ss:$12 sps:$4 sm:$0xff]  }
 0x7a4   : > { %9010 = vmatprep.subr.bf16.mxu0 %v18021_v25  ;;  %v18069_v25 = vld [vmem:[#allocation14 + $0xf4] ss:$12 sps:$4 sm:$0xff]  }
 0x7a7   : > { %9011 = vmatpush1.bf16.msra.mxu0 %v18019_v39  ;;  %v18067_v39 = vld [vmem:[#allocation14 + $0xf0] ss:$12 sps:$4 sm:$0xff]  }
 0x7a8   : > { %9012 = vmatprep.subr.bf16.mxu0 %v18024_v49  ;;  %v18072_v49 = vld [vmem:[#allocation14 + $0x10c] ss:$12 sps:$4 sm:$0xff]  }
 0x7ab   : > { %9013 = vmatpush1.bf16.msra.mxu0 %v18022_v50  ;;  %v18070_v50 = vld [vmem:[#allocation14 + $0x108] ss:$12 sps:$4 sm:$0xff]  }
 0x7ac   : > { %9014 = vmatprep.subr.bf16.mxu0 %v18027_v51  ;;  %v18075_v51 = vld [vmem:[#allocation14 + $0x124] ss:$12 sps:$4 sm:$0xff]  }
 0x7af   : > { %9015 = vmatpush1.bf16.msra.mxu0 %v18025_v52  ;;  %v18073_v52 = vld [vmem:[#allocation14 + $0x120] ss:$12 sps:$4 sm:$0xff]  }
 0x7b0   : > { %9016 = vmatprep.subr.bf16.mxu0 %v18030_v31  ;;  %v18078_v31 = vld [vmem:[#allocation14 + $0x13c] ss:$12 sps:$4 sm:$0xff]  }
 0x7b3   : > { %9017 = vmatpush1.bf16.msra.mxu0 %v18028_v54  ;;  %v18076_v54 = vld [vmem:[#allocation14 + $0x138] ss:$12 sps:$4 sm:$0xff]  }
 0x7b6   : > { %9019 = vmatmul.mubr.bf16.vlgmr.msra.gmra.mrb[60].mxu0 %v19951_v46 }
 0x809   : > { %v8848_v35 = vpop.f32.mrb[56].mxu0  ;;  %v8934_v63 = vpop.f32.mrb[56].mxu1 }
 0x80a   : > { %v8850_v38 = vpop.f32.mrb[57].mxu0  ;;  %v8936_v10 = vpop.f32.mrb[57].mxu1 }
 0x80b   : > { %v8852_v21 = vpop.f32.mrb[58].mxu0  ;;  %v8938_v4 = vpop.f32.mrb[58].mxu1 }
 0x80c   : > { %v9029_v28 = vpack.c.bf16 %v8852_v21, %v8848_v35  ;;  %v9035_v33 = vpack.c.bf16 %v8938_v4, %v8934_v63  ;;  %v8854_v34 = vpop.f32.mrb[59].mxu0  ;;  %v8940_v37 = vpop.f32.mrb[59].mxu1  ;;  %v18081_v35 = vld [vmem:[#allocation14 + $0x154] ss:$12 sps:$4 sm:$0xff]   ;;  %v18079_v63 = vld [vmem:[#allocation14 + $0x150] ss:$12 sps:$4 sm:$0xff]  }
 0x80d   : > { %v9030_v56 = vpack.c.bf16 %v8854_v34, %v8850_v38  ;;  %v9036_v57 = vpack.c.bf16 %v8940_v37, %v8936_v10  ;;  %v18082_v38 = vld [vmem:[#allocation14 + $0x168] ss:$12 sps:$4 sm:$0xff]   ;;  %v9287_v21 = vld [vmem:[#allocation13] sm:$0x3] }
 0x80e   : > { %v9064_v58 = vand.u32 %v9062_v41, %v9035_v33  ;;  %v9139_v53 = vand.u32 %v9062_v41, %v9029_v28  ;;  %v18085_v10 = vld [vmem:[#allocation14 + $0xc8] ss:$12 sps:$4 sm:$0xff]   ;;  %v9292_v4 = vrot.slane %v9287_v21, %v19600_v11  ;;  %v9296_v28 = vrot.slane %v9287_v21, %v19603_v13 }
 0x80f   : > { %v9067_v46 = vand.u32 %v9062_v41, %v9036_v57  ;;  %v9142_v14 = vand.u32 %v9062_v41, %v9030_v56  ;;  %v18093_v21 = vld [vmem:[#allocation14 + $0x128] ss:$12 sps:$4 sm:$0xff]  }
 0x811   : > { %9069 = vmatprep.subr.bf16.mxu1 %v9067_v46 }
 0x812   : > { %9070 = vmatpush1.bf16.msra.mxu1 %v9064_v58 }
 0x813   : > { %9144 = vmatprep.subr.bf16.mxu1 %v9142_v14 }
 0x815   : > { %15025 = vmatmul.mubr.msk.bf16.vlgmr.msra.gmra.mrb[60].mxu1 %vm9052_vm6, %v18031_v59 }
 0x816   : > { %9145 = vmatpush1.bf16.msra.mxu1 %v9139_v53  ;;  %9111 = vmatprep.mubr.bf16.mxu1 %v18993_v0 }
 0x81d   : > { %15026 = vmatmul.mubr.msk.bf16.gmra.mrb[64].mxu1 %vm9052_vm6, %v18032_v16 }
 0x81e   : > { %9176 = vmatprep.mubr.bf16.mxu1 %v18993_v0 }
 0x825   : > { %15029 = vmatmul.mubr.msk.bf16.vlgmr.msra.gmra.mrb[60].mxu1 %vm9052_vm6, %v18033_v55 }
 0x826   : > { %9186 = vmatprep.mubr.bf16.mxu1 %v18993_v0 }
 0x82d   : > { %15030 = vmatmul.mubr.msk.bf16.gmra.mrb[64].mxu1 %vm9052_vm6, %v18034_v60 }
 0x82e   : > { %9258 = vmatprep.mubr.bf16.mxu1 %v18993_v0 }
 0x889   : > { %v9020_v61 = vpop.f32.mrb[60].mxu0 }
 0x88a   : > { %v9022_v62 = vpop.f32.mrb[61].mxu0 }
 0x88b   : > { %v9024_v1 = vpop.f32.mrb[62].mxu0 }
 0x88c   : > { %v9197_v5 = vpack.c.bf16 %v9024_v1, %v9020_v61  ;;  %v9026_v6 = vpop.f32.mrb[63].mxu0 }
 0x88d   : > { %v9198_v7 = vpack.c.bf16 %v9026_v6, %v9022_v62 }
 0x88e   : > { %v9221_v12 = vand.u32 %v9197_v5, %v9062_v41 }
 0x88f   : > { %v9224_v8 = vand.u32 %v9198_v7, %v9062_v41 }
 0x891   : > { %9226 = vmatprep.subr.bf16.mxu1 %v9224_v8 }
 0x892   : > { %9227 = vmatpush1.bf16.msra.mxu1 %v9221_v12 }
 0x893   : > { %9671 = vmatprep.subr.bf16.mxu1 %v18039_v9 }
 0x895   : > { %15037 = vmatmul.mubr.msk.bf16.vlgmr.msra.gmra.mrb[60].mxu1 %vm9052_vm6, %v18035_v15 }
 0x896   : > { %9268 = vmatprep.mubr.bf16.mxu1 %v18993_v0  ;;  %9672 = vmatpush1.bf16.msra.mxu1 %v18037_v24 }
 0x897   : > { %9673 = vmatprep.subr.bf16.mxu1 %v18042_v17 }
 0x89a   : > { %9674 = vmatpush1.bf16.msra.mxu1 %v18040_v18 }
 0x89b   : > { %9675 = vmatprep.subr.bf16.mxu1 %v18045_v19 }
 0x89d   : > { %15038 = vmatmul.mubr.msk.bf16.gmra.mrb[64].mxu1 %vm9052_vm6, %v18036_v20 }
 0x89e   : > { %9676 = vmatpush1.bf16.msra.mxu1 %v18043_v22 }
 0x89f   : > { %9677 = vmatprep.subr.bf16.mxu1 %v18048_v26 }
 0x8a2   : > { %9678 = vmatpush1.bf16.msra.mxu1 %v18046_v40 }
 0x8a3   : > { %9679 = vmatprep.subr.bf16.mxu1 %v18051_v23 }
 0x8a6   : > { %9680 = vmatpush1.bf16.msra.mxu1 %v18049_v36 }
 0x8a7   : > { %9681 = vmatprep.subr.bf16.mxu1 %v18054_v27 }
 0x8aa   : > { %9682 = vmatpush1.bf16.msra.mxu1 %v18052_v30 }
 0x8ab   : > { %9683 = vmatprep.subr.bf16.mxu1 %v18057_v32  ;;  %v18086_v32 = vld [vmem:[#allocation14 + $0x8] ss:$12 sps:$4 sm:$0xff]  }
 0x8ae   : > { %9684 = vmatpush1.bf16.msra.mxu1 %v18055_v42 }
 0x8af   : > { %9685 = vmatprep.subr.bf16.mxu1 %v18060_v43  ;;  %v18087_v43 = vld [vmem:[#allocation14 + $0xe0] ss:$12 sps:$4 sm:$0xff]  }
 0x8b2   : > { %9686 = vmatpush1.bf16.msra.mxu1 %v18058_v44 }
 0x8b3   : > { %9687 = vmatprep.subr.bf16.mxu1 %v18063_v45 }
 0x8b6   : > { %9688 = vmatpush1.bf16.msra.mxu1 %v18061_v47 }
 0x8b7   : > { %9689 = vmatprep.subr.bf16.mxu1 %v18066_v48 }
 0x8ba   : > { %9690 = vmatpush1.bf16.msra.mxu1 %v18064_v29 }
 0x8bb   : > { %9691 = vmatprep.subr.bf16.mxu1 %v18069_v25 }
 0x8be   : > { %9692 = vmatpush1.bf16.msra.mxu1 %v18067_v39  ;;  %v18088_v39 = vld [vmem:[#allocation14 + $0x20] ss:$12 sps:$4 sm:$0xff]  }
 0x8bf   : > { %9693 = vmatprep.subr.bf16.mxu1 %v18072_v49 }
 0x8c2   : > { %9694 = vmatpush1.bf16.msra.mxu1 %v18070_v50  ;;  %v18089_v50 = vld [vmem:[#allocation14 + $0xf8] ss:$12 sps:$4 sm:$0xff]  }
 0x8c3   : > { %9695 = vmatprep.subr.bf16.mxu1 %v18075_v51 }
 0x8c6   : > { %9696 = vmatpush1.bf16.msra.mxu1 %v18073_v52 }
 0x8c7   : > { %9697 = vmatprep.subr.bf16.mxu1 %v18078_v31 }
 0x8ca   : > { %9698 = vmatpush1.bf16.msra.mxu1 %v18076_v54 }
 0x8cb   : > { %9699 = vmatprep.subr.bf16.mxu1 %v18081_v35 }
 0x8ce   : > { %9700 = vmatpush1.bf16.msra.mxu1 %v18079_v63 }
 0x8cf   : > { %9701 = vmatprep.subr.bf16.mxu1 %v18084_v3  ;;  %v18090_v3 = vld [vmem:[#allocation14 + $0x38] ss:$12 sps:$4 sm:$0xff]  }
 0x8d2   : > { %9702 = vmatpush1.bf16.msra.mxu1 %v18082_v38  ;;  %v18091_v38 = vld [vmem:[#allocation14 + $0x110] ss:$12 sps:$4 sm:$0xff]  }
 0x8d3   : > { %15516 = vmatprep.subr.bf16.mxu1 %v18085_v10  ;;  %v18092_v10 = vld [vmem:[#allocation14 + $0x50] ss:$12 sps:$4 sm:$0xff]  }
 0x968   : > { %v9260_v41 = vpop.f32.mrb[60].mxu1 }
 0x969   : > { %v9299_v33 = vadd.f32 %v9292_v4, %v9260_v41  ;;  %v9262_v34 = vpop.f32.mrb[61].mxu1  ;;  %v18096_v41 = vld [vmem:[#allocation14 + $0x80] ss:$12 sps:$4 sm:$0xff]  }
 0x96a   : > { %v9300_v37 = vadd.f32 %v9296_v28, %v9262_v34  ;;  %v9264_v56 = vpop.f32.mrb[62].mxu1  ;;  %v18098_v34 = vld [vmem:[#allocation14 + $0x98] ss:$12 sps:$4 sm:$0xff]  }
 0x96b   : > { %v9315_v57 = vmul.f32 1.442695, %v9299_v33  ;;  %v9301_v46 = vadd.f32 %v9292_v4, %v9264_v56  ;;  %v9266_v58 = vpop.f32.mrb[63].mxu1  ;;  %vm9307_vm7 = vcmp.gt.f32.partialorder %v9299_v33, 0.0  ;;  %v18100_v56 = vld [vmem:[#allocation14 + $0xb0] ss:$12 sps:$4 sm:$0xff]  }
 0x96c   : > { %v9317_v14 = vmul.f32 1.442695, %v9300_v37  ;;  %v9302_v59 = vadd.f32 %v9296_v28, %v9266_v58  ;;  %vm9308_vm10 = vcmp.gt.f32.partialorder %v9300_v37, 0.0 }
 0x96d   : > { %18330 = vpow2.f32 %v9315_v57  ;;  %v9319_v53 = vmul.f32 1.442695, %v9301_v46  ;;  %vm9309_vm8 = vcmp.gt.f32.partialorder %v9301_v46, 0.0  ;;  %v18101_v57 = vld [vmem:[%s21250_s21] sm:$0xff]  }
 0x96e   : > { %18332 = vpow2.f32 %v9317_v14  ;;  %v9321_v16 = vmul.f32 1.442695, %v9302_v59  ;;  %vm9310_vm11 = vcmp.gt.f32.partialorder %v9302_v59, 0.0  ;;  %15800 = vmatprep.mubr.msk.bf16.mxu0 %vm9814_vm1, %v18101_v57  ;;  %v18137_v57 = vld [vmem:[#allocation17 + $0x90] ss:$12 sps:$4 sm:$0xff]  }
 0x96f   : > { %18334 = vpow2.f32 %v9319_v53 }
 0x970   : > { %18336 = vpow2.f32 %v9321_v16  ;;  %v9270_v55 = vpop.f32.mrb[64].mxu1 }
 0x971   : > { %v9303_v11 = vadd.f32 %v9292_v4, %v9270_v55  ;;  %v9272_v60 = vpop.f32.mrb[65].mxu1 }
 0x972   : > { %v9304_v13 = vadd.f32 %v9296_v28, %v9272_v60  ;;  %v9274_v61 = vpop.f32.mrb[66].mxu1 }
 0x973   : > { %v9323_v62 = vmul.f32 1.442695, %v9303_v11  ;;  %v9305_v1 = vadd.f32 %v9292_v4, %v9274_v61  ;;  %v9276_v5 = vpop.f32.mrb[67].mxu1  ;;  %vm9311_vm12 = vcmp.gt.f32.partialorder %v9303_v11, 0.0  ;;  %v18094_v4 = vld [vmem:[#allocation14 + $0x68] ss:$12 sps:$4 sm:$0xff]  }
 0x974   : > { %v9325_v6 = vmul.f32 1.442695, %v9304_v13  ;;  %v9306_v7 = vadd.f32 %v9296_v28, %v9276_v5  ;;  %vm9312_vm14 = vcmp.gt.f32.partialorder %v9304_v13, 0.0  ;;  %v18095_v28 = vld [vmem:[#allocation14 + $0x140] ss:$12 sps:$4 sm:$0xff]  }
 0x975   : > { %18338 = vpow2.f32 %v9323_v62  ;;  %v9327_v8 = vmul.f32 1.442695, %v9305_v1  ;;  %vm9313_vm13 = vcmp.gt.f32.partialorder %v9305_v1, 0.0 }
 0x976   : > { %18340 = vpow2.f32 %v9325_v6  ;;  %v9329_v9 = vmul.f32 1.442695, %v9306_v7  ;;  %vm9314_vm15 = vcmp.gt.f32.partialorder %v9306_v7, 0.0 }
 0x977   : > { %v18331_v12 = vpop.eup %18330  ;;  %18342 = vpow2.f32 %v9327_v8 }
 0x978   : > { %v18333_v15 = vpop.eup %18332  ;;  %v15039_v24 = vadd.f32 -1.0, %v18331_v12  ;;  %18344 = vpow2.f32 %v9329_v9  ;;  %v18115_v9 = vld [vmem:[#allocation17 + $0x4] ss:$12 sps:$4 sm:$0xff]   ;;  %v18102_v12 = vld [vmem:[%s21250_s21 + $0x8] sm:$0xff]  }
 0x979   : > { %v18335_v17 = vpop.eup %18334  ;;  %v15040_v18 = vadd.f32 -1.0, %v18333_v15  ;;  %v18103_v15 = vld [vmem:[%s21250_s21 + $0x10] sm:$0xff]  }
 0x97a   : > { %v18337_v19 = vpop.eup %18336  ;;  %v15041_v20 = vadd.f32 -1.0, %v18335_v17  ;;  %v9339_v26 = vsel %vm9307_vm7, %v9299_v33, %v15039_v24  ;;  %v18097_v33 = vld [vmem:[#allocation14 + $0x158] ss:$12 sps:$4 sm:$0xff]  }
 0x97b   : > { %v15042_v22 = vadd.f32 -1.0, %v18337_v19  ;;  %v9340_v36 = vsel %vm9308_vm10, %v9300_v37, %v15040_v18  ;;  %v18099_v37 = vld [vmem:[#allocation14 + $0x170] ss:$12 sps:$4 sm:$0xff]   ;;  %v18109_v17 = vld [vmem:[%s21250_s21 + $0x30] sm:$0xff]   ;;  %v18104_v19 = vld [vmem:[%s21250_s21 + $0x18] sm:$0x1f]  }
 0x97c   : > { %v9341_v40 = vsel %vm9309_vm8, %v9301_v46, %v15041_v20  ;;  %v18105_v46 = vld [vmem:[%s21250_s21 + $0x20] sm:$0xff]   ;;  %v18106_v24 = vld [vmem:[%s21250_s21 + $0x28] sm:$0xff]  }
 0x97d   : > { %v9347_v23 = vpack.c.bf16 %v9341_v40, %v9339_v26  ;;  %v9342_v27 = vsel %vm9310_vm11, %v9302_v59, %v15042_v22  ;;  %v18113_v18 = vld [vmem:[#allocation17] ss:$12 sps:$4 sm:$0xff]   ;;  %v18111_v22 = vld [vmem:[%s21250_s21 + $0x38] sm:$0x1f]  }
 0x97e   : > { %v9348_v30 = vpack.c.bf16 %v9342_v27, %v9340_v36  ;;  %v18107_v20 = vld [vmem:[%s21250_s21 + $0x40] sm:$0xff]  }
 0x97f   : > { %v18339_v42 = vpop.eup %18338 }
 0x980   : > { %v18341_v44 = vpop.eup %18340  ;;  %v15043_v45 = vadd.f32 -1.0, %v18339_v42  ;;  %9703 = vmatprep.mubr.bf16.mxu1 %v9348_v30 }
 0x981   : > { %v18343_v47 = vpop.eup %18342  ;;  %v15044_v48 = vadd.f32 -1.0, %v18341_v44  ;;  %9704 = vmatmul.mubr.bf16.vlgmr.msra.gmra.mrb[68].mxu1 %v9347_v23 }
 0x982   : > { %v18345_v29 = vpop.eup %18344  ;;  %v15045_v25 = vadd.f32 -1.0, %v18343_v47  ;;  %15517 = vmatpush3.bf16.msra.mxu1 %v18086_v32  ;;  %v9343_v51 = vsel %vm9311_vm12, %v9303_v11, %v15043_v45  ;;  %v9828_v11 = vsel %vm9827_vm2, 4294967295, %v18994_v2  ;;  %vm10551_vm12 = vcmask 465920  }
 0x983   : > { %v15046_v49 = vadd.f32 -1.0, %v18345_v29  ;;  %15518 = vmatprep.subr.bf16.mxu1 %v18087_v43  ;;  %v9344_v31 = vsel %vm9312_vm14, %v9304_v13, %v15044_v48  ;;  %v9829_v62 = vsel %vm9059_vm4, %v9828_v11, 0 }
 0x984   : > { %v9345_v52 = vsel %vm9313_vm13, %v9305_v1, %v15045_v25  ;;  %vm10576_vm13 = vcmask 1044480  }
 0x985   : > { %v9346_v54 = vsel %vm9314_vm15, %v9306_v7, %v15046_v49  ;;  %v9349_v35 = vpack.c.bf16 %v9345_v52, %v9343_v51  ;;  %v18108_v49 = vld [vmem:[%s21250_s21 + $0x48] sm:$0xff]   ;;  %v18112_v51 = vld [vmem:[%s21250_s21 + $0x58] sm:$0x1f]  }
 0x986   : > { %15519 = vmatpush3.bf16.msra.mxu1 %v18088_v39  ;;  %v9350_v63 = vpack.c.bf16 %v9346_v54, %v9344_v31  ;;  %v18116_v39 = vld [vmem:[#allocation17 + $0x8] ss:$12 sps:$4 sm:$0xff]   ;;  %v18117_v52 = vld [vmem:[#allocation17 + $0x18] ss:$12 sps:$4 sm:$0xff]   ;;  %v18120_v54 = vld [vmem:[#allocation17 + $0x20] ss:$12 sps:$4 sm:$0xff]  }
 0x987   : > { %15520 = vmatprep.subr.bf16.mxu1 %v18089_v50  ;;  %v18110_v50 = vld [vmem:[%s21250_s21 + $0x50] sm:$0xff]  }
 0x988   : > { %9713 = vmatprep.mubr.bf16.mxu1 %v9350_v63  ;;  %v18119_v31 = vld [vmem:[#allocation17 + $0x1c] ss:$12 sps:$4 sm:$0xff]  }
 0x989   : > { %9714 = vmatmul.mubr.bf16.gmra.mrb[72].mxu1 %v9349_v35 }
 0x98a   : > { %15521 = vmatpush3.bf16.msra.mxu1 %v18090_v3  ;;  %9756 = vmatprep.mubr.bf16.mxu1 %v9348_v30  ;;  %v18124_v3 = vld [vmem:[#allocation17 + $0x38] ss:$12 sps:$4 sm:$0xff]  }
 0x98b   : > { %15522 = vmatprep.subr.bf16.mxu1 %v18091_v38  ;;  %v18127_v38 = vld [vmem:[#allocation17 + $0x4c] ss:$12 sps:$4 sm:$0xff]  }
 0x98e   : > { %15523 = vmatpush3.bf16.msra.mxu1 %v18092_v10  ;;  %v18125_v10 = vld [vmem:[#allocation17 + $0x48] ss:$12 sps:$4 sm:$0xff]  }
 0x98f   : > { %15524 = vmatprep.subr.bf16.mxu1 %v18093_v21  ;;  %v18128_v21 = vld [vmem:[#allocation17 + $0x50] ss:$12 sps:$4 sm:$0xff]  }
 0x992   : > { %15525 = vmatpush3.bf16.msra.mxu1 %v18094_v4  ;;  %v18131_v4 = vld [vmem:[#allocation17 + $0x64] ss:$12 sps:$4 sm:$0xff]  }
 0x993   : > { %15526 = vmatprep.subr.bf16.mxu1 %v18095_v28  ;;  %v18129_v28 = vld [vmem:[#allocation17 + $0x60] ss:$12 sps:$4 sm:$0xff]  }
 0x996   : > { %15527 = vmatpush3.bf16.msra.mxu1 %v18096_v41  ;;  %v18132_v41 = vld [vmem:[#allocation17 + $0x68] ss:$12 sps:$4 sm:$0xff]  }
 0x997   : > { %15528 = vmatprep.subr.bf16.mxu1 %v18097_v33  ;;  %v18135_v33 = vld [vmem:[#allocation17 + $0x7c] ss:$12 sps:$4 sm:$0xff]  }
 0x99a   : > { %15529 = vmatpush3.bf16.msra.mxu1 %v18098_v34  ;;  %v18133_v34 = vld [vmem:[#allocation17 + $0x78] ss:$12 sps:$4 sm:$0xff]  }
 0x99b   : > { %15530 = vmatprep.subr.bf16.mxu1 %v18099_v37  ;;  %v18136_v37 = vld [vmem:[#allocation17 + $0x80] ss:$12 sps:$4 sm:$0xff]  }
 0x99e   : > { %15531 = vmatpush3.bf16.msra.mxu1 %v18100_v56  ;;  %v18139_v56 = vld [vmem:[#allocation17 + $0x94] ss:$12 sps:$4 sm:$0xff]  }
 0x9a1   : > { %9757 = vmatmul.mubr.bf16.vlgmr.msra.gmra.mrb[76].mxu1 %v9347_v23 }
 0x9a2   : > { %9764 = vmatprep.mubr.bf16.mxu1 %v9350_v63  ;;  %v18121_v63 = vld [vmem:[#allocation17 + $0x30] ss:$12 sps:$4 sm:$0xff]  }
 0x9a9   : > { %9765 = vmatmul.mubr.bf16.gmra.mrb[80].mxu1 %v9349_v35  ;;  %v18123_v35 = vld [vmem:[#allocation17 + $0x34] ss:$12 sps:$4 sm:$0xff]  }
 0x9aa   : > { %15788 = vmatprep.mubr.msk.bf16.mxu1 %vm9814_vm1, %v18105_v46  ;;  %v18140_v46 = vld [vmem:[#allocation17 + $0x98] ss:$12 sps:$4 sm:$0xff]  }
 0xa54   : > { %v9705_v58 = vpop.f32.mrb[68].mxu1 }
 0xa55   : > { %v9707_v14 = vpop.f32.mrb[69].mxu1 }
 0xa56   : > { %v9709_v59 = vpop.f32.mrb[70].mxu1 }
 0xa57   : > { %v9773_v53 = vpack.c.bf16 %v9709_v59, %v9705_v58  ;;  %v9711_v16 = vpop.f32.mrb[71].mxu1  ;;  %v18143_v58 = vld [vmem:[#allocation17 + $0xac] ss:$12 sps:$4 sm:$0xff]   ;;  %v18144_v59 = vld [vmem:[#allocation17 + $0xb0] ss:$12 sps:$4 sm:$0xff]  }
 0xa58   : > { %v9783_v55 = vpack.c.bf16 %v9711_v16, %v9707_v14  ;;  %v18141_v14 = vld [vmem:[#allocation17 + $0xa8] ss:$12 sps:$4 sm:$0xff]  }
 0xa59   : > { %15796 = vmatprep.subr.bf16.mxu0 %v9773_v53 }
 0xa5a   : > { %15784 = vmatprep.subr.bf16.mxu1 %v9783_v55  ;;  %15797 = vmatpush3.bf16.msra.mxu0 %v9773_v53 }
 0xa5b   : > { %15785 = vmatpush3.bf16.msra.mxu1 %v9783_v55 }
 0xa5c   : > { %v9715_v60 = vpop.f32.mrb[72].mxu1 }
 0xa5d   : > { %v9717_v13 = vpop.f32.mrb[73].mxu1 }
 0xa5e   : > { %v9719_v61 = vpop.f32.mrb[74].mxu1 }
 0xa5f   : > { %v9774_v1 = vpack.c.bf16 %v9719_v61, %v9715_v60  ;;  %v9721_v5 = vpop.f32.mrb[75].mxu1 }
 0xa60   : > { %v9784_v6 = vpack.c.bf16 %v9721_v5, %v9717_v13  ;;  %v15135_v5 = vld [vmem:[#allocation16] ss:$0 sm:$0xff] }
 0xa61   : > { %v9931_v7 = vand.u32 %v9829_v62, %v9774_v1 }
 0xa62   : > { %v9831_v8 = vand.u32 %v9829_v62, %v9784_v6 }
 0xa63   : > { %15798 = vmatprep.subr.bf16.mxu0 %v9931_v7 }
 0xa64   : > { %15786 = vmatprep.subr.bf16.mxu1 %v9831_v8  ;;  %15799 = vmatpush3.bf16.msra.mxu0 %v9931_v7 }
 0xa65   : > { %15787 = vmatpush3.bf16.msra.mxu1 %v9831_v8 }
 0xa66   : > { %10336 = vmatprep.subr.bf16.mxu1 %v18115_v9 }
 0xa67   : > { %15801 = vmatmul.mubr.msk.bf16.vlgmr.msra.gmra.mrb[64].mxu0 %vm9814_vm1, %v18102_v12 }
 0xa68   : > { %15804 = vmatprep.mubr.msk.bf16.mxu0 %vm9814_vm1, %v18103_v15  ;;  %15789 = vmatmul.mubr.msk.bf16.vlgmr.msra.gmra.mrb[84].mxu1 %vm9814_vm1, %v18106_v24 }
 0xa69   : > { %15792 = vmatprep.mubr.msk.bf16.mxu1 %vm9814_vm1, %v18109_v17  ;;  %10337 = vmatpush1.bf16.msra.mxu1 %v18113_v18 }
 0xa6a   : > { %10338 = vmatprep.subr.bf16.mxu1 %v18119_v31 }
 0xa6d   : > { %10339 = vmatpush1.bf16.msra.mxu1 %v18117_v52 }
 0xa6e   : > { %10340 = vmatprep.subr.bf16.mxu1 %v18123_v35 }
 0xa6f   : > { %15805 = vmatmul.mubr.msk.bf16.gmra.mrb[68].mxu0 %vm9814_vm1, %v18104_v19 }
 0xa70   : > { %15812 = vmatprep.mubr.msk.bf16.mxu0 %vm9814_vm1, %v18107_v20  ;;  %15793 = vmatmul.mubr.msk.bf16.gmra.mrb[88].mxu1 %vm9814_vm1, %v18111_v22 }
 0xa71   : > { %10368 = vmatprep.mubr.bf16.mxu1 %v18993_v0  ;;  %10341 = vmatpush1.bf16.msra.mxu1 %v18121_v63 }
 0xa72   : > { %10342 = vmatprep.subr.bf16.mxu1 %v18127_v38 }
 0xa74   : > { %v15532_v26 = vpop.f32.mrb[76].mxu1 }
 0xa75   : > { %v15533_v40 = vpop.f32.mrb[77].mxu1  ;;  %10343 = vmatpush1.bf16.msra.mxu1 %v18125_v10 }
 0xa76   : > { %v15534_v23 = vadd.f32 %v15533_v40, %v15532_v26  ;;  %v15535_v36 = vpop.f32.mrb[78].mxu1  ;;  %10344 = vmatprep.subr.bf16.mxu1 %v18131_v4 }
 0xa77   : > { %v15536_v27 = vpop.f32.mrb[79].mxu1 }
 0xa78   : > { %v15537_v30 = vadd.f32 %v15536_v27, %v15535_v36 }
 0xa79   : > { %10345 = vmatpush1.bf16.msra.mxu1 %v18129_v28 }
 0xa7a   : > { %v9998_v32 = vpack.c.bf16 %v15537_v30, %v15534_v23  ;;  %10346 = vmatprep.subr.bf16.mxu1 %v18135_v33 }
 0xa7c   : > { %v15538_v42 = vpop.f32.mrb[80].mxu1  ;;  %15808 = vmatprep.subr.bf16.mxu0 %v9998_v32 }
 0xa7d   : > { %v15539_v43 = vpop.f32.mrb[81].mxu1  ;;  %15809 = vmatpush3.bf16.msra.mxu0 %v9998_v32  ;;  %10347 = vmatpush1.bf16.msra.mxu1 %v18133_v34 }
 0xa7e   : > { %v15540_v44 = vadd.f32 %v15539_v43, %v15538_v42  ;;  %v15541_v45 = vpop.f32.mrb[82].mxu1  ;;  %10348 = vmatprep.subr.bf16.mxu1 %v18139_v56 }
 0xa7f   : > { %v15542_v47 = vpop.f32.mrb[83].mxu1 }
 0xa80   : > { %v15543_v48 = vadd.f32 %v15542_v47, %v15541_v45 }
 0xa81   : > { %10349 = vmatpush1.bf16.msra.mxu1 %v18137_v57 }
 0xa82   : > { %v9999_v29 = vpack.c.bf16 %v15543_v48, %v15540_v44  ;;  %10350 = vmatprep.subr.bf16.mxu1 %v18143_v58 }
 0xa84   : > { %v10042_v25 = vand.u32 %v9999_v29, %v9829_v62 }
 0xa85   : > { %10351 = vmatpush1.bf16.msra.mxu1 %v18141_v14 }
 0xa86   : > { %15810 = vmatprep.subr.bf16.mxu0 %v10042_v25 }
 0xa87   : > { %15811 = vmatpush3.bf16.msra.mxu0 %v10042_v25 }
 0xa88   : > { %15820 = vmatprep.subr.bf16.mxu0 %v18116_v39 }
 0xa8a   : > { %15813 = vmatmul.mubr.msk.bf16.vlgmr.msra.gmra.mrb[64].mxu0 %vm9814_vm1, %v18108_v49 }
 0xa8b   : > { %15816 = vmatprep.mubr.msk.bf16.mxu0 %vm9814_vm1, %v18110_v50  ;;  %15821 = vmatpush3.bf16.msra.mxu0 %v18116_v39 }
 0xa8c   : > { %15822 = vmatprep.subr.bf16.mxu0 %v18120_v54 }
 0xa8f   : > { %15823 = vmatpush3.bf16.msra.mxu0 %v18120_v54 }
 0xa90   : > { %15824 = vmatprep.subr.bf16.mxu0 %v18124_v3 }
 0xa92   : > { %15817 = vmatmul.mubr.msk.bf16.gmra.mrb[68].mxu0 %vm9814_vm1, %v18112_v51 }
 0xa93   : > { %15825 = vmatpush3.bf16.msra.mxu0 %v18124_v3 }
 0xa94   : > { %15826 = vmatprep.subr.bf16.mxu0 %v18128_v21 }
 0xa97   : > { %15827 = vmatpush3.bf16.msra.mxu0 %v18128_v21 }
 0xa98   : > { %15828 = vmatprep.subr.bf16.mxu0 %v18132_v41 }
 0xa9b   : > { %15829 = vmatpush3.bf16.msra.mxu0 %v18132_v41 }
 0xa9c   : > { %15830 = vmatprep.subr.bf16.mxu0 %v18136_v37 }
 0xa9f   : > { %15831 = vmatpush3.bf16.msra.mxu0 %v18136_v37 }
 0xaa0   : > { %15832 = vmatprep.subr.bf16.mxu0 %v18140_v46 }
 0xaa3   : > { %15833 = vmatpush3.bf16.msra.mxu0 %v18140_v46 }
 0xaa4   : > { %15834 = vmatprep.subr.bf16.mxu0 %v18144_v59 }
 0xaa7   : > { %15835 = vmatpush3.bf16.msra.mxu0 %v18144_v59 }
 0xb3b   : > { %v15790_v53 = vpop.f32.mrb[84].mxu1 }
 0xb3c   : > { %v9867_v16 = vpop.f32.mrb[85].mxu1 }
 0xb3d   : > { %v15791_v55 = vpop.f32.mrb[86].mxu1 }
 0xb3e   : > { %v9870_v11 = vpop.f32.mrb[87].mxu1 }
 0xb43   : > { %v15794_v60 = vpop.f32.mrb[88].mxu1 }
 0xb44   : > { %v9883_v13 = vpop.f32.mrb[89].mxu1 }
 0xb45   : > { %v15795_v61 = vpop.f32.mrb[90].mxu1 }
 0xb46   : > { %v9886_v62 = vpop.f32.mrb[91].mxu1 }
 0xb5d   : > { %v15814_v1 = vpop.f32.mrb[64].mxu0 }
 0xb5e   : > { %v16444_v6 = vadd.f32 %v15814_v1, %v15790_v53  ;;  %v10078_v7 = vpop.f32.mrb[65].mxu0 }
 0xb5f   : > { %v16445_v8 = vadd.f32 %v10078_v7, %v9867_v16  ;;  %v15815_v9 = vpop.f32.mrb[66].mxu0 }
 0xb60   : > { %v10126_v12 = vadd.f32 %v16444_v6, %v15135_v5  ;;  %v16446_v15 = vadd.f32 %v15815_v9, %v15791_v55  ;;  %v10081_v24 = vpop.f32.mrb[67].mxu0 }
 0xb61   : > { %v10124_v17 = vadd.f32 %v16445_v8, %v15135_v5  ;;  %v16447_v18 = vadd.f32 %v10081_v24, %v9870_v11 }
 0xb62   : > { %v10144_v19 = vmul.f32 1.442695, %v10126_v12  ;;  %v10127_v20 = vadd.f32 %v16446_v15, %v15135_v5  ;;  %vm10134_vm3 = vcmp.gt.f32.partialorder %v10126_v12, 0.0 }
 0xb63   : > { %v10140_v22 = vmul.f32 1.442695, %v10124_v17  ;;  %v10125_v26 = vadd.f32 %v16447_v18, %v15135_v5  ;;  %vm10132_vm5 = vcmp.gt.f32.partialorder %v10124_v17, 0.0 }
 0xb64   : > { %18346 = vpow2.f32 %v10144_v19  ;;  %v10146_v40 = vmul.f32 1.442695, %v10127_v20  ;;  %vm10135_vm4 = vcmp.gt.f32.partialorder %v10127_v20, 0.0 }
 0xb65   : > { %18348 = vpow2.f32 %v10140_v22  ;;  %v10142_v23 = vmul.f32 1.442695, %v10125_v26  ;;  %v15818_v36 = vpop.f32.mrb[68].mxu0  ;;  %vm10133_vm6 = vcmp.gt.f32.partialorder %v10125_v26, 0.0 }
 0xb66   : > { %18350 = vpow2.f32 %v10146_v40  ;;  %v16448_v27 = vadd.f32 %v15818_v36, %v15794_v60  ;;  %v10094_v30 = vpop.f32.mrb[69].mxu0 }
 0xb67   : > { %18352 = vpow2.f32 %v10142_v23  ;;  %v16449_v32 = vadd.f32 %v10094_v30, %v9883_v13  ;;  %v15819_v42 = vpop.f32.mrb[70].mxu0 }
 0xb68   : > { %v10130_v43 = vadd.f32 %v16448_v27, %v15135_v5  ;;  %v16450_v44 = vadd.f32 %v15819_v42, %v15795_v61  ;;  %v10097_v45 = vpop.f32.mrb[71].mxu0 }
 0xb69   : > { %v10128_v47 = vadd.f32 %v16449_v32, %v15135_v5  ;;  %v16451_v48 = vadd.f32 %v10097_v45, %v9886_v62  ;;  %v18145_v62 = vld [vmem:[%s21251_s3 + $0x3c] sm:$0xff]  }
 0xb6a   : > { %v10152_v29 = vmul.f32 1.442695, %v10130_v43  ;;  %v10131_v25 = vadd.f32 %v16450_v44, %v15135_v5  ;;  %vm10138_vm7 = vcmp.gt.f32.partialorder %v10130_v43, 0.0 }
 0xb6b   : > { %v10148_v39 = vmul.f32 1.442695, %v10128_v47  ;;  %v10129_v49 = vadd.f32 %v16451_v48, %v15135_v5  ;;  %vm10136_vm10 = vcmp.gt.f32.partialorder %v10128_v47, 0.0 }
 0xb6c   : > { %18354 = vpow2.f32 %v10152_v29  ;;  %v10154_v50 = vmul.f32 1.442695, %v10131_v25  ;;  %vm10139_vm8 = vcmp.gt.f32.partialorder %v10131_v25, 0.0 }
 0xb6d   : > { %18356 = vpow2.f32 %v10148_v39  ;;  %v10150_v51 = vmul.f32 1.442695, %v10129_v49  ;;  %vm10137_vm11 = vcmp.gt.f32.partialorder %v10129_v49, 0.0 }
 0xb6e   : > { %v18347_v52 = vpop.eup %18346  ;;  %18358 = vpow2.f32 %v10154_v50 }
 0xb6f   : > { %v18349_v31 = vpop.eup %18348  ;;  %v15138_v54 = vadd.f32 -1.0, %v18347_v52  ;;  %18360 = vpow2.f32 %v10150_v51  ;;  %v10577_v51 = vsel %vm6977_vm9, 4294967295, %v18994_v2  ;;  %v18148_v2 = vld [vmem:[%s21251_s3 + $0x54] sm:$0xff]  }
 0xb70   : > { %v18351_v35 = vpop.eup %18350  ;;  %v15136_v63 = vadd.f32 -1.0, %v18349_v31 }
 0xb71   : > { %v18353_v3 = vpop.eup %18352  ;;  %v15139_v38 = vadd.f32 -1.0, %v18351_v35  ;;  %v10166_v21 = vsel %vm10134_vm3, %v10126_v12, %v15138_v54 }
 0xb72   : > { %v15137_v10 = vadd.f32 -1.0, %v18353_v3  ;;  %v10164_v28 = vsel %vm10132_vm5, %v10124_v17, %v15136_v63  ;;  %v10578_v63 = vsel %vm10576_vm13, %v10577_v51, 0 }
 0xb73   : > { %v10167_v4 = vsel %vm10135_vm4, %v10127_v20, %v15139_v38  ;;  %v18146_v38 = vld [vmem:[%s21251_s3 + $0x44] sm:$0xff]  }
 0xb74   : > { %v10173_v41 = vpack.c.bf16 %v10167_v4, %v10166_v21  ;;  %v10165_v33 = vsel %vm10133_vm6, %v10125_v26, %v15137_v10  ;;  %v18147_v10 = vld [vmem:[%s21251_s3 + $0x4c] sm:$0xff]   ;;  %v18149_v21 = vld [vmem:[%s21251_s3 + $0x5c] sm:$0xff]  }
 0xb75   : > { %v10172_v34 = vpack.c.bf16 %v10165_v33, %v10164_v28  ;;  %v18150_v28 = vld [vmem:[%s21251_s3 + $0x64] sm:$0xff]   ;;  %v18152_v33 = vld [vmem:[%s21251_s3 + $0x74] ss:$0 sps:$4 sm:$0x11]  }
 0xb76   : > { %v18355_v37 = vpop.eup %18354 }
 0xb77   : > { %v18357_v56 = vpop.eup %18356  ;;  %10369 = vmatmul.mubr.bf16.vlgmr.msra.gmra.mrb[92].mxu1 %v10172_v34  ;;  %15836 = vmatprep.mubr.bf16.mxu0 %v10172_v34  ;;  %v15142_v57 = vadd.f32 -1.0, %v18355_v37  ;;  %v18153_v34 = vld [vmem:[%s21251_s3] sm:$0xff]   ;;  %v18154_v37 = vld [vmem:[%s21251_s3 + $0x8] sm:$0xff]  }
 0xb78   : > { %v18359_v46 = vpop.eup %18358  ;;  %15837 = vmatmul.mubr.bf16.vlgmr.msra.gmra.mrb[72].mxu0 %v10173_v41  ;;  %10378 = vmatprep.mubr.bf16.mxu1 %v18993_v0  ;;  %v15140_v58 = vadd.f32 -1.0, %v18357_v56  ;;  %v18155_v56 = vld [vmem:[%s21251_s3 + $0x10] sm:$0xff]  }
 0xb79   : > { %v18361_v14 = vpop.eup %18360  ;;  %v15143_v59 = vadd.f32 -1.0, %v18359_v46  ;;  %v10170_v16 = vsel %vm10138_vm7, %v10130_v43, %v15142_v57  ;;  %v18156_v57 = vld [vmem:[%s21251_s3 + $0x18] sm:$0xff]   ;;  %v18157_v46 = vld [vmem:[%s21251_s3 + $0x20] sm:$0xff]  }
 0xb7a   : > { %v15141_v53 = vadd.f32 -1.0, %v18361_v14  ;;  %v10168_v11 = vsel %vm10136_vm10, %v10128_v47, %v15140_v58  ;;  %v18158_v14 = vld [vmem:[%s21251_s3 + $0x28] sm:$0xff]  }
 0xb7b   : > { %v10171_v55 = vsel %vm10139_vm8, %v10131_v25, %v15143_v59  ;;  %v18159_v59 = vld [vmem:[%s21251_s3 + $0x30] sm:$0xff]  }
 0xb7c   : > { %v10169_v60 = vsel %vm10137_vm11, %v10129_v49, %v15141_v53  ;;  %v10175_v13 = vpack.c.bf16 %v10171_v55, %v10170_v16  ;;  %v18160_v53 = vld [vmem:[%s21251_s3 + $0x38] ss:$0 sps:$4 sm:$0x11]   ;;  %v18162_v55 = vld [vmem:[%s21251_s3 + $0x80] sm:$0xff]  }
 0xb7d   : > { %v10174_v61 = vpack.c.bf16 %v10169_v60, %v10168_v11  ;;  %v18161_v16 = vld [vmem:[%s21251_s3 + $0x78] sm:$0xff]   ;;  %v18163_v11 = vld [vmem:[%s21251_s3 + $0x88] sm:$0xff]   ;;  %v18164_v60 = vld [vmem:[%s21251_s3 + $0x90] sm:$0xff]  }
 0xb7f   : > { %10379 = vmatmul.mubr.bf16.gmra.mrb[96].mxu1 %v10173_v41  ;;  %15840 = vmatprep.mubr.bf16.mxu0 %v10174_v61  ;;  %v18151_v41 = vld [vmem:[%s21251_s3 + $0x6c] sm:$0xff]  }
 0xb80   : > { %15841 = vmatmul.mubr.bf16.gmra.mrb[76].mxu0 %v10175_v13  ;;  %10388 = vmatprep.mubr.bf16.mxu1 %v18993_v0 }
 0xb87   : > { %10389 = vmatmul.mubr.bf16.gmra.mrb[100].mxu1 %v10174_v61  ;;  %v18166_v61 = vld [vmem:[%s21251_s3 + $0xa0] sm:$0xff]  }
 0xb88   : > { %10398 = vmatprep.mubr.bf16.mxu1 %v18993_v0 }
 0xb8f   : > { %10399 = vmatmul.mubr.bf16.gmra.mrb[104].mxu1 %v10175_v13  ;;  %v18165_v13 = vld [vmem:[%s21251_s3 + $0x98] sm:$0xff]  }
 0xb90   : > { %15852 = vmatprep.mubr.msk.bf16.mxu1 %vm10551_vm12, %v18145_v62  ;;  %v18167_v62 = vld [vmem:[%s21251_s3 + $0xa8] sm:$0xff]  }
 0xc4a   : > { %v10370_v1 = vpop.f32.mrb[92].mxu1 }
 0xc4b   : > { %v10372_v5 = vpop.f32.mrb[93].mxu1  ;;  %v15838_v6 = vpop.f32.mrb[72].mxu0 }
 0xc4c   : > { %v10374_v7 = vpop.f32.mrb[94].mxu1  ;;  %v10443_v8 = vpop.f32.mrb[73].mxu0 }
 0xc4d   : > { %v10474_v9 = vpack.c.bf16 %v10374_v7, %v10370_v1  ;;  %v10376_v12 = vpop.f32.mrb[95].mxu1  ;;  %v15839_v15 = vpop.f32.mrb[74].mxu0  ;;  %v18168_v1 = vld [vmem:[%s21251_s3 + $0xb0] ss:$0 sps:$4 sm:$0x11]  }
 0xc4e   : > { %v10493_v24 = vpack.c.bf16 %v10376_v12, %v10372_v5  ;;  %v20062_v17 = vpack.c.bf16 %v15839_v15, %v15838_v6  ;;  %v10446_v18 = vpop.f32.mrb[75].mxu0  ;;  %v18169_v5 = vld [vmem:[%s21252_s14] sm:$0xff]   ;;  %v18170_v6 = vld [vmem:[%s21252_s14 + $0x8] sm:$0xff]   ;;  %v18171_v7 = vld [vmem:[%s21252_s14 + $0x10] sm:$0xff]  }
 0xc4f   : > { %v20064_v19 = vpack.c.bf16 %v10446_v18, %v10443_v8  ;;  %15916 = vmatprep.subr.bf16.mxu0 %v18169_v5  ;;  %v18172_v8 = vld [vmem:[%s21252_s14 + $0x18] sm:$0xff]   ;;  %v18174_v12 = vld [vmem:[%s21252_s14 + $0x28] sm:$0xff]   ;;  %v18175_v15 = vld [vmem:[%s21252_s14 + $0x30] sm:$0xff]  }
 0xc50   : > { %15844 = vmatprep.subr.bf16.mxu1 %v10493_v24  ;;  %15917 = vmatpush3.bf16.msra.mxu0 %v18169_v5 }
 0xc51   : > { %15845 = vmatpush3.bf16.msra.mxu1 %v10493_v24  ;;  %15918 = vmatprep.subr.bf16.mxu0 %v18170_v6  ;;  %v18176_v24 = vld [vmem:[%s21252_s14 + $0x38] sm:$0xff]  }
 0xc52   : > { %v10380_v20 = vpop.f32.mrb[96].mxu1 }
 0xc53   : > { %v10382_v22 = vpop.f32.mrb[97].mxu1  ;;  %v20066_v26 = vpop.f32.mrb[76].mxu0 }
 0xc54   : > { %v10384_v40 = vpop.f32.mrb[98].mxu1  ;;  %v10459_v23 = vpop.f32.mrb[77].mxu0  ;;  %15919 = vmatpush3.bf16.msra.mxu0 %v18170_v6 }
 0xc55   : > { %v10475_v36 = vpack.c.bf16 %v10384_v40, %v10380_v20  ;;  %v10386_v27 = vpop.f32.mrb[99].mxu1  ;;  %v20068_v30 = vpop.f32.mrb[78].mxu0  ;;  %15920 = vmatprep.subr.bf16.mxu0 %v18171_v7 }
 0xc56   : > { %v10494_v32 = vpack.c.bf16 %v10386_v27, %v10382_v22  ;;  %v10842_v42 = vpack.c.bf16 %v20068_v30, %v20066_v26  ;;  %v10462_v43 = vpop.f32.mrb[79].mxu0 }
 0xc57   : > { %v10841_v44 = vpack.c.bf16 %v10462_v43, %v10459_v23 }
 0xc58   : > { %15846 = vmatprep.subr.bf16.mxu1 %v10494_v32  ;;  %v10922_v58 = vand.u32 %v10842_v42, %v10578_v63  ;;  %15921 = vmatpush3.bf16.msra.mxu0 %v18171_v7  ;;  %v20206_v42 = vld [vmem:[#allocation19] ss:$0 sm:$0xff] }
 0xc59   : > { %15847 = vmatpush3.bf16.msra.mxu1 %v10494_v32  ;;  %15922 = vmatprep.subr.bf16.mxu0 %v18172_v8 }
 0xc5a   : > { %v10390_v45 = vpop.f32.mrb[100].mxu1 }
 0xc5b   : > { %v10392_v47 = vpop.f32.mrb[101].mxu1 }
 0xc5c   : > { %v10394_v48 = vpop.f32.mrb[102].mxu1  ;;  %15923 = vmatpush3.bf16.msra.mxu0 %v18172_v8 }
 0xc5d   : > { %v10476_v29 = vpack.c.bf16 %v10394_v48, %v10390_v45  ;;  %v10396_v25 = vpop.f32.mrb[103].mxu1 }
 0xc5e   : > { %v10495_v39 = vpack.c.bf16 %v10396_v25, %v10392_v47 }
 0xc60   : > { %15848 = vmatprep.subr.bf16.mxu1 %v10495_v39 }
 0xc61   : > { %15849 = vmatpush3.bf16.msra.mxu1 %v10495_v39 }
 0xc62   : > { %v10400_v49 = vpop.f32.mrb[104].mxu1 }
 0xc63   : > { %v10402_v50 = vpop.f32.mrb[105].mxu1 }
 0xc64   : > { %v10404_v52 = vpop.f32.mrb[106].mxu1 }
 0xc65   : > { %v10477_v31 = vpack.c.bf16 %v10404_v52, %v10400_v49  ;;  %v10406_v54 = vpop.f32.mrb[107].mxu1 }
 0xc66   : > { %v10496_v35 = vpack.c.bf16 %v10406_v54, %v10402_v50 }
 0xc67   : > { %v10741_v4 = vand.u32 %v10578_v63, %v10477_v31 }
 0xc68   : > { %v10580_v3 = vand.u32 %v10578_v63, %v10496_v35 }
 0xc6a   : > { %15850 = vmatprep.subr.bf16.mxu1 %v10580_v3 }
 0xc6b   : > { %15851 = vmatpush3.bf16.msra.mxu1 %v10580_v3 }
 0xc6c   : > { %15868 = vmatprep.subr.bf16.mxu1 %v10474_v9 }
 0xc6e   : > { %15853 = vmatmul.mubr.msk.bf16.vlgmr.msra.gmra.mrb[108].mxu1 %vm10551_vm12, %v18146_v38 }
 0xc6f   : > { %15869 = vmatpush3.bf16.msra.mxu1 %v10474_v9  ;;  %15856 = vmatprep.mubr.msk.bf16.mxu1 %vm10551_vm12, %v18147_v10  ;;  %v18173_v9 = vld [vmem:[%s21252_s14 + $0x20] sm:$0xff]  }
 0xc70   : > { %15870 = vmatprep.subr.bf16.mxu1 %v10475_v36  ;;  %15924 = vmatprep.subr.bf16.mxu0 %v18173_v9 }
 0xc71   : > { %15925 = vmatpush3.bf16.msra.mxu0 %v18173_v9 }
 0xc72   : > { %15926 = vmatprep.subr.bf16.mxu0 %v18174_v12 }
 0xc73   : > { %15871 = vmatpush3.bf16.msra.mxu1 %v10475_v36 }
 0xc74   : > { %15872 = vmatprep.subr.bf16.mxu1 %v10476_v29 }
 0xc75   : > { %15927 = vmatpush3.bf16.msra.mxu0 %v18174_v12 }
 0xc76   : > { %15857 = vmatmul.mubr.msk.bf16.gmra.mrb[112].mxu1 %vm10551_vm12, %v18148_v2  ;;  %15928 = vmatprep.subr.bf16.mxu0 %v18175_v15 }
 0xc77   : > { %15873 = vmatpush3.bf16.msra.mxu1 %v10476_v29  ;;  %15860 = vmatprep.mubr.msk.bf16.mxu1 %vm10551_vm12, %v18149_v21 }
 0xc78   : > { %15874 = vmatprep.subr.bf16.mxu1 %v10741_v4 }
 0xc79   : > { %15929 = vmatpush3.bf16.msra.mxu0 %v18175_v15 }
 0xc7a   : > { %15930 = vmatprep.subr.bf16.mxu0 %v18176_v24 }
 0xc7b   : > { %15875 = vmatpush3.bf16.msra.mxu1 %v10741_v4 }
 0xc7c   : > { %15892 = vmatprep.subr.bf16.mxu1 %v20064_v19 }
 0xc7d   : > { %15931 = vmatpush3.bf16.msra.mxu0 %v18176_v24 }
 0xc7e   : > { %15861 = vmatmul.mubr.msk.bf16.gmra.mrb[116].mxu1 %vm10551_vm12, %v18150_v28 }
 0xc7f   : > { %15864 = vmatprep.mubr.msk.bf16.mxu1 %vm10551_vm12, %v18151_v41 }
 0xc86   : > { %15865 = vmatmul.mubr.msk.bf16.gmra.mrb[120].mxu1 %vm10551_vm12, %v18152_v33 }
 0xc87   : > { %15876 = vmatprep.mubr.msk.bf16.mxu1 %vm10551_vm12, %v18153_v34 }
 0xc8e   : > { %15877 = vmatmul.mubr.msk.bf16.vlgmr.msra.gmra.mrb[108].mxu1 %vm10551_vm12, %v18154_v37 }
 0xc8f   : > { %15893 = vmatpush3.bf16.msra.mxu1 %v20064_v19  ;;  %15880 = vmatprep.mubr.msk.bf16.mxu1 %vm10551_vm12, %v18155_v56 }
 0xc90   : > { %15894 = vmatprep.subr.bf16.mxu1 %v20062_v17 }
 0xc93   : > { %15895 = vmatpush3.bf16.msra.mxu1 %v20062_v17  ;;  %v20197_v17 = vld [vmem:[%s21252_s14 + $0x40] sm:$0xff]  }
 0xc94   : > { %15896 = vmatprep.subr.bf16.mxu1 %v10841_v44  ;;  %15948 = vmatprep.subr.bf16.mxu0 %v20197_v17 }
 0xc96   : > { %15881 = vmatmul.mubr.msk.bf16.gmra.mrb[112].mxu1 %vm10551_vm12, %v18156_v57 }
 0xc97   : > { %15897 = vmatpush3.bf16.msra.mxu1 %v10841_v44  ;;  %15884 = vmatprep.mubr.msk.bf16.mxu1 %vm10551_vm12, %v18157_v46 }
 0xc98   : > { %15898 = vmatprep.subr.bf16.mxu1 %v10922_v58 }
 0xc9b   : > { %15899 = vmatpush3.bf16.msra.mxu1 %v10922_v58 }
 0xc9e   : > { %15885 = vmatmul.mubr.msk.bf16.gmra.mrb[116].mxu1 %vm10551_vm12, %v18158_v14 }
 0xc9f   : > { %15888 = vmatprep.mubr.msk.bf16.mxu1 %vm10551_vm12, %v18159_v59 }
 0xca6   : > { %15889 = vmatmul.mubr.msk.bf16.gmra.mrb[124].mxu1 %vm10551_vm12, %v18160_v53 }
 0xca7   : > { %15900 = vmatprep.mubr.msk.bf16.mxu1 %vm10551_vm12, %v18161_v16 }
 0xcae   : > { %15901 = vmatmul.mubr.msk.bf16.vlgmr.msra.gmra.mrb[108].mxu1 %vm10551_vm12, %v18162_v55 }
 0xcaf   : > { %15904 = vmatprep.mubr.msk.bf16.mxu1 %vm10551_vm12, %v18163_v11 }
 0xcb6   : > { %15905 = vmatmul.mubr.msk.bf16.gmra.mrb[112].mxu1 %vm10551_vm12, %v18164_v60 }
 0xcb7   : > { %15908 = vmatprep.mubr.msk.bf16.mxu1 %vm10551_vm12, %v18165_v13 }
 0xcbe   : > { %15909 = vmatmul.mubr.msk.bf16.gmra.mrb[116].mxu1 %vm10551_vm12, %v18166_v61 }
 0xcbf   : > { %15912 = vmatprep.mubr.msk.bf16.mxu1 %vm10551_vm12, %v18167_v62 }
 0xcc6   : > { %15913 = vmatmul.mubr.msk.bf16.gmra.mrb[128].mxu1 %vm10551_vm12, %v18168_v1 }
 0xd59   : > { %v15866_v18 = vpop.f32.mrb[120].mxu1 }
 0xd5a   : > { %v10664_v19 = vpop.f32.mrb[121].mxu1 }
 0xd5b   : > { %v15867_v20 = vpop.f32.mrb[122].mxu1 }
 0xd5c   : > { %v10667_v22 = vpop.f32.mrb[123].mxu1 }
 0xd79   : > { %v15890_v26 = vpop.f32.mrb[124].mxu1 }
 0xd7a   : > { %v20200_v40 = vadd.f32 %v15890_v26, %v15866_v18  ;;  %v10825_v23 = vpop.f32.mrb[125].mxu1 }
 0xd7b   : > { %v20202_v36 = vadd.f32 %v10825_v23, %v10664_v19  ;;  %v15891_v27 = vpop.f32.mrb[126].mxu1 }
 0xd7c   : > { %v10828_v30 = vpop.f32.mrb[127].mxu1 }
 0xd7d   : > { %v20204_v32 = vadd.f32 %v10828_v30, %v10667_v22 }
 0xd81   : > { %v15902_v43 = vpop.f32.mrb[108].mxu1 }
 0xd82   : > { %v11044_v44 = vadd.f32 %v15902_v43, %v20206_v42  ;;  %v10958_v45 = vpop.f32.mrb[109].mxu1  ;;  %v18178_v43 = vld [vmem:[%s21252_s14 + $0x48] sm:$0xff]  }
 0xd83   : > { %v11042_v47 = vadd.f32 %v20206_v42, %v10958_v45  ;;  %v15903_v48 = vpop.f32.mrb[110].mxu1 }
 0xd84   : > { %v11076_v29 = vmul.f32 1.442695, %v11044_v44  ;;  %v11045_v25 = vadd.f32 %v15903_v48, %v20206_v42  ;;  %v10961_v39 = vpop.f32.mrb[111].mxu1  ;;  %vm11059_vm9 = vcmp.gt.f32.partialorder %v11044_v44, 0.0 }
 0xd85   : > { %v11072_v49 = vmul.f32 1.442695, %v11042_v47  ;;  %v11043_v50 = vadd.f32 %v20206_v42, %v10961_v39  ;;  %vm11057_vm15 = vcmp.gt.f32.partialorder %v11042_v47, 0.0 }
 0xd86   : > { %18362 = vpow2.f32 %v11076_v29  ;;  %v11078_v51 = vmul.f32 1.442695, %v11045_v25  ;;  %vm11060_vm14 = vcmp.gt.f32.partialorder %v11045_v25, 0.0 }
 0xd87   : > { %18364 = vpow2.f32 %v11072_v49  ;;  %v11074_v52 = vmul.f32 1.442695, %v11043_v50  ;;  %vm11058_vm1 = vcmp.gt.f32.partialorder %v11043_v50, 0.0 }
 0xd88   : > { %18366 = vpow2.f32 %v11078_v51 }
 0xd89   : > { %18368 = vpow2.f32 %v11074_v52  ;;  %v15906_v31 = vpop.f32.mrb[112].mxu1 }
 0xd8a   : > { %v20213_v54 = vadd.f32 %v15906_v31, %v20206_v42  ;;  %v10974_v35 = vpop.f32.mrb[113].mxu1 }
 0xd8b   : > { %v20216_v63 = vadd.f32 %v20206_v42, %v10974_v35  ;;  %v15907_v3 = vpop.f32.mrb[114].mxu1 }
 0xd8c   : > { %v11084_v38 = vmul.f32 1.442695, %v20213_v54  ;;  %v20220_v10 = vadd.f32 %v15907_v3, %v20206_v42  ;;  %v10977_v2 = vpop.f32.mrb[115].mxu1  ;;  %vm11063_vm2 = vcmp.gt.f32.partialorder %v20213_v54, 0.0 }
 0xd8d   : > { %v11080_v21 = vmul.f32 1.442695, %v20216_v63  ;;  %v20224_v4 = vadd.f32 %v20206_v42, %v10977_v2  ;;  %vm11061_vm3 = vcmp.gt.f32.partialorder %v20216_v63, 0.0 }
 0xd8e   : > { %18370 = vpow2.f32 %v11084_v38  ;;  %v11086_v28 = vmul.f32 1.442695, %v20220_v10  ;;  %vm11064_vm4 = vcmp.gt.f32.partialorder %v20220_v10, 0.0 }
 0xd8f   : > { %18372 = vpow2.f32 %v11080_v21  ;;  %v11082_v41 = vmul.f32 1.442695, %v20224_v4  ;;  %vm11062_vm5 = vcmp.gt.f32.partialorder %v20224_v4, 0.0 }
 0xd90   : > { %v18363_v33 = vpop.eup %18362  ;;  %18374 = vpow2.f32 %v11086_v28  ;;  %v18180_v28 = vld [vmem:[%s21252_s14 + $0x58] sm:$0xff]  }
 0xd91   : > { %v18365_v34 = vpop.eup %18364  ;;  %v15249_v37 = vadd.f32 -1.0, %v18363_v33  ;;  %18376 = vpow2.f32 %v11082_v41  ;;  %v15910_v56 = vpop.f32.mrb[116].mxu1 }
 0xd92   : > { %v18367_v57 = vpop.eup %18366  ;;  %v20229_v46 = vadd.f32 %v15910_v56, %v20206_v42  ;;  %v10990_v58 = vpop.f32.mrb[117].mxu1  ;;  %v15247_v55 = vadd.f32 -1.0, %v18365_v34 }
 0xd93   : > { %v18369_v14 = vpop.eup %18368  ;;  %v15250_v59 = vadd.f32 -1.0, %v18367_v57  ;;  %v20232_v53 = vadd.f32 %v20206_v42, %v10990_v58  ;;  %v15911_v16 = vpop.f32.mrb[118].mxu1  ;;  %v11119_v62 = vsel %vm11059_vm9, %v11044_v44, %v15249_v37  ;;  %vm18996_vm9 = vmmov 0  }
 0xd94   : > { %v15248_v11 = vadd.f32 -1.0, %v18369_v14  ;;  %v11092_v60 = vmul.f32 1.442695, %v20229_v46  ;;  %v20236_v13 = vadd.f32 %v15911_v16, %v20206_v42  ;;  %v10993_v61 = vpop.f32.mrb[119].mxu1  ;;  %v11117_v15 = vsel %vm11057_vm15, %v11042_v47, %v15247_v55  ;;  %v18181_v14 = vld [vmem:[%s21252_s14 + $0x60] sm:$0xff]  }
 0xd95   : > { %v11120_v1 = vsel %vm11060_vm14, %v11045_v25, %v15250_v59  ;;  %v11088_v5 = vmul.f32 1.442695, %v20232_v53  ;;  %v20240_v6 = vadd.f32 %v20206_v42, %v10993_v61  ;;  %vm11067_vm6 = vcmp.gt.f32.partialorder %v20229_v46, 0.0  ;;  %v18183_v61 = vld [vmem:[%s21252_s14 + $0x70] sm:$0xff]  }
 0xd96   : > { %v20242_v7 = vpack.c.bf16 %v11120_v1, %v11119_v62  ;;  %18378 = vpow2.f32 %v11092_v60  ;;  %v11094_v8 = vmul.f32 1.442695, %v20236_v13  ;;  %v11118_v24 = vsel %vm11058_vm1, %v11043_v50, %v15248_v11 }
 0xd97   : > { %18380 = vpow2.f32 %v11088_v5  ;;  %v11090_v9 = vmul.f32 1.442695, %v20240_v6  ;;  %v20246_v22 = vpack.c.bf16 %v11118_v24, %v11117_v15  ;;  %vm11068_vm7 = vcmp.gt.f32.partialorder %v20236_v13, 0.0 }
 0xd98   : > { %v18371_v12 = vpop.eup %18370  ;;  %18382 = vpow2.f32 %v11094_v8  ;;  %vm11065_vm8 = vcmp.gt.f32.partialorder %v20232_v53, 0.0  ;;  %vm11066_vm10 = vcmp.gt.f32.partialorder %v20240_v6, 0.0  ;;  %vm11655_vm14 = vcmask 1040384  }
 0xd99   : > { %v18373_v18 = vpop.eup %18372  ;;  %v15253_v19 = vadd.f32 -1.0, %v18371_v12  ;;  %18384 = vpow2.f32 %v11090_v9  ;;  %v15914_v20 = vpop.f32.mrb[128].mxu1  ;;  %15932 = vmatprep.mubr.bf16.mxu0 %v20246_v22  ;;  %v18184_v9 = vld [vmem:[%s21252_s14 + $0x78] sm:$0xff]   ;;  %v18995_v12 = vmov 0.0   ;;  %vm11609_vm15 = vcmask 924672  }
 0xd9a   : > { %v18375_v26 = vpop.eup %18374  ;;  %v15251_v23 = vadd.f32 -1.0, %v18373_v18  ;;  %v11034_v27 = vadd.f32 %v15914_v20, %v20200_v40  ;;  %v11006_v30 = vpop.f32.mrb[129].mxu1  ;;  %15933 = vmatmul.mubr.bf16.vlgmr.msra.gmra.mrb[80].mxu0 %v20242_v7  ;;  %16056 = vmatprep.subr.bf16.mxu1 %v18995_v12  ;;  %12783 = vst.msk [vmem:[#allocation2] sm:$0xff] %vm1413_vm0, %v18995_v12  ;;  %12784 = vst.msk [vmem:[#allocation2 + $0x8] sm:$0xff] %vm1413_vm0, %v18995_v12 }
 0xd9b   : > { %v18377_v44 = vpop.eup %18376  ;;  %v15254_v45 = vadd.f32 -1.0, %v18375_v26  ;;  %v11032_v47 = vadd.f32 %v11006_v30, %v20202_v36  ;;  %v15915_v48 = vpop.f32.mrb[130].mxu1  ;;  %15949 = vmatpush3.bf16.msra.mxu0 %v20197_v17  ;;  %v11123_v36 = vsel %vm11063_vm2, %v20213_v54, %v15253_v19  ;;  %12785 = vst.msk [vmem:[#allocation2 + $0x10] sm:$0xff] %vm1413_vm0, %v18995_v12  ;;  %12786 = vst.msk [vmem:[#allocation2 + $0x18] sm:$0xff] %vm1413_vm0, %v18995_v12  ;;  %16072 = vmatprep.mubr.msk.bf16.mxu1 %vm18996_vm9, %v18995_v12 }
 0xd9c   : > { %v15252_v40 = vadd.f32 -1.0, %v18377_v44  ;;  %v20259_v29 = vadd.f32 %v20206_v42, %v11034_v27  ;;  %v11009_v25 = vpop.f32.mrb[131].mxu1  ;;  %15950 = vmatprep.subr.bf16.mxu0 %v18178_v43  ;;  %v11121_v52 = vsel %vm11061_vm3, %v20216_v63, %v15251_v23  ;;  %12787 = vst.msk [vmem:[#allocation2 + $0x20] sm:$0xff] %vm1413_vm0, %v18995_v12  ;;  %12788 = vst.msk [vmem:[#allocation2 + $0x28] sm:$0xff] %vm1413_vm0, %v18995_v12  ;;  %vm12845_vm3 = vcmask 523264  }
 0xd9d   : > { %v20263_v39 = vadd.f32 %v20206_v42, %v11032_v47  ;;  %v11033_v49 = vadd.f32 %v11009_v25, %v20204_v32  ;;  %v11124_v50 = vsel %vm11064_vm4, %v20220_v10, %v15254_v45  ;;  %v18179_v32 = vld [vmem:[%s21252_s14 + $0x50] sm:$0xff]   ;;  %12789 = vst.msk [vmem:[#allocation2 + $0x30] sm:$0xff] %vm1413_vm0, %v18995_v12  ;;  %12790 = vst.msk [vmem:[#allocation2 + $0x38] sm:$0xff] %vm1413_vm0, %v18995_v12 }
 0xd9e   : > { %v11100_v51 = vmul.f32 1.442695, %v20259_v29  ;;  %v11122_v31 = vsel %vm11062_vm5, %v20224_v4, %v15252_v40  ;;  %v20274_v35 = vpack.c.bf16 %v11124_v50, %v11123_v36  ;;  %vm11071_vm11 = vcmp.gt.f32.partialorder %v20259_v29, 0.0  ;;  %12791 = vst.msk [vmem:[#allocation2 + $0x40] sm:$0xff] %vm1413_vm0, %v18995_v12  ;;  %12792 = vst.msk [vmem:[#allocation2 + $0x48] sm:$0xff] %vm1413_vm0, %v18995_v12 }
 0xd9f   : > { %v11096_v17 = vmul.f32 1.442695, %v20263_v39  ;;  %v11055_v54 = vadd.f32 %v20206_v42, %v11033_v49  ;;  %v20281_v3 = vpack.c.bf16 %v11122_v31, %v11121_v52  ;;  %15951 = vmatpush3.bf16.msra.mxu0 %v18178_v43  ;;  %vm11069_vm12 = vcmp.gt.f32.partialorder %v20263_v39, 0.0  ;;  %12793 = vst.msk [vmem:[#allocation2 + $0x50] sm:$0xff] %vm1413_vm0, %v18995_v12  ;;  %12794 = vst.msk [vmem:[#allocation2 + $0x58] sm:$0xff] %vm1413_vm0, %v18995_v12 }
 0xda0   : > { %v18379_v38 = vpop.eup %18378  ;;  %18386 = vpow2.f32 %v11100_v51  ;;  %15952 = vmatprep.subr.bf16.mxu0 %v18179_v32  ;;  %12795 = vst.msk [vmem:[#allocation2 + $0x60] sm:$0xff] %vm1413_vm0, %v18995_v12  ;;  %12796 = vst.msk [vmem:[#allocation2 + $0x68] sm:$0xff] %vm1413_vm0, %v18995_v12 }
 0xda1   : > { %v18381_v10 = vpop.eup %18380  ;;  %v15257_v2 = vadd.f32 -1.0, %v18379_v38  ;;  %18388 = vpow2.f32 %v11096_v17  ;;  %v11098_v63 = vmul.f32 1.442695, %v11055_v54  ;;  %15936 = vmatprep.mubr.bf16.mxu0 %v20281_v3  ;;  %vm11070_vm13 = vcmp.gt.f32.partialorder %v11055_v54, 0.0  ;;  %12797 = vst.msk [vmem:[#allocation2 + $0x70] sm:$0xff] %vm1413_vm0, %v18995_v12  ;;  %12798 = vst.msk [vmem:[#allocation2 + $0x78] sm:$0xff] %vm1413_vm0, %v18995_v12 }
 0xda2   : > { %v18383_v21 = vpop.eup %18382  ;;  %v15255_v4 = vadd.f32 -1.0, %v18381_v10  ;;  %15937 = vmatmul.mubr.bf16.gmra.mrb[84].mxu0 %v20274_v35  ;;  %12799 = vst.msk [vmem:[#allocation2 + $0x80] sm:$0xff] %vm1413_vm0, %v18995_v12  ;;  %12800 = vst.msk [vmem:[#allocation2 + $0x88] sm:$0xff] %vm1413_vm0, %v18995_v12  ;;  %v18186_v10 = vld [vmem:[#allocation22] sm:$0xff]  }
 0xda3   : > { %v18385_v41 = vpop.eup %18384  ;;  %v15258_v42 = vadd.f32 -1.0, %v18383_v21  ;;  %18390 = vpow2.f32 %v11098_v63  ;;  %15953 = vmatpush3.bf16.msra.mxu0 %v18179_v32  ;;  %v11127_v34 = vsel %vm11067_vm6, %v20229_v46, %v15257_v2  ;;  %v18182_v46 = vld [vmem:[%s21252_s14 + $0x68] sm:$0xff]   ;;  %12801 = vst.msk [vmem:[#allocation2 + $0x90] sm:$0xff] %vm1413_vm0, %v18995_v12  ;;  %12802 = vst.msk [vmem:[#allocation2 + $0x98] sm:$0xff] %vm1413_vm0, %v18995_v12  ;;  %v20401_v32 = vsel %vm11655_vm14, 65535, %v18993_v0 }
 0xda4   : > { %v15256_v33 = vadd.f32 -1.0, %v18385_v41  ;;  %15954 = vmatprep.subr.bf16.mxu0 %v18180_v28  ;;  %v11125_v56 = vsel %vm11065_vm8, %v20232_v53, %v15255_v4  ;;  %12803 = vst.msk [vmem:[#allocation2 + $0xa0] sm:$0xff] %vm1413_vm0, %v18995_v12  ;;  %12804 = vst.msk [vmem:[#allocation2 + $0xa8] sm:$0xff] %vm1413_vm0, %v18995_v12  ;;  %v18188_v41 = vld [vmem:[#allocation22 + $0x8] sm:$0xff]  }
 0xda5   : > { %v11128_v37 = vsel %vm11068_vm7, %v20236_v13, %v15258_v42  ;;  %12805 = vst.msk [vmem:[#allocation2 + $0xb0] sm:$0xff] %vm1413_vm0, %v18995_v12  ;;  %12806 = vst.msk [vmem:[#allocation2 + $0xb8] sm:$0xff] %vm1413_vm0, %v18995_v12 }
 0xda6   : > { %v11126_v57 = vsel %vm11066_vm10, %v20240_v6, %v15256_v33  ;;  %v20296_v58 = vpack.c.bf16 %v11128_v37, %v11127_v34  ;;  %12807 = vst.msk [vmem:[#allocation2 + $0xc0] sm:$0xff] %vm1413_vm0, %v18995_v12  ;;  %12808 = vst.msk [vmem:[#allocation2 + $0xc8] sm:$0xff] %vm1413_vm0, %v18995_v12 }
 0xda7   : > { %v20301_v59 = vpack.c.bf16 %v11126_v57, %v11125_v56  ;;  %15955 = vmatpush3.bf16.msra.mxu0 %v18180_v28  ;;  %12809 = vst.msk [vmem:[#allocation2 + $0xd0] sm:$0xff] %vm1413_vm0, %v18995_v12  ;;  %12810 = vst.msk [vmem:[#allocation2 + $0xd8] sm:$0xff] %vm1413_vm0, %v18995_v12 }
 0xda8   : > { %15956 = vmatprep.subr.bf16.mxu0 %v18181_v14 }
 0xda9   : > { %15940 = vmatprep.mubr.bf16.mxu0 %v20301_v59 }
 0xdaa   : > { %v18387_v16 = vpop.eup %18386  ;;  %15941 = vmatmul.mubr.bf16.gmra.mrb[88].mxu0 %v20296_v58 }
 0xdab   : > { %v18389_v53 = vpop.eup %18388  ;;  %v15261_v55 = vadd.f32 -1.0, %v18387_v16  ;;  %15957 = vmatpush3.bf16.msra.mxu0 %v18181_v14  ;;  %v18190_v14 = vld [vmem:[#allocation22 + $0x10] sm:$0xff]  }
 0xdac   : > { %v15259_v11 = vadd.f32 -1.0, %v18389_v53  ;;  %15958 = vmatprep.subr.bf16.mxu0 %v18182_v46 }
 0xdad   : > { %v18391_v60 = vpop.eup %18390  ;;  %v11131_v62 = vsel %vm11071_vm11, %v20259_v29, %v15261_v55 }
 0xdae   : > { %v15260_v13 = vadd.f32 -1.0, %v18391_v60  ;;  %v11129_v1 = vsel %vm11069_vm12, %v20263_v39, %v15259_v11  ;;  %v20317_v8 = vpack.c.bf16 %v11131_v62, %v11131_v62 }
 0xdaf   : > { %15959 = vmatpush3.bf16.msra.mxu0 %v18182_v46 }
 0xdb0   : > { %v11130_v5 = vsel %vm11070_vm13, %v11055_v54, %v15260_v13  ;;  %15960 = vmatprep.subr.bf16.mxu0 %v18183_v61  ;;  %v18192_v13 = vld [vmem:[#allocation22 + $0x18] sm:$0xff]  }
 0xdb1   : > { %v20315_v6 = vpack.c.bf16 %v11130_v5, %v11129_v1 }
 0xdb3   : > { %15944 = vmatprep.mubr.bf16.mxu0 %v20315_v6  ;;  %15961 = vmatpush3.bf16.msra.mxu0 %v18183_v61 }
 0xdb4   : > { %15945 = vmatmul.mubr.bf16.gmra.mrb[92].mxu0 %v20317_v8  ;;  %15962 = vmatprep.subr.bf16.mxu0 %v18184_v9 }
 0xdb5   : > { %15964 = vmatprep.mubr.bf16.mxu0 %v20246_v22 }
 0xdb7   : > { %15963 = vmatpush3.bf16.msra.mxu0 %v18184_v9  ;;  %v18209_v9 = vld [vmem:[%s21252_s14 + $0x80] sm:$0xff]  }
 0xdb8   : > { %15980 = vmatprep.subr.bf16.mxu0 %v18995_v12 }
 0xdbc   : > { %15965 = vmatmul.mubr.bf16.vlgmr.msra.gmra.mrb[96].mxu0 %v20242_v7 }
 0xdbd   : > { %15968 = vmatprep.mubr.bf16.mxu0 %v20281_v3 }
 0xdc4   : > { %15969 = vmatmul.mubr.bf16.gmra.mrb[100].mxu0 %v20274_v35 }
 0xdc5   : > { %15972 = vmatprep.mubr.bf16.mxu0 %v20301_v59 }
 0xdcc   : > { %15973 = vmatmul.mubr.bf16.gmra.mrb[104].mxu0 %v20296_v58 }
 0xdcd   : > { %15976 = vmatprep.mubr.bf16.mxu0 %v20315_v6 }
 0xdd4   : > { %15977 = vmatmul.mubr.bf16.gmra.mrb[108].mxu0 %v20317_v8 }
 0xdd5   : > { %15996 = vmatprep.mubr.msk.bf16.mxu0 %vm18996_vm9, %v18995_v12 }
 0xe6d   : > { %v15934_v15 = vpop.f32.mrb[80].mxu0 }
 0xe6e   : > { %v11238_v24 = vpop.f32.mrb[81].mxu0 }
 0xe6f   : > { %v15935_v18 = vpop.f32.mrb[82].mxu0 }
 0xe70   : > { %v11330_v19 = vpack.c.bf16 %v15935_v18, %v15934_v15  ;;  %v11241_v20 = vpop.f32.mrb[83].mxu0  ;;  %v18194_v18 = vld [vmem:[#allocation22 + $0x20] sm:$0xff]  }
 0xe71   : > { %v11329_v26 = vpack.c.bf16 %v11241_v20, %v11238_v24  ;;  %v18185_v24 = vld [vmem:[#allocation22 + $0x74] sm:$0xff]  }
 0xe72   : > { %v18213_v20 = vld [vmem:[%s21252_s14 + $0x90] sm:$0xff]  }
 0xe73   : > { %16057 = vmatpush3.bf16.msra.mxu1 %v11329_v26  ;;  %v18187_v26 = vld [vmem:[#allocation22 + $0x7c] sm:$0xff]  }
 0xe74   : > { %16058 = vmatprep.subr.bf16.mxu1 %v18995_v12 }
 0xe75   : > { %v15938_v23 = vpop.f32.mrb[84].mxu0 }
 0xe76   : > { %v11254_v27 = vpop.f32.mrb[85].mxu0 }
 0xe77   : > { %v15939_v30 = vpop.f32.mrb[86].mxu0  ;;  %16059 = vmatpush3.bf16.msra.mxu1 %v11330_v19  ;;  %v18210_v19 = vld [vmem:[%s21252_s14 + $0x88] sm:$0xff]  }
 0xe78   : > { %v11332_v43 = vpack.c.bf16 %v15939_v30, %v15938_v23  ;;  %v11257_v44 = vpop.f32.mrb[87].mxu0  ;;  %16060 = vmatprep.subr.bf16.mxu1 %v18995_v12  ;;  %v18196_v23 = vld [vmem:[#allocation22 + $0x28] sm:$0xff]  }
 0xe79   : > { %v11331_v45 = vpack.c.bf16 %v11257_v44, %v11254_v27  ;;  %v18214_v27 = vld [vmem:[%s21252_s14 + $0x98] sm:$0xff]   ;;  %v18217_v30 = vld [vmem:[%s21252_s14 + $0xa0] sm:$0xff]  }
 0xe7a   : > { %v18198_v44 = vld [vmem:[#allocation22 + $0x30] sm:$0xff]  }
 0xe7b   : > { %16061 = vmatpush3.bf16.msra.mxu1 %v11331_v45  ;;  %v18218_v45 = vld [vmem:[%s21252_s14 + $0xa8] sm:$0xff]  }
 0xe7c   : > { %16062 = vmatprep.subr.bf16.mxu1 %v18995_v12 }
 0xe7d   : > { %v15942_v47 = vpop.f32.mrb[88].mxu0 }
 0xe7e   : > { %v11270_v48 = vpop.f32.mrb[89].mxu0 }
 0xe7f   : > { %v15943_v40 = vpop.f32.mrb[90].mxu0  ;;  %16063 = vmatpush3.bf16.msra.mxu1 %v11332_v43  ;;  %v18189_v43 = vld [vmem:[#allocation22 + $0x84] sm:$0xff]  }
 0xe80   : > { %v11334_v29 = vpack.c.bf16 %v15943_v40, %v15942_v47  ;;  %v11273_v25 = vpop.f32.mrb[91].mxu0  ;;  %16064 = vmatprep.subr.bf16.mxu1 %v18995_v12  ;;  %v18221_v47 = vld [vmem:[%s21252_s14 + $0xb0] sm:$0xff]  }
 0xe81   : > { %v11333_v39 = vpack.c.bf16 %v11273_v25, %v11270_v48  ;;  %v18191_v48 = vld [vmem:[#allocation22 + $0x8c] sm:$0xff]   ;;  %v18200_v40 = vld [vmem:[#allocation22 + $0x38] sm:$0xff]  }
 0xe82   : > { %v18193_v25 = vld [vmem:[#allocation22 + $0x94] sm:$0xff]  }
 0xe83   : > { %16065 = vmatpush3.bf16.msra.mxu1 %v11333_v39  ;;  %v18202_v39 = vld [vmem:[#allocation22 + $0x40] sm:$0xff]  }
 0xe84   : > { %16066 = vmatprep.subr.bf16.mxu1 %v18995_v12 }
 0xe87   : > { %v15946_v49 = vpop.f32.mrb[92].mxu0  ;;  %16067 = vmatpush3.bf16.msra.mxu1 %v11334_v29  ;;  %v18222_v29 = vld [vmem:[%s21252_s14 + $0xb8] sm:$0xff]  }
 0xe88   : > { %v11286_v36 = vpop.f32.mrb[93].mxu0  ;;  %16068 = vmatprep.subr.bf16.mxu1 %v18995_v12  ;;  %v11336_v52 = vpack.c.bf16 %v15946_v49, %v15946_v49  ;;  %v18195_v49 = vld [vmem:[#allocation22 + $0x9c] sm:$0xff]  }
 0xe89   : > { %v15947_v50 = vpop.f32.mrb[94].mxu0 }
 0xe8a   : > { %v11289_v51 = vpop.f32.mrb[95].mxu0  ;;  %v11932_v17 = vand.u32 %v20401_v32, %v11336_v52  ;;  %v18197_v50 = vld [vmem:[#allocation22 + $0xa4] sm:$0xff]   ;;  %v18199_v52 = vld [vmem:[#allocation22 + $0xac] sm:$0xff]  }
 0xe8b   : > { %v11335_v31 = vpack.c.bf16 %v11289_v51, %v11286_v36  ;;  %v18204_v36 = vld [vmem:[#allocation22 + $0x48] sm:$0xff]   ;;  %v18206_v51 = vld [vmem:[#allocation22 + $0x50] sm:$0xff]  }
 0xe8d   : > { %16069 = vmatpush3.bf16.msra.mxu1 %v11335_v31  ;;  %v18208_v31 = vld [vmem:[#allocation22 + $0x58] sm:$0xff]  }
 0xe8e   : > { %16070 = vmatprep.subr.bf16.mxu1 %v18995_v12 }
 0xe8f   : > { %v15966_v54 = vpop.f32.mrb[96].mxu0 }
 0xe90   : > { %v11436_v38 = vpop.f32.mrb[97].mxu0 }
 0xe91   : > { %v15967_v2 = vpop.f32.mrb[98].mxu0  ;;  %16071 = vmatpush3.bf16.msra.mxu1 %v11932_v17  ;;  %v18201_v17 = vld [vmem:[#allocation22 + $0xb4] sm:$0xff]  }
 0xe92   : > { %v11529_v63 = vpack.c.bf16 %v15967_v2, %v15966_v54  ;;  %v11439_v21 = vpop.f32.mrb[99].mxu0  ;;  %16164 = vmatprep.subr.bf16.mxu1 %v18995_v12  ;;  %v18212_v54 = vld [vmem:[#allocation22 + $0x60] sm:$0xff]  }
 0xe93   : > { %v11528_v4 = vpack.c.bf16 %v11439_v21, %v11436_v38  ;;  %v18203_v38 = vld [vmem:[#allocation22 + $0xbc] sm:$0xff]   ;;  %v18205_v2 = vld [vmem:[#allocation22 + $0xc4] sm:$0xff]   ;;  %v18207_v21 = vld [vmem:[#allocation22 + $0xcc] sm:$0xff]  }
 0xe94   : > { %16073 = vmatmul.mubr.msk.bf16.vlgmr.msra.gmra.mrb[132].mxu1 %vm11609_vm15, %v18186_v10  ;;  %v18216_v10 = vld [vmem:[#allocation22 + $0x68] sm:$0xff]  }
 0xe95   : > { %15981 = vmatpush3.bf16.msra.mxu0 %v11528_v4  ;;  %16076 = vmatprep.mubr.msk.bf16.mxu1 %vm18996_vm9, %v18995_v12  ;;  %v18211_v4 = vld [vmem:[#allocation22 + $0xd4] sm:$0xff]  }
 0xe96   : > { %15982 = vmatprep.subr.bf16.mxu0 %v18995_v12 }
 0xe97   : > { %v15970_v0 = vpop.f32.mrb[100].mxu0 }
 0xe98   : > { %v11452_v28 = vpop.f32.mrb[101].mxu0 }
 0xe99   : > { %v15971_v42 = vpop.f32.mrb[102].mxu0  ;;  %15983 = vmatpush3.bf16.msra.mxu0 %v11529_v63  ;;  %v18220_v63 = vld [vmem:[#allocation22 + $0x70] ss:$0 sps:$4 sm:$0x11]  }
 0xe9a   : > { %v11531_v33 = vpack.c.bf16 %v15971_v42, %v15970_v0  ;;  %v11455_v34 = vpop.f32.mrb[103].mxu0  ;;  %15984 = vmatprep.subr.bf16.mxu0 %v18995_v12  ;;  %v18215_v0 = vld [vmem:[#allocation22 + $0xdc] sm:$0xff]  }
 0xe9b   : > { %v11530_v37 = vpack.c.bf16 %v11455_v34, %v11452_v28  ;;  %v18219_v28 = vld [vmem:[#allocation22 + $0xe4] ss:$0 sps:$4 sm:$0x11]  }
 0xe9c   : > { %16077 = vmatmul.mubr.msk.bf16.gmra.mrb[136].mxu1 %vm11609_vm15, %v18188_v41 }
 0xe9d   : > { %15985 = vmatpush3.bf16.msra.mxu0 %v11530_v37  ;;  %16080 = vmatprep.mubr.msk.bf16.mxu1 %vm18996_vm9, %v18995_v12 }
 0xe9e   : > { %15986 = vmatprep.subr.bf16.mxu0 %v18995_v12 }
 0xe9f   : > { %v15974_v56 = vpop.f32.mrb[104].mxu0 }
 0xea0   : > { %v11468_v57 = vpop.f32.mrb[105].mxu0 }
 0xea1   : > { %v15975_v16 = vpop.f32.mrb[106].mxu0  ;;  %15987 = vmatpush3.bf16.msra.mxu0 %v11531_v33 }
 0xea2   : > { %v11533_v46 = vpack.c.bf16 %v15975_v16, %v15974_v56  ;;  %v11471_v53 = vpop.f32.mrb[107].mxu0  ;;  %15988 = vmatprep.subr.bf16.mxu0 %v18995_v12 }
 0xea3   : > { %v11532_v55 = vpack.c.bf16 %v11471_v53, %v11468_v57 }
 0xea4   : > { %16081 = vmatmul.mubr.msk.bf16.gmra.mrb[140].mxu1 %vm11609_vm15, %v18190_v14 }
 0xea5   : > { %15989 = vmatpush3.bf16.msra.mxu0 %v11532_v55  ;;  %16084 = vmatprep.mubr.msk.bf16.mxu1 %vm18996_vm9, %v18995_v12 }
 0xea6   : > { %15990 = vmatprep.subr.bf16.mxu0 %v18995_v12 }
 0xea7   : > { %v15978_v11 = vpop.f32.mrb[108].mxu0 }
 0xea8   : > { %v11484_v60 = vpop.f32.mrb[109].mxu0  ;;  %v11535_v1 = vpack.c.bf16 %v15978_v11, %v15978_v11 }
 0xea9   : > { %v15979_v61 = vpop.f32.mrb[110].mxu0  ;;  %15991 = vmatpush3.bf16.msra.mxu0 %v11533_v46 }
 0xeaa   : > { %v11487_v62 = vpop.f32.mrb[111].mxu0  ;;  %15992 = vmatprep.subr.bf16.mxu0 %v18995_v12  ;;  %v11659_v15 = vand.u32 %v20401_v32, %v11535_v1 }
 0xeab   : > { %v11534_v5 = vpack.c.bf16 %v11487_v62, %v11484_v60 }
 0xeac   : > { %16085 = vmatmul.mubr.msk.bf16.gmra.mrb[144].mxu1 %vm11609_vm15, %v18192_v13 }
 0xead   : > { %15993 = vmatpush3.bf16.msra.mxu0 %v11534_v5  ;;  %16088 = vmatprep.mubr.msk.bf16.mxu1 %vm18996_vm9, %v18995_v12 }
 0xeae   : > { %15994 = vmatprep.subr.bf16.mxu0 %v18995_v12 }
 0xeb1   : > { %15995 = vmatpush3.bf16.msra.mxu0 %v11659_v15 }
 0xeb2   : > { %16132 = vmatprep.subr.bf16.mxu0 %v18209_v9 }
 0xeb4   : > { %15997 = vmatmul.mubr.msk.bf16.vlgmr.msra.gmra.mrb[112].mxu0 %vm11609_vm15, %v18185_v24  ;;  %16089 = vmatmul.mubr.msk.bf16.gmra.mrb[148].mxu1 %vm11609_vm15, %v18194_v18 }
 0xeb5   : > { %16000 = vmatprep.mubr.msk.bf16.mxu0 %vm18996_vm9, %v18995_v12  ;;  %16092 = vmatprep.mubr.msk.bf16.mxu1 %vm18996_vm9, %v18995_v12 }
 0xeb6   : > { %16133 = vmatpush3.bf16.msra.mxu0 %v18209_v9 }
 0xeb7   : > { %16134 = vmatprep.subr.bf16.mxu0 %v18210_v19 }
 0xeba   : > { %16135 = vmatpush3.bf16.msra.mxu0 %v18210_v19 }
 0xebb   : > { %16136 = vmatprep.subr.bf16.mxu0 %v18213_v20 }
 0xebc   : > { %16001 = vmatmul.mubr.msk.bf16.gmra.mrb[116].mxu0 %vm11609_vm15, %v18187_v26  ;;  %16093 = vmatmul.mubr.msk.bf16.gmra.mrb[152].mxu1 %vm11609_vm15, %v18196_v23 }
 0xebd   : > { %16004 = vmatprep.mubr.msk.bf16.mxu0 %vm18996_vm9, %v18995_v12  ;;  %16096 = vmatprep.mubr.msk.bf16.mxu1 %vm18996_vm9, %v18995_v12 }
 0xebe   : > { %16137 = vmatpush3.bf16.msra.mxu0 %v18213_v20 }
 0xebf   : > { %16138 = vmatprep.subr.bf16.mxu0 %v18214_v27 }
 0xec2   : > { %16139 = vmatpush3.bf16.msra.mxu0 %v18214_v27 }
 0xec3   : > { %16140 = vmatprep.subr.bf16.mxu0 %v18217_v30 }
 0xec4   : > { %16005 = vmatmul.mubr.msk.bf16.gmra.mrb[120].mxu0 %vm11609_vm15, %v18189_v43  ;;  %16097 = vmatmul.mubr.msk.bf16.gmra.mrb[156].mxu1 %vm11609_vm15, %v18198_v44 }
 0xec5   : > { %16008 = vmatprep.mubr.msk.bf16.mxu0 %vm18996_vm9, %v18995_v12  ;;  %16100 = vmatprep.mubr.msk.bf16.mxu1 %vm18996_vm9, %v18995_v12 }
 0xec6   : > { %16141 = vmatpush3.bf16.msra.mxu0 %v18217_v30 }
 0xec7   : > { %16142 = vmatprep.subr.bf16.mxu0 %v18218_v45 }
 0xeca   : > { %16143 = vmatpush3.bf16.msra.mxu0 %v18218_v45 }
 0xecb   : > { %16144 = vmatprep.subr.bf16.mxu0 %v18221_v47 }
 0xecc   : > { %16009 = vmatmul.mubr.msk.bf16.gmra.mrb[124].mxu0 %vm11609_vm15, %v18191_v48  ;;  %16101 = vmatmul.mubr.msk.bf16.gmra.mrb[160].mxu1 %vm11609_vm15, %v18200_v40 }
 0xecd   : > { %16012 = vmatprep.mubr.msk.bf16.mxu0 %vm18996_vm9, %v18995_v12  ;;  %16104 = vmatprep.mubr.msk.bf16.mxu1 %vm18996_vm9, %v18995_v12 }
 0xece   : > { %16145 = vmatpush3.bf16.msra.mxu0 %v18221_v47 }
 0xecf   : > { %16146 = vmatprep.subr.bf16.mxu0 %v18222_v29 }
 0xed2   : > { %16147 = vmatpush3.bf16.msra.mxu0 %v18222_v29 }
 0xed3   : > { %16240 = vmatprep.subr.bf16.mxu0 %v18995_v12 }
 0xed4   : > { %16013 = vmatmul.mubr.msk.bf16.gmra.mrb[128].mxu0 %vm11609_vm15, %v18193_v25  ;;  %16105 = vmatmul.mubr.msk.bf16.gmra.mrb[164].mxu1 %vm11609_vm15, %v18202_v39 }
 0xed5   : > { %16016 = vmatprep.mubr.msk.bf16.mxu0 %vm18996_vm9, %v18995_v12  ;;  %16108 = vmatprep.mubr.msk.bf16.mxu1 %vm18996_vm9, %v18995_v12 }
 0xedc   : > { %16017 = vmatmul.mubr.msk.bf16.gmra.mrb[132].mxu0 %vm11609_vm15, %v18195_v49  ;;  %16109 = vmatmul.mubr.msk.bf16.gmra.mrb[168].mxu1 %vm11609_vm15, %v18204_v36 }
 0xedd   : > { %16020 = vmatprep.mubr.msk.bf16.mxu0 %vm18996_vm9, %v18995_v12  ;;  %16112 = vmatprep.mubr.msk.bf16.mxu1 %vm18996_vm9, %v18995_v12 }
 0xee4   : > { %16021 = vmatmul.mubr.msk.bf16.gmra.mrb[136].mxu0 %vm11609_vm15, %v18197_v50  ;;  %16113 = vmatmul.mubr.msk.bf16.gmra.mrb[172].mxu1 %vm11609_vm15, %v18206_v51 }
 0xee5   : > { %16024 = vmatprep.mubr.msk.bf16.mxu0 %vm18996_vm9, %v18995_v12  ;;  %16116 = vmatprep.mubr.msk.bf16.mxu1 %vm18996_vm9, %v18995_v12 }
 0xeec   : > { %16025 = vmatmul.mubr.msk.bf16.gmra.mrb[140].mxu0 %vm11609_vm15, %v18199_v52  ;;  %16117 = vmatmul.mubr.msk.bf16.gmra.mrb[176].mxu1 %vm11609_vm15, %v18208_v31 }
 0xeed   : > { %16028 = vmatprep.mubr.msk.bf16.mxu0 %vm18996_vm9, %v18995_v12  ;;  %16120 = vmatprep.mubr.msk.bf16.mxu1 %vm18996_vm9, %v18995_v12 }
 0xef4   : > { %16029 = vmatmul.mubr.msk.bf16.gmra.mrb[144].mxu0 %vm11609_vm15, %v18201_v17  ;;  %16121 = vmatmul.mubr.msk.bf16.gmra.mrb[180].mxu1 %vm11609_vm15, %v18212_v54 }
 0xef5   : > { %16032 = vmatprep.mubr.msk.bf16.mxu0 %vm18996_vm9, %v18995_v12  ;;  %16124 = vmatprep.mubr.msk.bf16.mxu1 %vm18996_vm9, %v18995_v12 }
 0xefc   : > { %16033 = vmatmul.mubr.msk.bf16.gmra.mrb[148].mxu0 %vm11609_vm15, %v18203_v38  ;;  %16125 = vmatmul.mubr.msk.bf16.gmra.mrb[184].mxu1 %vm11609_vm15, %v18216_v10 }
 0xefd   : > { %16036 = vmatprep.mubr.msk.bf16.mxu0 %vm18996_vm9, %v18995_v12  ;;  %16128 = vmatprep.mubr.msk.bf16.mxu1 %vm18996_vm9, %v18995_v12 }
 0xf04   : > { %16037 = vmatmul.mubr.msk.bf16.gmra.mrb[152].mxu0 %vm11609_vm15, %v18205_v2  ;;  %16129 = vmatmul.mubr.msk.bf16.gmra.mrb[188].mxu1 %vm11609_vm15, %v18220_v63 }
 0xf05   : > { %16040 = vmatprep.mubr.msk.bf16.mxu0 %vm18996_vm9, %v18995_v12  ;;  %16180 = vmatprep.mubr.msk.bf16.mxu1 %vm18996_vm9, %v18995_v12 }
 0xf0c   : > { %16041 = vmatmul.mubr.msk.bf16.gmra.mrb[156].mxu0 %vm11609_vm15, %v18207_v21 }
 0xf0d   : > { %16044 = vmatprep.mubr.msk.bf16.mxu0 %vm18996_vm9, %v18995_v12 }
 0xf14   : > { %16045 = vmatmul.mubr.msk.bf16.gmra.mrb[160].mxu0 %vm11609_vm15, %v18211_v4 }
 0xf15   : > { %16048 = vmatprep.mubr.msk.bf16.mxu0 %vm18996_vm9, %v18995_v12 }
 0xf1c   : > { %16049 = vmatmul.mubr.msk.bf16.gmra.mrb[164].mxu0 %vm11609_vm15, %v18215_v0 }
 0xf1d   : > { %16052 = vmatprep.mubr.msk.bf16.mxu0 %vm18996_vm9, %v18995_v12 }
 0xf24   : > { %16053 = vmatmul.mubr.msk.bf16.gmra.mrb[168].mxu0 %vm11609_vm15, %v18219_v28 }
 0xf25   : > { %16148 = vmatprep.mubr.bf16.mxu0 %v20246_v22 }
 0xf2c   : > { %16149 = vmatmul.mubr.bf16.vlgmr.msra.gmra.mrb[172].mxu0 %v20242_v7 }
 0xf2d   : > { %16152 = vmatprep.mubr.bf16.mxu0 %v20281_v3 }
 0xf34   : > { %16153 = vmatmul.mubr.bf16.gmra.mrb[176].mxu0 %v20274_v35 }
 0xf35   : > { %16156 = vmatprep.mubr.bf16.mxu0 %v20301_v59 }
 0xf3c   : > { %16157 = vmatmul.mubr.bf16.gmra.mrb[180].mxu0 %v20296_v58 }
 0xf3d   : > { %16160 = vmatprep.mubr.bf16.mxu0 %v20315_v6 }
 0xf44   : > { %16161 = vmatmul.mubr.bf16.gmra.mrb[184].mxu0 %v20317_v8 }
 0xf45   : > { %16248 = vmatprep.mubr.msk.bf16.mxu0 %vm18996_vm9, %v18995_v12 }
 0xf67   : > { %v11968_v41 = vpop.f32.mrb[132].mxu1 }
 0xf68   : > { %v16074_v42 = vpop.f32.mrb[133].mxu1 }
 0xf69   : > { %v11971_v22 = vpop.f32.mrb[134].mxu1 }
 0xf6a   : > { %v16075_v33 = vpop.f32.mrb[135].mxu1 }
 0xf6f   : > { %v11976_v7 = vpop.f32.mrb[136].mxu1 }
 0xf70   : > { %v16078_v34 = vpop.f32.mrb[137].mxu1 }
 0xf71   : > { %v11979_v3 = vpop.f32.mrb[138].mxu1 }
 0xf72   : > { %v16079_v37 = vpop.f32.mrb[139].mxu1 }
 0xf77   : > { %v11984_v35 = vpop.f32.mrb[140].mxu1 }
 0xf78   : > { %v16082_v56 = vpop.f32.mrb[141].mxu1 }
 0xf79   : > { %v11987_v59 = vpop.f32.mrb[142].mxu1 }
 0xf7a   : > { %v16083_v57 = vpop.f32.mrb[143].mxu1 }
 0xf7f   : > { %v11992_v58 = vpop.f32.mrb[144].mxu1 }
 0xf80   : > { %v16086_v14 = vpop.f32.mrb[145].mxu1 }
 0xf81   : > { %v11995_v6 = vpop.f32.mrb[146].mxu1 }
 0xf82   : > { %v16087_v16 = vpop.f32.mrb[147].mxu1 }
 0xf87   : > { %v11695_v8 = vpop.f32.mrb[112].mxu0  ;;  %v12000_v46 = vpop.f32.mrb[148].mxu1 }
 0xf88   : > { %v20537_v53 = vadd.f32 %v11968_v41, %v11695_v8  ;;  %v15998_v55 = vpop.f32.mrb[113].mxu0  ;;  %v16090_v11 = vpop.f32.mrb[149].mxu1 }
 0xf89   : > { %v11698_v60 = vpop.f32.mrb[114].mxu0  ;;  %v12003_v13 = vpop.f32.mrb[150].mxu1 }
 0xf8a   : > { %v20539_v61 = vadd.f32 %v11971_v22, %v11698_v60  ;;  %v15999_v62 = vpop.f32.mrb[115].mxu0  ;;  %v16091_v1 = vpop.f32.mrb[151].mxu1 }
 0xf8f   : > { %v11703_v5 = vpop.f32.mrb[116].mxu0  ;;  %v12008_v9 = vpop.f32.mrb[152].mxu1 }
 0xf90   : > { %v20541_v15 = vadd.f32 %v11976_v7, %v11703_v5  ;;  %v16002_v24 = vpop.f32.mrb[117].mxu0  ;;  %v16094_v18 = vpop.f32.mrb[153].mxu1 }
 0xf91   : > { %v11706_v19 = vpop.f32.mrb[118].mxu0  ;;  %v12011_v20 = vpop.f32.mrb[154].mxu1 }
 0xf92   : > { %v20543_v26 = vadd.f32 %v11979_v3, %v11706_v19  ;;  %v16003_v23 = vpop.f32.mrb[119].mxu0  ;;  %v16095_v27 = vpop.f32.mrb[155].mxu1 }
 0xf97   : > { %v11711_v30 = vpop.f32.mrb[120].mxu0  ;;  %v12016_v43 = vpop.f32.mrb[156].mxu1 }
 0xf98   : > { %v20545_v44 = vadd.f32 %v11984_v35, %v11711_v30  ;;  %v16006_v45 = vpop.f32.mrb[121].mxu0  ;;  %v16098_v47 = vpop.f32.mrb[157].mxu1 }
 0xf99   : > { %v11714_v48 = vpop.f32.mrb[122].mxu0  ;;  %v12019_v40 = vpop.f32.mrb[158].mxu1 }
 0xf9a   : > { %v20547_v29 = vadd.f32 %v11987_v59, %v11714_v48  ;;  %v16007_v25 = vpop.f32.mrb[123].mxu0  ;;  %v16099_v39 = vpop.f32.mrb[159].mxu1 }
 0xf9f   : > { %v11719_v49 = vpop.f32.mrb[124].mxu0  ;;  %v12024_v36 = vpop.f32.mrb[160].mxu1 }
 0xfa0   : > { %v20549_v50 = vadd.f32 %v11992_v58, %v11719_v49  ;;  %v16010_v51 = vpop.f32.mrb[125].mxu0  ;;  %v16102_v52 = vpop.f32.mrb[161].mxu1 }
 0xfa1   : > { %v11722_v31 = vpop.f32.mrb[126].mxu0  ;;  %v12027_v17 = vpop.f32.mrb[162].mxu1 }
 0xfa2   : > { %v20551_v54 = vadd.f32 %v11995_v6, %v11722_v31  ;;  %v16011_v38 = vpop.f32.mrb[127].mxu0  ;;  %v16103_v10 = vpop.f32.mrb[163].mxu1 }
 0xfa7   : > { %v11727_v2 = vpop.f32.mrb[128].mxu0  ;;  %v12032_v63 = vpop.f32.mrb[164].mxu1 }
 0xfa8   : > { %v20553_v21 = vadd.f32 %v12000_v46, %v11727_v2  ;;  %v16014_v4 = vpop.f32.mrb[129].mxu0  ;;  %v16106_v0 = vpop.f32.mrb[165].mxu1 }
 0xfa9   : > { %v11730_v28 = vpop.f32.mrb[130].mxu0  ;;  %v12035_v41 = vpop.f32.mrb[166].mxu1 }
 0xfaa   : > { %v20555_v42 = vadd.f32 %v12003_v13, %v11730_v28  ;;  %v16015_v22 = vpop.f32.mrb[131].mxu0  ;;  %v16107_v33 = vpop.f32.mrb[167].mxu1 }
 0xfaf   : > { %v11735_v7 = vpop.f32.mrb[132].mxu0  ;;  %v12040_v34 = vpop.f32.mrb[168].mxu1 }
 0xfb0   : > { %v20557_v3 = vadd.f32 %v12008_v9, %v11735_v7  ;;  %v16018_v37 = vpop.f32.mrb[133].mxu0  ;;  %v16110_v35 = vpop.f32.mrb[169].mxu1 }
 0xfb1   : > { %v11738_v56 = vpop.f32.mrb[134].mxu0  ;;  %v12043_v59 = vpop.f32.mrb[170].mxu1 }
 0xfb2   : > { %v20559_v57 = vadd.f32 %v12011_v20, %v11738_v56  ;;  %v16019_v58 = vpop.f32.mrb[135].mxu0  ;;  %v16111_v14 = vpop.f32.mrb[171].mxu1 }
 0xfb7   : > { %v11743_v6 = vpop.f32.mrb[136].mxu0  ;;  %v12048_v16 = vpop.f32.mrb[172].mxu1 }
 0xfb8   : > { %v20561_v8 = vadd.f32 %v12016_v43, %v11743_v6  ;;  %v16022_v46 = vpop.f32.mrb[137].mxu0  ;;  %v16114_v55 = vpop.f32.mrb[173].mxu1 }
 0xfb9   : > { %v11746_v11 = vpop.f32.mrb[138].mxu0  ;;  %v12051_v60 = vpop.f32.mrb[174].mxu1 }
 0xfba   : > { %v20563_v13 = vadd.f32 %v12019_v40, %v11746_v11  ;;  %v16023_v62 = vpop.f32.mrb[139].mxu0  ;;  %v16115_v1 = vpop.f32.mrb[175].mxu1 }
 0xfbf   : > { %v11751_v5 = vpop.f32.mrb[140].mxu0  ;;  %v12056_v9 = vpop.f32.mrb[176].mxu1 }
 0xfc0   : > { %v20565_v24 = vadd.f32 %v12024_v36, %v11751_v5  ;;  %v16026_v18 = vpop.f32.mrb[141].mxu0  ;;  %v16118_v19 = vpop.f32.mrb[177].mxu1 }
 0xfc1   : > { %v11754_v20 = vpop.f32.mrb[142].mxu0  ;;  %v12059_v23 = vpop.f32.mrb[178].mxu1 }
 0xfc2   : > { %v20567_v27 = vadd.f32 %v12027_v17, %v11754_v20  ;;  %v16027_v30 = vpop.f32.mrb[143].mxu0  ;;  %v16119_v43 = vpop.f32.mrb[179].mxu1 }
 0xfc7   : > { %v11759_v45 = vpop.f32.mrb[144].mxu0  ;;  %v12064_v47 = vpop.f32.mrb[180].mxu1 }
 0xfc8   : > { %v20569_v48 = vadd.f32 %v12032_v63, %v11759_v45  ;;  %v16030_v40 = vpop.f32.mrb[145].mxu0  ;;  %v16122_v25 = vpop.f32.mrb[181].mxu1 }
 0xfc9   : > { %v11762_v39 = vpop.f32.mrb[146].mxu0  ;;  %v12067_v49 = vpop.f32.mrb[182].mxu1 }
 0xfca   : > { %v20571_v51 = vadd.f32 %v12035_v41, %v11762_v39  ;;  %v16031_v36 = vpop.f32.mrb[147].mxu0  ;;  %v16123_v52 = vpop.f32.mrb[183].mxu1 }
 0xfcf   : > { %v11767_v31 = vpop.f32.mrb[148].mxu0  ;;  %v12072_v38 = vpop.f32.mrb[184].mxu1 }
 0xfd0   : > { %v20573_v10 = vadd.f32 %v12040_v34, %v11767_v31  ;;  %v16034_v17 = vpop.f32.mrb[149].mxu0  ;;  %v16126_v2 = vpop.f32.mrb[185].mxu1 }
 0xfd1   : > { %v11770_v4 = vpop.f32.mrb[150].mxu0  ;;  %v12075_v0 = vpop.f32.mrb[186].mxu1 }
 0xfd2   : > { %v20575_v28 = vadd.f32 %v12043_v59, %v11770_v4  ;;  %v16035_v63 = vpop.f32.mrb[151].mxu0  ;;  %v16127_v22 = vpop.f32.mrb[187].mxu1 }
 0xfd7   : > { %v11775_v33 = vpop.f32.mrb[152].mxu0  ;;  %v12080_v7 = vpop.f32.mrb[188].mxu1 }
 0xfd8   : > { %v20577_v37 = vadd.f32 %v12048_v16, %v11775_v33  ;;  %v16038_v41 = vpop.f32.mrb[153].mxu0  ;;  %v16130_v35 = vpop.f32.mrb[189].mxu1 }
 0xfd9   : > { %v11778_v56 = vpop.f32.mrb[154].mxu0  ;;  %v12083_v58 = vpop.f32.mrb[190].mxu1 }
 0xfda   : > { %v20579_v14 = vadd.f32 %v12051_v60, %v11778_v56  ;;  %v16039_v34 = vpop.f32.mrb[155].mxu0  ;;  %v16131_v6 = vpop.f32.mrb[191].mxu1 }
 0xfdf   : > { %v11783_v46 = vpop.f32.mrb[156].mxu0 }
 0xfe0   : > { %v20581_v55 = vadd.f32 %v12056_v9, %v11783_v46  ;;  %v16042_v11 = vpop.f32.mrb[157].mxu0 }
 0xfe1   : > { %v11786_v59 = vpop.f32.mrb[158].mxu0 }
 0xfe2   : > { %v20583_v62 = vadd.f32 %v12059_v23, %v11786_v59  ;;  %v16043_v1 = vpop.f32.mrb[159].mxu0 }
 0xfe7   : > { %v11791_v5 = vpop.f32.mrb[160].mxu0 }
 0xfe8   : > { %v20585_v18 = vadd.f32 %v12064_v47, %v11791_v5  ;;  %v16046_v16 = vpop.f32.mrb[161].mxu0 }
 0xfe9   : > { %v11794_v19 = vpop.f32.mrb[162].mxu0 }
 0xfea   : > { %v20587_v20 = vadd.f32 %v12067_v49, %v11794_v19  ;;  %v16047_v30 = vpop.f32.mrb[163].mxu0 }
 0xfef   : > { %v11799_v60 = vpop.f32.mrb[164].mxu0 }
 0xff0   : > { %v20589_v43 = vadd.f32 %v12072_v38, %v11799_v60  ;;  %v16050_v45 = vpop.f32.mrb[165].mxu0  ;;  %v18223_v60 = vld [vmem:[#allocation22 + $0xe8] sm:$0xff]  }
 0xff1   : > { %v11802_v40 = vpop.f32.mrb[166].mxu0  ;;  %v18224_v45 = vld [vmem:[#allocation22 + $0xf0] sm:$0xff]  }
 0xff2   : > { %v20591_v9 = vadd.f32 %v12075_v0, %v11802_v40  ;;  %v16051_v25 = vpop.f32.mrb[167].mxu0  ;;  %v18225_v40 = vld [vmem:[#allocation22 + $0xf8] sm:$0xff]  }
 0xff3   : > { %v18227_v25 = vld [vmem:[#allocation22 + $0x108] sm:$0xff]  }
 0xff7   : > { %v11807_v39 = vpop.f32.mrb[168].mxu0 }
 0xff8   : > { %v20593_v23 = vadd.f32 %v12080_v7, %v11807_v39  ;;  %v16054_v36 = vpop.f32.mrb[169].mxu0  ;;  %v18228_v39 = vld [vmem:[#allocation22 + $0x110] sm:$0xff]  }
 0xff9   : > { %v11810_v52 = vpop.f32.mrb[170].mxu0  ;;  %v18229_v36 = vld [vmem:[#allocation22 + $0x118] sm:$0xff]  }
 0xffa   : > { %v16055_v47 = vpop.f32.mrb[171].mxu0  ;;  %v18230_v52 = vld [vmem:[#allocation22 + $0x120] sm:$0xff]  }
 0xffb   : > { %v18231_v47 = vld [vmem:[#allocation22 + $0x128] sm:$0xff]  }
 0xfff   : > { %v16150_v31 = vpop.f32.mrb[172].mxu0 }
0x1000   : > { %v12185_v17 = vpop.f32.mrb[173].mxu0 }
0x1001   : > { %v16151_v2 = vpop.f32.mrb[174].mxu0 }
0x1002   : > { %v12278_v49 = vpack.c.bf16 %v16151_v2, %v16150_v31  ;;  %v12188_v4 = vpop.f32.mrb[175].mxu0  ;;  %v18232_v31 = vld [vmem:[#allocation22 + $0x130] sm:$0xff]   ;;  %v18234_v2 = vld [vmem:[#allocation22 + $0x140] sm:$0xff]  }
0x1003   : > { %v12277_v63 = vpack.c.bf16 %v12188_v4, %v12185_v17  ;;  %v18233_v17 = vld [vmem:[#allocation22 + $0x138] sm:$0xff]   ;;  %v18238_v4 = vld [vmem:[%s21253_s29] sm:$0xff]  }
0x1004   : > { %16241 = vmatpush3.bf16.msra.mxu0 %v18238_v4 }
0x1005   : > { %16165 = vmatpush3.bf16.msra.mxu1 %v12277_v63  ;;  %v18239_v63 = vld [vmem:[%s21253_s29 + $0x20] sm:$0xff]   ;;  %16242 = vmatprep.subr.bf16.mxu0 %v18995_v12 }
0x1006   : > { %16166 = vmatprep.subr.bf16.mxu1 %v18995_v12 }
0x1007   : > { %v16154_v38 = vpop.f32.mrb[176].mxu0 }
0x1008   : > { %v12201_v22 = vpop.f32.mrb[177].mxu0 }
0x1009   : > { %v16155_v0 = vpop.f32.mrb[178].mxu0  ;;  %16167 = vmatpush3.bf16.msra.mxu1 %v12278_v49  ;;  %v18235_v49 = vld [vmem:[#allocation22 + $0x148] sm:$0xff]  }
0x100a   : > { %v12280_v33 = vpack.c.bf16 %v16155_v0, %v16154_v38  ;;  %v12204_v41 = vpop.f32.mrb[179].mxu0  ;;  %16168 = vmatprep.subr.bf16.mxu1 %v18995_v12  ;;  %v18240_v38 = vld [vmem:[%s21253_s29 + $0x8] sm:$0xff]  }
0x100b   : > { %v12279_v7 = vpack.c.bf16 %v12204_v41, %v12201_v22  ;;  %v18241_v22 = vld [vmem:[%s21253_s29 + $0x28] sm:$0xff]   ;;  %16243 = vmatpush3.bf16.msra.mxu0 %v18240_v38  ;;  %v18243_v41 = vld [vmem:[%s21253_s29 + $0x30] sm:$0xff]  }
0x100c   : > { %v18236_v0 = vld [vmem:[#allocation22 + $0x150] sm:$0xff]   ;;  %16244 = vmatprep.subr.bf16.mxu0 %v18995_v12 }
0x100d   : > { %16169 = vmatpush3.bf16.msra.mxu1 %v12279_v7  ;;  %v18244_v7 = vld [vmem:[%s21253_s29 + $0x18] sm:$0xff]  }
0x100e   : > { %16170 = vmatprep.subr.bf16.mxu1 %v18995_v12 }
0x100f   : > { %v16158_v35 = vpop.f32.mrb[180].mxu0 }
0x1010   : > { %v12217_v56 = vpop.f32.mrb[181].mxu0 }
0x1011   : > { %v16159_v58 = vpop.f32.mrb[182].mxu0  ;;  %16171 = vmatpush3.bf16.msra.mxu1 %v12280_v33  ;;  %v18242_v33 = vld [vmem:[%s21253_s29 + $0x10] sm:$0xff]  }
0x1012   : > { %v12282_v34 = vpack.c.bf16 %v16159_v58, %v16158_v35  ;;  %v12220_v6 = vpop.f32.mrb[183].mxu0  ;;  %16172 = vmatprep.subr.bf16.mxu1 %v18995_v12  ;;  %16245 = vmatpush3.bf16.msra.mxu0 %v18242_v33  ;;  %v18245_v35 = vld [vmem:[%s21253_s29 + $0x38] sm:$0xff]  }
0x1013   : > { %v12281_v46 = vpack.c.bf16 %v12220_v6, %v12217_v56  ;;  %16246 = vmatprep.subr.bf16.mxu0 %v18995_v12  ;;  %v18237_v56 = vld [vmem:[#allocation22 + $0x158] ss:$0 sps:$4 sm:$0x11]  }
0x1015   : > { %16173 = vmatpush3.bf16.msra.mxu1 %v12281_v46 }
0x1016   : > { %16174 = vmatprep.subr.bf16.mxu1 %v18995_v12  ;;  %16247 = vmatpush3.bf16.msra.mxu0 %v18244_v7 }
0x1017   : > { %v16162_v11 = vpop.f32.mrb[184].mxu0  ;;  %16376 = vmatprep.subr.bf16.mxu0 %v18995_v12 }
0x1018   : > { %v12233_v59 = vpop.f32.mrb[185].mxu0  ;;  %v12284_v16 = vpack.c.bf16 %v16162_v11, %v16162_v11 }
0x1019   : > { %v16163_v1 = vpop.f32.mrb[186].mxu0  ;;  %16175 = vmatpush3.bf16.msra.mxu1 %v12282_v34  ;;  %v20680_v34 = vld [vmem:[#allocation20] ss:$0 sm:$0xff] }
0x101a   : > { %v12236_v5 = vpop.f32.mrb[187].mxu0  ;;  %16176 = vmatprep.subr.bf16.mxu1 %v18995_v12  ;;  %v12404_v30 = vand.u32 %v12284_v16, %v20401_v32  ;;  %v18226_v32 = vld [vmem:[#allocation22 + $0x100] sm:$0xff]  }
0x101b   : > { %v12283_v19 = vpack.c.bf16 %v12236_v5, %v12233_v59 }
0x101d   : > { %16177 = vmatpush3.bf16.msra.mxu1 %v12283_v19 }
0x101e   : > { %16178 = vmatprep.subr.bf16.mxu1 %v18995_v12 }
0x1021   : > { %16179 = vmatpush3.bf16.msra.mxu1 %v12404_v30 }
0x1022   : > { %16308 = vmatprep.subr.bf16.mxu1 %v18995_v12 }
0x1024   : > { %16181 = vmatmul.mubr.msk.bf16.vlgmr.msra.gmra.mrb[192].mxu1 %vm11609_vm15, %v18223_v60 }
0x1025   : > { %16184 = vmatprep.mubr.msk.bf16.mxu1 %vm18996_vm9, %v18995_v12  ;;  %16309 = vmatpush3.bf16.msra.mxu1 %v18239_v63 }
0x1026   : > { %16310 = vmatprep.subr.bf16.mxu1 %v18995_v12 }
0x1029   : > { %16311 = vmatpush3.bf16.msra.mxu1 %v18241_v22 }
0x102a   : > { %16312 = vmatprep.subr.bf16.mxu1 %v18995_v12 }
0x102c   : > { %16185 = vmatmul.mubr.msk.bf16.gmra.mrb[196].mxu1 %vm11609_vm15, %v18224_v45 }
0x102d   : > { %16188 = vmatprep.mubr.msk.bf16.mxu1 %vm18996_vm9, %v18995_v12  ;;  %16313 = vmatpush3.bf16.msra.mxu1 %v18243_v41 }
0x102e   : > { %16314 = vmatprep.subr.bf16.mxu1 %v18995_v12 }
0x1031   : > { %16315 = vmatpush3.bf16.msra.mxu1 %v18245_v35 }
0x1034   : > { %16189 = vmatmul.mubr.msk.bf16.gmra.mrb[200].mxu1 %vm11609_vm15, %v18225_v40 }
0x1035   : > { %16192 = vmatprep.mubr.msk.bf16.mxu1 %vm18996_vm9, %v18995_v12 }
0x103c   : > { %16193 = vmatmul.mubr.msk.bf16.gmra.mrb[204].mxu1 %vm11609_vm15, %v18226_v32 }
0x103d   : > { %16196 = vmatprep.mubr.msk.bf16.mxu1 %vm18996_vm9, %v18995_v12 }
0x1044   : > { %16197 = vmatmul.mubr.msk.bf16.gmra.mrb[208].mxu1 %vm11609_vm15, %v18227_v25 }
0x1045   : > { %16200 = vmatprep.mubr.msk.bf16.mxu1 %vm18996_vm9, %v18995_v12 }
0x104c   : > { %16201 = vmatmul.mubr.msk.bf16.gmra.mrb[212].mxu1 %vm11609_vm15, %v18228_v39 }
0x104d   : > { %16204 = vmatprep.mubr.msk.bf16.mxu1 %vm18996_vm9, %v18995_v12 }
0x1054   : > { %16205 = vmatmul.mubr.msk.bf16.gmra.mrb[216].mxu1 %vm11609_vm15, %v18229_v36 }
0x1055   : > { %16208 = vmatprep.mubr.msk.bf16.mxu1 %vm18996_vm9, %v18995_v12 }
0x105c   : > { %16209 = vmatmul.mubr.msk.bf16.gmra.mrb[220].mxu1 %vm11609_vm15, %v18230_v52 }
0x105d   : > { %16212 = vmatprep.mubr.msk.bf16.mxu1 %vm18996_vm9, %v18995_v12 }
0x1064   : > { %16213 = vmatmul.mubr.msk.bf16.gmra.mrb[224].mxu1 %vm11609_vm15, %v18231_v47 }
0x1065   : > { %16216 = vmatprep.mubr.msk.bf16.mxu1 %vm18996_vm9, %v18995_v12 }
0x106c   : > { %16217 = vmatmul.mubr.msk.bf16.gmra.mrb[228].mxu1 %vm11609_vm15, %v18232_v31 }
0x106d   : > { %16220 = vmatprep.mubr.msk.bf16.mxu1 %vm18996_vm9, %v18995_v12 }
0x1074   : > { %16221 = vmatmul.mubr.msk.bf16.gmra.mrb[232].mxu1 %vm11609_vm15, %v18233_v17 }
0x1075   : > { %16224 = vmatprep.mubr.msk.bf16.mxu1 %vm18996_vm9, %v18995_v12 }
0x107c   : > { %16225 = vmatmul.mubr.msk.bf16.gmra.mrb[236].mxu1 %vm11609_vm15, %v18234_v2 }
0x107d   : > { %16228 = vmatprep.mubr.msk.bf16.mxu1 %vm18996_vm9, %v18995_v12 }
0x1084   : > { %16229 = vmatmul.mubr.msk.bf16.gmra.mrb[240].mxu1 %vm11609_vm15, %v18235_v49 }
0x1085   : > { %16232 = vmatprep.mubr.msk.bf16.mxu1 %vm18996_vm9, %v18995_v12 }
0x108c   : > { %16233 = vmatmul.mubr.msk.bf16.gmra.mrb[244].mxu1 %vm11609_vm15, %v18236_v0 }
0x108d   : > { %16236 = vmatprep.mubr.msk.bf16.mxu1 %vm18996_vm9, %v18995_v12 }
0x1094   : > { %16237 = vmatmul.mubr.msk.bf16.gmra.mrb[248].mxu1 %vm11609_vm15, %v18237_v56 }
0x1095   : > { %16316 = vmatprep.mubr.msk.bf16.mxu1 %vm18996_vm9, %v18995_v12 }
0x10f7   : > { %v12440_v58 = vpop.f32.mrb[192].mxu1 }
0x10f8   : > { %v12558_v6 = vadd.f32 %v12440_v58, %v20537_v53  ;;  %v16182_v46 = vpop.f32.mrb[193].mxu1 }
0x10f9   : > { %v12443_v11 = vpop.f32.mrb[194].mxu1 }
0x10fa   : > { %v12594_v59 = vadd.f32 %v20680_v34, %v12558_v6  ;;  %v12559_v1 = vadd.f32 %v12443_v11, %v20539_v61  ;;  %v16183_v5 = vpop.f32.mrb[195].mxu1 }
0x10fc   : > { %v12652_v16 = vmul.f32 1.442695, %v12594_v59  ;;  %v12595_v19 = vadd.f32 %v20680_v34, %v12559_v1  ;;  %vm12623_vm1 = vcmp.gt.f32.partialorder %v12594_v59, 0.0 }
0x10fe   : > { %18392 = vpow2.f32 %v12652_v16  ;;  %v12654_v30 = vmul.f32 1.442695, %v12595_v19  ;;  %vm12624_vm2 = vcmp.gt.f32.partialorder %v12595_v19, 0.0 }
0x10ff   : > { %v12448_v60 = vpop.f32.mrb[196].mxu1 }
0x1100   : > { %18394 = vpow2.f32 %v12654_v30  ;;  %v12560_v45 = vadd.f32 %v12448_v60, %v20541_v15  ;;  %v16186_v40 = vpop.f32.mrb[197].mxu1 }
0x1101   : > { %v12451_v32 = vpop.f32.mrb[198].mxu1 }
0x1102   : > { %v12596_v53 = vadd.f32 %v20680_v34, %v12560_v45  ;;  %v12561_v25 = vadd.f32 %v12451_v32, %v20543_v26  ;;  %v16187_v39 = vpop.f32.mrb[199].mxu1 }
0x1103   : > { %v18248_v39 = vld [vmem:[%s21253_s29 + $0x50] sm:$0xff]  }
0x1104   : > { %v12656_v36 = vmul.f32 1.442695, %v12596_v53  ;;  %v12597_v61 = vadd.f32 %v20680_v34, %v12561_v25  ;;  %vm12625_vm4 = vcmp.gt.f32.partialorder %v12596_v53, 0.0 }
0x1106   : > { %18396 = vpow2.f32 %v12656_v36  ;;  %v12658_v52 = vmul.f32 1.442695, %v12597_v61  ;;  %vm12626_vm5 = vcmp.gt.f32.partialorder %v12597_v61, 0.0 }
0x1107   : > { %v12456_v47 = vpop.f32.mrb[200].mxu1 }
0x1108   : > { %v18393_v31 = vpop.eup %18392  ;;  %18398 = vpow2.f32 %v12658_v52  ;;  %v12562_v17 = vadd.f32 %v12456_v47, %v20545_v44  ;;  %v16190_v2 = vpop.f32.mrb[201].mxu1 }
0x1109   : > { %v15409_v49 = vadd.f32 -1.0, %v18393_v31  ;;  %v12459_v15 = vpop.f32.mrb[202].mxu1 }
0x110a   : > { %v18395_v4 = vpop.eup %18394  ;;  %v20692_v63 = vadd.f32 %v20680_v34, %v12562_v17  ;;  %v12563_v26 = vadd.f32 %v12459_v15, %v20547_v29  ;;  %v16191_v38 = vpop.f32.mrb[203].mxu1  ;;  %v18246_v29 = vld [vmem:[%s21253_s29 + $0x40] sm:$0xff]   ;;  %v18249_v15 = vld [vmem:[%s21253_s29 + $0x58] sm:$0xff]  }
0x110b   : > { %v15410_v22 = vadd.f32 -1.0, %v18395_v4  ;;  %v12739_v41 = vsel %vm12623_vm1, %v12594_v59, %v15409_v49 }
0x110c   : > { %v12660_v0 = vmul.f32 1.442695, %v20692_v63  ;;  %v20697_v33 = vadd.f32 %v20680_v34, %v12563_v26  ;;  %vm12627_vm6 = vcmp.gt.f32.partialorder %v20692_v63, 0.0 }
0x110d   : > { %v12740_v44 = vsel %vm12624_vm2, %v12595_v19, %v15410_v22  ;;  %v18247_v19 = vld [vmem:[%s21253_s29 + $0x48] sm:$0xff]  }
0x110e   : > { %v20699_v7 = vpack.c.bf16 %v12740_v44, %v12739_v41  ;;  %18400 = vpow2.f32 %v12660_v0  ;;  %v12662_v35 = vmul.f32 1.442695, %v20697_v33  ;;  %vm12628_vm7 = vcmp.gt.f32.partialorder %v20697_v33, 0.0 }
0x110f   : > { %v12464_v56 = vpop.f32.mrb[204].mxu1 }
0x1110   : > { %v18397_v58 = vpop.eup %18396  ;;  %18402 = vpow2.f32 %v12662_v35  ;;  %v12564_v6 = vadd.f32 %v12464_v56, %v20549_v50  ;;  %v16194_v46 = vpop.f32.mrb[205].mxu1  ;;  %16249 = vmatmul.mubr.msk.bf16.vlgmr.msra.gmra.mrb[188].mxu0 %vm12845_vm3, %v20699_v7  ;;  %16317 = vmatmul.mubr.msk.bf16.vlgmr.msra.gmra.mrb[252].mxu1 %vm12845_vm3, %v20699_v7 }
0x1111   : > { %v15411_v11 = vadd.f32 -1.0, %v18397_v58  ;;  %v12467_v59 = vpop.f32.mrb[206].mxu1  ;;  %16252 = vmatprep.mubr.msk.bf16.mxu0 %vm18996_vm9, %v18995_v12  ;;  %16320 = vmatprep.mubr.msk.bf16.mxu1 %vm18996_vm9, %v18995_v12 }
0x1112   : > { %v18399_v1 = vpop.eup %18398  ;;  %v20715_v5 = vadd.f32 %v20680_v34, %v12564_v6  ;;  %v12565_v50 = vadd.f32 %v12467_v59, %v20551_v54  ;;  %v16195_v16 = vpop.f32.mrb[207].mxu1  ;;  %16377 = vmatpush3.bf16.msra.mxu0 %v18246_v29 }
0x1113   : > { %v15412_v30 = vadd.f32 -1.0, %v18399_v1  ;;  %16378 = vmatprep.subr.bf16.mxu0 %v18995_v12  ;;  %v12741_v40 = vsel %vm12625_vm4, %v12596_v53, %v15411_v11 }
0x1114   : > { %v12664_v60 = vmul.f32 1.442695, %v20715_v5  ;;  %v12601_v45 = vadd.f32 %v20680_v34, %v12565_v50  ;;  %vm12629_vm8 = vcmp.gt.f32.partialorder %v20715_v5, 0.0 }
0x1115   : > { %v12742_v32 = vsel %vm12626_vm5, %v12597_v61, %v15412_v30 }
0x1116   : > { %18404 = vpow2.f32 %v12664_v60  ;;  %v12666_v25 = vmul.f32 1.442695, %v12601_v45  ;;  %v20724_v54 = vpack.c.bf16 %v12742_v32, %v12741_v40  ;;  %16379 = vmatpush3.bf16.msra.mxu0 %v18247_v19  ;;  %vm12630_vm10 = vcmp.gt.f32.partialorder %v12601_v45, 0.0 }
0x1117   : > { %v12472_v36 = vpop.f32.mrb[208].mxu1  ;;  %16380 = vmatprep.subr.bf16.mxu0 %v18995_v12 }
0x1118   : > { %v18401_v52 = vpop.eup %18400  ;;  %18406 = vpow2.f32 %v12666_v25  ;;  %v12566_v47 = vadd.f32 %v12472_v36, %v20553_v21  ;;  %v16198_v31 = vpop.f32.mrb[209].mxu1  ;;  %16253 = vmatmul.mubr.msk.bf16.gmra.mrb[192].mxu0 %vm12845_vm3, %v20724_v54  ;;  %16321 = vmatmul.mubr.msk.bf16.gmra.mrb[0].mxu1 %vm12845_vm3, %v20724_v54 }
0x1119   : > { %v15413_v53 = vadd.f32 -1.0, %v18401_v52  ;;  %v12475_v61 = vpop.f32.mrb[210].mxu1  ;;  %16256 = vmatprep.mubr.msk.bf16.mxu0 %vm18996_vm9, %v18995_v12  ;;  %16324 = vmatprep.mubr.msk.bf16.mxu1 %vm18996_vm9, %v18995_v12 }
0x111a   : > { %v18403_v17 = vpop.eup %18402  ;;  %v20740_v2 = vadd.f32 %v20680_v34, %v12566_v47  ;;  %v12567_v21 = vadd.f32 %v12475_v61, %v20555_v42  ;;  %v16199_v49 = vpop.f32.mrb[211].mxu1  ;;  %16381 = vmatpush3.bf16.msra.mxu0 %v18248_v39 }
0x111b   : > { %v15414_v4 = vadd.f32 -1.0, %v18403_v17  ;;  %16382 = vmatprep.subr.bf16.mxu0 %v18995_v12  ;;  %v12743_v22 = vsel %vm12627_vm6, %v20692_v63, %v15413_v53 }
0x111c   : > { %v12668_v26 = vmul.f32 1.442695, %v20740_v2  ;;  %v12603_v38 = vadd.f32 %v20680_v34, %v12567_v21  ;;  %vm12631_vm11 = vcmp.gt.f32.partialorder %v20740_v2, 0.0 }
0x111d   : > { %v12744_v42 = vsel %vm12628_vm7, %v20697_v33, %v15414_v4 }
0x111e   : > { %18408 = vpow2.f32 %v12668_v26  ;;  %v12670_v0 = vmul.f32 1.442695, %v12603_v38  ;;  %v20753_v41 = vpack.c.bf16 %v12744_v42, %v12743_v22  ;;  %16383 = vmatpush3.bf16.msra.mxu0 %v18249_v15  ;;  %vm12632_vm12 = vcmp.gt.f32.partialorder %v12603_v38, 0.0 }
0x111f   : > { %v12480_v44 = vpop.f32.mrb[212].mxu1 }
0x1120   : > { %v18405_v35 = vpop.eup %18404  ;;  %18410 = vpow2.f32 %v12670_v0  ;;  %v12568_v29 = vadd.f32 %v12480_v44, %v20557_v3  ;;  %v16202_v56 = vpop.f32.mrb[213].mxu1  ;;  %16257 = vmatmul.mubr.msk.bf16.gmra.mrb[196].mxu0 %vm12845_vm3, %v20753_v41  ;;  %16325 = vmatmul.mubr.msk.bf16.gmra.mrb[4].mxu1 %vm12845_vm3, %v20753_v41 }
0x1121   : > { %v15415_v63 = vadd.f32 -1.0, %v18405_v35  ;;  %v12483_v58 = vpop.f32.mrb[214].mxu1  ;;  %16260 = vmatprep.mubr.msk.bf16.mxu0 %vm18996_vm9, %v18995_v12  ;;  %16328 = vmatprep.mubr.msk.bf16.mxu1 %vm18996_vm9, %v18995_v12 }
0x1122   : > { %v18407_v33 = vpop.eup %18406  ;;  %v12604_v6 = vadd.f32 %v20680_v34, %v12568_v29  ;;  %v12569_v3 = vadd.f32 %v12483_v58, %v20559_v57  ;;  %v16203_v46 = vpop.f32.mrb[215].mxu1 }
0x1123   : > { %v15416_v11 = vadd.f32 -1.0, %v18407_v33  ;;  %v12745_v50 = vsel %vm12629_vm8, %v20715_v5, %v15415_v63 }
0x1124   : > { %v12672_v59 = vmul.f32 1.442695, %v12604_v6  ;;  %v12605_v1 = vadd.f32 %v20680_v34, %v12569_v3  ;;  %vm12633_vm13 = vcmp.gt.f32.partialorder %v12604_v6, 0.0 }
0x1125   : > { %v12746_v16 = vsel %vm12630_vm10, %v12601_v45, %v15416_v11 }
0x1126   : > { %18412 = vpow2.f32 %v12672_v59  ;;  %v12674_v19 = vmul.f32 1.442695, %v12605_v1  ;;  %v20769_v30 = vpack.c.bf16 %v12746_v16, %v12745_v50  ;;  %vm12634_vm14 = vcmp.gt.f32.partialorder %v12605_v1, 0.0 }
0x1127   : > { %v12488_v60 = vpop.f32.mrb[216].mxu1 }
0x1128   : > { %v18409_v40 = vpop.eup %18408  ;;  %18414 = vpow2.f32 %v12674_v19  ;;  %v12570_v57 = vadd.f32 %v12488_v60, %v20561_v8  ;;  %v16206_v32 = vpop.f32.mrb[217].mxu1  ;;  %16261 = vmatmul.mubr.msk.bf16.gmra.mrb[200].mxu0 %vm12845_vm3, %v20769_v30  ;;  %16329 = vmatmul.mubr.msk.bf16.gmra.mrb[8].mxu1 %vm12845_vm3, %v20769_v30 }
0x1129   : > { %v15417_v25 = vadd.f32 -1.0, %v18409_v40  ;;  %v12491_v39 = vpop.f32.mrb[218].mxu1  ;;  %16264 = vmatprep.mubr.msk.bf16.mxu0 %vm18996_vm9, %v18995_v12  ;;  %16332 = vmatprep.mubr.msk.bf16.mxu1 %vm18996_vm9, %v18995_v12 }
0x112a   : > { %v18411_v5 = vpop.eup %18410  ;;  %v12606_v45 = vadd.f32 %v20680_v34, %v12570_v57  ;;  %v12571_v8 = vadd.f32 %v12491_v39, %v20563_v13  ;;  %v16207_v36 = vpop.f32.mrb[219].mxu1 }
0x112b   : > { %v15418_v52 = vadd.f32 -1.0, %v18411_v5  ;;  %v12747_v53 = vsel %vm12631_vm11, %v20740_v2, %v15417_v25 }
0x112c   : > { %v12676_v47 = vmul.f32 1.442695, %v12606_v45  ;;  %v12607_v31 = vadd.f32 %v20680_v34, %v12571_v8  ;;  %vm12635_vm15 = vcmp.gt.f32.partialorder %v12606_v45, 0.0 }
0x112d   : > { %v12748_v61 = vsel %vm12632_vm12, %v12603_v38, %v15418_v52 }
0x112e   : > { %18416 = vpow2.f32 %v12676_v47  ;;  %v12678_v17 = vmul.f32 1.442695, %v12607_v31  ;;  %v20785_v21 = vpack.c.bf16 %v12748_v61, %v12747_v53  ;;  %vm12636_vm1 = vcmp.gt.f32.partialorder %v12607_v31, 0.0 }
0x112f   : > { %v12496_v49 = vpop.f32.mrb[220].mxu1 }
0x1130   : > { %v18413_v15 = vpop.eup %18412  ;;  %18418 = vpow2.f32 %v12678_v17  ;;  %v12572_v13 = vadd.f32 %v12496_v49, %v20565_v24  ;;  %v16210_v4 = vpop.f32.mrb[221].mxu1  ;;  %16265 = vmatmul.mubr.msk.bf16.gmra.mrb[204].mxu0 %vm12845_vm3, %v20785_v21  ;;  %16333 = vmatmul.mubr.msk.bf16.gmra.mrb[12].mxu1 %vm12845_vm3, %v20785_v21 }
0x1131   : > { %v15419_v26 = vadd.f32 -1.0, %v18413_v15  ;;  %v12499_v22 = vpop.f32.mrb[222].mxu1  ;;  %16268 = vmatprep.mubr.msk.bf16.mxu0 %vm18996_vm9, %v18995_v12  ;;  %16336 = vmatprep.mubr.msk.bf16.mxu1 %vm18996_vm9, %v18995_v12 }
0x1132   : > { %v18415_v2 = vpop.eup %18414  ;;  %v12608_v38 = vadd.f32 %v20680_v34, %v12572_v13  ;;  %v12573_v24 = vadd.f32 %v12499_v22, %v20567_v27  ;;  %v16211_v42 = vpop.f32.mrb[223].mxu1 }
0x1133   : > { %v15420_v0 = vadd.f32 -1.0, %v18415_v2  ;;  %v12749_v29 = vsel %vm12633_vm13, %v12604_v6, %v15419_v26 }
0x1134   : > { %v12680_v44 = vmul.f32 1.442695, %v12608_v38  ;;  %v12609_v35 = vadd.f32 %v20680_v34, %v12573_v24  ;;  %vm12637_vm2 = vcmp.gt.f32.partialorder %v12608_v38, 0.0 }
0x1135   : > { %v12750_v56 = vsel %vm12634_vm14, %v12605_v1, %v15420_v0 }
0x1136   : > { %18420 = vpow2.f32 %v12680_v44  ;;  %v12682_v63 = vmul.f32 1.442695, %v12609_v35  ;;  %v20799_v58 = vpack.c.bf16 %v12750_v56, %v12749_v29  ;;  %vm12638_vm4 = vcmp.gt.f32.partialorder %v12609_v35, 0.0 }
0x1137   : > { %v12504_v33 = vpop.f32.mrb[224].mxu1 }
0x1138   : > { %v18417_v3 = vpop.eup %18416  ;;  %18422 = vpow2.f32 %v12682_v63  ;;  %v12574_v46 = vadd.f32 %v12504_v33, %v20569_v48  ;;  %v16214_v11 = vpop.f32.mrb[225].mxu1  ;;  %16269 = vmatmul.mubr.msk.bf16.gmra.mrb[208].mxu0 %vm12845_vm3, %v20799_v58  ;;  %16337 = vmatmul.mubr.msk.bf16.gmra.mrb[16].mxu1 %vm12845_vm3, %v20799_v58 }
0x1139   : > { %v15421_v27 = vadd.f32 -1.0, %v18417_v3  ;;  %v12507_v59 = vpop.f32.mrb[226].mxu1  ;;  %16272 = vmatprep.mubr.msk.bf16.mxu0 %vm18996_vm9, %v18995_v12  ;;  %16340 = vmatprep.mubr.msk.bf16.mxu1 %vm18996_vm9, %v18995_v12 }
0x113a   : > { %v18419_v6 = vpop.eup %18418  ;;  %v12610_v1 = vadd.f32 %v20680_v34, %v12574_v46  ;;  %v12575_v48 = vadd.f32 %v12507_v59, %v20571_v51  ;;  %v16215_v50 = vpop.f32.mrb[227].mxu1 }
0x113b   : > { %v15422_v16 = vadd.f32 -1.0, %v18419_v6  ;;  %v12751_v40 = vsel %vm12635_vm15, %v12606_v45, %v15421_v27 }
0x113c   : > { %v12684_v19 = vmul.f32 1.442695, %v12610_v1  ;;  %v12611_v60 = vadd.f32 %v20680_v34, %v12575_v48  ;;  %vm12639_vm5 = vcmp.gt.f32.partialorder %v12610_v1, 0.0 }
0x113d   : > { %v12752_v57 = vsel %vm12636_vm1, %v12607_v31, %v15422_v16 }
0x113e   : > { %18424 = vpow2.f32 %v12684_v19  ;;  %v12686_v32 = vmul.f32 1.442695, %v12611_v60  ;;  %v20813_v25 = vpack.c.bf16 %v12752_v57, %v12751_v40  ;;  %vm12640_vm6 = vcmp.gt.f32.partialorder %v12611_v60, 0.0 }
0x113f   : > { %v12512_v39 = vpop.f32.mrb[228].mxu1 }
0x1140   : > { %v18421_v5 = vpop.eup %18420  ;;  %18426 = vpow2.f32 %v12686_v32  ;;  %v12576_v8 = vadd.f32 %v12512_v39, %v20573_v10  ;;  %v16218_v36 = vpop.f32.mrb[229].mxu1  ;;  %16273 = vmatmul.mubr.msk.bf16.gmra.mrb[212].mxu0 %vm12845_vm3, %v20813_v25  ;;  %16341 = vmatmul.mubr.msk.bf16.gmra.mrb[20].mxu1 %vm12845_vm3, %v20813_v25 }
0x1141   : > { %v15423_v51 = vadd.f32 -1.0, %v18421_v5  ;;  %v12515_v52 = vpop.f32.mrb[230].mxu1  ;;  %16276 = vmatprep.mubr.msk.bf16.mxu0 %vm18996_vm9, %v18995_v12  ;;  %16344 = vmatprep.mubr.msk.bf16.mxu1 %vm18996_vm9, %v18995_v12 }
0x1142   : > { %v18423_v45 = vpop.eup %18422  ;;  %v12612_v47 = vadd.f32 %v20680_v34, %v12576_v8  ;;  %v12577_v10 = vadd.f32 %v12515_v52, %v20575_v28  ;;  %v16219_v31 = vpop.f32.mrb[231].mxu1 }
0x1143   : > { %v15424_v53 = vadd.f32 -1.0, %v18423_v45  ;;  %v12753_v49 = vsel %vm12637_vm2, %v12608_v38, %v15423_v51 }
0x1144   : > { %v12688_v61 = vmul.f32 1.442695, %v12612_v47  ;;  %v12613_v17 = vadd.f32 %v20680_v34, %v12577_v10  ;;  %vm12641_vm7 = vcmp.gt.f32.partialorder %v12612_v47, 0.0 }
0x1145   : > { %v12754_v15 = vsel %vm12638_vm4, %v12609_v35, %v15424_v53 }
0x1146   : > { %18428 = vpow2.f32 %v12688_v61  ;;  %v12690_v13 = vmul.f32 1.442695, %v12613_v17  ;;  %v20827_v4 = vpack.c.bf16 %v12754_v15, %v12753_v49  ;;  %vm12642_vm8 = vcmp.gt.f32.partialorder %v12613_v17, 0.0 }
0x1147   : > { %v12520_v26 = vpop.f32.mrb[232].mxu1 }
0x1148   : > { %v18425_v22 = vpop.eup %18424  ;;  %18430 = vpow2.f32 %v12690_v13  ;;  %v12578_v2 = vadd.f32 %v12520_v26, %v20577_v37  ;;  %v16222_v24 = vpop.f32.mrb[233].mxu1  ;;  %16277 = vmatmul.mubr.msk.bf16.gmra.mrb[216].mxu0 %vm12845_vm3, %v20827_v4  ;;  %16345 = vmatmul.mubr.msk.bf16.gmra.mrb[24].mxu1 %vm12845_vm3, %v20827_v4 }
0x1149   : > { %v15425_v28 = vadd.f32 -1.0, %v18425_v22  ;;  %v12523_v42 = vpop.f32.mrb[234].mxu1  ;;  %16280 = vmatprep.mubr.msk.bf16.mxu0 %vm18996_vm9, %v18995_v12  ;;  %16348 = vmatprep.mubr.msk.bf16.mxu1 %vm18996_vm9, %v18995_v12 }
0x114a   : > { %v18427_v38 = vpop.eup %18426  ;;  %v12614_v0 = vadd.f32 %v20680_v34, %v12578_v2  ;;  %v12579_v37 = vadd.f32 %v12523_v42, %v20579_v14  ;;  %v16223_v44 = vpop.f32.mrb[235].mxu1 }
0x114b   : > { %v15426_v35 = vadd.f32 -1.0, %v18427_v38  ;;  %v12755_v63 = vsel %vm12639_vm5, %v12610_v1, %v15425_v28  ;;  %vm12811_vm5 = vcmask 256000  }
0x114c   : > { %v12692_v29 = vmul.f32 1.442695, %v12614_v0  ;;  %v12615_v56 = vadd.f32 %v20680_v34, %v12579_v37  ;;  %vm12643_vm10 = vcmp.gt.f32.partialorder %v12614_v0, 0.0  ;;  %12812 = vst.msk [vmem:[#allocation2 + $0xe0] sm:$0x7] %vm12811_vm5, %v18995_v12 }
0x114d   : > { %v12756_v33 = vsel %vm12640_vm6, %v12611_v60, %v15426_v35 }
0x114e   : > { %18432 = vpow2.f32 %v12692_v29  ;;  %v12694_v3 = vmul.f32 1.442695, %v12615_v56  ;;  %v20841_v46 = vpack.c.bf16 %v12756_v33, %v12755_v63  ;;  %vm12644_vm11 = vcmp.gt.f32.partialorder %v12615_v56, 0.0 }
0x114f   : > { %v12528_v11 = vpop.f32.mrb[236].mxu1 }
0x1150   : > { %v18429_v27 = vpop.eup %18428  ;;  %18434 = vpow2.f32 %v12694_v3  ;;  %v12580_v59 = vadd.f32 %v12528_v11, %v20581_v55  ;;  %v16226_v6 = vpop.f32.mrb[237].mxu1  ;;  %16281 = vmatmul.mubr.msk.bf16.gmra.mrb[220].mxu0 %vm12845_vm3, %v20841_v46  ;;  %16349 = vmatmul.mubr.msk.bf16.gmra.mrb[28].mxu1 %vm12845_vm3, %v20841_v46 }
0x1151   : > { %v15427_v14 = vadd.f32 -1.0, %v18429_v27  ;;  %v12531_v48 = vpop.f32.mrb[238].mxu1  ;;  %16284 = vmatprep.mubr.msk.bf16.mxu0 %vm18996_vm9, %v18995_v12  ;;  %16352 = vmatprep.mubr.msk.bf16.mxu1 %vm18996_vm9, %v18995_v12 }
0x1152   : > { %v18431_v1 = vpop.eup %18430  ;;  %v12616_v50 = vadd.f32 %v20680_v34, %v12580_v59  ;;  %v12581_v55 = vadd.f32 %v12531_v48, %v20583_v62  ;;  %v16227_v16 = vpop.f32.mrb[239].mxu1 }
0x1153   : > { %v15428_v19 = vadd.f32 -1.0, %v18431_v1  ;;  %v12757_v57 = vsel %vm12641_vm7, %v12612_v47, %v15427_v14 }
0x1154   : > { %v12696_v60 = vmul.f32 1.442695, %v12616_v50  ;;  %v12617_v40 = vadd.f32 %v20680_v34, %v12581_v55  ;;  %vm12645_vm12 = vcmp.gt.f32.partialorder %v12616_v50, 0.0 }
0x1155   : > { %v12758_v32 = vsel %vm12642_vm8, %v12613_v17, %v15428_v19 }
0x1156   : > { %18436 = vpow2.f32 %v12696_v60  ;;  %v12698_v39 = vmul.f32 1.442695, %v12617_v40  ;;  %v20855_v5 = vpack.c.bf16 %v12758_v32, %v12757_v57  ;;  %vm12646_vm13 = vcmp.gt.f32.partialorder %v12617_v40, 0.0 }
0x1157   : > { %v12536_v8 = vpop.f32.mrb[240].mxu1 }
0x1158   : > { %v18433_v36 = vpop.eup %18432  ;;  %18438 = vpow2.f32 %v12698_v39  ;;  %v12582_v51 = vadd.f32 %v12536_v8, %v20585_v18  ;;  %v16230_v52 = vpop.f32.mrb[241].mxu1  ;;  %16285 = vmatmul.mubr.msk.bf16.gmra.mrb[224].mxu0 %vm12845_vm3, %v20855_v5  ;;  %16353 = vmatmul.mubr.msk.bf16.gmra.mrb[32].mxu1 %vm12845_vm3, %v20855_v5 }
0x1159   : > { %v15429_v62 = vadd.f32 -1.0, %v18433_v36  ;;  %v12539_v45 = vpop.f32.mrb[242].mxu1  ;;  %16288 = vmatprep.mubr.msk.bf16.mxu0 %vm18996_vm9, %v18995_v12  ;;  %16356 = vmatprep.mubr.msk.bf16.mxu1 %vm18996_vm9, %v18995_v12 }
0x115a   : > { %v18435_v47 = vpop.eup %18434  ;;  %v12618_v10 = vadd.f32 %v20680_v34, %v12582_v51  ;;  %v12583_v18 = vadd.f32 %v12539_v45, %v20587_v20  ;;  %v16231_v31 = vpop.f32.mrb[243].mxu1 }
0x115b   : > { %v15430_v53 = vadd.f32 -1.0, %v18435_v47  ;;  %v12759_v49 = vsel %vm12643_vm10, %v12614_v0, %v15429_v62 }
0x115c   : > { %v12700_v61 = vmul.f32 1.442695, %v12618_v10  ;;  %v12619_v17 = vadd.f32 %v20680_v34, %v12583_v18  ;;  %vm12647_vm14 = vcmp.gt.f32.partialorder %v12618_v10, 0.0  ;;  %v13045_v18 = vld [vmem:[#allocation2 + $0x10] sm:$0xff] }
0x115d   : > { %v12760_v15 = vsel %vm12644_vm11, %v12615_v56, %v15430_v53 }
0x115e   : > { %18440 = vpow2.f32 %v12700_v61  ;;  %v12702_v13 = vmul.f32 1.442695, %v12619_v17  ;;  %v20869_v26 = vpack.c.bf16 %v12760_v15, %v12759_v49  ;;  %vm12648_vm15 = vcmp.gt.f32.partialorder %v12619_v17, 0.0  ;;  %v13046_v61 = vld [vmem:[#allocation2 + $0x18] sm:$0xff] }
0x115f   : > { %v12544_v22 = vpop.f32.mrb[244].mxu1 }
0x1160   : > { %v18437_v2 = vpop.eup %18436  ;;  %18442 = vpow2.f32 %v12702_v13  ;;  %v12584_v24 = vadd.f32 %v12544_v22, %v20589_v43  ;;  %v16234_v28 = vpop.f32.mrb[245].mxu1  ;;  %16289 = vmatmul.mubr.msk.bf16.gmra.mrb[228].mxu0 %vm12845_vm3, %v20869_v26  ;;  %16357 = vmatmul.mubr.msk.bf16.gmra.mrb[36].mxu1 %vm12845_vm3, %v20869_v26 }
0x1161   : > { %v15431_v20 = vadd.f32 -1.0, %v18437_v2  ;;  %v12547_v42 = vpop.f32.mrb[246].mxu1  ;;  %16292 = vmatprep.mubr.msk.bf16.mxu0 %vm18996_vm9, %v18995_v12  ;;  %16360 = vmatprep.mubr.msk.bf16.mxu1 %vm18996_vm9, %v18995_v12 }
0x1162   : > { %v18439_v38 = vpop.eup %18438  ;;  %v12620_v0 = vadd.f32 %v20680_v34, %v12584_v24  ;;  %v12585_v43 = vadd.f32 %v12547_v42, %v20591_v9  ;;  %v16235_v37 = vpop.f32.mrb[247].mxu1  ;;  %v13047_v42 = vld [vmem:[#allocation2 + $0x20] sm:$0xff] }
0x1163   : > { %v15432_v44 = vadd.f32 -1.0, %v18439_v38  ;;  %v12761_v56 = vsel %vm12645_vm12, %v12616_v50, %v15431_v20 }
0x1164   : > { %v12704_v35 = vmul.f32 1.442695, %v12620_v0  ;;  %v12621_v29 = vadd.f32 %v20680_v34, %v12585_v43  ;;  %vm12649_vm1 = vcmp.gt.f32.partialorder %v12620_v0, 0.0  ;;  %v13048_v43 = vld [vmem:[#allocation2 + $0x28] sm:$0xff] }
0x1165   : > { %v12762_v63 = vsel %vm12646_vm13, %v12617_v40, %v15432_v44 }
0x1166   : > { %18444 = vpow2.f32 %v12704_v35  ;;  %v12706_v33 = vmul.f32 1.442695, %v12621_v29  ;;  %v20883_v3 = vpack.c.bf16 %v12762_v63, %v12761_v56  ;;  %vm12650_vm2 = vcmp.gt.f32.partialorder %v12621_v29, 0.0 }
0x1167   : > { %v12552_v11 = vpop.f32.mrb[248].mxu1 }
0x1168   : > { %v18441_v27 = vpop.eup %18440  ;;  %18446 = vpow2.f32 %v12706_v33  ;;  %v12586_v59 = vadd.f32 %v12552_v11, %v20593_v23  ;;  %16293 = vmatmul.mubr.msk.bf16.gmra.mrb[232].mxu0 %vm12845_vm3, %v20883_v3  ;;  %16361 = vmatmul.mubr.msk.bf16.gmra.mrb[40].mxu1 %vm12845_vm3, %v20883_v3  ;;  %v16238_v9 = vpop.f32.mrb[249].mxu1 }
0x1169   : > { %v15433_v6 = vadd.f32 -1.0, %v18441_v27  ;;  %16296 = vmatprep.mubr.msk.bf16.mxu0 %vm18996_vm9, %v18995_v12  ;;  %16364 = vmatprep.mubr.msk.bf16.mxu1 %vm18996_vm9, %v18995_v12  ;;  %v12555_v14 = vpop.f32.mrb[250].mxu1  ;;  %v13049_v9 = vld [vmem:[#allocation2 + $0x30] sm:$0xff] }
0x116a   : > { %v18443_v48 = vpop.eup %18442  ;;  %v12622_v1 = vadd.f32 %v20680_v34, %v12586_v59  ;;  %v16239_v50 = vpop.f32.mrb[251].mxu1 }
0x116b   : > { %v15434_v23 = vadd.f32 -1.0, %v18443_v48  ;;  %v12763_v16 = vsel %vm12647_vm14, %v12618_v10, %v15433_v6  ;;  %v13050_v48 = vld [vmem:[#allocation2 + $0x38] sm:$0xff] }
0x116c   : > { %v12708_v55 = vmul.f32 1.442695, %v12622_v1  ;;  %vm12651_vm4 = vcmp.gt.f32.partialorder %v12622_v1, 0.0 }
0x116d   : > { %v12764_v19 = vsel %vm12648_vm15, %v12619_v17, %v15434_v23 }
0x116e   : > { %18448 = vpow2.f32 %v12708_v55  ;;  %v20895_v60 = vpack.c.bf16 %v12764_v19, %v12763_v16 }
0x1170   : > { %v18445_v40 = vpop.eup %18444  ;;  %16297 = vmatmul.mubr.msk.bf16.gmra.mrb[236].mxu0 %vm12845_vm3, %v20895_v60  ;;  %16365 = vmatmul.mubr.msk.bf16.gmra.mrb[44].mxu1 %vm12845_vm3, %v20895_v60 }
0x1171   : > { %v15435_v57 = vadd.f32 -1.0, %v18445_v40  ;;  %16300 = vmatprep.mubr.msk.bf16.mxu0 %vm18996_vm9, %v18995_v12  ;;  %16368 = vmatprep.mubr.msk.bf16.mxu1 %vm18996_vm9, %v18995_v12 }
0x1172   : > { %v18447_v34 = vpop.eup %18446 }
0x1173   : > { %v15436_v32 = vadd.f32 -1.0, %v18447_v34  ;;  %v12765_v39 = vsel %vm12649_vm1, %v12620_v0, %v15435_v57 }
0x1175   : > { %v12766_v8 = vsel %vm12650_vm2, %v12621_v29, %v15436_v32 }
0x1176   : > { %v20905_v36 = vpack.c.bf16 %v12766_v8, %v12765_v39  ;;  %v13051_v8 = vld [vmem:[#allocation2 + $0x40] sm:$0xff] }
0x1178   : > { %v18449_v51 = vpop.eup %18448  ;;  %16301 = vmatmul.mubr.msk.bf16.gmra.mrb[240].mxu0 %vm12845_vm3, %v20905_v36  ;;  %16369 = vmatmul.mubr.msk.bf16.gmra.mrb[48].mxu1 %vm12845_vm3, %v20905_v36 }
0x1179   : > { %v15437_v52 = vadd.f32 -1.0, %v18449_v51  ;;  %16304 = vmatprep.mubr.msk.bf16.mxu0 %vm18996_vm9, %v18995_v12  ;;  %16372 = vmatprep.mubr.msk.bf16.mxu1 %vm18996_vm9, %v18995_v12 }
0x117b   : > { %v12767_v62 = vsel %vm12651_vm4, %v12622_v1, %v15437_v52  ;;  %v13052_v52 = vld [vmem:[#allocation2 + $0x48] sm:$0xff] }
0x117c   : > { %v20915_v45 = vpack.c.bf16 %v12767_v62, %v12767_v62 }
0x1180   : > { %16305 = vmatmul.mubr.msk.bf16.gmra.mrb[244].mxu0 %vm12845_vm3, %v20915_v45  ;;  %16373 = vmatmul.mubr.msk.bf16.gmra.mrb[52].mxu1 %vm12845_vm3, %v20915_v45 }
0x1181   : > { %16384 = vmatprep.mubr.msk.bf16.mxu0 %vm18996_vm9, %v18995_v12 }
0x1188   : > { %16385 = vmatmul.mubr.msk.bf16.vlgmr.msra.gmra.mrb[248].mxu0 %vm12845_vm3, %v20699_v7  ;;  %v13043_v7 = vld [vmem:[#allocation2] sm:$0xff] }
0x1189   : > { %16388 = vmatprep.mubr.msk.bf16.mxu0 %vm18996_vm9, %v18995_v12 }
0x1190   : > { %16389 = vmatmul.mubr.msk.bf16.gmra.mrb[252].mxu0 %vm12845_vm3, %v20724_v54 }
0x1191   : > { %16392 = vmatprep.mubr.msk.bf16.mxu0 %vm18996_vm9, %v18995_v12 }
0x1198   : > { %16393 = vmatmul.mubr.msk.bf16.gmra.mrb[0].mxu0 %vm12845_vm3, %v20753_v41 }
0x1199   : > { %16396 = vmatprep.mubr.msk.bf16.mxu0 %vm18996_vm9, %v18995_v12 }
0x11a0   : > { %16397 = vmatmul.mubr.msk.bf16.gmra.mrb[4].mxu0 %vm12845_vm3, %v20769_v30  ;;  %v13044_v30 = vld [vmem:[#allocation2 + $0x8] sm:$0xff] }
0x11a1   : > { %16400 = vmatprep.mubr.msk.bf16.mxu0 %vm18996_vm9, %v18995_v12 }
0x11a8   : > { %16401 = vmatmul.mubr.msk.bf16.gmra.mrb[8].mxu0 %vm12845_vm3, %v20785_v21 }
0x11a9   : > { %16404 = vmatprep.mubr.msk.bf16.mxu0 %vm18996_vm9, %v18995_v12 }
0x11b0   : > { %16405 = vmatmul.mubr.msk.bf16.gmra.mrb[12].mxu0 %vm12845_vm3, %v20799_v58 }
0x11b1   : > { %16408 = vmatprep.mubr.msk.bf16.mxu0 %vm18996_vm9, %v18995_v12 }
0x11b8   : > { %16409 = vmatmul.mubr.msk.bf16.gmra.mrb[16].mxu0 %vm12845_vm3, %v20813_v25 }
0x11b9   : > { %16412 = vmatprep.mubr.msk.bf16.mxu0 %vm18996_vm9, %v18995_v12 }
0x11c0   : > { %16413 = vmatmul.mubr.msk.bf16.gmra.mrb[20].mxu0 %vm12845_vm3, %v20827_v4 }
0x11c1   : > { %16416 = vmatprep.mubr.msk.bf16.mxu0 %vm18996_vm9, %v18995_v12 }
0x11c8   : > { %16417 = vmatmul.mubr.msk.bf16.gmra.mrb[24].mxu0 %vm12845_vm3, %v20841_v46 }
0x11c9   : > { %16420 = vmatprep.mubr.msk.bf16.mxu0 %vm18996_vm9, %v18995_v12 }
0x11d0   : > { %16421 = vmatmul.mubr.msk.bf16.gmra.mrb[28].mxu0 %vm12845_vm3, %v20855_v5 }
0x11d1   : > { %16424 = vmatprep.mubr.msk.bf16.mxu0 %vm18996_vm9, %v18995_v12 }
0x11d8   : > { %16425 = vmatmul.mubr.msk.bf16.gmra.mrb[32].mxu0 %vm12845_vm3, %v20869_v26 }
0x11d9   : > { %16428 = vmatprep.mubr.msk.bf16.mxu0 %vm18996_vm9, %v18995_v12 }
0x11e0   : > { %16429 = vmatmul.mubr.msk.bf16.gmra.mrb[36].mxu0 %vm12845_vm3, %v20883_v3 }
0x11e1   : > { %16432 = vmatprep.mubr.msk.bf16.mxu0 %vm18996_vm9, %v18995_v12 }
0x11e3   : > { %v12925_v54 = vpop.f32.mrb[188].mxu0  ;;  %v13198_v41 = vpop.f32.mrb[252].mxu1 }
0x11e4   : > { %v13072_v21 = vadd.f32 %v13043_v7, %v12925_v54  ;;  %v16250_v58 = vpop.f32.mrb[189].mxu0  ;;  %v16318_v25 = vpop.f32.mrb[253].mxu1 }
0x11e5   : > { %v12928_v4 = vpop.f32.mrb[190].mxu0  ;;  %v13201_v46 = vpop.f32.mrb[254].mxu1 }
0x11e6   : > { %13101 = vst.msk [vmem:[#allocation2] sm:$0xff] %vm1413_vm0, %v13072_v21  ;;  %v13073_v5 = vadd.f32 %v13044_v30, %v12928_v4  ;;  %v16251_v47 = vpop.f32.mrb[191].mxu0  ;;  %v16319_v10 = vpop.f32.mrb[255].mxu1 }
0x11e7   : > { %v13053_v47 = vld [vmem:[#allocation2 + $0x50] sm:$0xff] }
0x11e8   : > { %13102 = vst.msk [vmem:[#allocation2 + $0x8] sm:$0xff] %vm1413_vm0, %v13073_v5  ;;  %16433 = vmatmul.mubr.msk.bf16.gmra.mrb[40].mxu0 %vm12845_vm3, %v20895_v60 }
0x11e9   : > { %16436 = vmatprep.mubr.msk.bf16.mxu0 %vm18996_vm9, %v18995_v12 }
0x11eb   : > { %v12933_v31 = vpop.f32.mrb[192].mxu0  ;;  %v13206_v53 = vpop.f32.mrb[0].mxu1 }
0x11ec   : > { %v13074_v17 = vadd.f32 %v13045_v18, %v12933_v31  ;;  %v16254_v49 = vpop.f32.mrb[193].mxu0  ;;  %v16322_v15 = vpop.f32.mrb[1].mxu1  ;;  %v13054_v31 = vld [vmem:[#allocation2 + $0x58] sm:$0xff] }
0x11ed   : > { %v12936_v13 = vpop.f32.mrb[194].mxu0  ;;  %v13209_v26 = vpop.f32.mrb[2].mxu1 }
0x11ee   : > { %13103 = vst.msk [vmem:[#allocation2 + $0x10] sm:$0xff] %vm1413_vm0, %v13074_v17  ;;  %v13075_v22 = vadd.f32 %v13046_v61, %v12936_v13  ;;  %v16255_v2 = vpop.f32.mrb[195].mxu0  ;;  %v16323_v24 = vpop.f32.mrb[3].mxu1 }
0x11ef   : > { %v13316_v28 = vld [vmem:[#allocation2 + $0x1] sm:$0xff] }
0x11f0   : > { %v13345_v20 = vadd.f32 %v13316_v28, %v13198_v41  ;;  %13104 = vst.msk [vmem:[#allocation2 + $0x18] sm:$0xff] %vm1413_vm0, %v13075_v22  ;;  %16437 = vmatmul.mubr.msk.bf16.gmra.mrb[44].mxu0 %vm12845_vm3, %v20905_v36 }
0x11f1   : > { %16440 = vmatprep.mubr.msk.bf16.mxu0 %vm18996_vm9, %v18995_v12  ;;  %vm13129_vm9 = vcmask 253952  }
0x11f2   : > { %13374 = vst.msk [vmem:[#allocation2 + $0x1] sm:$0xff] %vm1413_vm0, %v13345_v20 }
0x11f3   : > { %v12941_v38 = vpop.f32.mrb[196].mxu0  ;;  %v13214_v0 = vpop.f32.mrb[4].mxu1 }
0x11f4   : > { %v13076_v37 = vadd.f32 %v13047_v42, %v12941_v38  ;;  %v16258_v44 = vpop.f32.mrb[197].mxu0  ;;  %v16326_v35 = vpop.f32.mrb[5].mxu1  ;;  %v13055_v42 = vld [vmem:[#allocation2 + $0x60] sm:$0xff] }
0x11f5   : > { %v13317_v29 = vld [vmem:[#allocation2 + $0x9] sm:$0xff]  ;;  %v12944_v56 = vpop.f32.mrb[198].mxu0  ;;  %v13217_v63 = vpop.f32.mrb[6].mxu1 }
0x11f6   : > { %v13346_v33 = vadd.f32 %v13317_v29, %v13201_v46  ;;  %13105 = vst.msk [vmem:[#allocation2 + $0x20] sm:$0xff] %vm1413_vm0, %v13076_v37  ;;  %v13077_v3 = vadd.f32 %v13048_v43, %v12944_v56  ;;  %v16259_v11 = vpop.f32.mrb[199].mxu0  ;;  %v16327_v27 = vpop.f32.mrb[7].mxu1  ;;  %v13056_v43 = vld [vmem:[#allocation2 + $0x68] sm:$0xff] }
0x11f7   : > { %v13318_v59 = vld [vmem:[#allocation2 + $0x11] sm:$0xff] }
0x11f8   : > { %13375 = vst.msk [vmem:[#allocation2 + $0x9] sm:$0xff] %vm1413_vm0, %v13346_v33  ;;  %v13347_v12 = vadd.f32 %v13318_v59, %v13206_v53  ;;  %13106 = vst.msk [vmem:[#allocation2 + $0x28] sm:$0xff] %vm1413_vm0, %v13077_v3  ;;  %16441 = vmatmul.mubr.msk.bf16.gmra.mrb[48].mxu0 %vm12845_vm3, %v20915_v45  ;;  %vm13825_vm3 = vcmask 7168  }
0x11fa   : > { %13376 = vst.msk [vmem:[#allocation2 + $0x11] sm:$0xff] %vm1413_vm0, %v13347_v12 }
0x11fb   : > { %v12949_v6 = vpop.f32.mrb[200].mxu0  ;;  %v13222_v14 = vpop.f32.mrb[8].mxu1 }
0x11fc   : > { %v13078_v1 = vadd.f32 %v13049_v9, %v12949_v6  ;;  %v16262_v50 = vpop.f32.mrb[201].mxu0  ;;  %v16330_v23 = vpop.f32.mrb[9].mxu1  ;;  %v13057_v9 = vld [vmem:[#allocation2 + $0x70] sm:$0xff] }
0x11fd   : > { %v13319_v55 = vld [vmem:[#allocation2 + $0x19] sm:$0xff]  ;;  %v12952_v16 = vpop.f32.mrb[202].mxu0  ;;  %v13225_v19 = vpop.f32.mrb[10].mxu1 }
0x11fe   : > { %v13348_v60 = vadd.f32 %v13319_v55, %v13209_v26  ;;  %13107 = vst.msk [vmem:[#allocation2 + $0x30] sm:$0xff] %vm1413_vm0, %v13078_v1  ;;  %v13079_v40 = vadd.f32 %v13050_v48, %v12952_v16  ;;  %v16263_v57 = vpop.f32.mrb[203].mxu0  ;;  %v16331_v34 = vpop.f32.mrb[11].mxu1  ;;  %v13058_v48 = vld [vmem:[#allocation2 + $0x78] sm:$0xff] }
0x11ff   : > { %v13320_v32 = vld [vmem:[#allocation2 + $0x21] sm:$0xff] }
0x1200   : > { %13377 = vst.msk [vmem:[#allocation2 + $0x19] sm:$0xff] %vm1413_vm0, %v13348_v60  ;;  %v13349_v39 = vadd.f32 %v13320_v32, %v13214_v0  ;;  %13108 = vst.msk [vmem:[#allocation2 + $0x38] sm:$0xff] %vm1413_vm0, %v13079_v40 }
0x1202   : > { %13378 = vst.msk [vmem:[#allocation2 + $0x21] sm:$0xff] %vm1413_vm0, %v13349_v39 }
0x1203   : > { %v12957_v36 = vpop.f32.mrb[204].mxu0  ;;  %v13230_v51 = vpop.f32.mrb[12].mxu1 }
0x1204   : > { %v13080_v62 = vadd.f32 %v13051_v8, %v12957_v36  ;;  %v16266_v45 = vpop.f32.mrb[205].mxu0  ;;  %v16334_v7 = vpop.f32.mrb[13].mxu1  ;;  %v13059_v8 = vld [vmem:[#allocation2 + $0x80] sm:$0xff] }
0x1205   : > { %v13321_v54 = vld [vmem:[#allocation2 + $0x29] sm:$0xff]  ;;  %v12960_v41 = vpop.f32.mrb[206].mxu0  ;;  %v13233_v30 = vpop.f32.mrb[14].mxu1 }
0x1206   : > { %v13350_v21 = vadd.f32 %v13321_v54, %v13217_v63  ;;  %13109 = vst.msk [vmem:[#allocation2 + $0x40] sm:$0xff] %vm1413_vm0, %v13080_v62  ;;  %v13081_v58 = vadd.f32 %v13052_v52, %v12960_v41  ;;  %v16267_v25 = vpop.f32.mrb[207].mxu0  ;;  %v16335_v4 = vpop.f32.mrb[15].mxu1  ;;  %v13060_v52 = vld [vmem:[#allocation2 + $0x88] sm:$0xff] }
0x1207   : > { %v13322_v46 = vld [vmem:[#allocation2 + $0x31] sm:$0xff] }
0x1208   : > { %13379 = vst.msk [vmem:[#allocation2 + $0x29] sm:$0xff] %vm1413_vm0, %v13350_v21  ;;  %v13351_v5 = vadd.f32 %v13322_v46, %v13222_v14  ;;  %13110 = vst.msk [vmem:[#allocation2 + $0x48] sm:$0xff] %vm1413_vm0, %v13081_v58 }
0x120a   : > { %13380 = vst.msk [vmem:[#allocation2 + $0x31] sm:$0xff] %vm1413_vm0, %v13351_v5 }
0x120b   : > { %v12965_v10 = vpop.f32.mrb[208].mxu0  ;;  %v13238_v18 = vpop.f32.mrb[16].mxu1 }
0x120c   : > { %v13082_v53 = vadd.f32 %v13053_v47, %v12965_v10  ;;  %v16270_v61 = vpop.f32.mrb[209].mxu0  ;;  %v16338_v17 = vpop.f32.mrb[17].mxu1  ;;  %v13061_v47 = vld [vmem:[#allocation2 + $0x90] sm:$0xff] }
0x120d   : > { %v13323_v49 = vld [vmem:[#allocation2 + $0x39] sm:$0xff]  ;;  %v12968_v15 = vpop.f32.mrb[210].mxu0  ;;  %v13241_v13 = vpop.f32.mrb[18].mxu1 }
0x120e   : > { %v13352_v26 = vadd.f32 %v13323_v49, %v13225_v19  ;;  %13111 = vst.msk [vmem:[#allocation2 + $0x50] sm:$0xff] %vm1413_vm0, %v13082_v53  ;;  %v13083_v22 = vadd.f32 %v13054_v31, %v12968_v15  ;;  %v16271_v2 = vpop.f32.mrb[211].mxu0  ;;  %v16339_v24 = vpop.f32.mrb[19].mxu1  ;;  %v13062_v31 = vld [vmem:[#allocation2 + $0x98] sm:$0xff] }
0x120f   : > { %v13324_v28 = vld [vmem:[#allocation2 + $0x41] sm:$0xff] }
0x1210   : > { %13381 = vst.msk [vmem:[#allocation2 + $0x39] sm:$0xff] %vm1413_vm0, %v13352_v26  ;;  %v13353_v20 = vadd.f32 %v13324_v28, %v13230_v51  ;;  %13112 = vst.msk [vmem:[#allocation2 + $0x58] sm:$0xff] %vm1413_vm0, %v13083_v22 }
0x1212   : > { %13382 = vst.msk [vmem:[#allocation2 + $0x41] sm:$0xff] %vm1413_vm0, %v13353_v20 }
0x1213   : > { %v12973_v38 = vpop.f32.mrb[212].mxu0  ;;  %v13246_v0 = vpop.f32.mrb[20].mxu1 }
0x1214   : > { %v13084_v37 = vadd.f32 %v13055_v42, %v12973_v38  ;;  %v16274_v44 = vpop.f32.mrb[213].mxu0  ;;  %v16342_v35 = vpop.f32.mrb[21].mxu1  ;;  %v13063_v42 = vld [vmem:[#allocation2 + $0xa0] sm:$0xff] }
0x1215   : > { %v13325_v29 = vld [vmem:[#allocation2 + $0x49] sm:$0xff]  ;;  %v12976_v56 = vpop.f32.mrb[214].mxu0  ;;  %v13249_v63 = vpop.f32.mrb[22].mxu1 }
0x1216   : > { %v13354_v33 = vadd.f32 %v13325_v29, %v13233_v30  ;;  %13113 = vst.msk [vmem:[#allocation2 + $0x60] sm:$0xff] %vm1413_vm0, %v13084_v37  ;;  %v13085_v3 = vadd.f32 %v13056_v43, %v12976_v56  ;;  %v16275_v11 = vpop.f32.mrb[215].mxu0  ;;  %v16343_v27 = vpop.f32.mrb[23].mxu1  ;;  %v13064_v43 = vld [vmem:[#allocation2 + $0xa8] sm:$0xff] }
0x1217   : > { %v13326_v59 = vld [vmem:[#allocation2 + $0x51] sm:$0xff] }
0x1218   : > { %13383 = vst.msk [vmem:[#allocation2 + $0x49] sm:$0xff] %vm1413_vm0, %v13354_v33  ;;  %v13355_v12 = vadd.f32 %v13326_v59, %v13238_v18  ;;  %13114 = vst.msk [vmem:[#allocation2 + $0x68] sm:$0xff] %vm1413_vm0, %v13085_v3 }
0x121a   : > { %13384 = vst.msk [vmem:[#allocation2 + $0x51] sm:$0xff] %vm1413_vm0, %v13355_v12 }
0x121b   : > { %v12981_v6 = vpop.f32.mrb[216].mxu0  ;;  %v13254_v14 = vpop.f32.mrb[24].mxu1 }
0x121c   : > { %v13086_v1 = vadd.f32 %v13057_v9, %v12981_v6  ;;  %v16278_v50 = vpop.f32.mrb[217].mxu0  ;;  %v16346_v23 = vpop.f32.mrb[25].mxu1  ;;  %v13065_v9 = vld [vmem:[#allocation2 + $0xb0] sm:$0xff] }
0x121d   : > { %v13327_v55 = vld [vmem:[#allocation2 + $0x59] sm:$0xff]  ;;  %v12984_v16 = vpop.f32.mrb[218].mxu0  ;;  %v13257_v19 = vpop.f32.mrb[26].mxu1 }
0x121e   : > { %v13356_v60 = vadd.f32 %v13327_v55, %v13241_v13  ;;  %13115 = vst.msk [vmem:[#allocation2 + $0x70] sm:$0xff] %vm1413_vm0, %v13086_v1  ;;  %v13087_v40 = vadd.f32 %v13058_v48, %v12984_v16  ;;  %v16279_v57 = vpop.f32.mrb[219].mxu0  ;;  %v16347_v34 = vpop.f32.mrb[27].mxu1  ;;  %v13066_v48 = vld [vmem:[#allocation2 + $0xb8] sm:$0xff] }
0x121f   : > { %v13328_v32 = vld [vmem:[#allocation2 + $0x61] sm:$0xff] }
0x1220   : > { %13385 = vst.msk [vmem:[#allocation2 + $0x59] sm:$0xff] %vm1413_vm0, %v13356_v60  ;;  %v13357_v39 = vadd.f32 %v13328_v32, %v13246_v0  ;;  %13116 = vst.msk [vmem:[#allocation2 + $0x78] sm:$0xff] %vm1413_vm0, %v13087_v40 }
0x1222   : > { %13386 = vst.msk [vmem:[#allocation2 + $0x61] sm:$0xff] %vm1413_vm0, %v13357_v39 }
0x1223   : > { %v12989_v36 = vpop.f32.mrb[220].mxu0  ;;  %v13262_v51 = vpop.f32.mrb[28].mxu1 }
0x1224   : > { %v13088_v62 = vadd.f32 %v13059_v8, %v12989_v36  ;;  %v16282_v45 = vpop.f32.mrb[221].mxu0  ;;  %v16350_v7 = vpop.f32.mrb[29].mxu1  ;;  %v13067_v8 = vld [vmem:[#allocation2 + $0xc0] sm:$0xff] }
0x1225   : > { %v13329_v54 = vld [vmem:[#allocation2 + $0x69] sm:$0xff]  ;;  %v12992_v41 = vpop.f32.mrb[222].mxu0  ;;  %v13265_v30 = vpop.f32.mrb[30].mxu1 }
0x1226   : > { %v13358_v21 = vadd.f32 %v13329_v54, %v13249_v63  ;;  %13117 = vst.msk [vmem:[#allocation2 + $0x80] sm:$0xff] %vm1413_vm0, %v13088_v62  ;;  %v13089_v58 = vadd.f32 %v13060_v52, %v12992_v41  ;;  %v16283_v25 = vpop.f32.mrb[223].mxu0  ;;  %v16351_v4 = vpop.f32.mrb[31].mxu1  ;;  %v13068_v52 = vld [vmem:[#allocation2 + $0xc8] sm:$0xff] }
0x1227   : > { %v13330_v46 = vld [vmem:[#allocation2 + $0x71] sm:$0xff] }
0x1228   : > { %13387 = vst.msk [vmem:[#allocation2 + $0x69] sm:$0xff] %vm1413_vm0, %v13358_v21  ;;  %v13359_v5 = vadd.f32 %v13330_v46, %v13254_v14  ;;  %13118 = vst.msk [vmem:[#allocation2 + $0x88] sm:$0xff] %vm1413_vm0, %v13089_v58 }
0x122a   : > { %13388 = vst.msk [vmem:[#allocation2 + $0x71] sm:$0xff] %vm1413_vm0, %v13359_v5 }
0x122b   : > { %v12997_v10 = vpop.f32.mrb[224].mxu0  ;;  %v13270_v18 = vpop.f32.mrb[32].mxu1 }
0x122c   : > { %v13090_v53 = vadd.f32 %v13061_v47, %v12997_v10  ;;  %v16286_v61 = vpop.f32.mrb[225].mxu0  ;;  %v16354_v17 = vpop.f32.mrb[33].mxu1  ;;  %v13069_v47 = vld [vmem:[#allocation2 + $0xd0] sm:$0xff] }
0x122d   : > { %v13331_v49 = vld [vmem:[#allocation2 + $0x79] sm:$0xff]  ;;  %v13000_v15 = vpop.f32.mrb[226].mxu0  ;;  %v13273_v13 = vpop.f32.mrb[34].mxu1 }
0x122e   : > { %v13360_v26 = vadd.f32 %v13331_v49, %v13257_v19  ;;  %13119 = vst.msk [vmem:[#allocation2 + $0x90] sm:$0xff] %vm1413_vm0, %v13090_v53  ;;  %v13091_v22 = vadd.f32 %v13062_v31, %v13000_v15  ;;  %v16287_v2 = vpop.f32.mrb[227].mxu0  ;;  %v16355_v24 = vpop.f32.mrb[35].mxu1  ;;  %v13070_v31 = vld [vmem:[#allocation2 + $0xd8] sm:$0xff] }
0x122f   : > { %v13332_v28 = vld [vmem:[#allocation2 + $0x81] sm:$0xff] }
0x1230   : > { %13389 = vst.msk [vmem:[#allocation2 + $0x79] sm:$0xff] %vm1413_vm0, %v13360_v26  ;;  %v13361_v20 = vadd.f32 %v13332_v28, %v13262_v51  ;;  %13120 = vst.msk [vmem:[#allocation2 + $0x98] sm:$0xff] %vm1413_vm0, %v13091_v22 }
0x1232   : > { %13390 = vst.msk [vmem:[#allocation2 + $0x81] sm:$0xff] %vm1413_vm0, %v13361_v20 }
0x1233   : > { %v13005_v38 = vpop.f32.mrb[228].mxu0  ;;  %v13278_v0 = vpop.f32.mrb[36].mxu1 }
0x1234   : > { %v13092_v37 = vadd.f32 %v13063_v42, %v13005_v38  ;;  %v16290_v44 = vpop.f32.mrb[229].mxu0  ;;  %v16358_v35 = vpop.f32.mrb[37].mxu1  ;;  %v13071_v42 = vld [vmem:[#allocation2 + $0xe0] sm:$0x1]  ;;  %v13344_v38 = vld [vmem:[#allocation2 + $0xe1] sm:$0x1] }
0x1235   : > { %v13333_v29 = vld [vmem:[#allocation2 + $0x89] sm:$0xff]  ;;  %v13008_v56 = vpop.f32.mrb[230].mxu0  ;;  %v13281_v63 = vpop.f32.mrb[38].mxu1 }
0x1236   : > { %v13362_v33 = vadd.f32 %v13333_v29, %v13265_v30  ;;  %13121 = vst.msk [vmem:[#allocation2 + $0xa0] sm:$0xff] %vm1413_vm0, %v13092_v37  ;;  %v13093_v3 = vadd.f32 %v13064_v43, %v13008_v56  ;;  %v16291_v11 = vpop.f32.mrb[231].mxu0  ;;  %v16359_v27 = vpop.f32.mrb[39].mxu1 }
0x1237   : > { %v13334_v59 = vld [vmem:[#allocation2 + $0x91] sm:$0xff] }
0x1238   : > { %13391 = vst.msk [vmem:[#allocation2 + $0x89] sm:$0xff] %vm1413_vm0, %v13362_v33  ;;  %v13363_v12 = vadd.f32 %v13334_v59, %v13270_v18  ;;  %13122 = vst.msk [vmem:[#allocation2 + $0xa8] sm:$0xff] %vm1413_vm0, %v13093_v3 }
0x123a   : > { %13392 = vst.msk [vmem:[#allocation2 + $0x91] sm:$0xff] %vm1413_vm0, %v13363_v12 }
0x123b   : > { %v13013_v6 = vpop.f32.mrb[232].mxu0  ;;  %v13286_v14 = vpop.f32.mrb[40].mxu1 }
0x123c   : > { %v13094_v1 = vadd.f32 %v13065_v9, %v13013_v6  ;;  %v16294_v50 = vpop.f32.mrb[233].mxu0  ;;  %v16362_v23 = vpop.f32.mrb[41].mxu1  ;;  %v13588_v6 = vld [vmem:[#allocation2 + $0x2] sm:$0xff] }
0x123d   : > { %v13335_v55 = vld [vmem:[#allocation2 + $0x99] sm:$0xff]  ;;  %v13016_v16 = vpop.f32.mrb[234].mxu0  ;;  %v13289_v19 = vpop.f32.mrb[42].mxu1  ;;  %v13589_v23 = vld [vmem:[#allocation2 + $0xa] sm:$0xff] }
0x123e   : > { %v13364_v60 = vadd.f32 %v13335_v55, %v13273_v13  ;;  %13123 = vst.msk [vmem:[#allocation2 + $0xb0] sm:$0xff] %vm1413_vm0, %v13094_v1  ;;  %v13095_v40 = vadd.f32 %v13066_v48, %v13016_v16  ;;  %v16295_v57 = vpop.f32.mrb[235].mxu0  ;;  %v16363_v34 = vpop.f32.mrb[43].mxu1 }
0x123f   : > { %v13336_v32 = vld [vmem:[#allocation2 + $0xa1] sm:$0xff]  ;;  %v21042_v57 = vld [vmem:[#allocation23] ss:$0 sm:$0xff] }
0x1240   : > { %13393 = vst.msk [vmem:[#allocation2 + $0x99] sm:$0xff] %vm1413_vm0, %v13364_v60  ;;  %v13365_v39 = vadd.f32 %v13336_v32, %v13278_v0  ;;  %13124 = vst.msk [vmem:[#allocation2 + $0xb8] sm:$0xff] %vm1413_vm0, %v13095_v40  ;;  %v13590_v40 = vld [vmem:[#allocation2 + $0x12] sm:$0xff] }
0x1242   : > { %13394 = vst.msk [vmem:[#allocation2 + $0xa1] sm:$0xff] %vm1413_vm0, %v13365_v39 }
0x1243   : > { %v13021_v36 = vpop.f32.mrb[236].mxu0  ;;  %v13294_v51 = vpop.f32.mrb[44].mxu1 }
0x1244   : > { %v13096_v62 = vadd.f32 %v13067_v8, %v13021_v36  ;;  %v16298_v45 = vpop.f32.mrb[237].mxu0  ;;  %v16366_v7 = vpop.f32.mrb[45].mxu1  ;;  %v13591_v8 = vld [vmem:[#allocation2 + $0x1a] sm:$0xff] }
0x1245   : > { %v13337_v54 = vld [vmem:[#allocation2 + $0xa9] sm:$0xff]  ;;  %v13024_v41 = vpop.f32.mrb[238].mxu0  ;;  %v13297_v30 = vpop.f32.mrb[46].mxu1 }
0x1246   : > { %v13366_v21 = vadd.f32 %v13337_v54, %v13281_v63  ;;  %13125 = vst.msk [vmem:[#allocation2 + $0xc0] sm:$0xff] %vm1413_vm0, %v13096_v62  ;;  %v13097_v58 = vadd.f32 %v13068_v52, %v13024_v41  ;;  %v16299_v25 = vpop.f32.mrb[239].mxu0  ;;  %v16367_v4 = vpop.f32.mrb[47].mxu1 }
0x1247   : > { %v13338_v46 = vld [vmem:[#allocation2 + $0xb1] sm:$0xff] }
0x1248   : > { %13395 = vst.msk [vmem:[#allocation2 + $0xa9] sm:$0xff] %vm1413_vm0, %v13366_v21  ;;  %v13367_v5 = vadd.f32 %v13338_v46, %v13286_v14  ;;  %13126 = vst.msk [vmem:[#allocation2 + $0xc8] sm:$0xff] %vm1413_vm0, %v13097_v58  ;;  %v13593_v46 = vld [vmem:[#allocation2 + $0x2a] sm:$0xff] }
0x124a   : > { %13396 = vst.msk [vmem:[#allocation2 + $0xb1] sm:$0xff] %vm1413_vm0, %v13367_v5 }
0x124b   : > { %v13029_v10 = vpop.f32.mrb[240].mxu0  ;;  %v13302_v18 = vpop.f32.mrb[48].mxu1 }
0x124c   : > { %v13098_v53 = vadd.f32 %v13069_v47, %v13029_v10  ;;  %v16302_v61 = vpop.f32.mrb[241].mxu0  ;;  %v16370_v17 = vpop.f32.mrb[49].mxu1 }
0x124d   : > { %v13339_v49 = vld [vmem:[#allocation2 + $0xb9] sm:$0xff]  ;;  %v13032_v15 = vpop.f32.mrb[242].mxu0  ;;  %v13305_v13 = vpop.f32.mrb[50].mxu1 }
0x124e   : > { %v13368_v26 = vadd.f32 %v13339_v49, %v13289_v19  ;;  %13127 = vst.msk [vmem:[#allocation2 + $0xd0] sm:$0xff] %vm1413_vm0, %v13098_v53  ;;  %v13099_v22 = vadd.f32 %v13070_v31, %v13032_v15  ;;  %v16303_v2 = vpop.f32.mrb[243].mxu0  ;;  %v16371_v24 = vpop.f32.mrb[51].mxu1  ;;  %v13594_v49 = vld [vmem:[#allocation2 + $0x32] sm:$0xff] }
0x124f   : > { %v13340_v28 = vld [vmem:[#allocation2 + $0xc1] sm:$0xff] }
0x1250   : > { %13397 = vst.msk [vmem:[#allocation2 + $0xb9] sm:$0xff] %vm1413_vm0, %v13368_v26  ;;  %v13369_v20 = vadd.f32 %v13340_v28, %v13294_v51  ;;  %13128 = vst.msk [vmem:[#allocation2 + $0xd8] sm:$0xff] %vm1413_vm0, %v13099_v22  ;;  %v13595_v2 = vld [vmem:[#allocation2 + $0x3a] sm:$0xff] }
0x1252   : > { %13398 = vst.msk [vmem:[#allocation2 + $0xc1] sm:$0xff] %vm1413_vm0, %v13369_v20 }
0x1253   : > { %v13037_v0 = vpop.f32.mrb[244].mxu0  ;;  %v13310_v43 = vpop.f32.mrb[52].mxu1 }
0x1254   : > { %v13100_v37 = vadd.f32 %v13071_v42, %v13037_v0  ;;  %v13373_v44 = vadd.f32 %v13344_v38, %v13310_v43  ;;  %v16306_v35 = vpop.f32.mrb[245].mxu0  ;;  %v16374_v29 = vpop.f32.mrb[53].mxu1 }
0x1255   : > { %v13341_v56 = vld [vmem:[#allocation2 + $0xc9] sm:$0xff]  ;;  %v13040_v63 = vpop.f32.mrb[246].mxu0  ;;  %v13313_v33 = vpop.f32.mrb[54].mxu1 }
0x1256   : > { %v13370_v3 = vadd.f32 %v13341_v56, %v13297_v30  ;;  %13130 = vst.msk [vmem:[#allocation2 + $0xe0] sm:$0x1] %vm13129_vm9, %v13100_v37  ;;  %13402 = vst.msk [vmem:[#allocation2 + $0xe1] sm:$0x1] %vm13129_vm9, %v13373_v44  ;;  %v16307_v11 = vpop.f32.mrb[247].mxu0  ;;  %v16375_v27 = vpop.f32.mrb[55].mxu1 }
0x1257   : > { %v13342_v59 = vld [vmem:[#allocation2 + $0xd1] sm:$0xff]  ;;  %v13592_v30 = vld [vmem:[#allocation2 + $0x22] sm:$0xff] }
0x1258   : > { %13399 = vst.msk [vmem:[#allocation2 + $0xc9] sm:$0xff] %vm1413_vm0, %v13370_v3  ;;  %v13371_v12 = vadd.f32 %v13342_v59, %v13302_v18  ;;  %v13596_v35 = vld [vmem:[#allocation2 + $0x42] sm:$0xff]  ;;  %v13597_v33 = vld [vmem:[#allocation2 + $0x4a] sm:$0xff] }
0x125a   : > { %13400 = vst.msk [vmem:[#allocation2 + $0xd1] sm:$0xff] %vm1413_vm0, %v13371_v12 }
0x125b   : > { %v13470_v9 = vpop.f32.mrb[248].mxu0 }
0x125c   : > { %v13617_v14 = vadd.f32 %v13588_v6, %v13470_v9  ;;  %v16386_v48 = vpop.f32.mrb[249].mxu0 }
0x125d   : > { %v13343_v1 = vld [vmem:[#allocation2 + $0xd9] sm:$0xff]  ;;  %v13473_v50 = vpop.f32.mrb[250].mxu0 }
0x125e   : > { %v13372_v55 = vadd.f32 %v13343_v1, %v13305_v13  ;;  %13646 = vst.msk [vmem:[#allocation2 + $0x2] sm:$0xff] %vm1413_vm0, %v13617_v14  ;;  %v13618_v16 = vadd.f32 %v13589_v23, %v13473_v50  ;;  %v16387_v19 = vpop.f32.mrb[251].mxu0  ;;  %v13598_v1 = vld [vmem:[#allocation2 + $0x52] sm:$0xff] }
0x1260   : > { %13401 = vst.msk [vmem:[#allocation2 + $0xd9] sm:$0xff] %vm1413_vm0, %v13372_v55  ;;  %13647 = vst.msk [vmem:[#allocation2 + $0xa] sm:$0xff] %vm1413_vm0, %v13618_v16  ;;  %v13599_v16 = vld [vmem:[#allocation2 + $0x5a] sm:$0xff] }
0x1263   : > { %v13478_v60 = vpop.f32.mrb[252].mxu0 }
0x1264   : > { %v13619_v34 = vadd.f32 %v13590_v40, %v13478_v60  ;;  %v16390_v32 = vpop.f32.mrb[253].mxu0 }
0x1265   : > { %v13481_v39 = vpop.f32.mrb[254].mxu0  ;;  %v13675_v36 = vld [vmem:[#allocation2 + $0x1] sm:$0xff] }
0x1266   : > { %13648 = vst.msk [vmem:[#allocation2 + $0x12] sm:$0xff] %vm1413_vm0, %v13619_v34  ;;  %v13620_v51 = vadd.f32 %v13591_v8, %v13481_v39  ;;  %v16391_v52 = vpop.f32.mrb[255].mxu0  ;;  %v21046_v62 = vadd.f32 %v21042_v57, %v13675_v36  ;;  %v13601_v8 = vld [vmem:[#allocation2 + $0x6a] sm:$0xff] }
0x1267   : > { %v13676_v45 = vld [vmem:[#allocation2 + $0x9] sm:$0xff] }
0x1268   : > { %13649 = vst.msk [vmem:[#allocation2 + $0x1a] sm:$0xff] %vm1413_vm0, %v13620_v51  ;;  %v13698_v7 = vsel %vm1413_vm0, %v21046_v62, -inf  ;;  %v21052_v54 = vadd.f32 %v21042_v57, %v13676_v45  ;;  %v13602_v45 = vld [vmem:[#allocation2 + $0x72] sm:$0xff] }
0x1269   : > { %13699 = vmax.xlane.f32.xlu0 %v13698_v7 }
0x126a   : > { %v13701_v25 = vsel %vm1413_vm0, %v21052_v54, -inf }
0x126b   : > { %v13486_v41 = vpop.f32.mrb[0].mxu0 }
0x126c   : > { %v13621_v21 = vadd.f32 %v13592_v30, %v13486_v41  ;;  %v16394_v58 = vpop.f32.mrb[1].mxu0 }
0x126d   : > { %v13489_v4 = vpop.f32.mrb[2].mxu0  ;;  %13702 = vmax.xlane.f32.xlu0 %v13701_v25  ;;  %v13677_v5 = vld [vmem:[#allocation2 + $0x11] sm:$0xff] }
0x126e   : > { %13650 = vst.msk [vmem:[#allocation2 + $0x22] sm:$0xff] %vm1413_vm0, %v13621_v21  ;;  %v13622_v47 = vadd.f32 %v13593_v46, %v13489_v4  ;;  %v16395_v10 = vpop.f32.mrb[3].mxu0  ;;  %v21058_v18 = vadd.f32 %v21042_v57, %v13677_v5  ;;  %v13603_v21 = vld [vmem:[#allocation2 + $0x7a] sm:$0xff]  ;;  %v13604_v46 = vld [vmem:[#allocation2 + $0x82] sm:$0xff] }
0x126f   : > { %v13678_v31 = vld [vmem:[#allocation2 + $0x19] sm:$0xff] }
0x1270   : > { %13651 = vst.msk [vmem:[#allocation2 + $0x2a] sm:$0xff] %vm1413_vm0, %v13622_v47  ;;  %v13704_v53 = vsel %vm1413_vm0, %v21058_v18, -inf  ;;  %v21064_v61 = vadd.f32 %v21042_v57, %v13678_v31  ;;  %v13605_v31 = vld [vmem:[#allocation2 + $0x8a] sm:$0xff] }
0x1271   : > { %13705 = vmax.xlane.f32.xlu1 %v13704_v53 }
0x1272   : > { %v13707_v26 = vsel %vm1413_vm0, %v21064_v61, -inf }
0x1273   : > { %v13494_v17 = vpop.f32.mrb[4].mxu0 }
0x1274   : > { %v13623_v15 = vadd.f32 %v13594_v49, %v13494_v17  ;;  %v16398_v13 = vpop.f32.mrb[5].mxu0 }
0x1275   : > { %v13497_v22 = vpop.f32.mrb[6].mxu0  ;;  %13708 = vmax.xlane.f32.xlu1 %v13707_v26  ;;  %v13679_v24 = vld [vmem:[#allocation2 + $0x21] sm:$0xff] }
0x1276   : > { %13652 = vst.msk [vmem:[#allocation2 + $0x32] sm:$0xff] %vm1413_vm0, %v13623_v15  ;;  %v13624_v28 = vadd.f32 %v13595_v2, %v13497_v22  ;;  %v16399_v20 = vpop.f32.mrb[7].mxu0  ;;  %v21070_v42 = vadd.f32 %v21042_v57, %v13679_v24  ;;  %v13606_v15 = vld [vmem:[#allocation2 + $0x92] sm:$0xff]  ;;  %v13607_v2 = vld [vmem:[#allocation2 + $0x9a] sm:$0xff] }
0x1277   : > { %v13680_v38 = vld [vmem:[#allocation2 + $0x29] sm:$0xff] }
0x1278   : > { %13653 = vst.msk [vmem:[#allocation2 + $0x3a] sm:$0xff] %vm1413_vm0, %v13624_v28  ;;  %v13710_v0 = vsel %vm1413_vm0, %v21070_v42, -inf  ;;  %v21076_v43 = vadd.f32 %v21042_v57, %v13680_v38  ;;  %v13608_v38 = vld [vmem:[#allocation2 + $0xa2] sm:$0xff] }
0x1279   : > { %13711 = vmax.xlane.f32.xlu0 %v13710_v0 }
0x127a   : > { %v13713_v37 = vsel %vm1413_vm0, %v21076_v43, -inf }
0x127b   : > { %v13502_v44 = vpop.f32.mrb[8].mxu0  ;;  %13714 = vmax.xlane.f32.xlu1 %v13713_v37 }
0x127c   : > { %v13625_v29 = vadd.f32 %v13596_v35, %v13502_v44  ;;  %v16402_v56 = vpop.f32.mrb[9].mxu0  ;;  %v13609_v35 = vld [vmem:[#allocation2 + $0xaa] sm:$0xff] }
0x127d   : > { %v13505_v63 = vpop.f32.mrb[10].mxu0  ;;  %v13681_v3 = vld [vmem:[#allocation2 + $0x31] sm:$0xff] }
0x127e   : > { %13654 = vst.msk [vmem:[#allocation2 + $0x42] sm:$0xff] %vm1413_vm0, %v13625_v29  ;;  %v13626_v11 = vadd.f32 %v13597_v33, %v13505_v63  ;;  %v16403_v27 = vpop.f32.mrb[11].mxu0  ;;  %v21082_v59 = vadd.f32 %v21042_v57, %v13681_v3  ;;  %v13610_v33 = vld [vmem:[#allocation2 + $0xb2] sm:$0xff] }
0x127f   : > { %v13682_v12 = vld [vmem:[#allocation2 + $0x39] sm:$0xff] }
0x1280   : > { %13655 = vst.msk [vmem:[#allocation2 + $0x4a] sm:$0xff] %vm1413_vm0, %v13626_v11  ;;  %v13716_v9 = vsel %vm1413_vm0, %v21082_v59, -inf  ;;  %v21088_v6 = vadd.f32 %v21042_v57, %v13682_v12  ;;  %v13600_v57 = vld [vmem:[#allocation2 + $0x62] sm:$0xff]  ;;  %v13611_v12 = vld [vmem:[#allocation2 + $0xba] sm:$0xff] }
0x1281   : > { %13717 = vmax.xlane.f32.xlu0 %v13716_v9 }
0x1282   : > { %v13719_v14 = vsel %vm1413_vm0, %v21088_v6, -inf }
0x1283   : > { %v13510_v48 = vpop.f32.mrb[12].mxu0  ;;  %13720 = vmax.xlane.f32.xlu1 %v13719_v14 }
0x1284   : > { %v13627_v50 = vadd.f32 %v13598_v1, %v13510_v48  ;;  %v16406_v23 = vpop.f32.mrb[13].mxu0  ;;  %v13612_v1 = vld [vmem:[#allocation2 + $0xc2] sm:$0xff] }
0x1285   : > { %v13513_v55 = vpop.f32.mrb[14].mxu0 }
0x1286   : > { %13656 = vst.msk [vmem:[#allocation2 + $0x52] sm:$0xff] %vm1413_vm0, %v13627_v50  ;;  %v13628_v19 = vadd.f32 %v13599_v16, %v13513_v55  ;;  %v16407_v60 = vpop.f32.mrb[15].mxu0  ;;  %v13613_v16 = vld [vmem:[#allocation2 + $0xca] sm:$0xff] }
0x1288   : > { %13657 = vst.msk [vmem:[#allocation2 + $0x5a] sm:$0xff] %vm1413_vm0, %v13628_v19 }
0x128b   : > { %v13518_v40 = vpop.f32.mrb[16].mxu0 }
0x128c   : > { %v13629_v34 = vadd.f32 %v13600_v57, %v13518_v40  ;;  %v16410_v32 = vpop.f32.mrb[17].mxu0  ;;  %v13614_v57 = vld [vmem:[#allocation2 + $0xd2] sm:$0xff] }
0x128d   : > { %v13521_v39 = vpop.f32.mrb[18].mxu0 }
0x128e   : > { %13658 = vst.msk [vmem:[#allocation2 + $0x62] sm:$0xff] %vm1413_vm0, %v13629_v34  ;;  %v13630_v36 = vadd.f32 %v13601_v8, %v13521_v39  ;;  %v16411_v51 = vpop.f32.mrb[19].mxu0  ;;  %v13615_v8 = vld [vmem:[#allocation2 + $0xda] sm:$0xff] }
0x1290   : > { %13659 = vst.msk [vmem:[#allocation2 + $0x6a] sm:$0xff] %vm1413_vm0, %v13630_v36 }
0x1293   : > { %v13526_v52 = vpop.f32.mrb[20].mxu0 }
0x1294   : > { %v13631_v7 = vadd.f32 %v13602_v45, %v13526_v52  ;;  %v16414_v41 = vpop.f32.mrb[21].mxu0  ;;  %v13616_v52 = vld [vmem:[#allocation2 + $0xe2] sm:$0x1] }
0x1295   : > { %v13529_v30 = vpop.f32.mrb[22].mxu0 }
0x1296   : > { %13660 = vst.msk [vmem:[#allocation2 + $0x72] sm:$0xff] %vm1413_vm0, %v13631_v7  ;;  %v13632_v58 = vadd.f32 %v13603_v21, %v13529_v30  ;;  %v16415_v25 = vpop.f32.mrb[23].mxu0 }
0x1298   : > { %13661 = vst.msk [vmem:[#allocation2 + $0x7a] sm:$0xff] %vm1413_vm0, %v13632_v58 }
0x129b   : > { %v13534_v4 = vpop.f32.mrb[24].mxu0 }
0x129c   : > { %v13633_v5 = vadd.f32 %v13604_v46, %v13534_v4  ;;  %v16418_v47 = vpop.f32.mrb[25].mxu0 }
0x129d   : > { %v13537_v10 = vpop.f32.mrb[26].mxu0 }
0x129e   : > { %13662 = vst.msk [vmem:[#allocation2 + $0x82] sm:$0xff] %vm1413_vm0, %v13633_v5  ;;  %v13634_v53 = vadd.f32 %v13605_v31, %v13537_v10  ;;  %v16419_v17 = vpop.f32.mrb[27].mxu0 }
0x12a0   : > { %13663 = vst.msk [vmem:[#allocation2 + $0x8a] sm:$0xff] %vm1413_vm0, %v13634_v53 }
0x12a3   : > { %v13542_v49 = vpop.f32.mrb[28].mxu0 }
0x12a4   : > { %v13635_v13 = vadd.f32 %v13606_v15, %v13542_v49  ;;  %v16422_v26 = vpop.f32.mrb[29].mxu0 }
0x12a5   : > { %v13545_v22 = vpop.f32.mrb[30].mxu0 }
0x12a6   : > { %13664 = vst.msk [vmem:[#allocation2 + $0x92] sm:$0xff] %vm1413_vm0, %v13635_v13  ;;  %v13636_v24 = vadd.f32 %v13607_v2, %v13545_v22  ;;  %v16423_v28 = vpop.f32.mrb[31].mxu0 }
0x12a8   : > { %13665 = vst.msk [vmem:[#allocation2 + $0x9a] sm:$0xff] %vm1413_vm0, %v13636_v24 }
0x12ab   : > { %v13550_v20 = vpop.f32.mrb[32].mxu0 }
0x12ac   : > { %v13637_v0 = vadd.f32 %v13608_v38, %v13550_v20  ;;  %v16426_v37 = vpop.f32.mrb[33].mxu0 }
0x12ad   : > { %v13553_v44 = vpop.f32.mrb[34].mxu0 }
0x12ae   : > { %13666 = vst.msk [vmem:[#allocation2 + $0xa2] sm:$0xff] %vm1413_vm0, %v13637_v0  ;;  %v13638_v29 = vadd.f32 %v13609_v35, %v13553_v44  ;;  %v16427_v56 = vpop.f32.mrb[35].mxu0 }
0x12b0   : > { %13667 = vst.msk [vmem:[#allocation2 + $0xaa] sm:$0xff] %vm1413_vm0, %v13638_v29 }
0x12b3   : > { %v13558_v63 = vpop.f32.mrb[36].mxu0 }
0x12b4   : > { %v13639_v3 = vadd.f32 %v13610_v33, %v13558_v63  ;;  %v16430_v11 = vpop.f32.mrb[37].mxu0 }
0x12b5   : > { %v13561_v27 = vpop.f32.mrb[38].mxu0 }
0x12b6   : > { %13668 = vst.msk [vmem:[#allocation2 + $0xb2] sm:$0xff] %vm1413_vm0, %v13639_v3  ;;  %v13640_v9 = vadd.f32 %v13611_v12, %v13561_v27  ;;  %v16431_v14 = vpop.f32.mrb[39].mxu0 }
0x12b8   : > { %13669 = vst.msk [vmem:[#allocation2 + $0xba] sm:$0xff] %vm1413_vm0, %v13640_v9 }
0x12bb   : > { %v13566_v48 = vpop.f32.mrb[40].mxu0 }
0x12bc   : > { %v13641_v50 = vadd.f32 %v13612_v1, %v13566_v48  ;;  %v16434_v23 = vpop.f32.mrb[41].mxu0 }
0x12bd   : > { %v13569_v55 = vpop.f32.mrb[42].mxu0 }
0x12be   : > { %13670 = vst.msk [vmem:[#allocation2 + $0xc2] sm:$0xff] %vm1413_vm0, %v13641_v50  ;;  %v13642_v19 = vadd.f32 %v13613_v16, %v13569_v55  ;;  %v16435_v60 = vpop.f32.mrb[43].mxu0  ;;  %v15512_v50 = vld [vmem:[#allocation25] ss:$0 sm:$0xff] }
0x12c0   : > { %13671 = vst.msk [vmem:[#allocation2 + $0xca] sm:$0xff] %vm1413_vm0, %v13642_v19 }
0x12c3   : > { %v13574_v40 = vpop.f32.mrb[44].mxu0 }
0x12c4   : > { %v13643_v34 = vadd.f32 %v13614_v57, %v13574_v40  ;;  %v16438_v32 = vpop.f32.mrb[45].mxu0 }
0x12c5   : > { %v13577_v39 = vpop.f32.mrb[46].mxu0 }
0x12c6   : > { %13672 = vst.msk [vmem:[#allocation2 + $0xd2] sm:$0xff] %vm1413_vm0, %v13643_v34  ;;  %v13644_v36 = vadd.f32 %v13615_v8, %v13577_v39  ;;  %v16439_v51 = vpop.f32.mrb[47].mxu0 }
0x12c8   : > { %13673 = vst.msk [vmem:[#allocation2 + $0xda] sm:$0xff] %vm1413_vm0, %v13644_v36 }
0x12cb   : > { %v13582_v45 = vpop.f32.mrb[48].mxu0 }
0x12cc   : > { %v13645_v7 = vadd.f32 %v13616_v52, %v13582_v45  ;;  %v16442_v41 = vpop.f32.mrb[49].mxu0 }
0x12cd   : > { %v13585_v30 = vpop.f32.mrb[50].mxu0 }
0x12ce   : > { %13674 = vst.msk [vmem:[#allocation2 + $0xe2] sm:$0x1] %vm13129_vm9, %v13645_v7  ;;  %v16443_v21 = vpop.f32.mrb[51].mxu0 }
0x12f6   : > { %v13700_v58 = vpop.xlane.xlu0 %13699 }
0x12f7   : > { %v13722_v25 = vsub.f32 %v21046_v62, %v13700_v58 }
0x12f9   : > { %v13730_v4 = vmul.f32 1.442695, %v13722_v25 }
0x12fa   : > { %v13703_v46 = vpop.xlane.xlu0 %13702 }
0x12fb   : > { %18450 = vpow2.f32 %v13730_v4  ;;  %v13723_v5 = vsub.f32 %v21052_v54, %v13703_v46 }
0x12fd   : > { %v13732_v47 = vmul.f32 1.442695, %v13723_v5 }
0x12fe   : > { %v13706_v10 = vpop.xlane.xlu1 %13705 }
0x12ff   : > { %18452 = vpow2.f32 %v13732_v47  ;;  %v13724_v31 = vsub.f32 %v21058_v18, %v13706_v10 }
0x1301   : > { %v13734_v53 = vmul.f32 1.442695, %v13724_v31 }
0x1302   : > { %v13709_v17 = vpop.xlane.xlu1 %13708 }
0x1303   : > { %18454 = vpow2.f32 %v13734_v53  ;;  %v13725_v49 = vsub.f32 %v21064_v61, %v13709_v17 }
0x1305   : > { %v18451_v15 = vpop.eup %18450  ;;  %v13736_v13 = vmul.f32 1.442695, %v13725_v49 }
0x1306   : > { %v13712_v26 = vpop.xlane.xlu0 %13711  ;;  %v13746_v62 = vsel %vm1413_vm0, %v18451_v15, 0.0 }
0x1307   : > { %18456 = vpow2.f32 %v13736_v13  ;;  %v13726_v22 = vsub.f32 %v21070_v42, %v13712_v26  ;;  %13747 = vadd.xlane.f32.xlu0 %v13746_v62 }
0x1308   : > { %v13715_v54 = vpop.xlane.xlu1 %13714 }
0x1309   : > { %v18453_v2 = vpop.eup %18452  ;;  %v13738_v24 = vmul.f32 1.442695, %v13726_v22  ;;  %v13727_v28 = vsub.f32 %v21076_v43, %v13715_v54 }
0x130a   : > { %v13749_v18 = vsel %vm1413_vm0, %v18453_v2, 0.0 }
0x130b   : > { %18458 = vpow2.f32 %v13738_v24  ;;  %v13740_v20 = vmul.f32 1.442695, %v13727_v28  ;;  %13750 = vadd.xlane.f32.xlu1 %v13749_v18 }
0x130d   : > { %v18455_v61 = vpop.eup %18454  ;;  %18460 = vpow2.f32 %v13740_v20 }
0x130e   : > { %v13718_v38 = vpop.xlane.xlu0 %13717  ;;  %v13752_v0 = vsel %vm1413_vm0, %v18455_v61, 0.0 }
0x130f   : > { %v13728_v37 = vsub.f32 %v21082_v59, %v13718_v38  ;;  %13753 = vadd.xlane.f32.xlu0 %v13752_v0 }
0x1310   : > { %v13721_v42 = vpop.xlane.xlu1 %13720 }
0x1311   : > { %v18457_v44 = vpop.eup %18456  ;;  %v13742_v35 = vmul.f32 1.442695, %v13728_v37  ;;  %v13729_v29 = vsub.f32 %v21088_v6, %v13721_v42 }
0x1312   : > { %v13755_v43 = vsel %vm1413_vm0, %v18457_v44, 0.0 }
0x1313   : > { %18462 = vpow2.f32 %v13742_v35  ;;  %v13744_v56 = vmul.f32 1.442695, %v13729_v29  ;;  %13756 = vadd.xlane.f32.xlu1 %v13755_v43 }
0x1315   : > { %v18459_v63 = vpop.eup %18458  ;;  %18464 = vpow2.f32 %v13744_v56 }
0x1316   : > { %v13758_v33 = vsel %vm1413_vm0, %v18459_v63, 0.0 }
0x1317   : > { %v18461_v3 = vpop.eup %18460  ;;  %13759 = vadd.xlane.f32.xlu0 %v13758_v33 }
0x1318   : > { %v13761_v11 = vsel %vm1413_vm0, %v18461_v3, 0.0 }
0x1319   : > { %13762 = vadd.xlane.f32.xlu1 %v13761_v11 }
0x131d   : > { %v18463_v59 = vpop.eup %18462 }
0x131e   : > { %v13764_v27 = vsel %vm1413_vm0, %v18463_v59, 0.0 }
0x131f   : > { %v18465_v12 = vpop.eup %18464  ;;  %13765 = vadd.xlane.f32.xlu0 %v13764_v27 }
0x1320   : > { %v13767_v6 = vsel %vm1413_vm0, %v18465_v12, 0.0 }
0x1321   : > { %13768 = vadd.xlane.f32.xlu1 %v13767_v6 }
0x1394   : > { %v13748_v9 = vpop.xlane.xlu0 %13747 }
0x1395   : > { %18466 = vrcp.f32 %v13748_v9 }
0x1398   : > { %v13751_v14 = vpop.xlane.xlu1 %13750 }
0x1399   : > { %18468 = vrcp.f32 %v13751_v14 }
0x139c   : > { %v13754_v48 = vpop.xlane.xlu0 %13753 }
0x139d   : > { %18470 = vrcp.f32 %v13754_v48 }
0x139f   : > { %v18467_v1 = vpop.eup %18466 }
0x13a0   : > { %v13757_v23 = vpop.xlane.xlu1 %13756  ;;  %v13778_v55 = vmul.f32 %v18467_v1, %v18451_v15 }
0x13a1   : > { %18472 = vrcp.f32 %v13757_v23 }
0x13a2   : > { %v13793_v16 = vmul.f32 %v15512_v50, %v13778_v55 }
0x13a3   : > { %v18469_v19 = vpop.eup %18468 }
0x13a4   : > { %v13760_v60 = vpop.xlane.xlu0 %13759  ;;  %v13801_v40 = vsel %vm1413_vm0, %v13793_v16, 0.0  ;;  %v13779_v57 = vmul.f32 %v18469_v19, %v18453_v2 }
0x13a5   : > { %18474 = vrcp.f32 %v13760_v60  ;;  %13802 = vadd.xlane.f32.xlu0 %v13801_v40 }
0x13a6   : > { %v13763_v34 = vpop.xlane.xlu1 %13762  ;;  %v13794_v32 = vmul.f32 %v15512_v50, %v13779_v57 }
0x13a7   : > { %v18471_v39 = vpop.eup %18470  ;;  %18476 = vrcp.f32 %v13763_v34 }
0x13a8   : > { %v13804_v8 = vsel %vm1413_vm0, %v13794_v32, 0.0  ;;  %v13780_v36 = vmul.f32 %v18471_v39, %v18455_v61 }
0x13a9   : > { %13805 = vadd.xlane.f32.xlu1 %v13804_v8 }
0x13aa   : > { %v13795_v51 = vmul.f32 %v15512_v50, %v13780_v36 }
0x13ab   : > { %v18473_v52 = vpop.eup %18472 }
0x13ac   : > { %v13766_v45 = vpop.xlane.xlu0 %13765  ;;  %v13807_v7 = vsel %vm1413_vm0, %v13795_v51, 0.0  ;;  %v13781_v41 = vmul.f32 %v18473_v52, %v18457_v44 }
0x13ad   : > { %18478 = vrcp.f32 %v13766_v45  ;;  %13808 = vadd.xlane.f32.xlu0 %v13807_v7 }
0x13ae   : > { %v13769_v30 = vpop.xlane.xlu1 %13768  ;;  %v13796_v21 = vmul.f32 %v15512_v50, %v13781_v41 }
0x13af   : > { %v18475_v58 = vpop.eup %18474  ;;  %18480 = vrcp.f32 %v13769_v30 }
0x13b0   : > { %v13810_v25 = vsel %vm1413_vm0, %v13796_v21, 0.0  ;;  %v13782_v4 = vmul.f32 %v18475_v58, %v18459_v63 }
0x13b1   : > { %v18477_v46 = vpop.eup %18476  ;;  %13811 = vadd.xlane.f32.xlu1 %v13810_v25 }
0x13b2   : > { %v13797_v5 = vmul.f32 %v15512_v50, %v13782_v4  ;;  %v13783_v47 = vmul.f32 %v18477_v46, %v18461_v3 }
0x13b4   : > { %v13813_v10 = vsel %vm1413_vm0, %v13797_v5, 0.0  ;;  %v13798_v31 = vmul.f32 %v15512_v50, %v13783_v47 }
0x13b5   : > { %13814 = vadd.xlane.f32.xlu0 %v13813_v10 }
0x13b6   : > { %v13816_v53 = vsel %vm1413_vm0, %v13798_v31, 0.0 }
0x13b7   : > { %v18479_v17 = vpop.eup %18478  ;;  %13817 = vadd.xlane.f32.xlu1 %v13816_v53 }
0x13b8   : > { %v13784_v49 = vmul.f32 %v18479_v17, %v18463_v59 }
0x13b9   : > { %v18481_v15 = vpop.eup %18480 }
0x13ba   : > { %v13799_v13 = vmul.f32 %v15512_v50, %v13784_v49  ;;  %v13785_v26 = vmul.f32 %v18481_v15, %v18465_v12 }
0x13bc   : > { %v13819_v62 = vsel %vm1413_vm0, %v13799_v13, 0.0  ;;  %v13800_v22 = vmul.f32 %v15512_v50, %v13785_v26 }
0x13bd   : > { %13820 = vadd.xlane.f32.xlu0 %v13819_v62 }
0x13be   : > { %v13822_v54 = vsel %vm1413_vm0, %v13800_v22, 0.0 }
0x13bf   : > { %13823 = vadd.xlane.f32.xlu1 %v13822_v54 }
0x1432   : > { %v13803_v2 = vpop.xlane.xlu0 %13802 }
0x1433   : > { %13826 = vst.msk [vmem:[%s857_s24] sm:$0xff] %vm13825_vm3, %v13803_v2 }
0x1436   : > { %v13806_v24 = vpop.xlane.xlu1 %13805 }
0x1437   : > { %13827 = vst.msk [vmem:[%s857_s24 + $0x8] sm:$0xff] %vm13825_vm3, %v13806_v24 }
0x143a   : > { %v13809_v28 = vpop.xlane.xlu0 %13808 }
0x143b   : > { %13828 = vst.msk [vmem:[%s857_s24 + $0x10] sm:$0xff] %vm13825_vm3, %v13809_v28 }
0x143e   : > { %v13812_v18 = vpop.xlane.xlu1 %13811 }
0x143f   : > { %13829 = vst.msk [vmem:[%s857_s24 + $0x18] sm:$0xff] %vm13825_vm3, %v13812_v18 }
0x1442   : > { %v13815_v20 = vpop.xlane.xlu0 %13814 }
0x1443   : > { %13830 = vst.msk [vmem:[%s857_s24 + $0x20] sm:$0xff] %vm13825_vm3, %v13815_v20 }
0x1444   : > { %v13818_v61 = vpop.xlane.xlu1 %13817 }
0x1445   : > { %13831 = vst.msk [vmem:[%s857_s24 + $0x28] sm:$0xff] %vm13825_vm3, %v13818_v61 }
0x144a   : > { %v13821_v38 = vpop.xlane.xlu0 %13820 }
0x144b   : > { %13832 = vst.msk [vmem:[%s857_s24 + $0x30] sm:$0xff] %vm13825_vm3, %v13821_v38 }
0x144c   : > { %v13824_v0 = vpop.xlane.xlu1 %13823 }
0x144d   : > { %13833 = vst.msk [vmem:[%s857_s24 + $0x38] sm:$0xff] %vm13825_vm3, %v13824_v0 }
0x144e PF: > { %p38_p3 = scmp.ge.s32.totalorder %s19451_s4, 4   ;;  %s21255_s2 = smov %s18958_s25 }
0x144f   : > { %s21256_s25 = smov %s18962_s26  ;;  %s21257_s26 = smov %s19463_s0 }
0x1450   : > { %s21258_s27 = smov %s19451_s4  ;;  %40 = sbr.rel (!%p38_p3) target bundleno = 24 (0x18), region = 216 }
0x1457   :  { %13855 = vsyncpa [#allocation4], 1 }
0x1458   :  { %13857 = vsyncpa [#allocation4 + $0x1], 1 }
0x1459   :  { %13858 = vsyncpa [#allocation6], 1 }
0x145a   :  { %13859 = vsyncpa [#allocation9], 1 }
0x145b   :  { %13860 = vsyncpa [#allocation12], 1 }
0x145c   :  { %13861 = vsyncpa [#allocation15], 1 }
0x145d   :  { %13862 = vsyncpa [#allocation18], 1 }
0x145e   :  { %13863 = vsyncpa [#allocation21], 1 }
0x145f   :  { %13864 = vsyncpa [#allocation24], 1 }

</bundles_post_ra>
